<compile_context>
chip_gen: v7x
topology: tpu7x:2x2x1
jax: 0.10.0
libtpu: 0.0.40
codegen_flags: <defaults>
</compile_context>

<pallas_src>
import functools
import math

import jax
import jax.numpy as jnp
from jax.experimental import pallas as pl
from jax.experimental.pallas import tpu as pltpu

# ----------------------------- configuration --------------------------------
N_CLS = 4          # number of classes
N_CTX_TEXT = 4     # learnable text context tokens
N_CTX_VISION = 4   # learnable vision context tokens (deep VPT prompt length)
SEQ_LEN = 16       # tokenized prompt length (CLIP uses 77; small here)
TEXT_DIM = 64      # text transformer width (ctx_dim)
VIS_DIM = 64       # vision transformer width
EMBED_DIM = 64     # joint embedding dim
N_HEADS = 4
TEXT_LAYERS = 3
VIS_LAYERS = 3
DEEP_LAYERS = 11   # VPT_shallow prompts on resblocks 1..11 (reg loss loop)
IMG_SIZE = 32
PATCH = 8
IN_CH = 3


# --------------------------- BlockSpec helpers ------------------------------
def _rep_spec(a):
    """Whole array, same block at every grid step (weights)."""
    zeros = (0,) * a.ndim
    return pl.BlockSpec(a.shape, lambda i, _z=zeros: _z)


def _batched_spec(a):
    """One slice along the leading (batch/class) axis per grid step."""
    rest = (0,) * (a.ndim - 1)
    return pl.BlockSpec((1,) + tuple(a.shape[1:]), lambda i, _r=rest: (i,) + _r)


# ------------------------ in-kernel building blocks --------------------------
def _layer_norm(x, g, b, eps=1e-5):
    mu = jnp.mean(x, axis=-1, keepdims=True)
    xc = x - mu
    var = jnp.mean(xc * xc, axis=-1, keepdims=True)
    return xc * jax.lax.rsqrt(var + eps) * g + b


def _transformer(x, mask, n_layers, n_heads,
                 ln1_g, ln1_b, in_w, in_b, out_w, out_b,
                 ln2_g, ln2_b, fc_w, fc_b, pj_w, pj_b):
    """CLIP residual-attention stack on a single sample, fully in VMEM.

    x: (S, D) activations.  Per-layer weights are Refs with leading L dim.
    Heads are split with static lane slices of the (S, 3D) QKV slab.
    """
    S, D = x.shape
    Dh = D // n_heads
    scale = 1.0 / math.sqrt(Dh)
    for l in range(n_layers):
        # --- multi-head self-attention ---
        h = _layer_norm(x, ln1_g[l][None, :], ln1_b[l][None, :])
        qkv = jnp.dot(h, in_w[l], preferred_element_type=jnp.float32)
        qkv = qkv + in_b[l][None, :]                       # (S, 3D)
        heads = []
        for hh in range(n_heads):
            q = qkv[:, hh * Dh:(hh + 1) * Dh]
            k = qkv[:, D + hh * Dh:D + (hh + 1) * Dh]
            v = qkv[:, 2 * D + hh * Dh:2 * D + (hh + 1) * Dh]
            # q @ k^T without materializing a transpose
            s = jax.lax.dot_general(q, k, (((1,), (1,)), ((), ())),
                                    preferred_element_type=jnp.float32)
            s = s * scale
            if mask is not None:
                s = s + mask
            s = s - jnp.max(s, axis=-1, keepdims=True)
            p = jnp.exp(s)
            p = p * pl.reciprocal(jnp.sum(p, axis=-1, keepdims=True),
                                  approx=True)
            heads.append(jnp.dot(p, v, preferred_element_type=jnp.float32))
        attn = jnp.concatenate(heads, axis=-1)             # (S, D)
        attn = jnp.dot(attn, out_w[l], preferred_element_type=jnp.float32)
        attn = attn + out_b[l][None, :]
        x = x + attn
        # --- MLP (QuickGELU) ---
        h = _layer_norm(x, ln2_g[l][None, :], ln2_b[l][None, :])
        h = jnp.dot(h, fc_w[l], preferred_element_type=jnp.float32)
        h = h + fc_b[l][None, :]
        h = h * jax.nn.sigmoid(1.702 * h)                  # QuickGELU
        h = jnp.dot(h, pj_w[l], preferred_element_type=jnp.float32)
        h = h + pj_b[l][None, :]
        x = x + h
    return x


# --------------------------- fused encoder kernels ---------------------------
def _text_kernel(prompts_ref, pos_ref, eot_ref,
                 ln1_g, ln1_b, in_w, in_b, out_w, out_b,
                 ln2_g, ln2_b, fc_w, fc_b, pj_w, pj_b,
                 lnf_g, lnf_b, tproj_ref, o_ref, *, n_layers, n_heads):
    S, D = pos_ref.shape
    x = prompts_ref[0] + pos_ref[...]                      # (S, D)
    # causal additive mask built in-kernel (no HBM mask operand)
    r = jax.lax.broadcasted_iota(jnp.int32, (S, S), 0)
    c = jax.lax.broadcasted_iota(jnp.int32, (S, S), 1)
    mask = jnp.where(c > r, jnp.float32(-1e9), jnp.float32(0.0))
    x = _transformer(x, mask, n_layers, n_heads,
                     ln1_g, ln1_b, in_w, in_b, out_w, out_b,
                     ln2_g, ln2_b, fc_w, fc_b, pj_w, pj_b)
    # EOT token select via one-hot matvec (LN commutes with per-row select)
    x_eot = jnp.dot(eot_ref[0], x, preferred_element_type=jnp.float32)  # (1, D)
    x_eot = _layer_norm(x_eot, lnf_g[...], lnf_b[...])
    o_ref[0] = jnp.dot(x_eot, tproj_ref[...],
                       preferred_element_type=jnp.float32)              # (1, E)


def _vision_kernel(patch_ref, conv_w_ref, cls_ref, pos_ref,
                   lnpre_g, lnpre_b,
                   ln1_g, ln1_b, in_w, in_b, out_w, out_b,
                   ln2_g, ln2_b, fc_w, fc_b, pj_w, pj_b,
                   lnpost_g, lnpost_b, proj_ref, o_ref, *, n_layers, n_heads):
    # patch embedding (conv with kernel=stride=PATCH, no bias) as a matmul
    x_p = jnp.dot(patch_ref[0], conv_w_ref[...],
                  preferred_element_type=jnp.float32)      # (n_patch, D)
    x = jnp.concatenate([cls_ref[...], x_p], axis=0)       # (1+n_patch, D)
    x = x + pos_ref[...]
    x = _layer_norm(x, lnpre_g[...], lnpre_b[...])
    x = _transformer(x, None, n_layers, n_heads,
                     ln1_g, ln1_b, in_w, in_b, out_w, out_b,
                     ln2_g, ln2_b, fc_w, fc_b, pj_w, pj_b)
    x0 = _layer_norm(x[0:1, :], lnpost_g[...], lnpost_b[...])
    o_ref[0] = jnp.dot(x0, proj_ref[...],
                       preferred_element_type=jnp.float32)              # (1, E)


def text_encoder(prompts, eot_onehot, tp):
    """prompts: (n_cls, S, D); eot_onehot: (n_cls, S). -> (n_cls, E)."""
    n_cls, S, D = prompts.shape
    E = tp["text_projection"].shape[1]
    blk = tp["blocks"]
    eot = eot_onehot.reshape(n_cls, 1, S).astype(jnp.float32)
    args = (prompts.astype(jnp.float32), tp["pos_emb"], eot,
            blk["ln1_g"], blk["ln1_b"], blk["in_w"], blk["in_b"],
            blk["out_w"], blk["out_b"], blk["ln2_g"], blk["ln2_b"],
            blk["fc_w"], blk["fc_b"], blk["pj_w"], blk["pj_b"],
            tp["lnf_g"].reshape(1, D), tp["lnf_b"].reshape(1, D),
            tp["text_projection"])
    in_specs = ([_batched_spec(args[0]), _rep_spec(args[1]),
                 _batched_spec(args[2])] + [_rep_spec(a) for a in args[3:]])
    out = pl.pallas_call(
        functools.partial(_text_kernel, n_layers=TEXT_LAYERS, n_heads=N_HEADS),
        out_shape=jax.ShapeDtypeStruct((n_cls, 1, E), jnp.float32),
        grid=(n_cls,),
        in_specs=in_specs,
        out_specs=pl.BlockSpec((1, 1, E), lambda i: (i, 0, 0)),
        compiler_params=pltpu.CompilerParams(
            dimension_semantics=("parallel",)),
    )(*args)
    return out.reshape(n_cls, E)


def image_encoder(image, vp):
    """image: (B, C, H, W) NCHW. -> (B, E)."""
    B, C, H, W = image.shape
    p = PATCH
    gh, gw = H // p, W // p
    D = vp["proj"].shape[0]
    E = vp["proj"].shape[1]
    # patchify in XLA (pure layout): (B, n_patch, C*p*p)
    patches = image.reshape(B, C, gh, p, gw, p).transpose(0, 2, 4, 1, 3, 5)
    patches = patches.reshape(B, gh * gw, C * p * p).astype(jnp.float32)
    blk = vp["blocks"]
    args = (patches, vp["conv_w"], vp["class_emb"].reshape(1, D),
            vp["pos_emb"],
            vp["ln_pre_g"].reshape(1, D), vp["ln_pre_b"].reshape(1, D),
            blk["ln1_g"], blk["ln1_b"], blk["in_w"], blk["in_b"],
            blk["out_w"], blk["out_b"], blk["ln2_g"], blk["ln2_b"],
            blk["fc_w"], blk["fc_b"], blk["pj_w"], blk["pj_b"],
            vp["ln_post_g"].reshape(1, D), vp["ln_post_b"].reshape(1, D),
            vp["proj"])
    in_specs = [_batched_spec(args[0])] + [_rep_spec(a) for a in args[1:]]
    out = pl.pallas_call(
        functools.partial(_vision_kernel, n_layers=VIS_LAYERS, n_heads=N_HEADS),
        out_shape=jax.ShapeDtypeStruct((B, 1, E), jnp.float32),
        grid=(B,),
        in_specs=in_specs,
        out_specs=pl.BlockSpec((1, 1, E), lambda i: (i, 0, 0)),
        compiler_params=pltpu.CompilerParams(
            dimension_semantics=("parallel",)),
    )(*args)
    return out.reshape(B, E)


# ------------------------------ logits kernel --------------------------------
def _logits_kernel(img_ref, txt_ref, scale_ref, o_ref):
    img = img_ref[...]
    txt = txt_ref[...]
    img = img * jax.lax.rsqrt(jnp.sum(img * img, axis=-1, keepdims=True) + 1e-12)
    txt = txt * jax.lax.rsqrt(jnp.sum(txt * txt, axis=-1, keepdims=True) + 1e-12)
    o_ref[...] = scale_ref[0, 0] * jax.lax.dot_general(
        img, txt, (((1,), (1,)), ((), ())), preferred_element_type=jnp.float32)


def pallas_clip_logits(image_features, text_features, logit_scale):
    B, D = image_features.shape
    C, _ = text_features.shape
    scale = jnp.asarray(logit_scale, jnp.float32).reshape(1, 1)
    return pl.pallas_call(
        _logits_kernel,
        out_shape=jax.ShapeDtypeStruct((B, C), jnp.float32),
        grid=(1,),
        in_specs=[
            pl.BlockSpec((B, D), lambda i: (0, 0)),
            pl.BlockSpec((C, D), lambda i: (0, 0)),
            pl.BlockSpec(memory_space=pltpu.MemorySpace.SMEM),
        ],
        out_specs=pl.BlockSpec((B, C), lambda i: (0, 0)),
    )(image_features.astype(jnp.float32),
      text_features.astype(jnp.float32), scale)


# ------------------------ prompt-shift regularizer ---------------------------
def _gram_kernel(p_ref, o_ref):
    # ||P^T P||_F == ||P P^T||_F  -> compute the tiny (n_ctx x n_ctx) gram.
    p = p_ref[...]                                        # (L2, n, D)
    g = jnp.einsum('lnd,lmd->lnm', p, p, preferred_element_type=jnp.float32)
    sq = jnp.sum(g * g, axis=-1, keepdims=True)           # (L2, n, 1)
    o_ref[...] = jnp.sqrt(jnp.sum(sq, axis=1, keepdims=True))   # (L2, 1, 1)


def pallas_prompt_gram_norms(prompts):
    """prompts: (L2, n_ctx, D) -> (L2,) of ||P_l^T P_l||_F (one fused call)."""
    L2, n, D = prompts.shape
    out = pl.pallas_call(
        _gram_kernel,
        out_shape=jax.ShapeDtypeStruct((L2, 1, 1), jnp.float32),
        grid=(1,),
        in_specs=[pl.BlockSpec((L2, n, D), lambda i: (0, 0, 0))],
        out_specs=pl.BlockSpec((L2, 1, 1), lambda i: (0, 0, 0)),
    )(prompts.astype(jnp.float32))
    return out.reshape(L2)


# ------------------------------ model forward --------------------------------
def prompt_learner_forward(plp):
    # VLPromptLearner.forward: [prefix | ctx | suffix] along the token axis.
    ctx = jnp.broadcast_to(plp["ctx"][None], (N_CLS, N_CTX_TEXT, TEXT_DIM))
    return jnp.concatenate([plp["token_prefix"], ctx, plp["token_suffix"]],
                           axis=1)


def custom_clip_forward(params, image, label=None, training=False,
                        init_norms=None):
    tokenized_prompts = params["tokenized_prompts"]
    logit_scale = jnp.exp(params["logit_scale"])
    prompts = prompt_learner_forward(params["prompt_learner"])
    eot_onehot = jax.nn.one_hot(jnp.argmax(tokenized_prompts, axis=-1),
                                tokenized_prompts.shape[-1], dtype=jnp.float32)

    text_features = text_encoder(prompts, eot_onehot, params["text"])
    image_features = image_encoder(image.astype(jnp.float32), params["visual"])
    logits = pallas_clip_logits(image_features, text_features, logit_scale)

    if not training:
        # reg_loss is unused at inference -> skip the gram-norm kernel.
        return logits

    # Prompt-shift regularizer over deep VPT prompts of resblocks 1..11,
    # text + vision fused into a single gram-norm kernel call.
    L = params["text_vpt"].shape[0]
    norms = pallas_prompt_gram_norms(
        jnp.concatenate([params["text_vpt"], params["vis_vpt"]], axis=0))
    text_norms, vis_norms = norms[:L], norms[L:]
    if init_norms is None:
        # First-forward behaviour (torch sets the buffers to current norms).
        init_text, init_vis = text_norms, vis_norms
    else:
        init_text, init_vis = init_norms
    reg_loss = jnp.sum((text_norms / init_text - vis_norms / init_vis) ** 2)

    logp = jax.nn.log_softmax(logits, axis=-1)
    ce = -jnp.mean(logp[jnp.arange(logits.shape[0]), label])
    return ce + reg_loss


# ----------------------------- parameter setup -------------------------------
def _normal(key, shape, std=0.02):
    return std * jax.random.normal(key, shape, dtype=jnp.float32)


def init_block_stack(key, L, D):
    ks = jax.random.split(key, 4)
    return {
        "ln1_g": jnp.ones((L, D), jnp.float32),
        "ln1_b": jnp.zeros((L, D), jnp.float32),
        "ln2_g": jnp.ones((L, D), jnp.float32),
        "ln2_b": jnp.zeros((L, D), jnp.float32),
        "in_w": _normal(ks[0], (L, D, 3 * D)),
        "in_b": jnp.zeros((L, 3 * D), jnp.float32),
        "out_w": _normal(ks[1], (L, D, D)),
        "out_b": jnp.zeros((L, D), jnp.float32),
        "fc_w": _normal(ks[2], (L, D, 4 * D)),
        "fc_b": jnp.zeros((L, 4 * D), jnp.float32),
        "pj_w": _normal(ks[3], (L, 4 * D, D)),
        "pj_b": jnp.zeros((L, D), jnp.float32),
    }


def init_params(key):
    keys = iter(jax.random.split(key, 16))
    n_patch = (IMG_SIZE // PATCH) ** 2

    # synthetic tokenized prompts (SOT=49406, EOT=49407 is the max id -> argmax)
    name_lens = [1, 2, 3, 2]
    tok = []
    for i, nl in enumerate(name_lens):
        row = ([49406] + [400 + j for j in range(N_CTX_TEXT)]
               + [1000 + i] * nl + [49407])
        row = row + [0] * (SEQ_LEN - len(row))
        tok.append(row[:SEQ_LEN])
    tokenized_prompts = jnp.array(tok, jnp.int32)

    return {
        "tokenized_prompts": tokenized_prompts,
        "logit_scale": jnp.asarray(math.log(1.0 / 0.07), jnp.float32),
        "prompt_learner": {
            "ctx": _normal(next(keys), (N_CTX_TEXT, TEXT_DIM)),
            "token_prefix": _normal(next(keys), (N_CLS, 1, TEXT_DIM)),
            "token_suffix": _normal(next(keys),
                                    (N_CLS, SEQ_LEN - 1 - N_CTX_TEXT, TEXT_DIM)),
        },
        "text": {
            "pos_emb": _normal(next(keys), (SEQ_LEN, TEXT_DIM)),
            "blocks": init_block_stack(next(keys), TEXT_LAYERS, TEXT_DIM),
            "lnf_g": jnp.ones((TEXT_DIM,), jnp.float32),
            "lnf_b": jnp.zeros((TEXT_DIM,), jnp.float32),
            "text_projection": _normal(next(keys), (TEXT_DIM, EMBED_DIM)),
        },
        "visual": {
            "conv_w": _normal(next(keys), (IN_CH * PATCH * PATCH, VIS_DIM)),
            "class_emb": _normal(next(keys), (VIS_DIM,)),
            "pos_emb": _normal(next(keys), (1 + n_patch, VIS_DIM)),
            "ln_pre_g": jnp.ones((VIS_DIM,), jnp.float32),
            "ln_pre_b": jnp.zeros((VIS_DIM,), jnp.float32),
            "blocks": init_block_stack(next(keys), VIS_LAYERS, VIS_DIM),
            "ln_post_g": jnp.ones((VIS_DIM,), jnp.float32),
            "ln_post_b": jnp.zeros((VIS_DIM,), jnp.float32),
            "proj": _normal(next(keys), (VIS_DIM, EMBED_DIM)),
        },
        "text_vpt": _normal(next(keys), (DEEP_LAYERS, N_CTX_TEXT, TEXT_DIM)),
        "vis_vpt": _normal(next(keys), (DEEP_LAYERS, N_CTX_VISION, VIS_DIM)),
    }


# ---------------------------------- main --------------------------------------
if __name__ == "__main__":
    key = jax.random.PRNGKey(0)
    k_params, k_img = jax.random.split(key)
    params = init_params(k_params)
    image = jax.random.normal(k_img, (2, IN_CH, IMG_SIZE, IMG_SIZE),
                              dtype=jnp.float32)   # NCHW, like PyTorch

    fwd = jax.jit(lambda p, img: custom_clip_forward(p, img, training=False))
    logits = fwd(params, image)
    jax.block_until_ready(logits)
    assert logits.shape == (2, N_CLS)
    assert bool(jnp.all(jnp.isfinite(logits)))
    print("KERNEL_OK")
</pallas_src>

<mosaic_0001>
module attributes {stable_mosaic.version = 11 : i64} {
  func.func @_vision_kernel(%arg0: i32, %arg1: memref<1x16x192xf32, #tpu.memory_space<vmem>>, %arg2: memref<192x64xf32, #tpu.memory_space<vmem>>, %arg3: memref<1x64xf32, #tpu.memory_space<vmem>>, %arg4: memref<17x64xf32, #tpu.memory_space<vmem>>, %arg5: memref<1x64xf32, #tpu.memory_space<vmem>>, %arg6: memref<1x64xf32, #tpu.memory_space<vmem>>, %arg7: memref<3x64xf32, #tpu.memory_space<vmem>>, %arg8: memref<3x64xf32, #tpu.memory_space<vmem>>, %arg9: memref<3x64x192xf32, #tpu.memory_space<vmem>>, %arg10: memref<3x192xf32, #tpu.memory_space<vmem>>, %arg11: memref<3x64x64xf32, #tpu.memory_space<vmem>>, %arg12: memref<3x64xf32, #tpu.memory_space<vmem>>, %arg13: memref<3x64xf32, #tpu.memory_space<vmem>>, %arg14: memref<3x64xf32, #tpu.memory_space<vmem>>, %arg15: memref<3x64x256xf32, #tpu.memory_space<vmem>>, %arg16: memref<3x256xf32, #tpu.memory_space<vmem>>, %arg17: memref<3x256x64xf32, #tpu.memory_space<vmem>>, %arg18: memref<3x64xf32, #tpu.memory_space<vmem>>, %arg19: memref<1x64xf32, #tpu.memory_space<vmem>>, %arg20: memref<1x64xf32, #tpu.memory_space<vmem>>, %arg21: memref<64x64xf32, #tpu.memory_space<vmem>>, %arg22: memref<1x1x64xf32, #tpu.memory_space<vmem>>) attributes {dimension_semantics = [#tpu.dimension_semantics<parallel>], iteration_bounds = array<i64: 2>, scalar_prefetch = 0 : i64, scratch_operands = 0 : i64, tpu.core_type = #tpu.core_type<tc>, window_params = [{transform_indices = @transform_0, window_bounds = array<i64: 1, 16, 192>}, {pipeline_mode = #tpu.pipeline_mode<synchronous>, transform_indices = @transform_1, window_bounds = array<i64: 192, 64>}, {pipeline_mode = #tpu.pipeline_mode<synchronous>, transform_indices = @transform_2, window_bounds = array<i64: 1, 64>}, {pipeline_mode = #tpu.pipeline_mode<synchronous>, transform_indices = @transform_3, window_bounds = array<i64: 17, 64>}, {pipeline_mode = #tpu.pipeline_mode<synchronous>, transform_indices = @transform_4, window_bounds = array<i64: 1, 64>}, {pipeline_mode = #tpu.pipeline_mode<synchronous>, transform_indices = @transform_5, window_bounds = array<i64: 1, 64>}, {pipeline_mode = #tpu.pipeline_mode<synchronous>, transform_indices = @transform_6, window_bounds = array<i64: 3, 64>}, {pipeline_mode = #tpu.pipeline_mode<synchronous>, transform_indices = @transform_7, window_bounds = array<i64: 3, 64>}, {pipeline_mode = #tpu.pipeline_mode<synchronous>, transform_indices = @transform_8, window_bounds = array<i64: 3, 64, 192>}, {pipeline_mode = #tpu.pipeline_mode<synchronous>, transform_indices = @transform_9, window_bounds = array<i64: 3, 192>}, {pipeline_mode = #tpu.pipeline_mode<synchronous>, transform_indices = @transform_10, window_bounds = array<i64: 3, 64, 64>}, {pipeline_mode = #tpu.pipeline_mode<synchronous>, transform_indices = @transform_11, window_bounds = array<i64: 3, 64>}, {pipeline_mode = #tpu.pipeline_mode<synchronous>, transform_indices = @transform_12, window_bounds = array<i64: 3, 64>}, {pipeline_mode = #tpu.pipeline_mode<synchronous>, transform_indices = @transform_13, window_bounds = array<i64: 3, 64>}, {pipeline_mode = #tpu.pipeline_mode<synchronous>, transform_indices = @transform_14, window_bounds = array<i64: 3, 64, 256>}, {pipeline_mode = #tpu.pipeline_mode<synchronous>, transform_indices = @transform_15, window_bounds = array<i64: 3, 256>}, {pipeline_mode = #tpu.pipeline_mode<synchronous>, transform_indices = @transform_16, window_bounds = array<i64: 3, 256, 64>}, {pipeline_mode = #tpu.pipeline_mode<synchronous>, transform_indices = @transform_17, window_bounds = array<i64: 3, 64>}, {pipeline_mode = #tpu.pipeline_mode<synchronous>, transform_indices = @transform_18, window_bounds = array<i64: 1, 64>}, {pipeline_mode = #tpu.pipeline_mode<synchronous>, transform_indices = @transform_19, window_bounds = array<i64: 1, 64>}, {pipeline_mode = #tpu.pipeline_mode<synchronous>, transform_indices = @transform_20, window_bounds = array<i64: 64, 64>}, {transform_indices = @transform_21, window_bounds = array<i64: 1, 1, 64>}]} {
    %c0 = arith.constant 0 : index
    %c0_0 = arith.constant 0 : index
    %c0_1 = arith.constant 0 : index
    %0 = vector.load %arg1[%c0, %c0_0, %c0_1] : memref<1x16x192xf32, #tpu.memory_space<vmem>>, vector<1x16x192xf32>
    %1 = vector.shape_cast %0 : vector<1x16x192xf32> to vector<16x192xf32>
    %c0_2 = arith.constant 0 : index
    %c0_3 = arith.constant 0 : index
    %2 = vector.load %arg2[%c0_2, %c0_3] : memref<192x64xf32, #tpu.memory_space<vmem>>, vector<192x64xf32>
    %cst = arith.constant dense<0.000000e+00> : vector<16x64xf32>
    %3 = tpu.matmul %1, %2, %cst {dimension_numbers = #tpu.dot_dimension_numbers<[1], [0], [0], [1], [0, 0, 1, 1], [], []>} : vector<16x192xf32>, vector<192x64xf32>, vector<16x64xf32> -> vector<16x64xf32>
    %c0_4 = arith.constant 0 : index
    %c0_5 = arith.constant 0 : index
    %4 = vector.load %arg3[%c0_4, %c0_5] : memref<1x64xf32, #tpu.memory_space<vmem>>, vector<1x64xf32>
    %5 = tpu.concatenate %4, %3 in 0 : vector<1x64xf32>, vector<16x64xf32> -> vector<17x64xf32>
    %c0_6 = arith.constant 0 : index
    %c0_7 = arith.constant 0 : index
    %6 = vector.load %arg4[%c0_6, %c0_7] : memref<17x64xf32, #tpu.memory_space<vmem>>, vector<17x64xf32>
    %7 = arith.addf %5, %6 : vector<17x64xf32>
    %c0_8 = arith.constant 0 : index
    %c0_9 = arith.constant 0 : index
    %8 = vector.load %arg5[%c0_8, %c0_9] : memref<1x64xf32, #tpu.memory_space<vmem>>, vector<1x64xf32>
    %c0_10 = arith.constant 0 : index
    %c0_11 = arith.constant 0 : index
    %9 = vector.load %arg6[%c0_10, %c0_11] : memref<1x64xf32, #tpu.memory_space<vmem>>, vector<1x64xf32>
    %cst_12 = arith.constant dense<0.000000e+00> : vector<17xf32>
    %10 = vector.multi_reduction <add>, %7, %cst_12 [1] : vector<17x64xf32> to vector<17xf32>
    %11 = vector.shape_cast %10 : vector<17xf32> to vector<17x1xf32>
    %cst_13 = arith.constant 6.400000e+01 : f32
    %12 = vector.broadcast %cst_13 : f32 to vector<17x1xf32>
    %13 = arith.divf %11, %12 : vector<17x1xf32>
    %14 = vector.broadcast %13 : vector<17x1xf32> to vector<17x64xf32>
    %15 = arith.subf %7, %14 : vector<17x64xf32>
    %16 = arith.mulf %15, %15 : vector<17x64xf32>
    %cst_14 = arith.constant dense<0.000000e+00> : vector<17xf32>
    %17 = vector.multi_reduction <add>, %16, %cst_14 [1] : vector<17x64xf32> to vector<17xf32>
    %18 = vector.shape_cast %17 : vector<17xf32> to vector<17x1xf32>
    %cst_15 = arith.constant 6.400000e+01 : f32
    %19 = vector.broadcast %cst_15 : f32 to vector<17x1xf32>
    %20 = arith.divf %18, %19 : vector<17x1xf32>
    %cst_16 = arith.constant 9.99999974E-6 : f32
    %21 = vector.broadcast %cst_16 : f32 to vector<17x1xf32>
    %22 = arith.addf %20, %21 : vector<17x1xf32>
    %23 = math.rsqrt %22 : vector<17x1xf32>
    %24 = vector.broadcast %23 : vector<17x1xf32> to vector<17x64xf32>
    %25 = arith.mulf %15, %24 : vector<17x64xf32>
    %26 = vector.broadcast %8 : vector<1x64xf32> to vector<17x64xf32>
    %27 = arith.mulf %25, %26 : vector<17x64xf32>
    %28 = vector.broadcast %9 : vector<1x64xf32> to vector<17x64xf32>
    %29 = arith.addf %27, %28 : vector<17x64xf32>
    %c0_17 = arith.constant 0 : index
    %c0_18 = arith.constant 0 : index
    %30 = vector.load %arg7[%c0_17, %c0_18] : memref<3x64xf32, #tpu.memory_space<vmem>>, vector<1x64xf32>
    %31 = vector.shape_cast %30 : vector<1x64xf32> to vector<64xf32>
    %32 = vector.shape_cast %31 : vector<64xf32> to vector<1x64xf32>
    %c0_19 = arith.constant 0 : index
    %c0_20 = arith.constant 0 : index
    %33 = vector.load %arg8[%c0_19, %c0_20] : memref<3x64xf32, #tpu.memory_space<vmem>>, vector<1x64xf32>
    %34 = vector.shape_cast %33 : vector<1x64xf32> to vector<64xf32>
    %35 = vector.shape_cast %34 : vector<64xf32> to vector<1x64xf32>
    %cst_21 = arith.constant dense<0.000000e+00> : vector<17xf32>
    %36 = vector.multi_reduction <add>, %29, %cst_21 [1] : vector<17x64xf32> to vector<17xf32>
    %37 = vector.shape_cast %36 : vector<17xf32> to vector<17x1xf32>
    %cst_22 = arith.constant 6.400000e+01 : f32
    %38 = vector.broadcast %cst_22 : f32 to vector<17x1xf32>
    %39 = arith.divf %37, %38 : vector<17x1xf32>
    %40 = vector.broadcast %39 : vector<17x1xf32> to vector<17x64xf32>
    %41 = arith.subf %29, %40 : vector<17x64xf32>
    %42 = arith.mulf %41, %41 : vector<17x64xf32>
    %cst_23 = arith.constant dense<0.000000e+00> : vector<17xf32>
    %43 = vector.multi_reduction <add>, %42, %cst_23 [1] : vector<17x64xf32> to vector<17xf32>
    %44 = vector.shape_cast %43 : vector<17xf32> to vector<17x1xf32>
    %cst_24 = arith.constant 6.400000e+01 : f32
    %45 = vector.broadcast %cst_24 : f32 to vector<17x1xf32>
    %46 = arith.divf %44, %45 : vector<17x1xf32>
    %cst_25 = arith.constant 9.99999974E-6 : f32
    %47 = vector.broadcast %cst_25 : f32 to vector<17x1xf32>
    %48 = arith.addf %46, %47 : vector<17x1xf32>
    %49 = math.rsqrt %48 : vector<17x1xf32>
    %50 = vector.broadcast %49 : vector<17x1xf32> to vector<17x64xf32>
    %51 = arith.mulf %41, %50 : vector<17x64xf32>
    %52 = vector.broadcast %32 : vector<1x64xf32> to vector<17x64xf32>
    %53 = arith.mulf %51, %52 : vector<17x64xf32>
    %54 = vector.broadcast %35 : vector<1x64xf32> to vector<17x64xf32>
    %55 = arith.addf %53, %54 : vector<17x64xf32>
    %c0_26 = arith.constant 0 : index
    %c0_27 = arith.constant 0 : index
    %c0_28 = arith.constant 0 : index
    %56 = vector.load %arg9[%c0_26, %c0_27, %c0_28] : memref<3x64x192xf32, #tpu.memory_space<vmem>>, vector<1x64x192xf32>
    %57 = vector.shape_cast %56 : vector<1x64x192xf32> to vector<64x192xf32>
    %cst_29 = arith.constant dense<0.000000e+00> : vector<17x192xf32>
    %58 = tpu.matmul %55, %57, %cst_29 {dimension_numbers = #tpu.dot_dimension_numbers<[1], [0], [0], [1], [0, 0, 1, 1], [], []>} : vector<17x64xf32>, vector<64x192xf32>, vector<17x192xf32> -> vector<17x192xf32>
    %c0_30 = arith.constant 0 : index
    %c0_31 = arith.constant 0 : index
    %59 = vector.load %arg10[%c0_30, %c0_31] : memref<3x192xf32, #tpu.memory_space<vmem>>, vector<1x192xf32>
    %60 = vector.shape_cast %59 : vector<1x192xf32> to vector<192xf32>
    %61 = vector.shape_cast %60 : vector<192xf32> to vector<1x192xf32>
    %62 = vector.broadcast %61 : vector<1x192xf32> to vector<17x192xf32>
    %63 = arith.addf %58, %62 : vector<17x192xf32>
    %64 = vector.extract_strided_slice %63 {offsets = [0, 0], sizes = [17, 16], strides = [1, 1]} : vector<17x192xf32> to vector<17x16xf32>
    %65 = vector.extract_strided_slice %63 {offsets = [0, 64], sizes = [17, 16], strides = [1, 1]} : vector<17x192xf32> to vector<17x16xf32>
    %66 = vector.extract_strided_slice %63 {offsets = [0, 128], sizes = [17, 16], strides = [1, 1]} : vector<17x192xf32> to vector<17x16xf32>
    %cst_32 = arith.constant dense<0.000000e+00> : vector<17x17xf32>
    %67 = tpu.matmul %64, %65, %cst_32 {dimension_numbers = #tpu.dot_dimension_numbers<[1], [1], [0], [0], [0, 0, 1, 0], [], []>} : vector<17x16xf32>, vector<17x16xf32>, vector<17x17xf32> -> vector<17x17xf32>
    %cst_33 = arith.constant 2.500000e-01 : f32
    %68 = vector.broadcast %cst_33 : f32 to vector<17x17xf32>
    %69 = arith.mulf %67, %68 : vector<17x17xf32>
    %cst_34 = arith.constant dense<0xFF800000> : vector<17xf32>
    %70 = vector.multi_reduction <maximumf>, %69, %cst_34 [1] : vector<17x17xf32> to vector<17xf32>
    %71 = vector.shape_cast %70 : vector<17xf32> to vector<17x1xf32>
    %72 = vector.broadcast %71 : vector<17x1xf32> to vector<17x17xf32>
    %73 = arith.subf %69, %72 : vector<17x17xf32>
    %74 = math.exp %73 : vector<17x17xf32>
    %cst_35 = arith.constant dense<0.000000e+00> : vector<17xf32>
    %75 = vector.multi_reduction <add>, %74, %cst_35 [1] : vector<17x17xf32> to vector<17xf32>
    %76 = vector.shape_cast %75 : vector<17xf32> to vector<17x1xf32>
    %77 = tpu.reciprocal %76 {approx = true} : vector<17x1xf32> -> vector<17x1xf32>
    %78 = vector.broadcast %77 : vector<17x1xf32> to vector<17x17xf32>
    %79 = arith.mulf %74, %78 : vector<17x17xf32>
    %cst_36 = arith.constant dense<0.000000e+00> : vector<17x16xf32>
    %80 = tpu.matmul %79, %66, %cst_36 {dimension_numbers = #tpu.dot_dimension_numbers<[1], [0], [0], [1], [0, 0, 1, 1], [], []>} : vector<17x17xf32>, vector<17x16xf32>, vector<17x16xf32> -> vector<17x16xf32>
    %81 = vector.extract_strided_slice %63 {offsets = [0, 16], sizes = [17, 16], strides = [1, 1]} : vector<17x192xf32> to vector<17x16xf32>
    %82 = vector.extract_strided_slice %63 {offsets = [0, 80], sizes = [17, 16], strides = [1, 1]} : vector<17x192xf32> to vector<17x16xf32>
    %83 = vector.extract_strided_slice %63 {offsets = [0, 144], sizes = [17, 16], strides = [1, 1]} : vector<17x192xf32> to vector<17x16xf32>
    %cst_37 = arith.constant dense<0.000000e+00> : vector<17x17xf32>
    %84 = tpu.matmul %81, %82, %cst_37 {dimension_numbers = #tpu.dot_dimension_numbers<[1], [1], [0], [0], [0, 0, 1, 0], [], []>} : vector<17x16xf32>, vector<17x16xf32>, vector<17x17xf32> -> vector<17x17xf32>
    %cst_38 = arith.constant 2.500000e-01 : f32
    %85 = vector.broadcast %cst_38 : f32 to vector<17x17xf32>
    %86 = arith.mulf %84, %85 : vector<17x17xf32>
    %cst_39 = arith.constant dense<0xFF800000> : vector<17xf32>
    %87 = vector.multi_reduction <maximumf>, %86, %cst_39 [1] : vector<17x17xf32> to vector<17xf32>
    %88 = vector.shape_cast %87 : vector<17xf32> to vector<17x1xf32>
    %89 = vector.broadcast %88 : vector<17x1xf32> to vector<17x17xf32>
    %90 = arith.subf %86, %89 : vector<17x17xf32>
    %91 = math.exp %90 : vector<17x17xf32>
    %cst_40 = arith.constant dense<0.000000e+00> : vector<17xf32>
    %92 = vector.multi_reduction <add>, %91, %cst_40 [1] : vector<17x17xf32> to vector<17xf32>
    %93 = vector.shape_cast %92 : vector<17xf32> to vector<17x1xf32>
    %94 = tpu.reciprocal %93 {approx = true} : vector<17x1xf32> -> vector<17x1xf32>
    %95 = vector.broadcast %94 : vector<17x1xf32> to vector<17x17xf32>
    %96 = arith.mulf %91, %95 : vector<17x17xf32>
    %cst_41 = arith.constant dense<0.000000e+00> : vector<17x16xf32>
    %97 = tpu.matmul %96, %83, %cst_41 {dimension_numbers = #tpu.dot_dimension_numbers<[1], [0], [0], [1], [0, 0, 1, 1], [], []>} : vector<17x17xf32>, vector<17x16xf32>, vector<17x16xf32> -> vector<17x16xf32>
    %98 = vector.extract_strided_slice %63 {offsets = [0, 32], sizes = [17, 16], strides = [1, 1]} : vector<17x192xf32> to vector<17x16xf32>
    %99 = vector.extract_strided_slice %63 {offsets = [0, 96], sizes = [17, 16], strides = [1, 1]} : vector<17x192xf32> to vector<17x16xf32>
    %100 = vector.extract_strided_slice %63 {offsets = [0, 160], sizes = [17, 16], strides = [1, 1]} : vector<17x192xf32> to vector<17x16xf32>
    %cst_42 = arith.constant dense<0.000000e+00> : vector<17x17xf32>
    %101 = tpu.matmul %98, %99, %cst_42 {dimension_numbers = #tpu.dot_dimension_numbers<[1], [1], [0], [0], [0, 0, 1, 0], [], []>} : vector<17x16xf32>, vector<17x16xf32>, vector<17x17xf32> -> vector<17x17xf32>
    %cst_43 = arith.constant 2.500000e-01 : f32
    %102 = vector.broadcast %cst_43 : f32 to vector<17x17xf32>
    %103 = arith.mulf %101, %102 : vector<17x17xf32>
    %cst_44 = arith.constant dense<0xFF800000> : vector<17xf32>
    %104 = vector.multi_reduction <maximumf>, %103, %cst_44 [1] : vector<17x17xf32> to vector<17xf32>
    %105 = vector.shape_cast %104 : vector<17xf32> to vector<17x1xf32>
    %106 = vector.broadcast %105 : vector<17x1xf32> to vector<17x17xf32>
    %107 = arith.subf %103, %106 : vector<17x17xf32>
    %108 = math.exp %107 : vector<17x17xf32>
    %cst_45 = arith.constant dense<0.000000e+00> : vector<17xf32>
    %109 = vector.multi_reduction <add>, %108, %cst_45 [1] : vector<17x17xf32> to vector<17xf32>
    %110 = vector.shape_cast %109 : vector<17xf32> to vector<17x1xf32>
    %111 = tpu.reciprocal %110 {approx = true} : vector<17x1xf32> -> vector<17x1xf32>
    %112 = vector.broadcast %111 : vector<17x1xf32> to vector<17x17xf32>
    %113 = arith.mulf %108, %112 : vector<17x17xf32>
    %cst_46 = arith.constant dense<0.000000e+00> : vector<17x16xf32>
    %114 = tpu.matmul %113, %100, %cst_46 {dimension_numbers = #tpu.dot_dimension_numbers<[1], [0], [0], [1], [0, 0, 1, 1], [], []>} : vector<17x17xf32>, vector<17x16xf32>, vector<17x16xf32> -> vector<17x16xf32>
    %115 = vector.extract_strided_slice %63 {offsets = [0, 48], sizes = [17, 16], strides = [1, 1]} : vector<17x192xf32> to vector<17x16xf32>
    %116 = vector.extract_strided_slice %63 {offsets = [0, 112], sizes = [17, 16], strides = [1, 1]} : vector<17x192xf32> to vector<17x16xf32>
    %117 = vector.extract_strided_slice %63 {offsets = [0, 176], sizes = [17, 16], strides = [1, 1]} : vector<17x192xf32> to vector<17x16xf32>
    %cst_47 = arith.constant dense<0.000000e+00> : vector<17x17xf32>
    %118 = tpu.matmul %115, %116, %cst_47 {dimension_numbers = #tpu.dot_dimension_numbers<[1], [1], [0], [0], [0, 0, 1, 0], [], []>} : vector<17x16xf32>, vector<17x16xf32>, vector<17x17xf32> -> vector<17x17xf32>
    %cst_48 = arith.constant 2.500000e-01 : f32
    %119 = vector.broadcast %cst_48 : f32 to vector<17x17xf32>
    %120 = arith.mulf %118, %119 : vector<17x17xf32>
    %cst_49 = arith.constant dense<0xFF800000> : vector<17xf32>
    %121 = vector.multi_reduction <maximumf>, %120, %cst_49 [1] : vector<17x17xf32> to vector<17xf32>
    %122 = vector.shape_cast %121 : vector<17xf32> to vector<17x1xf32>
    %123 = vector.broadcast %122 : vector<17x1xf32> to vector<17x17xf32>
    %124 = arith.subf %120, %123 : vector<17x17xf32>
    %125 = math.exp %124 : vector<17x17xf32>
    %cst_50 = arith.constant dense<0.000000e+00> : vector<17xf32>
    %126 = vector.multi_reduction <add>, %125, %cst_50 [1] : vector<17x17xf32> to vector<17xf32>
    %127 = vector.shape_cast %126 : vector<17xf32> to vector<17x1xf32>
    %128 = tpu.reciprocal %127 {approx = true} : vector<17x1xf32> -> vector<17x1xf32>
    %129 = vector.broadcast %128 : vector<17x1xf32> to vector<17x17xf32>
    %130 = arith.mulf %125, %129 : vector<17x17xf32>
    %cst_51 = arith.constant dense<0.000000e+00> : vector<17x16xf32>
    %131 = tpu.matmul %130, %117, %cst_51 {dimension_numbers = #tpu.dot_dimension_numbers<[1], [0], [0], [1], [0, 0, 1, 1], [], []>} : vector<17x17xf32>, vector<17x16xf32>, vector<17x16xf32> -> vector<17x16xf32>
    %132 = tpu.concatenate %80, %97, %114, %131 in 1 : vector<17x16xf32>, vector<17x16xf32>, vector<17x16xf32>, vector<17x16xf32> -> vector<17x64xf32>
    %c0_52 = arith.constant 0 : index
    %c0_53 = arith.constant 0 : index
    %c0_54 = arith.constant 0 : index
    %133 = vector.load %arg11[%c0_52, %c0_53, %c0_54] : memref<3x64x64xf32, #tpu.memory_space<vmem>>, vector<1x64x64xf32>
    %134 = vector.shape_cast %133 : vector<1x64x64xf32> to vector<64x64xf32>
    %cst_55 = arith.constant dense<0.000000e+00> : vector<17x64xf32>
    %135 = tpu.matmul %132, %134, %cst_55 {dimension_numbers = #tpu.dot_dimension_numbers<[1], [0], [0], [1], [0, 0, 1, 1], [], []>} : vector<17x64xf32>, vector<64x64xf32>, vector<17x64xf32> -> vector<17x64xf32>
    %c0_56 = arith.constant 0 : index
    %c0_57 = arith.constant 0 : index
    %136 = vector.load %arg12[%c0_56, %c0_57] : memref<3x64xf32, #tpu.memory_space<vmem>>, vector<1x64xf32>
    %137 = vector.shape_cast %136 : vector<1x64xf32> to vector<64xf32>
    %138 = vector.shape_cast %137 : vector<64xf32> to vector<1x64xf32>
    %139 = vector.broadcast %138 : vector<1x64xf32> to vector<17x64xf32>
    %140 = arith.addf %135, %139 : vector<17x64xf32>
    %141 = arith.addf %29, %140 : vector<17x64xf32>
    %c0_58 = arith.constant 0 : index
    %c0_59 = arith.constant 0 : index
    %142 = vector.load %arg13[%c0_58, %c0_59] : memref<3x64xf32, #tpu.memory_space<vmem>>, vector<1x64xf32>
    %143 = vector.shape_cast %142 : vector<1x64xf32> to vector<64xf32>
    %144 = vector.shape_cast %143 : vector<64xf32> to vector<1x64xf32>
    %c0_60 = arith.constant 0 : index
    %c0_61 = arith.constant 0 : index
    %145 = vector.load %arg14[%c0_60, %c0_61] : memref<3x64xf32, #tpu.memory_space<vmem>>, vector<1x64xf32>
    %146 = vector.shape_cast %145 : vector<1x64xf32> to vector<64xf32>
    %147 = vector.shape_cast %146 : vector<64xf32> to vector<1x64xf32>
    %cst_62 = arith.constant dense<0.000000e+00> : vector<17xf32>
    %148 = vector.multi_reduction <add>, %141, %cst_62 [1] : vector<17x64xf32> to vector<17xf32>
    %149 = vector.shape_cast %148 : vector<17xf32> to vector<17x1xf32>
    %cst_63 = arith.constant 6.400000e+01 : f32
    %150 = vector.broadcast %cst_63 : f32 to vector<17x1xf32>
    %151 = arith.divf %149, %150 : vector<17x1xf32>
    %152 = vector.broadcast %151 : vector<17x1xf32> to vector<17x64xf32>
    %153 = arith.subf %141, %152 : vector<17x64xf32>
    %154 = arith.mulf %153, %153 : vector<17x64xf32>
    %cst_64 = arith.constant dense<0.000000e+00> : vector<17xf32>
    %155 = vector.multi_reduction <add>, %154, %cst_64 [1] : vector<17x64xf32> to vector<17xf32>
    %156 = vector.shape_cast %155 : vector<17xf32> to vector<17x1xf32>
    %cst_65 = arith.constant 6.400000e+01 : f32
    %157 = vector.broadcast %cst_65 : f32 to vector<17x1xf32>
    %158 = arith.divf %156, %157 : vector<17x1xf32>
    %cst_66 = arith.constant 9.99999974E-6 : f32
    %159 = vector.broadcast %cst_66 : f32 to vector<17x1xf32>
    %160 = arith.addf %158, %159 : vector<17x1xf32>
    %161 = math.rsqrt %160 : vector<17x1xf32>
    %162 = vector.broadcast %161 : vector<17x1xf32> to vector<17x64xf32>
    %163 = arith.mulf %153, %162 : vector<17x64xf32>
    %164 = vector.broadcast %144 : vector<1x64xf32> to vector<17x64xf32>
    %165 = arith.mulf %163, %164 : vector<17x64xf32>
    %166 = vector.broadcast %147 : vector<1x64xf32> to vector<17x64xf32>
    %167 = arith.addf %165, %166 : vector<17x64xf32>
    %c0_67 = arith.constant 0 : index
    %c0_68 = arith.constant 0 : index
    %c0_69 = arith.constant 0 : index
    %168 = vector.load %arg15[%c0_67, %c0_68, %c0_69] : memref<3x64x256xf32, #tpu.memory_space<vmem>>, vector<1x64x256xf32>
    %169 = vector.shape_cast %168 : vector<1x64x256xf32> to vector<64x256xf32>
    %cst_70 = arith.constant dense<0.000000e+00> : vector<17x256xf32>
    %170 = tpu.matmul %167, %169, %cst_70 {dimension_numbers = #tpu.dot_dimension_numbers<[1], [0], [0], [1], [0, 0, 1, 1], [], []>} : vector<17x64xf32>, vector<64x256xf32>, vector<17x256xf32> -> vector<17x256xf32>
    %c0_71 = arith.constant 0 : index
    %c0_72 = arith.constant 0 : index
    %171 = vector.load %arg16[%c0_71, %c0_72] : memref<3x256xf32, #tpu.memory_space<vmem>>, vector<1x256xf32>
    %172 = vector.shape_cast %171 : vector<1x256xf32> to vector<256xf32>
    %173 = vector.shape_cast %172 : vector<256xf32> to vector<1x256xf32>
    %174 = vector.broadcast %173 : vector<1x256xf32> to vector<17x256xf32>
    %175 = arith.addf %170, %174 : vector<17x256xf32>
    %cst_73 = arith.constant 1.702000e+00 : f32
    %176 = vector.broadcast %cst_73 : f32 to vector<17x256xf32>
    %177 = arith.mulf %176, %175 : vector<17x256xf32>
    %178 = arith.negf %177 : vector<17x256xf32>
    %179 = math.exp %178 : vector<17x256xf32>
    %cst_74 = arith.constant 1.000000e+00 : f32
    %180 = vector.broadcast %cst_74 : f32 to vector<17x256xf32>
    %181 = arith.addf %180, %179 : vector<17x256xf32>
    %182 = arith.divf %180, %181 : vector<17x256xf32>
    %183 = arith.mulf %175, %182 : vector<17x256xf32>
    %c0_75 = arith.constant 0 : index
    %c0_76 = arith.constant 0 : index
    %c0_77 = arith.constant 0 : index
    %184 = vector.load %arg17[%c0_75, %c0_76, %c0_77] : memref<3x256x64xf32, #tpu.memory_space<vmem>>, vector<1x256x64xf32>
    %185 = vector.shape_cast %184 : vector<1x256x64xf32> to vector<256x64xf32>
    %cst_78 = arith.constant dense<0.000000e+00> : vector<17x64xf32>
    %186 = tpu.matmul %183, %185, %cst_78 {dimension_numbers = #tpu.dot_dimension_numbers<[1], [0], [0], [1], [0, 0, 1, 1], [], []>} : vector<17x256xf32>, vector<256x64xf32>, vector<17x64xf32> -> vector<17x64xf32>
    %c0_79 = arith.constant 0 : index
    %c0_80 = arith.constant 0 : index
    %187 = vector.load %arg18[%c0_79, %c0_80] : memref<3x64xf32, #tpu.memory_space<vmem>>, vector<1x64xf32>
    %188 = vector.shape_cast %187 : vector<1x64xf32> to vector<64xf32>
    %189 = vector.shape_cast %188 : vector<64xf32> to vector<1x64xf32>
    %190 = vector.broadcast %189 : vector<1x64xf32> to vector<17x64xf32>
    %191 = arith.addf %186, %190 : vector<17x64xf32>
    %192 = arith.addf %141, %191 : vector<17x64xf32>
    %c1 = arith.constant 1 : index
    %c0_81 = arith.constant 0 : index
    %193 = vector.load %arg7[%c1, %c0_81] : memref<3x64xf32, #tpu.memory_space<vmem>>, vector<1x64xf32>
    %194 = vector.shape_cast %193 : vector<1x64xf32> to vector<64xf32>
    %195 = vector.shape_cast %194 : vector<64xf32> to vector<1x64xf32>
    %c1_82 = arith.constant 1 : index
    %c0_83 = arith.constant 0 : index
    %196 = vector.load %arg8[%c1_82, %c0_83] : memref<3x64xf32, #tpu.memory_space<vmem>>, vector<1x64xf32>
    %197 = vector.shape_cast %196 : vector<1x64xf32> to vector<64xf32>
    %198 = vector.shape_cast %197 : vector<64xf32> to vector<1x64xf32>
    %cst_84 = arith.constant dense<0.000000e+00> : vector<17xf32>
    %199 = vector.multi_reduction <add>, %192, %cst_84 [1] : vector<17x64xf32> to vector<17xf32>
    %200 = vector.shape_cast %199 : vector<17xf32> to vector<17x1xf32>
    %cst_85 = arith.constant 6.400000e+01 : f32
    %201 = vector.broadcast %cst_85 : f32 to vector<17x1xf32>
    %202 = arith.divf %200, %201 : vector<17x1xf32>
    %203 = vector.broadcast %202 : vector<17x1xf32> to vector<17x64xf32>
    %204 = arith.subf %192, %203 : vector<17x64xf32>
    %205 = arith.mulf %204, %204 : vector<17x64xf32>
    %cst_86 = arith.constant dense<0.000000e+00> : vector<17xf32>
    %206 = vector.multi_reduction <add>, %205, %cst_86 [1] : vector<17x64xf32> to vector<17xf32>
    %207 = vector.shape_cast %206 : vector<17xf32> to vector<17x1xf32>
    %cst_87 = arith.constant 6.400000e+01 : f32
    %208 = vector.broadcast %cst_87 : f32 to vector<17x1xf32>
    %209 = arith.divf %207, %208 : vector<17x1xf32>
    %cst_88 = arith.constant 9.99999974E-6 : f32
    %210 = vector.broadcast %cst_88 : f32 to vector<17x1xf32>
    %211 = arith.addf %209, %210 : vector<17x1xf32>
    %212 = math.rsqrt %211 : vector<17x1xf32>
    %213 = vector.broadcast %212 : vector<17x1xf32> to vector<17x64xf32>
    %214 = arith.mulf %204, %213 : vector<17x64xf32>
    %215 = vector.broadcast %195 : vector<1x64xf32> to vector<17x64xf32>
    %216 = arith.mulf %214, %215 : vector<17x64xf32>
    %217 = vector.broadcast %198 : vector<1x64xf32> to vector<17x64xf32>
    %218 = arith.addf %216, %217 : vector<17x64xf32>
    %c1_89 = arith.constant 1 : index
    %c0_90 = arith.constant 0 : index
    %c0_91 = arith.constant 0 : index
    %219 = vector.load %arg9[%c1_89, %c0_90, %c0_91] : memref<3x64x192xf32, #tpu.memory_space<vmem>>, vector<1x64x192xf32>
    %220 = vector.shape_cast %219 : vector<1x64x192xf32> to vector<64x192xf32>
    %cst_92 = arith.constant dense<0.000000e+00> : vector<17x192xf32>
    %221 = tpu.matmul %218, %220, %cst_92 {dimension_numbers = #tpu.dot_dimension_numbers<[1], [0], [0], [1], [0, 0, 1, 1], [], []>} : vector<17x64xf32>, vector<64x192xf32>, vector<17x192xf32> -> vector<17x192xf32>
    %c1_93 = arith.constant 1 : index
    %c0_94 = arith.constant 0 : index
    %222 = vector.load %arg10[%c1_93, %c0_94] : memref<3x192xf32, #tpu.memory_space<vmem>>, vector<1x192xf32>
    %223 = vector.shape_cast %222 : vector<1x192xf32> to vector<192xf32>
    %224 = vector.shape_cast %223 : vector<192xf32> to vector<1x192xf32>
    %225 = vector.broadcast %224 : vector<1x192xf32> to vector<17x192xf32>
    %226 = arith.addf %221, %225 : vector<17x192xf32>
    %227 = vector.extract_strided_slice %226 {offsets = [0, 0], sizes = [17, 16], strides = [1, 1]} : vector<17x192xf32> to vector<17x16xf32>
    %228 = vector.extract_strided_slice %226 {offsets = [0, 64], sizes = [17, 16], strides = [1, 1]} : vector<17x192xf32> to vector<17x16xf32>
    %229 = vector.extract_strided_slice %226 {offsets = [0, 128], sizes = [17, 16], strides = [1, 1]} : vector<17x192xf32> to vector<17x16xf32>
    %cst_95 = arith.constant dense<0.000000e+00> : vector<17x17xf32>
    %230 = tpu.matmul %227, %228, %cst_95 {dimension_numbers = #tpu.dot_dimension_numbers<[1], [1], [0], [0], [0, 0, 1, 0], [], []>} : vector<17x16xf32>, vector<17x16xf32>, vector<17x17xf32> -> vector<17x17xf32>
    %cst_96 = arith.constant 2.500000e-01 : f32
    %231 = vector.broadcast %cst_96 : f32 to vector<17x17xf32>
    %232 = arith.mulf %230, %231 : vector<17x17xf32>
    %cst_97 = arith.constant dense<0xFF800000> : vector<17xf32>
    %233 = vector.multi_reduction <maximumf>, %232, %cst_97 [1] : vector<17x17xf32> to vector<17xf32>
    %234 = vector.shape_cast %233 : vector<17xf32> to vector<17x1xf32>
    %235 = vector.broadcast %234 : vector<17x1xf32> to vector<17x17xf32>
    %236 = arith.subf %232, %235 : vector<17x17xf32>
    %237 = math.exp %236 : vector<17x17xf32>
    %cst_98 = arith.constant dense<0.000000e+00> : vector<17xf32>
    %238 = vector.multi_reduction <add>, %237, %cst_98 [1] : vector<17x17xf32> to vector<17xf32>
    %239 = vector.shape_cast %238 : vector<17xf32> to vector<17x1xf32>
    %240 = tpu.reciprocal %239 {approx = true} : vector<17x1xf32> -> vector<17x1xf32>
    %241 = vector.broadcast %240 : vector<17x1xf32> to vector<17x17xf32>
    %242 = arith.mulf %237, %241 : vector<17x17xf32>
    %cst_99 = arith.constant dense<0.000000e+00> : vector<17x16xf32>
    %243 = tpu.matmul %242, %229, %cst_99 {dimension_numbers = #tpu.dot_dimension_numbers<[1], [0], [0], [1], [0, 0, 1, 1], [], []>} : vector<17x17xf32>, vector<17x16xf32>, vector<17x16xf32> -> vector<17x16xf32>
    %244 = vector.extract_strided_slice %226 {offsets = [0, 16], sizes = [17, 16], strides = [1, 1]} : vector<17x192xf32> to vector<17x16xf32>
    %245 = vector.extract_strided_slice %226 {offsets = [0, 80], sizes = [17, 16], strides = [1, 1]} : vector<17x192xf32> to vector<17x16xf32>
    %246 = vector.extract_strided_slice %226 {offsets = [0, 144], sizes = [17, 16], strides = [1, 1]} : vector<17x192xf32> to vector<17x16xf32>
    %cst_100 = arith.constant dense<0.000000e+00> : vector<17x17xf32>
    %247 = tpu.matmul %244, %245, %cst_100 {dimension_numbers = #tpu.dot_dimension_numbers<[1], [1], [0], [0], [0, 0, 1, 0], [], []>} : vector<17x16xf32>, vector<17x16xf32>, vector<17x17xf32> -> vector<17x17xf32>
    %cst_101 = arith.constant 2.500000e-01 : f32
    %248 = vector.broadcast %cst_101 : f32 to vector<17x17xf32>
    %249 = arith.mulf %247, %248 : vector<17x17xf32>
    %cst_102 = arith.constant dense<0xFF800000> : vector<17xf32>
    %250 = vector.multi_reduction <maximumf>, %249, %cst_102 [1] : vector<17x17xf32> to vector<17xf32>
    %251 = vector.shape_cast %250 : vector<17xf32> to vector<17x1xf32>
    %252 = vector.broadcast %251 : vector<17x1xf32> to vector<17x17xf32>
    %253 = arith.subf %249, %252 : vector<17x17xf32>
    %254 = math.exp %253 : vector<17x17xf32>
    %cst_103 = arith.constant dense<0.000000e+00> : vector<17xf32>
    %255 = vector.multi_reduction <add>, %254, %cst_103 [1] : vector<17x17xf32> to vector<17xf32>
    %256 = vector.shape_cast %255 : vector<17xf32> to vector<17x1xf32>
    %257 = tpu.reciprocal %256 {approx = true} : vector<17x1xf32> -> vector<17x1xf32>
    %258 = vector.broadcast %257 : vector<17x1xf32> to vector<17x17xf32>
    %259 = arith.mulf %254, %258 : vector<17x17xf32>
    %cst_104 = arith.constant dense<0.000000e+00> : vector<17x16xf32>
    %260 = tpu.matmul %259, %246, %cst_104 {dimension_numbers = #tpu.dot_dimension_numbers<[1], [0], [0], [1], [0, 0, 1, 1], [], []>} : vector<17x17xf32>, vector<17x16xf32>, vector<17x16xf32> -> vector<17x16xf32>
    %261 = vector.extract_strided_slice %226 {offsets = [0, 32], sizes = [17, 16], strides = [1, 1]} : vector<17x192xf32> to vector<17x16xf32>
    %262 = vector.extract_strided_slice %226 {offsets = [0, 96], sizes = [17, 16], strides = [1, 1]} : vector<17x192xf32> to vector<17x16xf32>
    %263 = vector.extract_strided_slice %226 {offsets = [0, 160], sizes = [17, 16], strides = [1, 1]} : vector<17x192xf32> to vector<17x16xf32>
    %cst_105 = arith.constant dense<0.000000e+00> : vector<17x17xf32>
    %264 = tpu.matmul %261, %262, %cst_105 {dimension_numbers = #tpu.dot_dimension_numbers<[1], [1], [0], [0], [0, 0, 1, 0], [], []>} : vector<17x16xf32>, vector<17x16xf32>, vector<17x17xf32> -> vector<17x17xf32>
    %cst_106 = arith.constant 2.500000e-01 : f32
    %265 = vector.broadcast %cst_106 : f32 to vector<17x17xf32>
    %266 = arith.mulf %264, %265 : vector<17x17xf32>
    %cst_107 = arith.constant dense<0xFF800000> : vector<17xf32>
    %267 = vector.multi_reduction <maximumf>, %266, %cst_107 [1] : vector<17x17xf32> to vector<17xf32>
    %268 = vector.shape_cast %267 : vector<17xf32> to vector<17x1xf32>
    %269 = vector.broadcast %268 : vector<17x1xf32> to vector<17x17xf32>
    %270 = arith.subf %266, %269 : vector<17x17xf32>
    %271 = math.exp %270 : vector<17x17xf32>
    %cst_108 = arith.constant dense<0.000000e+00> : vector<17xf32>
    %272 = vector.multi_reduction <add>, %271, %cst_108 [1] : vector<17x17xf32> to vector<17xf32>
    %273 = vector.shape_cast %272 : vector<17xf32> to vector<17x1xf32>
    %274 = tpu.reciprocal %273 {approx = true} : vector<17x1xf32> -> vector<17x1xf32>
    %275 = vector.broadcast %274 : vector<17x1xf32> to vector<17x17xf32>
    %276 = arith.mulf %271, %275 : vector<17x17xf32>
    %cst_109 = arith.constant dense<0.000000e+00> : vector<17x16xf32>
    %277 = tpu.matmul %276, %263, %cst_109 {dimension_numbers = #tpu.dot_dimension_numbers<[1], [0], [0], [1], [0, 0, 1, 1], [], []>} : vector<17x17xf32>, vector<17x16xf32>, vector<17x16xf32> -> vector<17x16xf32>
    %278 = vector.extract_strided_slice %226 {offsets = [0, 48], sizes = [17, 16], strides = [1, 1]} : vector<17x192xf32> to vector<17x16xf32>
    %279 = vector.extract_strided_slice %226 {offsets = [0, 112], sizes = [17, 16], strides = [1, 1]} : vector<17x192xf32> to vector<17x16xf32>
    %280 = vector.extract_strided_slice %226 {offsets = [0, 176], sizes = [17, 16], strides = [1, 1]} : vector<17x192xf32> to vector<17x16xf32>
    %cst_110 = arith.constant dense<0.000000e+00> : vector<17x17xf32>
    %281 = tpu.matmul %278, %279, %cst_110 {dimension_numbers = #tpu.dot_dimension_numbers<[1], [1], [0], [0], [0, 0, 1, 0], [], []>} : vector<17x16xf32>, vector<17x16xf32>, vector<17x17xf32> -> vector<17x17xf32>
    %cst_111 = arith.constant 2.500000e-01 : f32
    %282 = vector.broadcast %cst_111 : f32 to vector<17x17xf32>
    %283 = arith.mulf %281, %282 : vector<17x17xf32>
    %cst_112 = arith.constant dense<0xFF800000> : vector<17xf32>
    %284 = vector.multi_reduction <maximumf>, %283, %cst_112 [1] : vector<17x17xf32> to vector<17xf32>
    %285 = vector.shape_cast %284 : vector<17xf32> to vector<17x1xf32>
    %286 = vector.broadcast %285 : vector<17x1xf32> to vector<17x17xf32>
    %287 = arith.subf %283, %286 : vector<17x17xf32>
    %288 = math.exp %287 : vector<17x17xf32>
    %cst_113 = arith.constant dense<0.000000e+00> : vector<17xf32>
    %289 = vector.multi_reduction <add>, %288, %cst_113 [1] : vector<17x17xf32> to vector<17xf32>
    %290 = vector.shape_cast %289 : vector<17xf32> to vector<17x1xf32>
    %291 = tpu.reciprocal %290 {approx = true} : vector<17x1xf32> -> vector<17x1xf32>
    %292 = vector.broadcast %291 : vector<17x1xf32> to vector<17x17xf32>
    %293 = arith.mulf %288, %292 : vector<17x17xf32>
    %cst_114 = arith.constant dense<0.000000e+00> : vector<17x16xf32>
    %294 = tpu.matmul %293, %280, %cst_114 {dimension_numbers = #tpu.dot_dimension_numbers<[1], [0], [0], [1], [0, 0, 1, 1], [], []>} : vector<17x17xf32>, vector<17x16xf32>, vector<17x16xf32> -> vector<17x16xf32>
    %295 = tpu.concatenate %243, %260, %277, %294 in 1 : vector<17x16xf32>, vector<17x16xf32>, vector<17x16xf32>, vector<17x16xf32> -> vector<17x64xf32>
    %c1_115 = arith.constant 1 : index
    %c0_116 = arith.constant 0 : index
    %c0_117 = arith.constant 0 : index
    %296 = vector.load %arg11[%c1_115, %c0_116, %c0_117] : memref<3x64x64xf32, #tpu.memory_space<vmem>>, vector<1x64x64xf32>
    %297 = vector.shape_cast %296 : vector<1x64x64xf32> to vector<64x64xf32>
    %cst_118 = arith.constant dense<0.000000e+00> : vector<17x64xf32>
    %298 = tpu.matmul %295, %297, %cst_118 {dimension_numbers = #tpu.dot_dimension_numbers<[1], [0], [0], [1], [0, 0, 1, 1], [], []>} : vector<17x64xf32>, vector<64x64xf32>, vector<17x64xf32> -> vector<17x64xf32>
    %c1_119 = arith.constant 1 : index
    %c0_120 = arith.constant 0 : index
    %299 = vector.load %arg12[%c1_119, %c0_120] : memref<3x64xf32, #tpu.memory_space<vmem>>, vector<1x64xf32>
    %300 = vector.shape_cast %299 : vector<1x64xf32> to vector<64xf32>
    %301 = vector.shape_cast %300 : vector<64xf32> to vector<1x64xf32>
    %302 = vector.broadcast %301 : vector<1x64xf32> to vector<17x64xf32>
    %303 = arith.addf %298, %302 : vector<17x64xf32>
    %304 = arith.addf %192, %303 : vector<17x64xf32>
    %c1_121 = arith.constant 1 : index
    %c0_122 = arith.constant 0 : index
    %305 = vector.load %arg13[%c1_121, %c0_122] : memref<3x64xf32, #tpu.memory_space<vmem>>, vector<1x64xf32>
    %306 = vector.shape_cast %305 : vector<1x64xf32> to vector<64xf32>
    %307 = vector.shape_cast %306 : vector<64xf32> to vector<1x64xf32>
    %c1_123 = arith.constant 1 : index
    %c0_124 = arith.constant 0 : index
    %308 = vector.load %arg14[%c1_123, %c0_124] : memref<3x64xf32, #tpu.memory_space<vmem>>, vector<1x64xf32>
    %309 = vector.shape_cast %308 : vector<1x64xf32> to vector<64xf32>
    %310 = vector.shape_cast %309 : vector<64xf32> to vector<1x64xf32>
    %cst_125 = arith.constant dense<0.000000e+00> : vector<17xf32>
    %311 = vector.multi_reduction <add>, %304, %cst_125 [1] : vector<17x64xf32> to vector<17xf32>
    %312 = vector.shape_cast %311 : vector<17xf32> to vector<17x1xf32>
    %cst_126 = arith.constant 6.400000e+01 : f32
    %313 = vector.broadcast %cst_126 : f32 to vector<17x1xf32>
    %314 = arith.divf %312, %313 : vector<17x1xf32>
    %315 = vector.broadcast %314 : vector<17x1xf32> to vector<17x64xf32>
    %316 = arith.subf %304, %315 : vector<17x64xf32>
    %317 = arith.mulf %316, %316 : vector<17x64xf32>
    %cst_127 = arith.constant dense<0.000000e+00> : vector<17xf32>
    %318 = vector.multi_reduction <add>, %317, %cst_127 [1] : vector<17x64xf32> to vector<17xf32>
    %319 = vector.shape_cast %318 : vector<17xf32> to vector<17x1xf32>
    %cst_128 = arith.constant 6.400000e+01 : f32
    %320 = vector.broadcast %cst_128 : f32 to vector<17x1xf32>
    %321 = arith.divf %319, %320 : vector<17x1xf32>
    %cst_129 = arith.constant 9.99999974E-6 : f32
    %322 = vector.broadcast %cst_129 : f32 to vector<17x1xf32>
    %323 = arith.addf %321, %322 : vector<17x1xf32>
    %324 = math.rsqrt %323 : vector<17x1xf32>
    %325 = vector.broadcast %324 : vector<17x1xf32> to vector<17x64xf32>
    %326 = arith.mulf %316, %325 : vector<17x64xf32>
    %327 = vector.broadcast %307 : vector<1x64xf32> to vector<17x64xf32>
    %328 = arith.mulf %326, %327 : vector<17x64xf32>
    %329 = vector.broadcast %310 : vector<1x64xf32> to vector<17x64xf32>
    %330 = arith.addf %328, %329 : vector<17x64xf32>
    %c1_130 = arith.constant 1 : index
    %c0_131 = arith.constant 0 : index
    %c0_132 = arith.constant 0 : index
    %331 = vector.load %arg15[%c1_130, %c0_131, %c0_132] : memref<3x64x256xf32, #tpu.memory_space<vmem>>, vector<1x64x256xf32>
    %332 = vector.shape_cast %331 : vector<1x64x256xf32> to vector<64x256xf32>
    %cst_133 = arith.constant dense<0.000000e+00> : vector<17x256xf32>
    %333 = tpu.matmul %330, %332, %cst_133 {dimension_numbers = #tpu.dot_dimension_numbers<[1], [0], [0], [1], [0, 0, 1, 1], [], []>} : vector<17x64xf32>, vector<64x256xf32>, vector<17x256xf32> -> vector<17x256xf32>
    %c1_134 = arith.constant 1 : index
    %c0_135 = arith.constant 0 : index
    %334 = vector.load %arg16[%c1_134, %c0_135] : memref<3x256xf32, #tpu.memory_space<vmem>>, vector<1x256xf32>
    %335 = vector.shape_cast %334 : vector<1x256xf32> to vector<256xf32>
    %336 = vector.shape_cast %335 : vector<256xf32> to vector<1x256xf32>
    %337 = vector.broadcast %336 : vector<1x256xf32> to vector<17x256xf32>
    %338 = arith.addf %333, %337 : vector<17x256xf32>
    %cst_136 = arith.constant 1.702000e+00 : f32
    %339 = vector.broadcast %cst_136 : f32 to vector<17x256xf32>
    %340 = arith.mulf %339, %338 : vector<17x256xf32>
    %341 = arith.negf %340 : vector<17x256xf32>
    %342 = math.exp %341 : vector<17x256xf32>
    %cst_137 = arith.constant 1.000000e+00 : f32
    %343 = vector.broadcast %cst_137 : f32 to vector<17x256xf32>
    %344 = arith.addf %343, %342 : vector<17x256xf32>
    %345 = arith.divf %343, %344 : vector<17x256xf32>
    %346 = arith.mulf %338, %345 : vector<17x256xf32>
    %c1_138 = arith.constant 1 : index
    %c0_139 = arith.constant 0 : index
    %c0_140 = arith.constant 0 : index
    %347 = vector.load %arg17[%c1_138, %c0_139, %c0_140] : memref<3x256x64xf32, #tpu.memory_space<vmem>>, vector<1x256x64xf32>
    %348 = vector.shape_cast %347 : vector<1x256x64xf32> to vector<256x64xf32>
    %cst_141 = arith.constant dense<0.000000e+00> : vector<17x64xf32>
    %349 = tpu.matmul %346, %348, %cst_141 {dimension_numbers = #tpu.dot_dimension_numbers<[1], [0], [0], [1], [0, 0, 1, 1], [], []>} : vector<17x256xf32>, vector<256x64xf32>, vector<17x64xf32> -> vector<17x64xf32>
    %c1_142 = arith.constant 1 : index
    %c0_143 = arith.constant 0 : index
    %350 = vector.load %arg18[%c1_142, %c0_143] : memref<3x64xf32, #tpu.memory_space<vmem>>, vector<1x64xf32>
    %351 = vector.shape_cast %350 : vector<1x64xf32> to vector<64xf32>
    %352 = vector.shape_cast %351 : vector<64xf32> to vector<1x64xf32>
    %353 = vector.broadcast %352 : vector<1x64xf32> to vector<17x64xf32>
    %354 = arith.addf %349, %353 : vector<17x64xf32>
    %355 = arith.addf %304, %354 : vector<17x64xf32>
    %c2 = arith.constant 2 : index
    %c0_144 = arith.constant 0 : index
    %356 = vector.load %arg7[%c2, %c0_144] : memref<3x64xf32, #tpu.memory_space<vmem>>, vector<1x64xf32>
    %357 = vector.shape_cast %356 : vector<1x64xf32> to vector<64xf32>
    %358 = vector.shape_cast %357 : vector<64xf32> to vector<1x64xf32>
    %c2_145 = arith.constant 2 : index
    %c0_146 = arith.constant 0 : index
    %359 = vector.load %arg8[%c2_145, %c0_146] : memref<3x64xf32, #tpu.memory_space<vmem>>, vector<1x64xf32>
    %360 = vector.shape_cast %359 : vector<1x64xf32> to vector<64xf32>
    %361 = vector.shape_cast %360 : vector<64xf32> to vector<1x64xf32>
    %cst_147 = arith.constant dense<0.000000e+00> : vector<17xf32>
    %362 = vector.multi_reduction <add>, %355, %cst_147 [1] : vector<17x64xf32> to vector<17xf32>
    %363 = vector.shape_cast %362 : vector<17xf32> to vector<17x1xf32>
    %cst_148 = arith.constant 6.400000e+01 : f32
    %364 = vector.broadcast %cst_148 : f32 to vector<17x1xf32>
    %365 = arith.divf %363, %364 : vector<17x1xf32>
    %366 = vector.broadcast %365 : vector<17x1xf32> to vector<17x64xf32>
    %367 = arith.subf %355, %366 : vector<17x64xf32>
    %368 = arith.mulf %367, %367 : vector<17x64xf32>
    %cst_149 = arith.constant dense<0.000000e+00> : vector<17xf32>
    %369 = vector.multi_reduction <add>, %368, %cst_149 [1] : vector<17x64xf32> to vector<17xf32>
    %370 = vector.shape_cast %369 : vector<17xf32> to vector<17x1xf32>
    %cst_150 = arith.constant 6.400000e+01 : f32
    %371 = vector.broadcast %cst_150 : f32 to vector<17x1xf32>
    %372 = arith.divf %370, %371 : vector<17x1xf32>
    %cst_151 = arith.constant 9.99999974E-6 : f32
    %373 = vector.broadcast %cst_151 : f32 to vector<17x1xf32>
    %374 = arith.addf %372, %373 : vector<17x1xf32>
    %375 = math.rsqrt %374 : vector<17x1xf32>
    %376 = vector.broadcast %375 : vector<17x1xf32> to vector<17x64xf32>
    %377 = arith.mulf %367, %376 : vector<17x64xf32>
    %378 = vector.broadcast %358 : vector<1x64xf32> to vector<17x64xf32>
    %379 = arith.mulf %377, %378 : vector<17x64xf32>
    %380 = vector.broadcast %361 : vector<1x64xf32> to vector<17x64xf32>
    %381 = arith.addf %379, %380 : vector<17x64xf32>
    %c2_152 = arith.constant 2 : index
    %c0_153 = arith.constant 0 : index
    %c0_154 = arith.constant 0 : index
    %382 = vector.load %arg9[%c2_152, %c0_153, %c0_154] : memref<3x64x192xf32, #tpu.memory_space<vmem>>, vector<1x64x192xf32>
    %383 = vector.shape_cast %382 : vector<1x64x192xf32> to vector<64x192xf32>
    %cst_155 = arith.constant dense<0.000000e+00> : vector<17x192xf32>
    %384 = tpu.matmul %381, %383, %cst_155 {dimension_numbers = #tpu.dot_dimension_numbers<[1], [0], [0], [1], [0, 0, 1, 1], [], []>} : vector<17x64xf32>, vector<64x192xf32>, vector<17x192xf32> -> vector<17x192xf32>
    %c2_156 = arith.constant 2 : index
    %c0_157 = arith.constant 0 : index
    %385 = vector.load %arg10[%c2_156, %c0_157] : memref<3x192xf32, #tpu.memory_space<vmem>>, vector<1x192xf32>
    %386 = vector.shape_cast %385 : vector<1x192xf32> to vector<192xf32>
    %387 = vector.shape_cast %386 : vector<192xf32> to vector<1x192xf32>
    %388 = vector.broadcast %387 : vector<1x192xf32> to vector<17x192xf32>
    %389 = arith.addf %384, %388 : vector<17x192xf32>
    %390 = vector.extract_strided_slice %389 {offsets = [0, 0], sizes = [17, 16], strides = [1, 1]} : vector<17x192xf32> to vector<17x16xf32>
    %391 = vector.extract_strided_slice %389 {offsets = [0, 64], sizes = [17, 16], strides = [1, 1]} : vector<17x192xf32> to vector<17x16xf32>
    %392 = vector.extract_strided_slice %389 {offsets = [0, 128], sizes = [17, 16], strides = [1, 1]} : vector<17x192xf32> to vector<17x16xf32>
    %cst_158 = arith.constant dense<0.000000e+00> : vector<17x17xf32>
    %393 = tpu.matmul %390, %391, %cst_158 {dimension_numbers = #tpu.dot_dimension_numbers<[1], [1], [0], [0], [0, 0, 1, 0], [], []>} : vector<17x16xf32>, vector<17x16xf32>, vector<17x17xf32> -> vector<17x17xf32>
    %cst_159 = arith.constant 2.500000e-01 : f32
    %394 = vector.broadcast %cst_159 : f32 to vector<17x17xf32>
    %395 = arith.mulf %393, %394 : vector<17x17xf32>
    %cst_160 = arith.constant dense<0xFF800000> : vector<17xf32>
    %396 = vector.multi_reduction <maximumf>, %395, %cst_160 [1] : vector<17x17xf32> to vector<17xf32>
    %397 = vector.shape_cast %396 : vector<17xf32> to vector<17x1xf32>
    %398 = vector.broadcast %397 : vector<17x1xf32> to vector<17x17xf32>
    %399 = arith.subf %395, %398 : vector<17x17xf32>
    %400 = math.exp %399 : vector<17x17xf32>
    %cst_161 = arith.constant dense<0.000000e+00> : vector<17xf32>
    %401 = vector.multi_reduction <add>, %400, %cst_161 [1] : vector<17x17xf32> to vector<17xf32>
    %402 = vector.shape_cast %401 : vector<17xf32> to vector<17x1xf32>
    %403 = tpu.reciprocal %402 {approx = true} : vector<17x1xf32> -> vector<17x1xf32>
    %404 = vector.broadcast %403 : vector<17x1xf32> to vector<17x17xf32>
    %405 = arith.mulf %400, %404 : vector<17x17xf32>
    %cst_162 = arith.constant dense<0.000000e+00> : vector<17x16xf32>
    %406 = tpu.matmul %405, %392, %cst_162 {dimension_numbers = #tpu.dot_dimension_numbers<[1], [0], [0], [1], [0, 0, 1, 1], [], []>} : vector<17x17xf32>, vector<17x16xf32>, vector<17x16xf32> -> vector<17x16xf32>
    %407 = vector.extract_strided_slice %389 {offsets = [0, 16], sizes = [17, 16], strides = [1, 1]} : vector<17x192xf32> to vector<17x16xf32>
    %408 = vector.extract_strided_slice %389 {offsets = [0, 80], sizes = [17, 16], strides = [1, 1]} : vector<17x192xf32> to vector<17x16xf32>
    %409 = vector.extract_strided_slice %389 {offsets = [0, 144], sizes = [17, 16], strides = [1, 1]} : vector<17x192xf32> to vector<17x16xf32>
    %cst_163 = arith.constant dense<0.000000e+00> : vector<17x17xf32>
    %410 = tpu.matmul %407, %408, %cst_163 {dimension_numbers = #tpu.dot_dimension_numbers<[1], [1], [0], [0], [0, 0, 1, 0], [], []>} : vector<17x16xf32>, vector<17x16xf32>, vector<17x17xf32> -> vector<17x17xf32>
    %cst_164 = arith.constant 2.500000e-01 : f32
    %411 = vector.broadcast %cst_164 : f32 to vector<17x17xf32>
    %412 = arith.mulf %410, %411 : vector<17x17xf32>
    %cst_165 = arith.constant dense<0xFF800000> : vector<17xf32>
    %413 = vector.multi_reduction <maximumf>, %412, %cst_165 [1] : vector<17x17xf32> to vector<17xf32>
    %414 = vector.shape_cast %413 : vector<17xf32> to vector<17x1xf32>
    %415 = vector.broadcast %414 : vector<17x1xf32> to vector<17x17xf32>
    %416 = arith.subf %412, %415 : vector<17x17xf32>
    %417 = math.exp %416 : vector<17x17xf32>
    %cst_166 = arith.constant dense<0.000000e+00> : vector<17xf32>
    %418 = vector.multi_reduction <add>, %417, %cst_166 [1] : vector<17x17xf32> to vector<17xf32>
    %419 = vector.shape_cast %418 : vector<17xf32> to vector<17x1xf32>
    %420 = tpu.reciprocal %419 {approx = true} : vector<17x1xf32> -> vector<17x1xf32>
    %421 = vector.broadcast %420 : vector<17x1xf32> to vector<17x17xf32>
    %422 = arith.mulf %417, %421 : vector<17x17xf32>
    %cst_167 = arith.constant dense<0.000000e+00> : vector<17x16xf32>
    %423 = tpu.matmul %422, %409, %cst_167 {dimension_numbers = #tpu.dot_dimension_numbers<[1], [0], [0], [1], [0, 0, 1, 1], [], []>} : vector<17x17xf32>, vector<17x16xf32>, vector<17x16xf32> -> vector<17x16xf32>
    %424 = vector.extract_strided_slice %389 {offsets = [0, 32], sizes = [17, 16], strides = [1, 1]} : vector<17x192xf32> to vector<17x16xf32>
    %425 = vector.extract_strided_slice %389 {offsets = [0, 96], sizes = [17, 16], strides = [1, 1]} : vector<17x192xf32> to vector<17x16xf32>
    %426 = vector.extract_strided_slice %389 {offsets = [0, 160], sizes = [17, 16], strides = [1, 1]} : vector<17x192xf32> to vector<17x16xf32>
    %cst_168 = arith.constant dense<0.000000e+00> : vector<17x17xf32>
    %427 = tpu.matmul %424, %425, %cst_168 {dimension_numbers = #tpu.dot_dimension_numbers<[1], [1], [0], [0], [0, 0, 1, 0], [], []>} : vector<17x16xf32>, vector<17x16xf32>, vector<17x17xf32> -> vector<17x17xf32>
    %cst_169 = arith.constant 2.500000e-01 : f32
    %428 = vector.broadcast %cst_169 : f32 to vector<17x17xf32>
    %429 = arith.mulf %427, %428 : vector<17x17xf32>
    %cst_170 = arith.constant dense<0xFF800000> : vector<17xf32>
    %430 = vector.multi_reduction <maximumf>, %429, %cst_170 [1] : vector<17x17xf32> to vector<17xf32>
    %431 = vector.shape_cast %430 : vector<17xf32> to vector<17x1xf32>
    %432 = vector.broadcast %431 : vector<17x1xf32> to vector<17x17xf32>
    %433 = arith.subf %429, %432 : vector<17x17xf32>
    %434 = math.exp %433 : vector<17x17xf32>
    %cst_171 = arith.constant dense<0.000000e+00> : vector<17xf32>
    %435 = vector.multi_reduction <add>, %434, %cst_171 [1] : vector<17x17xf32> to vector<17xf32>
    %436 = vector.shape_cast %435 : vector<17xf32> to vector<17x1xf32>
    %437 = tpu.reciprocal %436 {approx = true} : vector<17x1xf32> -> vector<17x1xf32>
    %438 = vector.broadcast %437 : vector<17x1xf32> to vector<17x17xf32>
    %439 = arith.mulf %434, %438 : vector<17x17xf32>
    %cst_172 = arith.constant dense<0.000000e+00> : vector<17x16xf32>
    %440 = tpu.matmul %439, %426, %cst_172 {dimension_numbers = #tpu.dot_dimension_numbers<[1], [0], [0], [1], [0, 0, 1, 1], [], []>} : vector<17x17xf32>, vector<17x16xf32>, vector<17x16xf32> -> vector<17x16xf32>
    %441 = vector.extract_strided_slice %389 {offsets = [0, 48], sizes = [17, 16], strides = [1, 1]} : vector<17x192xf32> to vector<17x16xf32>
    %442 = vector.extract_strided_slice %389 {offsets = [0, 112], sizes = [17, 16], strides = [1, 1]} : vector<17x192xf32> to vector<17x16xf32>
    %443 = vector.extract_strided_slice %389 {offsets = [0, 176], sizes = [17, 16], strides = [1, 1]} : vector<17x192xf32> to vector<17x16xf32>
    %cst_173 = arith.constant dense<0.000000e+00> : vector<17x17xf32>
    %444 = tpu.matmul %441, %442, %cst_173 {dimension_numbers = #tpu.dot_dimension_numbers<[1], [1], [0], [0], [0, 0, 1, 0], [], []>} : vector<17x16xf32>, vector<17x16xf32>, vector<17x17xf32> -> vector<17x17xf32>
    %cst_174 = arith.constant 2.500000e-01 : f32
    %445 = vector.broadcast %cst_174 : f32 to vector<17x17xf32>
    %446 = arith.mulf %444, %445 : vector<17x17xf32>
    %cst_175 = arith.constant dense<0xFF800000> : vector<17xf32>
    %447 = vector.multi_reduction <maximumf>, %446, %cst_175 [1] : vector<17x17xf32> to vector<17xf32>
    %448 = vector.shape_cast %447 : vector<17xf32> to vector<17x1xf32>
    %449 = vector.broadcast %448 : vector<17x1xf32> to vector<17x17xf32>
    %450 = arith.subf %446, %449 : vector<17x17xf32>
    %451 = math.exp %450 : vector<17x17xf32>
    %cst_176 = arith.constant dense<0.000000e+00> : vector<17xf32>
    %452 = vector.multi_reduction <add>, %451, %cst_176 [1] : vector<17x17xf32> to vector<17xf32>
    %453 = vector.shape_cast %452 : vector<17xf32> to vector<17x1xf32>
    %454 = tpu.reciprocal %453 {approx = true} : vector<17x1xf32> -> vector<17x1xf32>
    %455 = vector.broadcast %454 : vector<17x1xf32> to vector<17x17xf32>
    %456 = arith.mulf %451, %455 : vector<17x17xf32>
    %cst_177 = arith.constant dense<0.000000e+00> : vector<17x16xf32>
    %457 = tpu.matmul %456, %443, %cst_177 {dimension_numbers = #tpu.dot_dimension_numbers<[1], [0], [0], [1], [0, 0, 1, 1], [], []>} : vector<17x17xf32>, vector<17x16xf32>, vector<17x16xf32> -> vector<17x16xf32>
    %458 = tpu.concatenate %406, %423, %440, %457 in 1 : vector<17x16xf32>, vector<17x16xf32>, vector<17x16xf32>, vector<17x16xf32> -> vector<17x64xf32>
    %c2_178 = arith.constant 2 : index
    %c0_179 = arith.constant 0 : index
    %c0_180 = arith.constant 0 : index
    %459 = vector.load %arg11[%c2_178, %c0_179, %c0_180] : memref<3x64x64xf32, #tpu.memory_space<vmem>>, vector<1x64x64xf32>
    %460 = vector.shape_cast %459 : vector<1x64x64xf32> to vector<64x64xf32>
    %cst_181 = arith.constant dense<0.000000e+00> : vector<17x64xf32>
    %461 = tpu.matmul %458, %460, %cst_181 {dimension_numbers = #tpu.dot_dimension_numbers<[1], [0], [0], [1], [0, 0, 1, 1], [], []>} : vector<17x64xf32>, vector<64x64xf32>, vector<17x64xf32> -> vector<17x64xf32>
    %c2_182 = arith.constant 2 : index
    %c0_183 = arith.constant 0 : index
    %462 = vector.load %arg12[%c2_182, %c0_183] : memref<3x64xf32, #tpu.memory_space<vmem>>, vector<1x64xf32>
    %463 = vector.shape_cast %462 : vector<1x64xf32> to vector<64xf32>
    %464 = vector.shape_cast %463 : vector<64xf32> to vector<1x64xf32>
    %465 = vector.broadcast %464 : vector<1x64xf32> to vector<17x64xf32>
    %466 = arith.addf %461, %465 : vector<17x64xf32>
    %467 = arith.addf %355, %466 : vector<17x64xf32>
    %c2_184 = arith.constant 2 : index
    %c0_185 = arith.constant 0 : index
    %468 = vector.load %arg13[%c2_184, %c0_185] : memref<3x64xf32, #tpu.memory_space<vmem>>, vector<1x64xf32>
    %469 = vector.shape_cast %468 : vector<1x64xf32> to vector<64xf32>
    %470 = vector.shape_cast %469 : vector<64xf32> to vector<1x64xf32>
    %c2_186 = arith.constant 2 : index
    %c0_187 = arith.constant 0 : index
    %471 = vector.load %arg14[%c2_186, %c0_187] : memref<3x64xf32, #tpu.memory_space<vmem>>, vector<1x64xf32>
    %472 = vector.shape_cast %471 : vector<1x64xf32> to vector<64xf32>
    %473 = vector.shape_cast %472 : vector<64xf32> to vector<1x64xf32>
    %cst_188 = arith.constant dense<0.000000e+00> : vector<17xf32>
    %474 = vector.multi_reduction <add>, %467, %cst_188 [1] : vector<17x64xf32> to vector<17xf32>
    %475 = vector.shape_cast %474 : vector<17xf32> to vector<17x1xf32>
    %cst_189 = arith.constant 6.400000e+01 : f32
    %476 = vector.broadcast %cst_189 : f32 to vector<17x1xf32>
    %477 = arith.divf %475, %476 : vector<17x1xf32>
    %478 = vector.broadcast %477 : vector<17x1xf32> to vector<17x64xf32>
    %479 = arith.subf %467, %478 : vector<17x64xf32>
    %480 = arith.mulf %479, %479 : vector<17x64xf32>
    %cst_190 = arith.constant dense<0.000000e+00> : vector<17xf32>
    %481 = vector.multi_reduction <add>, %480, %cst_190 [1] : vector<17x64xf32> to vector<17xf32>
    %482 = vector.shape_cast %481 : vector<17xf32> to vector<17x1xf32>
    %cst_191 = arith.constant 6.400000e+01 : f32
    %483 = vector.broadcast %cst_191 : f32 to vector<17x1xf32>
    %484 = arith.divf %482, %483 : vector<17x1xf32>
    %cst_192 = arith.constant 9.99999974E-6 : f32
    %485 = vector.broadcast %cst_192 : f32 to vector<17x1xf32>
    %486 = arith.addf %484, %485 : vector<17x1xf32>
    %487 = math.rsqrt %486 : vector<17x1xf32>
    %488 = vector.broadcast %487 : vector<17x1xf32> to vector<17x64xf32>
    %489 = arith.mulf %479, %488 : vector<17x64xf32>
    %490 = vector.broadcast %470 : vector<1x64xf32> to vector<17x64xf32>
    %491 = arith.mulf %489, %490 : vector<17x64xf32>
    %492 = vector.broadcast %473 : vector<1x64xf32> to vector<17x64xf32>
    %493 = arith.addf %491, %492 : vector<17x64xf32>
    %c2_193 = arith.constant 2 : index
    %c0_194 = arith.constant 0 : index
    %c0_195 = arith.constant 0 : index
    %494 = vector.load %arg15[%c2_193, %c0_194, %c0_195] : memref<3x64x256xf32, #tpu.memory_space<vmem>>, vector<1x64x256xf32>
    %495 = vector.shape_cast %494 : vector<1x64x256xf32> to vector<64x256xf32>
    %cst_196 = arith.constant dense<0.000000e+00> : vector<17x256xf32>
    %496 = tpu.matmul %493, %495, %cst_196 {dimension_numbers = #tpu.dot_dimension_numbers<[1], [0], [0], [1], [0, 0, 1, 1], [], []>} : vector<17x64xf32>, vector<64x256xf32>, vector<17x256xf32> -> vector<17x256xf32>
    %c2_197 = arith.constant 2 : index
    %c0_198 = arith.constant 0 : index
    %497 = vector.load %arg16[%c2_197, %c0_198] : memref<3x256xf32, #tpu.memory_space<vmem>>, vector<1x256xf32>
    %498 = vector.shape_cast %497 : vector<1x256xf32> to vector<256xf32>
    %499 = vector.shape_cast %498 : vector<256xf32> to vector<1x256xf32>
    %500 = vector.broadcast %499 : vector<1x256xf32> to vector<17x256xf32>
    %501 = arith.addf %496, %500 : vector<17x256xf32>
    %cst_199 = arith.constant 1.702000e+00 : f32
    %502 = vector.broadcast %cst_199 : f32 to vector<17x256xf32>
    %503 = arith.mulf %502, %501 : vector<17x256xf32>
    %504 = arith.negf %503 : vector<17x256xf32>
    %505 = math.exp %504 : vector<17x256xf32>
    %cst_200 = arith.constant 1.000000e+00 : f32
    %506 = vector.broadcast %cst_200 : f32 to vector<17x256xf32>
    %507 = arith.addf %506, %505 : vector<17x256xf32>
    %508 = arith.divf %506, %507 : vector<17x256xf32>
    %509 = arith.mulf %501, %508 : vector<17x256xf32>
    %c2_201 = arith.constant 2 : index
    %c0_202 = arith.constant 0 : index
    %c0_203 = arith.constant 0 : index
    %510 = vector.load %arg17[%c2_201, %c0_202, %c0_203] : memref<3x256x64xf32, #tpu.memory_space<vmem>>, vector<1x256x64xf32>
    %511 = vector.shape_cast %510 : vector<1x256x64xf32> to vector<256x64xf32>
    %cst_204 = arith.constant dense<0.000000e+00> : vector<17x64xf32>
    %512 = tpu.matmul %509, %511, %cst_204 {dimension_numbers = #tpu.dot_dimension_numbers<[1], [0], [0], [1], [0, 0, 1, 1], [], []>} : vector<17x256xf32>, vector<256x64xf32>, vector<17x64xf32> -> vector<17x64xf32>
    %c2_205 = arith.constant 2 : index
    %c0_206 = arith.constant 0 : index
    %513 = vector.load %arg18[%c2_205, %c0_206] : memref<3x64xf32, #tpu.memory_space<vmem>>, vector<1x64xf32>
    %514 = vector.shape_cast %513 : vector<1x64xf32> to vector<64xf32>
    %515 = vector.shape_cast %514 : vector<64xf32> to vector<1x64xf32>
    %516 = vector.broadcast %515 : vector<1x64xf32> to vector<17x64xf32>
    %517 = arith.addf %512, %516 : vector<17x64xf32>
    %518 = arith.addf %467, %517 : vector<17x64xf32>
    %519 = vector.extract_strided_slice %518 {offsets = [0, 0], sizes = [1, 64], strides = [1, 1]} : vector<17x64xf32> to vector<1x64xf32>
    %c0_207 = arith.constant 0 : index
    %c0_208 = arith.constant 0 : index
    %520 = vector.load %arg19[%c0_207, %c0_208] : memref<1x64xf32, #tpu.memory_space<vmem>>, vector<1x64xf32>
    %c0_209 = arith.constant 0 : index
    %c0_210 = arith.constant 0 : index
    %521 = vector.load %arg20[%c0_209, %c0_210] : memref<1x64xf32, #tpu.memory_space<vmem>>, vector<1x64xf32>
    %cst_211 = arith.constant dense<0.000000e+00> : vector<1xf32>
    %522 = vector.multi_reduction <add>, %519, %cst_211 [1] : vector<1x64xf32> to vector<1xf32>
    %523 = vector.shape_cast %522 : vector<1xf32> to vector<1x1xf32>
    %cst_212 = arith.constant 6.400000e+01 : f32
    %524 = vector.broadcast %cst_212 : f32 to vector<1x1xf32>
    %525 = arith.divf %523, %524 : vector<1x1xf32>
    %526 = vector.broadcast %525 : vector<1x1xf32> to vector<1x64xf32>
    %527 = arith.subf %519, %526 : vector<1x64xf32>
    %528 = arith.mulf %527, %527 : vector<1x64xf32>
    %cst_213 = arith.constant dense<0.000000e+00> : vector<1xf32>
    %529 = vector.multi_reduction <add>, %528, %cst_213 [1] : vector<1x64xf32> to vector<1xf32>
    %530 = vector.shape_cast %529 : vector<1xf32> to vector<1x1xf32>
    %cst_214 = arith.constant 6.400000e+01 : f32
    %531 = vector.broadcast %cst_214 : f32 to vector<1x1xf32>
    %532 = arith.divf %530, %531 : vector<1x1xf32>
    %cst_215 = arith.constant 9.99999974E-6 : f32
    %533 = vector.broadcast %cst_215 : f32 to vector<1x1xf32>
    %534 = arith.addf %532, %533 : vector<1x1xf32>
    %535 = math.rsqrt %534 : vector<1x1xf32>
    %536 = vector.broadcast %535 : vector<1x1xf32> to vector<1x64xf32>
    %537 = arith.mulf %527, %536 : vector<1x64xf32>
    %538 = arith.mulf %537, %520 : vector<1x64xf32>
    %539 = arith.addf %538, %521 : vector<1x64xf32>
    %c0_216 = arith.constant 0 : index
    %c0_217 = arith.constant 0 : index
    %540 = vector.load %arg21[%c0_216, %c0_217] : memref<64x64xf32, #tpu.memory_space<vmem>>, vector<64x64xf32>
    %cst_218 = arith.constant dense<0.000000e+00> : vector<1x64xf32>
    %541 = tpu.matmul %539, %540, %cst_218 {dimension_numbers = #tpu.dot_dimension_numbers<[1], [0], [0], [1], [0, 0, 1, 1], [], []>} : vector<1x64xf32>, vector<64x64xf32>, vector<1x64xf32> -> vector<1x64xf32>
    %c0_219 = arith.constant 0 : index
    %c0_220 = arith.constant 0 : index
    %c0_221 = arith.constant 0 : index
    %542 = vector.load %arg22[%c0_219, %c0_220, %c0_221] : memref<1x1x64xf32, #tpu.memory_space<vmem>>, vector<1x1x64xf32>
    %543 = vector.shape_cast %542 : vector<1x1x64xf32> to vector<1x64xf32>
    %544 = vector.shape_cast %541 : vector<1x64xf32> to vector<1x1x64xf32>
    tpu.vector_store %arg22[%c0_219, %c0_220, %c0_221], %544 {strides = array<i32>} : memref<1x1x64xf32, #tpu.memory_space<vmem>>, vector<1x1x64xf32>,
    return
  }
  func.func @transform_0(%arg0: i32) -> (i32, i32, i32) {
    %c0_i32 = arith.constant 0 : i32
    %c0_i32_0 = arith.constant 0 : i32
    %c0_i32_1 = arith.constant 0 : i32
    return %arg0, %c0_i32, %c0_i32_0 : i32, i32, i32
  }
  func.func @transform_1(%arg0: i32) -> (i32, i32) {
    %c0_i32 = arith.constant 0 : i32
    %c0_i32_0 = arith.constant 0 : i32
    %c0_i32_1 = arith.constant 0 : i32
    return %c0_i32, %c0_i32_0 : i32, i32
  }
  func.func @transform_2(%arg0: i32) -> (i32, i32) {
    %c0_i32 = arith.constant 0 : i32
    %c0_i32_0 = arith.constant 0 : i32
    %c0_i32_1 = arith.constant 0 : i32
    return %c0_i32, %c0_i32_0 : i32, i32
  }
  func.func @transform_3(%arg0: i32) -> (i32, i32) {
    %c0_i32 = arith.constant 0 : i32
    %c0_i32_0 = arith.constant 0 : i32
    %c0_i32_1 = arith.constant 0 : i32
    return %c0_i32, %c0_i32_0 : i32, i32
  }
  func.func @transform_4(%arg0: i32) -> (i32, i32) {
    %c0_i32 = arith.constant 0 : i32
    %c0_i32_0 = arith.constant 0 : i32
    %c0_i32_1 = arith.constant 0 : i32
    return %c0_i32, %c0_i32_0 : i32, i32
  }
  func.func @transform_5(%arg0: i32) -> (i32, i32) {
    %c0_i32 = arith.constant 0 : i32
    %c0_i32_0 = arith.constant 0 : i32
    %c0_i32_1 = arith.constant 0 : i32
    return %c0_i32, %c0_i32_0 : i32, i32
  }
  func.func @transform_6(%arg0: i32) -> (i32, i32) {
    %c0_i32 = arith.constant 0 : i32
    %c0_i32_0 = arith.constant 0 : i32
    %c0_i32_1 = arith.constant 0 : i32
    return %c0_i32, %c0_i32_0 : i32, i32
  }
  func.func @transform_7(%arg0: i32) -> (i32, i32) {
    %c0_i32 = arith.constant 0 : i32
    %c0_i32_0 = arith.constant 0 : i32
    %c0_i32_1 = arith.constant 0 : i32
    return %c0_i32, %c0_i32_0 : i32, i32
  }
  func.func @transform_8(%arg0: i32) -> (i32, i32, i32) {
    %c0_i32 = arith.constant 0 : i32
    %c0_i32_0 = arith.constant 0 : i32
    %c0_i32_1 = arith.constant 0 : i32
    %c0_i32_2 = arith.constant 0 : i32
    return %c0_i32, %c0_i32_0, %c0_i32_1 : i32, i32, i32
  }
  func.func @transform_9(%arg0: i32) -> (i32, i32) {
    %c0_i32 = arith.constant 0 : i32
    %c0_i32_0 = arith.constant 0 : i32
    %c0_i32_1 = arith.constant 0 : i32
    return %c0_i32, %c0_i32_0 : i32, i32
  }
  func.func @transform_10(%arg0: i32) -> (i32, i32, i32) {
    %c0_i32 = arith.constant 0 : i32
    %c0_i32_0 = arith.constant 0 : i32
    %c0_i32_1 = arith.constant 0 : i32
    %c0_i32_2 = arith.constant 0 : i32
    return %c0_i32, %c0_i32_0, %c0_i32_1 : i32, i32, i32
  }
  func.func @transform_11(%arg0: i32) -> (i32, i32) {
    %c0_i32 = arith.constant 0 : i32
    %c0_i32_0 = arith.constant 0 : i32
    %c0_i32_1 = arith.constant 0 : i32
    return %c0_i32, %c0_i32_0 : i32, i32
  }
  func.func @transform_12(%arg0: i32) -> (i32, i32) {
    %c0_i32 = arith.constant 0 : i32
    %c0_i32_0 = arith.constant 0 : i32
    %c0_i32_1 = arith.constant 0 : i32
    return %c0_i32, %c0_i32_0 : i32, i32
  }
  func.func @transform_13(%arg0: i32) -> (i32, i32) {
    %c0_i32 = arith.constant 0 : i32
    %c0_i32_0 = arith.constant 0 : i32
    %c0_i32_1 = arith.constant 0 : i32
    return %c0_i32, %c0_i32_0 : i32, i32
  }
  func.func @transform_14(%arg0: i32) -> (i32, i32, i32) {
    %c0_i32 = arith.constant 0 : i32
    %c0_i32_0 = arith.constant 0 : i32
    %c0_i32_1 = arith.constant 0 : i32
    %c0_i32_2 = arith.constant 0 : i32
    return %c0_i32, %c0_i32_0, %c0_i32_1 : i32, i32, i32
  }
  func.func @transform_15(%arg0: i32) -> (i32, i32) {
    %c0_i32 = arith.constant 0 : i32
    %c0_i32_0 = arith.constant 0 : i32
    %c0_i32_1 = arith.constant 0 : i32
    return %c0_i32, %c0_i32_0 : i32, i32
  }
  func.func @transform_16(%arg0: i32) -> (i32, i32, i32) {
    %c0_i32 = arith.constant 0 : i32
    %c0_i32_0 = arith.constant 0 : i32
    %c0_i32_1 = arith.constant 0 : i32
    %c0_i32_2 = arith.constant 0 : i32
    return %c0_i32, %c0_i32_0, %c0_i32_1 : i32, i32, i32
  }
  func.func @transform_17(%arg0: i32) -> (i32, i32) {
    %c0_i32 = arith.constant 0 : i32
    %c0_i32_0 = arith.constant 0 : i32
    %c0_i32_1 = arith.constant 0 : i32
    return %c0_i32, %c0_i32_0 : i32, i32
  }
  func.func @transform_18(%arg0: i32) -> (i32, i32) {
    %c0_i32 = arith.constant 0 : i32
    %c0_i32_0 = arith.constant 0 : i32
    %c0_i32_1 = arith.constant 0 : i32
    return %c0_i32, %c0_i32_0 : i32, i32
  }
  func.func @transform_19(%arg0: i32) -> (i32, i32) {
    %c0_i32 = arith.constant 0 : i32
    %c0_i32_0 = arith.constant 0 : i32
    %c0_i32_1 = arith.constant 0 : i32
    return %c0_i32, %c0_i32_0 : i32, i32
  }
  func.func @transform_20(%arg0: i32) -> (i32, i32) {
    %c0_i32 = arith.constant 0 : i32
    %c0_i32_0 = arith.constant 0 : i32
    %c0_i32_1 = arith.constant 0 : i32
    return %c0_i32, %c0_i32_0 : i32, i32
  }
  func.func @transform_21(%arg0: i32) -> (i32, i32, i32) {
    %c0_i32 = arith.constant 0 : i32
    %c0_i32_0 = arith.constant 0 : i32
    %c0_i32_1 = arith.constant 0 : i32
    return %arg0, %c0_i32, %c0_i32_0 : i32, i32, i32
  }
}

module attributes {stable_mosaic.version = 11 : i64} {
  func.func @_logits_kernel(%arg0: i32, %arg1: memref<2x64xf32, #tpu.memory_space<vmem>>, %arg2: memref<4x64xf32, #tpu.memory_space<vmem>>, %arg3: memref<1x1xf32, #tpu.memory_space<smem>>, %arg4: memref<2x4xf32, #tpu.memory_space<vmem>>) attributes {dimension_semantics = [#tpu.dimension_semantics<arbitrary>], iteration_bounds = array<i64: 1>, scalar_prefetch = 0 : i64, scratch_operands = 0 : i64, tpu.core_type = #tpu.core_type<tc>, window_params = [{pipeline_mode = #tpu.pipeline_mode<synchronous>, transform_indices = @transform_0, window_bounds = array<i64: 2, 64>}, {pipeline_mode = #tpu.pipeline_mode<synchronous>, transform_indices = @transform_1, window_bounds = array<i64: 4, 64>}, {transform_indices = @transform_2, window_bounds = array<i64: 1, 1>}, {pipeline_mode = #tpu.pipeline_mode<synchronous>, transform_indices = @transform_3, window_bounds = array<i64: 2, 4>}]} {
    %c0 = arith.constant 0 : index
    %c0_0 = arith.constant 0 : index
    %0 = vector.load %arg1[%c0, %c0_0] : memref<2x64xf32, #tpu.memory_space<vmem>>, vector<2x64xf32>
    %c0_1 = arith.constant 0 : index
    %c0_2 = arith.constant 0 : index
    %1 = vector.load %arg2[%c0_1, %c0_2] : memref<4x64xf32, #tpu.memory_space<vmem>>, vector<4x64xf32>
    %2 = arith.mulf %0, %0 : vector<2x64xf32>
    %cst = arith.constant dense<0.000000e+00> : vector<2xf32>
    %3 = vector.multi_reduction <add>, %2, %cst [1] : vector<2x64xf32> to vector<2xf32>
    %4 = vector.shape_cast %3 : vector<2xf32> to vector<2x1xf32>
    %cst_3 = arith.constant 9.99999996E-13 : f32
    %5 = vector.broadcast %cst_3 : f32 to vector<2x1xf32>
    %6 = arith.addf %4, %5 : vector<2x1xf32>
    %7 = math.rsqrt %6 : vector<2x1xf32>
    %8 = vector.broadcast %7 : vector<2x1xf32> to vector<2x64xf32>
    %9 = arith.mulf %0, %8 : vector<2x64xf32>
    %10 = arith.mulf %1, %1 : vector<4x64xf32>
    %cst_4 = arith.constant dense<0.000000e+00> : vector<4xf32>
    %11 = vector.multi_reduction <add>, %10, %cst_4 [1] : vector<4x64xf32> to vector<4xf32>
    %12 = vector.shape_cast %11 : vector<4xf32> to vector<4x1xf32>
    %cst_5 = arith.constant 9.99999996E-13 : f32
    %13 = vector.broadcast %cst_5 : f32 to vector<4x1xf32>
    %14 = arith.addf %12, %13 : vector<4x1xf32>
    %15 = math.rsqrt %14 : vector<4x1xf32>
    %16 = vector.broadcast %15 : vector<4x1xf32> to vector<4x64xf32>
    %17 = arith.mulf %1, %16 : vector<4x64xf32>
    %c0_6 = arith.constant 0 : index
    %c0_7 = arith.constant 0 : index
    %18 = memref.load %arg3[%c0_6, %c0_7] : memref<1x1xf32, #tpu.memory_space<smem>>
    %cst_8 = arith.constant dense<0.000000e+00> : vector<2x4xf32>
    %19 = tpu.matmul %9, %17, %cst_8 {dimension_numbers = #tpu.dot_dimension_numbers<[1], [1], [0], [0], [0, 0, 1, 0], [], []>} : vector<2x64xf32>, vector<4x64xf32>, vector<2x4xf32> -> vector<2x4xf32>
    %20 = vector.broadcast %18 : f32 to vector<2x4xf32>
    %21 = arith.mulf %20, %19 : vector<2x4xf32>
    %c0_9 = arith.constant 0 : index
    %c0_10 = arith.constant 0 : index
    %22 = vector.load %arg4[%c0_9, %c0_10] : memref<2x4xf32, #tpu.memory_space<vmem>>, vector<2x4xf32>
    tpu.vector_store %arg4[%c0_9, %c0_10], %21 {strides = array<i32>} : memref<2x4xf32, #tpu.memory_space<vmem>>, vector<2x4xf32>,
    return
  }
  func.func @transform_0(%arg0: i32) -> (i32, i32) {
    %c0_i32 = arith.constant 0 : i32
    %c0_i32_0 = arith.constant 0 : i32
    %c0_i32_1 = arith.constant 0 : i32
    return %c0_i32, %c0_i32_0 : i32, i32
  }
  func.func @transform_1(%arg0: i32) -> (i32, i32) {
    %c0_i32 = arith.constant 0 : i32
    %c0_i32_0 = arith.constant 0 : i32
    %c0_i32_1 = arith.constant 0 : i32
    return %c0_i32, %c0_i32_0 : i32, i32
  }
  func.func @transform_2(%arg0: i32) -> (i32, i32) {
    %c0_i32 = arith.constant 0 : i32
    %c0_i32_0 = arith.constant 0 : i32
    %c0_i32_1 = arith.constant 0 : i32
    return %c0_i32, %c0_i32_0 : i32, i32
  }
  func.func @transform_3(%arg0: i32) -> (i32, i32) {
    %c0_i32 = arith.constant 0 : i32
    %c0_i32_0 = arith.constant 0 : i32
    %c0_i32_1 = arith.constant 0 : i32
    return %c0_i32, %c0_i32_0 : i32, i32
  }
}

module attributes {stable_mosaic.version = 11 : i64} {
  func.func @_text_kernel(%arg0: i32, %arg1: memref<1x16x64xf32, #tpu.memory_space<vmem>>, %arg2: memref<16x64xf32, #tpu.memory_space<vmem>>, %arg3: memref<1x1x16xf32, #tpu.memory_space<vmem>>, %arg4: memref<3x64xf32, #tpu.memory_space<vmem>>, %arg5: memref<3x64xf32, #tpu.memory_space<vmem>>, %arg6: memref<3x64x192xf32, #tpu.memory_space<vmem>>, %arg7: memref<3x192xf32, #tpu.memory_space<vmem>>, %arg8: memref<3x64x64xf32, #tpu.memory_space<vmem>>, %arg9: memref<3x64xf32, #tpu.memory_space<vmem>>, %arg10: memref<3x64xf32, #tpu.memory_space<vmem>>, %arg11: memref<3x64xf32, #tpu.memory_space<vmem>>, %arg12: memref<3x64x256xf32, #tpu.memory_space<vmem>>, %arg13: memref<3x256xf32, #tpu.memory_space<vmem>>, %arg14: memref<3x256x64xf32, #tpu.memory_space<vmem>>, %arg15: memref<3x64xf32, #tpu.memory_space<vmem>>, %arg16: memref<1x64xf32, #tpu.memory_space<vmem>>, %arg17: memref<1x64xf32, #tpu.memory_space<vmem>>, %arg18: memref<64x64xf32, #tpu.memory_space<vmem>>, %arg19: memref<1x1x64xf32, #tpu.memory_space<vmem>>) attributes {dimension_semantics = [#tpu.dimension_semantics<parallel>], iteration_bounds = array<i64: 4>, scalar_prefetch = 0 : i64, scratch_operands = 0 : i64, tpu.core_type = #tpu.core_type<tc>, window_params = [{transform_indices = @transform_0, window_bounds = array<i64: 1, 16, 64>}, {pipeline_mode = #tpu.pipeline_mode<synchronous>, transform_indices = @transform_1, window_bounds = array<i64: 16, 64>}, {transform_indices = @transform_2, window_bounds = array<i64: 1, 1, 16>}, {pipeline_mode = #tpu.pipeline_mode<synchronous>, transform_indices = @transform_3, window_bounds = array<i64: 3, 64>}, {pipeline_mode = #tpu.pipeline_mode<synchronous>, transform_indices = @transform_4, window_bounds = array<i64: 3, 64>}, {pipeline_mode = #tpu.pipeline_mode<synchronous>, transform_indices = @transform_5, window_bounds = array<i64: 3, 64, 192>}, {pipeline_mode = #tpu.pipeline_mode<synchronous>, transform_indices = @transform_6, window_bounds = array<i64: 3, 192>}, {pipeline_mode = #tpu.pipeline_mode<synchronous>, transform_indices = @transform_7, window_bounds = array<i64: 3, 64, 64>}, {pipeline_mode = #tpu.pipeline_mode<synchronous>, transform_indices = @transform_8, window_bounds = array<i64: 3, 64>}, {pipeline_mode = #tpu.pipeline_mode<synchronous>, transform_indices = @transform_9, window_bounds = array<i64: 3, 64>}, {pipeline_mode = #tpu.pipeline_mode<synchronous>, transform_indices = @transform_10, window_bounds = array<i64: 3, 64>}, {pipeline_mode = #tpu.pipeline_mode<synchronous>, transform_indices = @transform_11, window_bounds = array<i64: 3, 64, 256>}, {pipeline_mode = #tpu.pipeline_mode<synchronous>, transform_indices = @transform_12, window_bounds = array<i64: 3, 256>}, {pipeline_mode = #tpu.pipeline_mode<synchronous>, transform_indices = @transform_13, window_bounds = array<i64: 3, 256, 64>}, {pipeline_mode = #tpu.pipeline_mode<synchronous>, transform_indices = @transform_14, window_bounds = array<i64: 3, 64>}, {pipeline_mode = #tpu.pipeline_mode<synchronous>, transform_indices = @transform_15, window_bounds = array<i64: 1, 64>}, {pipeline_mode = #tpu.pipeline_mode<synchronous>, transform_indices = @transform_16, window_bounds = array<i64: 1, 64>}, {pipeline_mode = #tpu.pipeline_mode<synchronous>, transform_indices = @transform_17, window_bounds = array<i64: 64, 64>}, {transform_indices = @transform_18, window_bounds = array<i64: 1, 1, 64>}]} {
    %c0 = arith.constant 0 : index
    %c0_0 = arith.constant 0 : index
    %c0_1 = arith.constant 0 : index
    %0 = vector.load %arg1[%c0, %c0_0, %c0_1] : memref<1x16x64xf32, #tpu.memory_space<vmem>>, vector<1x16x64xf32>
    %1 = vector.shape_cast %0 : vector<1x16x64xf32> to vector<16x64xf32>
    %c0_2 = arith.constant 0 : index
    %c0_3 = arith.constant 0 : index
    %2 = vector.load %arg2[%c0_2, %c0_3] : memref<16x64xf32, #tpu.memory_space<vmem>>, vector<16x64xf32>
    %3 = arith.addf %1, %2 : vector<16x64xf32>
    %4 = tpu.iota {dimensions = array<i32: 0>} : vector<16x16xi32>
    %5 = tpu.iota {dimensions = array<i32: 1>} : vector<16x16xi32>
    %6 = arith.cmpi sgt, %5, %4 : vector<16x16xi32>
    %cst = arith.constant -1.000000e+09 : f32
    %cst_4 = arith.constant 0.000000e+00 : f32
    %7 = vector.broadcast %cst : f32 to vector<16x16xf32>
    %8 = vector.broadcast %cst_4 : f32 to vector<16x16xf32>
    %9 = arith.select %6, %7, %8 : vector<16x16xi1>, vector<16x16xf32>
    %c0_5 = arith.constant 0 : index
    %c0_6 = arith.constant 0 : index
    %10 = vector.load %arg4[%c0_5, %c0_6] : memref<3x64xf32, #tpu.memory_space<vmem>>, vector<1x64xf32>
    %11 = vector.shape_cast %10 : vector<1x64xf32> to vector<64xf32>
    %12 = vector.shape_cast %11 : vector<64xf32> to vector<1x64xf32>
    %c0_7 = arith.constant 0 : index
    %c0_8 = arith.constant 0 : index
    %13 = vector.load %arg5[%c0_7, %c0_8] : memref<3x64xf32, #tpu.memory_space<vmem>>, vector<1x64xf32>
    %14 = vector.shape_cast %13 : vector<1x64xf32> to vector<64xf32>
    %15 = vector.shape_cast %14 : vector<64xf32> to vector<1x64xf32>
    %cst_9 = arith.constant dense<0.000000e+00> : vector<16xf32>
    %16 = vector.multi_reduction <add>, %3, %cst_9 [1] : vector<16x64xf32> to vector<16xf32>
    %17 = vector.shape_cast %16 : vector<16xf32> to vector<16x1xf32>
    %cst_10 = arith.constant 6.400000e+01 : f32
    %18 = vector.broadcast %cst_10 : f32 to vector<16x1xf32>
    %19 = arith.divf %17, %18 : vector<16x1xf32>
    %20 = vector.broadcast %19 : vector<16x1xf32> to vector<16x64xf32>
    %21 = arith.subf %3, %20 : vector<16x64xf32>
    %22 = arith.mulf %21, %21 : vector<16x64xf32>
    %cst_11 = arith.constant dense<0.000000e+00> : vector<16xf32>
    %23 = vector.multi_reduction <add>, %22, %cst_11 [1] : vector<16x64xf32> to vector<16xf32>
    %24 = vector.shape_cast %23 : vector<16xf32> to vector<16x1xf32>
    %cst_12 = arith.constant 6.400000e+01 : f32
    %25 = vector.broadcast %cst_12 : f32 to vector<16x1xf32>
    %26 = arith.divf %24, %25 : vector<16x1xf32>
    %cst_13 = arith.constant 9.99999974E-6 : f32
    %27 = vector.broadcast %cst_13 : f32 to vector<16x1xf32>
    %28 = arith.addf %26, %27 : vector<16x1xf32>
    %29 = math.rsqrt %28 : vector<16x1xf32>
    %30 = vector.broadcast %29 : vector<16x1xf32> to vector<16x64xf32>
    %31 = arith.mulf %21, %30 : vector<16x64xf32>
    %32 = vector.broadcast %12 : vector<1x64xf32> to vector<16x64xf32>
    %33 = arith.mulf %31, %32 : vector<16x64xf32>
    %34 = vector.broadcast %15 : vector<1x64xf32> to vector<16x64xf32>
    %35 = arith.addf %33, %34 : vector<16x64xf32>
    %c0_14 = arith.constant 0 : index
    %c0_15 = arith.constant 0 : index
    %c0_16 = arith.constant 0 : index
    %36 = vector.load %arg6[%c0_14, %c0_15, %c0_16] : memref<3x64x192xf32, #tpu.memory_space<vmem>>, vector<1x64x192xf32>
    %37 = vector.shape_cast %36 : vector<1x64x192xf32> to vector<64x192xf32>
    %cst_17 = arith.constant dense<0.000000e+00> : vector<16x192xf32>
    %38 = tpu.matmul %35, %37, %cst_17 {dimension_numbers = #tpu.dot_dimension_numbers<[1], [0], [0], [1], [0, 0, 1, 1], [], []>} : vector<16x64xf32>, vector<64x192xf32>, vector<16x192xf32> -> vector<16x192xf32>
    %c0_18 = arith.constant 0 : index
    %c0_19 = arith.constant 0 : index
    %39 = vector.load %arg7[%c0_18, %c0_19] : memref<3x192xf32, #tpu.memory_space<vmem>>, vector<1x192xf32>
    %40 = vector.shape_cast %39 : vector<1x192xf32> to vector<192xf32>
    %41 = vector.shape_cast %40 : vector<192xf32> to vector<1x192xf32>
    %42 = vector.broadcast %41 : vector<1x192xf32> to vector<16x192xf32>
    %43 = arith.addf %38, %42 : vector<16x192xf32>
    %44 = vector.extract_strided_slice %43 {offsets = [0, 0], sizes = [16, 16], strides = [1, 1]} : vector<16x192xf32> to vector<16x16xf32>
    %45 = vector.extract_strided_slice %43 {offsets = [0, 64], sizes = [16, 16], strides = [1, 1]} : vector<16x192xf32> to vector<16x16xf32>
    %46 = vector.extract_strided_slice %43 {offsets = [0, 128], sizes = [16, 16], strides = [1, 1]} : vector<16x192xf32> to vector<16x16xf32>
    %cst_20 = arith.constant dense<0.000000e+00> : vector<16x16xf32>
    %47 = tpu.matmul %44, %45, %cst_20 {dimension_numbers = #tpu.dot_dimension_numbers<[1], [1], [0], [0], [0, 0, 1, 0], [], []>} : vector<16x16xf32>, vector<16x16xf32>, vector<16x16xf32> -> vector<16x16xf32>
    %cst_21 = arith.constant 2.500000e-01 : f32
    %48 = vector.broadcast %cst_21 : f32 to vector<16x16xf32>
    %49 = arith.mulf %47, %48 : vector<16x16xf32>
    %50 = arith.addf %49, %9 : vector<16x16xf32>
    %cst_22 = arith.constant dense<0xFF800000> : vector<16xf32>
    %51 = vector.multi_reduction <maximumf>, %50, %cst_22 [1] : vector<16x16xf32> to vector<16xf32>
    %52 = vector.shape_cast %51 : vector<16xf32> to vector<16x1xf32>
    %53 = vector.broadcast %52 : vector<16x1xf32> to vector<16x16xf32>
    %54 = arith.subf %50, %53 : vector<16x16xf32>
    %55 = math.exp %54 : vector<16x16xf32>
    %cst_23 = arith.constant dense<0.000000e+00> : vector<16xf32>
    %56 = vector.multi_reduction <add>, %55, %cst_23 [1] : vector<16x16xf32> to vector<16xf32>
    %57 = vector.shape_cast %56 : vector<16xf32> to vector<16x1xf32>
    %58 = tpu.reciprocal %57 {approx = true} : vector<16x1xf32> -> vector<16x1xf32>
    %59 = vector.broadcast %58 : vector<16x1xf32> to vector<16x16xf32>
    %60 = arith.mulf %55, %59 : vector<16x16xf32>
    %cst_24 = arith.constant dense<0.000000e+00> : vector<16x16xf32>
    %61 = tpu.matmul %60, %46, %cst_24 {dimension_numbers = #tpu.dot_dimension_numbers<[1], [0], [0], [1], [0, 0, 1, 1], [], []>} : vector<16x16xf32>, vector<16x16xf32>, vector<16x16xf32> -> vector<16x16xf32>
    %62 = vector.extract_strided_slice %43 {offsets = [0, 16], sizes = [16, 16], strides = [1, 1]} : vector<16x192xf32> to vector<16x16xf32>
    %63 = vector.extract_strided_slice %43 {offsets = [0, 80], sizes = [16, 16], strides = [1, 1]} : vector<16x192xf32> to vector<16x16xf32>
    %64 = vector.extract_strided_slice %43 {offsets = [0, 144], sizes = [16, 16], strides = [1, 1]} : vector<16x192xf32> to vector<16x16xf32>
    %cst_25 = arith.constant dense<0.000000e+00> : vector<16x16xf32>
    %65 = tpu.matmul %62, %63, %cst_25 {dimension_numbers = #tpu.dot_dimension_numbers<[1], [1], [0], [0], [0, 0, 1, 0], [], []>} : vector<16x16xf32>, vector<16x16xf32>, vector<16x16xf32> -> vector<16x16xf32>
    %cst_26 = arith.constant 2.500000e-01 : f32
    %66 = vector.broadcast %cst_26 : f32 to vector<16x16xf32>
    %67 = arith.mulf %65, %66 : vector<16x16xf32>
    %68 = arith.addf %67, %9 : vector<16x16xf32>
    %cst_27 = arith.constant dense<0xFF800000> : vector<16xf32>
    %69 = vector.multi_reduction <maximumf>, %68, %cst_27 [1] : vector<16x16xf32> to vector<16xf32>
    %70 = vector.shape_cast %69 : vector<16xf32> to vector<16x1xf32>
    %71 = vector.broadcast %70 : vector<16x1xf32> to vector<16x16xf32>
    %72 = arith.subf %68, %71 : vector<16x16xf32>
    %73 = math.exp %72 : vector<16x16xf32>
    %cst_28 = arith.constant dense<0.000000e+00> : vector<16xf32>
    %74 = vector.multi_reduction <add>, %73, %cst_28 [1] : vector<16x16xf32> to vector<16xf32>
    %75 = vector.shape_cast %74 : vector<16xf32> to vector<16x1xf32>
    %76 = tpu.reciprocal %75 {approx = true} : vector<16x1xf32> -> vector<16x1xf32>
    %77 = vector.broadcast %76 : vector<16x1xf32> to vector<16x16xf32>
    %78 = arith.mulf %73, %77 : vector<16x16xf32>
    %cst_29 = arith.constant dense<0.000000e+00> : vector<16x16xf32>
    %79 = tpu.matmul %78, %64, %cst_29 {dimension_numbers = #tpu.dot_dimension_numbers<[1], [0], [0], [1], [0, 0, 1, 1], [], []>} : vector<16x16xf32>, vector<16x16xf32>, vector<16x16xf32> -> vector<16x16xf32>
    %80 = vector.extract_strided_slice %43 {offsets = [0, 32], sizes = [16, 16], strides = [1, 1]} : vector<16x192xf32> to vector<16x16xf32>
    %81 = vector.extract_strided_slice %43 {offsets = [0, 96], sizes = [16, 16], strides = [1, 1]} : vector<16x192xf32> to vector<16x16xf32>
    %82 = vector.extract_strided_slice %43 {offsets = [0, 160], sizes = [16, 16], strides = [1, 1]} : vector<16x192xf32> to vector<16x16xf32>
    %cst_30 = arith.constant dense<0.000000e+00> : vector<16x16xf32>
    %83 = tpu.matmul %80, %81, %cst_30 {dimension_numbers = #tpu.dot_dimension_numbers<[1], [1], [0], [0], [0, 0, 1, 0], [], []>} : vector<16x16xf32>, vector<16x16xf32>, vector<16x16xf32> -> vector<16x16xf32>
    %cst_31 = arith.constant 2.500000e-01 : f32
    %84 = vector.broadcast %cst_31 : f32 to vector<16x16xf32>
    %85 = arith.mulf %83, %84 : vector<16x16xf32>
    %86 = arith.addf %85, %9 : vector<16x16xf32>
    %cst_32 = arith.constant dense<0xFF800000> : vector<16xf32>
    %87 = vector.multi_reduction <maximumf>, %86, %cst_32 [1] : vector<16x16xf32> to vector<16xf32>
    %88 = vector.shape_cast %87 : vector<16xf32> to vector<16x1xf32>
    %89 = vector.broadcast %88 : vector<16x1xf32> to vector<16x16xf32>
    %90 = arith.subf %86, %89 : vector<16x16xf32>
    %91 = math.exp %90 : vector<16x16xf32>
    %cst_33 = arith.constant dense<0.000000e+00> : vector<16xf32>
    %92 = vector.multi_reduction <add>, %91, %cst_33 [1] : vector<16x16xf32> to vector<16xf32>
    %93 = vector.shape_cast %92 : vector<16xf32> to vector<16x1xf32>
    %94 = tpu.reciprocal %93 {approx = true} : vector<16x1xf32> -> vector<16x1xf32>
    %95 = vector.broadcast %94 : vector<16x1xf32> to vector<16x16xf32>
    %96 = arith.mulf %91, %95 : vector<16x16xf32>
    %cst_34 = arith.constant dense<0.000000e+00> : vector<16x16xf32>
    %97 = tpu.matmul %96, %82, %cst_34 {dimension_numbers = #tpu.dot_dimension_numbers<[1], [0], [0], [1], [0, 0, 1, 1], [], []>} : vector<16x16xf32>, vector<16x16xf32>, vector<16x16xf32> -> vector<16x16xf32>
    %98 = vector.extract_strided_slice %43 {offsets = [0, 48], sizes = [16, 16], strides = [1, 1]} : vector<16x192xf32> to vector<16x16xf32>
    %99 = vector.extract_strided_slice %43 {offsets = [0, 112], sizes = [16, 16], strides = [1, 1]} : vector<16x192xf32> to vector<16x16xf32>
    %100 = vector.extract_strided_slice %43 {offsets = [0, 176], sizes = [16, 16], strides = [1, 1]} : vector<16x192xf32> to vector<16x16xf32>
    %cst_35 = arith.constant dense<0.000000e+00> : vector<16x16xf32>
    %101 = tpu.matmul %98, %99, %cst_35 {dimension_numbers = #tpu.dot_dimension_numbers<[1], [1], [0], [0], [0, 0, 1, 0], [], []>} : vector<16x16xf32>, vector<16x16xf32>, vector<16x16xf32> -> vector<16x16xf32>
    %cst_36 = arith.constant 2.500000e-01 : f32
    %102 = vector.broadcast %cst_36 : f32 to vector<16x16xf32>
    %103 = arith.mulf %101, %102 : vector<16x16xf32>
    %104 = arith.addf %103, %9 : vector<16x16xf32>
    %cst_37 = arith.constant dense<0xFF800000> : vector<16xf32>
    %105 = vector.multi_reduction <maximumf>, %104, %cst_37 [1] : vector<16x16xf32> to vector<16xf32>
    %106 = vector.shape_cast %105 : vector<16xf32> to vector<16x1xf32>
    %107 = vector.broadcast %106 : vector<16x1xf32> to vector<16x16xf32>
    %108 = arith.subf %104, %107 : vector<16x16xf32>
    %109 = math.exp %108 : vector<16x16xf32>
    %cst_38 = arith.constant dense<0.000000e+00> : vector<16xf32>
    %110 = vector.multi_reduction <add>, %109, %cst_38 [1] : vector<16x16xf32> to vector<16xf32>
    %111 = vector.shape_cast %110 : vector<16xf32> to vector<16x1xf32>
    %112 = tpu.reciprocal %111 {approx = true} : vector<16x1xf32> -> vector<16x1xf32>
    %113 = vector.broadcast %112 : vector<16x1xf32> to vector<16x16xf32>
    %114 = arith.mulf %109, %113 : vector<16x16xf32>
    %cst_39 = arith.constant dense<0.000000e+00> : vector<16x16xf32>
    %115 = tpu.matmul %114, %100, %cst_39 {dimension_numbers = #tpu.dot_dimension_numbers<[1], [0], [0], [1], [0, 0, 1, 1], [], []>} : vector<16x16xf32>, vector<16x16xf32>, vector<16x16xf32> -> vector<16x16xf32>
    %116 = tpu.concatenate %61, %79, %97, %115 in 1 : vector<16x16xf32>, vector<16x16xf32>, vector<16x16xf32>, vector<16x16xf32> -> vector<16x64xf32>
    %c0_40 = arith.constant 0 : index
    %c0_41 = arith.constant 0 : index
    %c0_42 = arith.constant 0 : index
    %117 = vector.load %arg8[%c0_40, %c0_41, %c0_42] : memref<3x64x64xf32, #tpu.memory_space<vmem>>, vector<1x64x64xf32>
    %118 = vector.shape_cast %117 : vector<1x64x64xf32> to vector<64x64xf32>
    %cst_43 = arith.constant dense<0.000000e+00> : vector<16x64xf32>
    %119 = tpu.matmul %116, %118, %cst_43 {dimension_numbers = #tpu.dot_dimension_numbers<[1], [0], [0], [1], [0, 0, 1, 1], [], []>} : vector<16x64xf32>, vector<64x64xf32>, vector<16x64xf32> -> vector<16x64xf32>
    %c0_44 = arith.constant 0 : index
    %c0_45 = arith.constant 0 : index
    %120 = vector.load %arg9[%c0_44, %c0_45] : memref<3x64xf32, #tpu.memory_space<vmem>>, vector<1x64xf32>
    %121 = vector.shape_cast %120 : vector<1x64xf32> to vector<64xf32>
    %122 = vector.shape_cast %121 : vector<64xf32> to vector<1x64xf32>
    %123 = vector.broadcast %122 : vector<1x64xf32> to vector<16x64xf32>
    %124 = arith.addf %119, %123 : vector<16x64xf32>
    %125 = arith.addf %3, %124 : vector<16x64xf32>
    %c0_46 = arith.constant 0 : index
    %c0_47 = arith.constant 0 : index
    %126 = vector.load %arg10[%c0_46, %c0_47] : memref<3x64xf32, #tpu.memory_space<vmem>>, vector<1x64xf32>
    %127 = vector.shape_cast %126 : vector<1x64xf32> to vector<64xf32>
    %128 = vector.shape_cast %127 : vector<64xf32> to vector<1x64xf32>
    %c0_48 = arith.constant 0 : index
    %c0_49 = arith.constant 0 : index
    %129 = vector.load %arg11[%c0_48, %c0_49] : memref<3x64xf32, #tpu.memory_space<vmem>>, vector<1x64xf32>
    %130 = vector.shape_cast %129 : vector<1x64xf32> to vector<64xf32>
    %131 = vector.shape_cast %130 : vector<64xf32> to vector<1x64xf32>
    %cst_50 = arith.constant dense<0.000000e+00> : vector<16xf32>
    %132 = vector.multi_reduction <add>, %125, %cst_50 [1] : vector<16x64xf32> to vector<16xf32>
    %133 = vector.shape_cast %132 : vector<16xf32> to vector<16x1xf32>
    %cst_51 = arith.constant 6.400000e+01 : f32
    %134 = vector.broadcast %cst_51 : f32 to vector<16x1xf32>
    %135 = arith.divf %133, %134 : vector<16x1xf32>
    %136 = vector.broadcast %135 : vector<16x1xf32> to vector<16x64xf32>
    %137 = arith.subf %125, %136 : vector<16x64xf32>
    %138 = arith.mulf %137, %137 : vector<16x64xf32>
    %cst_52 = arith.constant dense<0.000000e+00> : vector<16xf32>
    %139 = vector.multi_reduction <add>, %138, %cst_52 [1] : vector<16x64xf32> to vector<16xf32>
    %140 = vector.shape_cast %139 : vector<16xf32> to vector<16x1xf32>
    %cst_53 = arith.constant 6.400000e+01 : f32
    %141 = vector.broadcast %cst_53 : f32 to vector<16x1xf32>
    %142 = arith.divf %140, %141 : vector<16x1xf32>
    %cst_54 = arith.constant 9.99999974E-6 : f32
    %143 = vector.broadcast %cst_54 : f32 to vector<16x1xf32>
    %144 = arith.addf %142, %143 : vector<16x1xf32>
    %145 = math.rsqrt %144 : vector<16x1xf32>
    %146 = vector.broadcast %145 : vector<16x1xf32> to vector<16x64xf32>
    %147 = arith.mulf %137, %146 : vector<16x64xf32>
    %148 = vector.broadcast %128 : vector<1x64xf32> to vector<16x64xf32>
    %149 = arith.mulf %147, %148 : vector<16x64xf32>
    %150 = vector.broadcast %131 : vector<1x64xf32> to vector<16x64xf32>
    %151 = arith.addf %149, %150 : vector<16x64xf32>
    %c0_55 = arith.constant 0 : index
    %c0_56 = arith.constant 0 : index
    %c0_57 = arith.constant 0 : index
    %152 = vector.load %arg12[%c0_55, %c0_56, %c0_57] : memref<3x64x256xf32, #tpu.memory_space<vmem>>, vector<1x64x256xf32>
    %153 = vector.shape_cast %152 : vector<1x64x256xf32> to vector<64x256xf32>
    %cst_58 = arith.constant dense<0.000000e+00> : vector<16x256xf32>
    %154 = tpu.matmul %151, %153, %cst_58 {dimension_numbers = #tpu.dot_dimension_numbers<[1], [0], [0], [1], [0, 0, 1, 1], [], []>} : vector<16x64xf32>, vector<64x256xf32>, vector<16x256xf32> -> vector<16x256xf32>
    %c0_59 = arith.constant 0 : index
    %c0_60 = arith.constant 0 : index
    %155 = vector.load %arg13[%c0_59, %c0_60] : memref<3x256xf32, #tpu.memory_space<vmem>>, vector<1x256xf32>
    %156 = vector.shape_cast %155 : vector<1x256xf32> to vector<256xf32>
    %157 = vector.shape_cast %156 : vector<256xf32> to vector<1x256xf32>
    %158 = vector.broadcast %157 : vector<1x256xf32> to vector<16x256xf32>
    %159 = arith.addf %154, %158 : vector<16x256xf32>
    %cst_61 = arith.constant 1.702000e+00 : f32
    %160 = vector.broadcast %cst_61 : f32 to vector<16x256xf32>
    %161 = arith.mulf %160, %159 : vector<16x256xf32>
    %162 = arith.negf %161 : vector<16x256xf32>
    %163 = math.exp %162 : vector<16x256xf32>
    %cst_62 = arith.constant 1.000000e+00 : f32
    %164 = vector.broadcast %cst_62 : f32 to vector<16x256xf32>
    %165 = arith.addf %164, %163 : vector<16x256xf32>
    %166 = arith.divf %164, %165 : vector<16x256xf32>
    %167 = arith.mulf %159, %166 : vector<16x256xf32>
    %c0_63 = arith.constant 0 : index
    %c0_64 = arith.constant 0 : index
    %c0_65 = arith.constant 0 : index
    %168 = vector.load %arg14[%c0_63, %c0_64, %c0_65] : memref<3x256x64xf32, #tpu.memory_space<vmem>>, vector<1x256x64xf32>
    %169 = vector.shape_cast %168 : vector<1x256x64xf32> to vector<256x64xf32>
    %cst_66 = arith.constant dense<0.000000e+00> : vector<16x64xf32>
    %170 = tpu.matmul %167, %169, %cst_66 {dimension_numbers = #tpu.dot_dimension_numbers<[1], [0], [0], [1], [0, 0, 1, 1], [], []>} : vector<16x256xf32>, vector<256x64xf32>, vector<16x64xf32> -> vector<16x64xf32>
    %c0_67 = arith.constant 0 : index
    %c0_68 = arith.constant 0 : index
    %171 = vector.load %arg15[%c0_67, %c0_68] : memref<3x64xf32, #tpu.memory_space<vmem>>, vector<1x64xf32>
    %172 = vector.shape_cast %171 : vector<1x64xf32> to vector<64xf32>
    %173 = vector.shape_cast %172 : vector<64xf32> to vector<1x64xf32>
    %174 = vector.broadcast %173 : vector<1x64xf32> to vector<16x64xf32>
    %175 = arith.addf %170, %174 : vector<16x64xf32>
    %176 = arith.addf %125, %175 : vector<16x64xf32>
    %c1 = arith.constant 1 : index
    %c0_69 = arith.constant 0 : index
    %177 = vector.load %arg4[%c1, %c0_69] : memref<3x64xf32, #tpu.memory_space<vmem>>, vector<1x64xf32>
    %178 = vector.shape_cast %177 : vector<1x64xf32> to vector<64xf32>
    %179 = vector.shape_cast %178 : vector<64xf32> to vector<1x64xf32>
    %c1_70 = arith.constant 1 : index
    %c0_71 = arith.constant 0 : index
    %180 = vector.load %arg5[%c1_70, %c0_71] : memref<3x64xf32, #tpu.memory_space<vmem>>, vector<1x64xf32>
    %181 = vector.shape_cast %180 : vector<1x64xf32> to vector<64xf32>
    %182 = vector.shape_cast %181 : vector<64xf32> to vector<1x64xf32>
    %cst_72 = arith.constant dense<0.000000e+00> : vector<16xf32>
    %183 = vector.multi_reduction <add>, %176, %cst_72 [1] : vector<16x64xf32> to vector<16xf32>
    %184 = vector.shape_cast %183 : vector<16xf32> to vector<16x1xf32>
    %cst_73 = arith.constant 6.400000e+01 : f32
    %185 = vector.broadcast %cst_73 : f32 to vector<16x1xf32>
    %186 = arith.divf %184, %185 : vector<16x1xf32>
    %187 = vector.broadcast %186 : vector<16x1xf32> to vector<16x64xf32>
    %188 = arith.subf %176, %187 : vector<16x64xf32>
    %189 = arith.mulf %188, %188 : vector<16x64xf32>
    %cst_74 = arith.constant dense<0.000000e+00> : vector<16xf32>
    %190 = vector.multi_reduction <add>, %189, %cst_74 [1] : vector<16x64xf32> to vector<16xf32>
    %191 = vector.shape_cast %190 : vector<16xf32> to vector<16x1xf32>
    %cst_75 = arith.constant 6.400000e+01 : f32
    %192 = vector.broadcast %cst_75 : f32 to vector<16x1xf32>
    %193 = arith.divf %191, %192 : vector<16x1xf32>
    %cst_76 = arith.constant 9.99999974E-6 : f32
    %194 = vector.broadcast %cst_76 : f32 to vector<16x1xf32>
    %195 = arith.addf %193, %194 : vector<16x1xf32>
    %196 = math.rsqrt %195 : vector<16x1xf32>
    %197 = vector.broadcast %196 : vector<16x1xf32> to vector<16x64xf32>
    %198 = arith.mulf %188, %197 : vector<16x64xf32>
    %199 = vector.broadcast %179 : vector<1x64xf32> to vector<16x64xf32>
    %200 = arith.mulf %198, %199 : vector<16x64xf32>
    %201 = vector.broadcast %182 : vector<1x64xf32> to vector<16x64xf32>
    %202 = arith.addf %200, %201 : vector<16x64xf32>
    %c1_77 = arith.constant 1 : index
    %c0_78 = arith.constant 0 : index
    %c0_79 = arith.constant 0 : index
    %203 = vector.load %arg6[%c1_77, %c0_78, %c0_79] : memref<3x64x192xf32, #tpu.memory_space<vmem>>, vector<1x64x192xf32>
    %204 = vector.shape_cast %203 : vector<1x64x192xf32> to vector<64x192xf32>
    %cst_80 = arith.constant dense<0.000000e+00> : vector<16x192xf32>
    %205 = tpu.matmul %202, %204, %cst_80 {dimension_numbers = #tpu.dot_dimension_numbers<[1], [0], [0], [1], [0, 0, 1, 1], [], []>} : vector<16x64xf32>, vector<64x192xf32>, vector<16x192xf32> -> vector<16x192xf32>
    %c1_81 = arith.constant 1 : index
    %c0_82 = arith.constant 0 : index
    %206 = vector.load %arg7[%c1_81, %c0_82] : memref<3x192xf32, #tpu.memory_space<vmem>>, vector<1x192xf32>
    %207 = vector.shape_cast %206 : vector<1x192xf32> to vector<192xf32>
    %208 = vector.shape_cast %207 : vector<192xf32> to vector<1x192xf32>
    %209 = vector.broadcast %208 : vector<1x192xf32> to vector<16x192xf32>
    %210 = arith.addf %205, %209 : vector<16x192xf32>
    %211 = vector.extract_strided_slice %210 {offsets = [0, 0], sizes = [16, 16], strides = [1, 1]} : vector<16x192xf32> to vector<16x16xf32>
    %212 = vector.extract_strided_slice %210 {offsets = [0, 64], sizes = [16, 16], strides = [1, 1]} : vector<16x192xf32> to vector<16x16xf32>
    %213 = vector.extract_strided_slice %210 {offsets = [0, 128], sizes = [16, 16], strides = [1, 1]} : vector<16x192xf32> to vector<16x16xf32>
    %cst_83 = arith.constant dense<0.000000e+00> : vector<16x16xf32>
    %214 = tpu.matmul %211, %212, %cst_83 {dimension_numbers = #tpu.dot_dimension_numbers<[1], [1], [0], [0], [0, 0, 1, 0], [], []>} : vector<16x16xf32>, vector<16x16xf32>, vector<16x16xf32> -> vector<16x16xf32>
    %cst_84 = arith.constant 2.500000e-01 : f32
    %215 = vector.broadcast %cst_84 : f32 to vector<16x16xf32>
    %216 = arith.mulf %214, %215 : vector<16x16xf32>
    %217 = arith.addf %216, %9 : vector<16x16xf32>
    %cst_85 = arith.constant dense<0xFF800000> : vector<16xf32>
    %218 = vector.multi_reduction <maximumf>, %217, %cst_85 [1] : vector<16x16xf32> to vector<16xf32>
    %219 = vector.shape_cast %218 : vector<16xf32> to vector<16x1xf32>
    %220 = vector.broadcast %219 : vector<16x1xf32> to vector<16x16xf32>
    %221 = arith.subf %217, %220 : vector<16x16xf32>
    %222 = math.exp %221 : vector<16x16xf32>
    %cst_86 = arith.constant dense<0.000000e+00> : vector<16xf32>
    %223 = vector.multi_reduction <add>, %222, %cst_86 [1] : vector<16x16xf32> to vector<16xf32>
    %224 = vector.shape_cast %223 : vector<16xf32> to vector<16x1xf32>
    %225 = tpu.reciprocal %224 {approx = true} : vector<16x1xf32> -> vector<16x1xf32>
    %226 = vector.broadcast %225 : vector<16x1xf32> to vector<16x16xf32>
    %227 = arith.mulf %222, %226 : vector<16x16xf32>
    %cst_87 = arith.constant dense<0.000000e+00> : vector<16x16xf32>
    %228 = tpu.matmul %227, %213, %cst_87 {dimension_numbers = #tpu.dot_dimension_numbers<[1], [0], [0], [1], [0, 0, 1, 1], [], []>} : vector<16x16xf32>, vector<16x16xf32>, vector<16x16xf32> -> vector<16x16xf32>
    %229 = vector.extract_strided_slice %210 {offsets = [0, 16], sizes = [16, 16], strides = [1, 1]} : vector<16x192xf32> to vector<16x16xf32>
    %230 = vector.extract_strided_slice %210 {offsets = [0, 80], sizes = [16, 16], strides = [1, 1]} : vector<16x192xf32> to vector<16x16xf32>
    %231 = vector.extract_strided_slice %210 {offsets = [0, 144], sizes = [16, 16], strides = [1, 1]} : vector<16x192xf32> to vector<16x16xf32>
    %cst_88 = arith.constant dense<0.000000e+00> : vector<16x16xf32>
    %232 = tpu.matmul %229, %230, %cst_88 {dimension_numbers = #tpu.dot_dimension_numbers<[1], [1], [0], [0], [0, 0, 1, 0], [], []>} : vector<16x16xf32>, vector<16x16xf32>, vector<16x16xf32> -> vector<16x16xf32>
    %cst_89 = arith.constant 2.500000e-01 : f32
    %233 = vector.broadcast %cst_89 : f32 to vector<16x16xf32>
    %234 = arith.mulf %232, %233 : vector<16x16xf32>
    %235 = arith.addf %234, %9 : vector<16x16xf32>
    %cst_90 = arith.constant dense<0xFF800000> : vector<16xf32>
    %236 = vector.multi_reduction <maximumf>, %235, %cst_90 [1] : vector<16x16xf32> to vector<16xf32>
    %237 = vector.shape_cast %236 : vector<16xf32> to vector<16x1xf32>
    %238 = vector.broadcast %237 : vector<16x1xf32> to vector<16x16xf32>
    %239 = arith.subf %235, %238 : vector<16x16xf32>
    %240 = math.exp %239 : vector<16x16xf32>
    %cst_91 = arith.constant dense<0.000000e+00> : vector<16xf32>
    %241 = vector.multi_reduction <add>, %240, %cst_91 [1] : vector<16x16xf32> to vector<16xf32>
    %242 = vector.shape_cast %241 : vector<16xf32> to vector<16x1xf32>
    %243 = tpu.reciprocal %242 {approx = true} : vector<16x1xf32> -> vector<16x1xf32>
    %244 = vector.broadcast %243 : vector<16x1xf32> to vector<16x16xf32>
    %245 = arith.mulf %240, %244 : vector<16x16xf32>
    %cst_92 = arith.constant dense<0.000000e+00> : vector<16x16xf32>
    %246 = tpu.matmul %245, %231, %cst_92 {dimension_numbers = #tpu.dot_dimension_numbers<[1], [0], [0], [1], [0, 0, 1, 1], [], []>} : vector<16x16xf32>, vector<16x16xf32>, vector<16x16xf32> -> vector<16x16xf32>
    %247 = vector.extract_strided_slice %210 {offsets = [0, 32], sizes = [16, 16], strides = [1, 1]} : vector<16x192xf32> to vector<16x16xf32>
    %248 = vector.extract_strided_slice %210 {offsets = [0, 96], sizes = [16, 16], strides = [1, 1]} : vector<16x192xf32> to vector<16x16xf32>
    %249 = vector.extract_strided_slice %210 {offsets = [0, 160], sizes = [16, 16], strides = [1, 1]} : vector<16x192xf32> to vector<16x16xf32>
    %cst_93 = arith.constant dense<0.000000e+00> : vector<16x16xf32>
    %250 = tpu.matmul %247, %248, %cst_93 {dimension_numbers = #tpu.dot_dimension_numbers<[1], [1], [0], [0], [0, 0, 1, 0], [], []>} : vector<16x16xf32>, vector<16x16xf32>, vector<16x16xf32> -> vector<16x16xf32>
    %cst_94 = arith.constant 2.500000e-01 : f32
    %251 = vector.broadcast %cst_94 : f32 to vector<16x16xf32>
    %252 = arith.mulf %250, %251 : vector<16x16xf32>
    %253 = arith.addf %252, %9 : vector<16x16xf32>
    %cst_95 = arith.constant dense<0xFF800000> : vector<16xf32>
    %254 = vector.multi_reduction <maximumf>, %253, %cst_95 [1] : vector<16x16xf32> to vector<16xf32>
    %255 = vector.shape_cast %254 : vector<16xf32> to vector<16x1xf32>
    %256 = vector.broadcast %255 : vector<16x1xf32> to vector<16x16xf32>
    %257 = arith.subf %253, %256 : vector<16x16xf32>
    %258 = math.exp %257 : vector<16x16xf32>
    %cst_96 = arith.constant dense<0.000000e+00> : vector<16xf32>
    %259 = vector.multi_reduction <add>, %258, %cst_96 [1] : vector<16x16xf32> to vector<16xf32>
    %260 = vector.shape_cast %259 : vector<16xf32> to vector<16x1xf32>
    %261 = tpu.reciprocal %260 {approx = true} : vector<16x1xf32> -> vector<16x1xf32>
    %262 = vector.broadcast %261 : vector<16x1xf32> to vector<16x16xf32>
    %263 = arith.mulf %258, %262 : vector<16x16xf32>
    %cst_97 = arith.constant dense<0.000000e+00> : vector<16x16xf32>
    %264 = tpu.matmul %263, %249, %cst_97 {dimension_numbers = #tpu.dot_dimension_numbers<[1], [0], [0], [1], [0, 0, 1, 1], [], []>} : vector<16x16xf32>, vector<16x16xf32>, vector<16x16xf32> -> vector<16x16xf32>
    %265 = vector.extract_strided_slice %210 {offsets = [0, 48], sizes = [16, 16], strides = [1, 1]} : vector<16x192xf32> to vector<16x16xf32>
    %266 = vector.extract_strided_slice %210 {offsets = [0, 112], sizes = [16, 16], strides = [1, 1]} : vector<16x192xf32> to vector<16x16xf32>
    %267 = vector.extract_strided_slice %210 {offsets = [0, 176], sizes = [16, 16], strides = [1, 1]} : vector<16x192xf32> to vector<16x16xf32>
    %cst_98 = arith.constant dense<0.000000e+00> : vector<16x16xf32>
    %268 = tpu.matmul %265, %266, %cst_98 {dimension_numbers = #tpu.dot_dimension_numbers<[1], [1], [0], [0], [0, 0, 1, 0], [], []>} : vector<16x16xf32>, vector<16x16xf32>, vector<16x16xf32> -> vector<16x16xf32>
    %cst_99 = arith.constant 2.500000e-01 : f32
    %269 = vector.broadcast %cst_99 : f32 to vector<16x16xf32>
    %270 = arith.mulf %268, %269 : vector<16x16xf32>
    %271 = arith.addf %270, %9 : vector<16x16xf32>
    %cst_100 = arith.constant dense<0xFF800000> : vector<16xf32>
    %272 = vector.multi_reduction <maximumf>, %271, %cst_100 [1] : vector<16x16xf32> to vector<16xf32>
    %273 = vector.shape_cast %272 : vector<16xf32> to vector<16x1xf32>
    %274 = vector.broadcast %273 : vector<16x1xf32> to vector<16x16xf32>
    %275 = arith.subf %271, %274 : vector<16x16xf32>
    %276 = math.exp %275 : vector<16x16xf32>
    %cst_101 = arith.constant dense<0.000000e+00> : vector<16xf32>
    %277 = vector.multi_reduction <add>, %276, %cst_101 [1] : vector<16x16xf32> to vector<16xf32>
    %278 = vector.shape_cast %277 : vector<16xf32> to vector<16x1xf32>
    %279 = tpu.reciprocal %278 {approx = true} : vector<16x1xf32> -> vector<16x1xf32>
    %280 = vector.broadcast %279 : vector<16x1xf32> to vector<16x16xf32>
    %281 = arith.mulf %276, %280 : vector<16x16xf32>
    %cst_102 = arith.constant dense<0.000000e+00> : vector<16x16xf32>
    %282 = tpu.matmul %281, %267, %cst_102 {dimension_numbers = #tpu.dot_dimension_numbers<[1], [0], [0], [1], [0, 0, 1, 1], [], []>} : vector<16x16xf32>, vector<16x16xf32>, vector<16x16xf32> -> vector<16x16xf32>
    %283 = tpu.concatenate %228, %246, %264, %282 in 1 : vector<16x16xf32>, vector<16x16xf32>, vector<16x16xf32>, vector<16x16xf32> -> vector<16x64xf32>
    %c1_103 = arith.constant 1 : index
    %c0_104 = arith.constant 0 : index
    %c0_105 = arith.constant 0 : index
    %284 = vector.load %arg8[%c1_103, %c0_104, %c0_105] : memref<3x64x64xf32, #tpu.memory_space<vmem>>, vector<1x64x64xf32>
    %285 = vector.shape_cast %284 : vector<1x64x64xf32> to vector<64x64xf32>
    %cst_106 = arith.constant dense<0.000000e+00> : vector<16x64xf32>
    %286 = tpu.matmul %283, %285, %cst_106 {dimension_numbers = #tpu.dot_dimension_numbers<[1], [0], [0], [1], [0, 0, 1, 1], [], []>} : vector<16x64xf32>, vector<64x64xf32>, vector<16x64xf32> -> vector<16x64xf32>
    %c1_107 = arith.constant 1 : index
    %c0_108 = arith.constant 0 : index
    %287 = vector.load %arg9[%c1_107, %c0_108] : memref<3x64xf32, #tpu.memory_space<vmem>>, vector<1x64xf32>
    %288 = vector.shape_cast %287 : vector<1x64xf32> to vector<64xf32>
    %289 = vector.shape_cast %288 : vector<64xf32> to vector<1x64xf32>
    %290 = vector.broadcast %289 : vector<1x64xf32> to vector<16x64xf32>
    %291 = arith.addf %286, %290 : vector<16x64xf32>
    %292 = arith.addf %176, %291 : vector<16x64xf32>
    %c1_109 = arith.constant 1 : index
    %c0_110 = arith.constant 0 : index
    %293 = vector.load %arg10[%c1_109, %c0_110] : memref<3x64xf32, #tpu.memory_space<vmem>>, vector<1x64xf32>
    %294 = vector.shape_cast %293 : vector<1x64xf32> to vector<64xf32>
    %295 = vector.shape_cast %294 : vector<64xf32> to vector<1x64xf32>
    %c1_111 = arith.constant 1 : index
    %c0_112 = arith.constant 0 : index
    %296 = vector.load %arg11[%c1_111, %c0_112] : memref<3x64xf32, #tpu.memory_space<vmem>>, vector<1x64xf32>
    %297 = vector.shape_cast %296 : vector<1x64xf32> to vector<64xf32>
    %298 = vector.shape_cast %297 : vector<64xf32> to vector<1x64xf32>
    %cst_113 = arith.constant dense<0.000000e+00> : vector<16xf32>
    %299 = vector.multi_reduction <add>, %292, %cst_113 [1] : vector<16x64xf32> to vector<16xf32>
    %300 = vector.shape_cast %299 : vector<16xf32> to vector<16x1xf32>
    %cst_114 = arith.constant 6.400000e+01 : f32
    %301 = vector.broadcast %cst_114 : f32 to vector<16x1xf32>
    %302 = arith.divf %300, %301 : vector<16x1xf32>
    %303 = vector.broadcast %302 : vector<16x1xf32> to vector<16x64xf32>
    %304 = arith.subf %292, %303 : vector<16x64xf32>
    %305 = arith.mulf %304, %304 : vector<16x64xf32>
    %cst_115 = arith.constant dense<0.000000e+00> : vector<16xf32>
    %306 = vector.multi_reduction <add>, %305, %cst_115 [1] : vector<16x64xf32> to vector<16xf32>
    %307 = vector.shape_cast %306 : vector<16xf32> to vector<16x1xf32>
    %cst_116 = arith.constant 6.400000e+01 : f32
    %308 = vector.broadcast %cst_116 : f32 to vector<16x1xf32>
    %309 = arith.divf %307, %308 : vector<16x1xf32>
    %cst_117 = arith.constant 9.99999974E-6 : f32
    %310 = vector.broadcast %cst_117 : f32 to vector<16x1xf32>
    %311 = arith.addf %309, %310 : vector<16x1xf32>
    %312 = math.rsqrt %311 : vector<16x1xf32>
    %313 = vector.broadcast %312 : vector<16x1xf32> to vector<16x64xf32>
    %314 = arith.mulf %304, %313 : vector<16x64xf32>
    %315 = vector.broadcast %295 : vector<1x64xf32> to vector<16x64xf32>
    %316 = arith.mulf %314, %315 : vector<16x64xf32>
    %317 = vector.broadcast %298 : vector<1x64xf32> to vector<16x64xf32>
    %318 = arith.addf %316, %317 : vector<16x64xf32>
    %c1_118 = arith.constant 1 : index
    %c0_119 = arith.constant 0 : index
    %c0_120 = arith.constant 0 : index
    %319 = vector.load %arg12[%c1_118, %c0_119, %c0_120] : memref<3x64x256xf32, #tpu.memory_space<vmem>>, vector<1x64x256xf32>
    %320 = vector.shape_cast %319 : vector<1x64x256xf32> to vector<64x256xf32>
    %cst_121 = arith.constant dense<0.000000e+00> : vector<16x256xf32>
    %321 = tpu.matmul %318, %320, %cst_121 {dimension_numbers = #tpu.dot_dimension_numbers<[1], [0], [0], [1], [0, 0, 1, 1], [], []>} : vector<16x64xf32>, vector<64x256xf32>, vector<16x256xf32> -> vector<16x256xf32>
    %c1_122 = arith.constant 1 : index
    %c0_123 = arith.constant 0 : index
    %322 = vector.load %arg13[%c1_122, %c0_123] : memref<3x256xf32, #tpu.memory_space<vmem>>, vector<1x256xf32>
    %323 = vector.shape_cast %322 : vector<1x256xf32> to vector<256xf32>
    %324 = vector.shape_cast %323 : vector<256xf32> to vector<1x256xf32>
    %325 = vector.broadcast %324 : vector<1x256xf32> to vector<16x256xf32>
    %326 = arith.addf %321, %325 : vector<16x256xf32>
    %cst_124 = arith.constant 1.702000e+00 : f32
    %327 = vector.broadcast %cst_124 : f32 to vector<16x256xf32>
    %328 = arith.mulf %327, %326 : vector<16x256xf32>
    %329 = arith.negf %328 : vector<16x256xf32>
    %330 = math.exp %329 : vector<16x256xf32>
    %cst_125 = arith.constant 1.000000e+00 : f32
    %331 = vector.broadcast %cst_125 : f32 to vector<16x256xf32>
    %332 = arith.addf %331, %330 : vector<16x256xf32>
    %333 = arith.divf %331, %332 : vector<16x256xf32>
    %334 = arith.mulf %326, %333 : vector<16x256xf32>
    %c1_126 = arith.constant 1 : index
    %c0_127 = arith.constant 0 : index
    %c0_128 = arith.constant 0 : index
    %335 = vector.load %arg14[%c1_126, %c0_127, %c0_128] : memref<3x256x64xf32, #tpu.memory_space<vmem>>, vector<1x256x64xf32>
    %336 = vector.shape_cast %335 : vector<1x256x64xf32> to vector<256x64xf32>
    %cst_129 = arith.constant dense<0.000000e+00> : vector<16x64xf32>
    %337 = tpu.matmul %334, %336, %cst_129 {dimension_numbers = #tpu.dot_dimension_numbers<[1], [0], [0], [1], [0, 0, 1, 1], [], []>} : vector<16x256xf32>, vector<256x64xf32>, vector<16x64xf32> -> vector<16x64xf32>
    %c1_130 = arith.constant 1 : index
    %c0_131 = arith.constant 0 : index
    %338 = vector.load %arg15[%c1_130, %c0_131] : memref<3x64xf32, #tpu.memory_space<vmem>>, vector<1x64xf32>
    %339 = vector.shape_cast %338 : vector<1x64xf32> to vector<64xf32>
    %340 = vector.shape_cast %339 : vector<64xf32> to vector<1x64xf32>
    %341 = vector.broadcast %340 : vector<1x64xf32> to vector<16x64xf32>
    %342 = arith.addf %337, %341 : vector<16x64xf32>
    %343 = arith.addf %292, %342 : vector<16x64xf32>
    %c2 = arith.constant 2 : index
    %c0_132 = arith.constant 0 : index
    %344 = vector.load %arg4[%c2, %c0_132] : memref<3x64xf32, #tpu.memory_space<vmem>>, vector<1x64xf32>
    %345 = vector.shape_cast %344 : vector<1x64xf32> to vector<64xf32>
    %346 = vector.shape_cast %345 : vector<64xf32> to vector<1x64xf32>
    %c2_133 = arith.constant 2 : index
    %c0_134 = arith.constant 0 : index
    %347 = vector.load %arg5[%c2_133, %c0_134] : memref<3x64xf32, #tpu.memory_space<vmem>>, vector<1x64xf32>
    %348 = vector.shape_cast %347 : vector<1x64xf32> to vector<64xf32>
    %349 = vector.shape_cast %348 : vector<64xf32> to vector<1x64xf32>
    %cst_135 = arith.constant dense<0.000000e+00> : vector<16xf32>
    %350 = vector.multi_reduction <add>, %343, %cst_135 [1] : vector<16x64xf32> to vector<16xf32>
    %351 = vector.shape_cast %350 : vector<16xf32> to vector<16x1xf32>
    %cst_136 = arith.constant 6.400000e+01 : f32
    %352 = vector.broadcast %cst_136 : f32 to vector<16x1xf32>
    %353 = arith.divf %351, %352 : vector<16x1xf32>
    %354 = vector.broadcast %353 : vector<16x1xf32> to vector<16x64xf32>
    %355 = arith.subf %343, %354 : vector<16x64xf32>
    %356 = arith.mulf %355, %355 : vector<16x64xf32>
    %cst_137 = arith.constant dense<0.000000e+00> : vector<16xf32>
    %357 = vector.multi_reduction <add>, %356, %cst_137 [1] : vector<16x64xf32> to vector<16xf32>
    %358 = vector.shape_cast %357 : vector<16xf32> to vector<16x1xf32>
    %cst_138 = arith.constant 6.400000e+01 : f32
    %359 = vector.broadcast %cst_138 : f32 to vector<16x1xf32>
    %360 = arith.divf %358, %359 : vector<16x1xf32>
    %cst_139 = arith.constant 9.99999974E-6 : f32
    %361 = vector.broadcast %cst_139 : f32 to vector<16x1xf32>
    %362 = arith.addf %360, %361 : vector<16x1xf32>
    %363 = math.rsqrt %362 : vector<16x1xf32>
    %364 = vector.broadcast %363 : vector<16x1xf32> to vector<16x64xf32>
    %365 = arith.mulf %355, %364 : vector<16x64xf32>
    %366 = vector.broadcast %346 : vector<1x64xf32> to vector<16x64xf32>
    %367 = arith.mulf %365, %366 : vector<16x64xf32>
    %368 = vector.broadcast %349 : vector<1x64xf32> to vector<16x64xf32>
    %369 = arith.addf %367, %368 : vector<16x64xf32>
    %c2_140 = arith.constant 2 : index
    %c0_141 = arith.constant 0 : index
    %c0_142 = arith.constant 0 : index
    %370 = vector.load %arg6[%c2_140, %c0_141, %c0_142] : memref<3x64x192xf32, #tpu.memory_space<vmem>>, vector<1x64x192xf32>
    %371 = vector.shape_cast %370 : vector<1x64x192xf32> to vector<64x192xf32>
    %cst_143 = arith.constant dense<0.000000e+00> : vector<16x192xf32>
    %372 = tpu.matmul %369, %371, %cst_143 {dimension_numbers = #tpu.dot_dimension_numbers<[1], [0], [0], [1], [0, 0, 1, 1], [], []>} : vector<16x64xf32>, vector<64x192xf32>, vector<16x192xf32> -> vector<16x192xf32>
    %c2_144 = arith.constant 2 : index
    %c0_145 = arith.constant 0 : index
    %373 = vector.load %arg7[%c2_144, %c0_145] : memref<3x192xf32, #tpu.memory_space<vmem>>, vector<1x192xf32>
    %374 = vector.shape_cast %373 : vector<1x192xf32> to vector<192xf32>
    %375 = vector.shape_cast %374 : vector<192xf32> to vector<1x192xf32>
    %376 = vector.broadcast %375 : vector<1x192xf32> to vector<16x192xf32>
    %377 = arith.addf %372, %376 : vector<16x192xf32>
    %378 = vector.extract_strided_slice %377 {offsets = [0, 0], sizes = [16, 16], strides = [1, 1]} : vector<16x192xf32> to vector<16x16xf32>
    %379 = vector.extract_strided_slice %377 {offsets = [0, 64], sizes = [16, 16], strides = [1, 1]} : vector<16x192xf32> to vector<16x16xf32>
    %380 = vector.extract_strided_slice %377 {offsets = [0, 128], sizes = [16, 16], strides = [1, 1]} : vector<16x192xf32> to vector<16x16xf32>
    %cst_146 = arith.constant dense<0.000000e+00> : vector<16x16xf32>
    %381 = tpu.matmul %378, %379, %cst_146 {dimension_numbers = #tpu.dot_dimension_numbers<[1], [1], [0], [0], [0, 0, 1, 0], [], []>} : vector<16x16xf32>, vector<16x16xf32>, vector<16x16xf32> -> vector<16x16xf32>
    %cst_147 = arith.constant 2.500000e-01 : f32
    %382 = vector.broadcast %cst_147 : f32 to vector<16x16xf32>
    %383 = arith.mulf %381, %382 : vector<16x16xf32>
    %384 = arith.addf %383, %9 : vector<16x16xf32>
    %cst_148 = arith.constant dense<0xFF800000> : vector<16xf32>
    %385 = vector.multi_reduction <maximumf>, %384, %cst_148 [1] : vector<16x16xf32> to vector<16xf32>
    %386 = vector.shape_cast %385 : vector<16xf32> to vector<16x1xf32>
    %387 = vector.broadcast %386 : vector<16x1xf32> to vector<16x16xf32>
    %388 = arith.subf %384, %387 : vector<16x16xf32>
    %389 = math.exp %388 : vector<16x16xf32>
    %cst_149 = arith.constant dense<0.000000e+00> : vector<16xf32>
    %390 = vector.multi_reduction <add>, %389, %cst_149 [1] : vector<16x16xf32> to vector<16xf32>
    %391 = vector.shape_cast %390 : vector<16xf32> to vector<16x1xf32>
    %392 = tpu.reciprocal %391 {approx = true} : vector<16x1xf32> -> vector<16x1xf32>
    %393 = vector.broadcast %392 : vector<16x1xf32> to vector<16x16xf32>
    %394 = arith.mulf %389, %393 : vector<16x16xf32>
    %cst_150 = arith.constant dense<0.000000e+00> : vector<16x16xf32>
    %395 = tpu.matmul %394, %380, %cst_150 {dimension_numbers = #tpu.dot_dimension_numbers<[1], [0], [0], [1], [0, 0, 1, 1], [], []>} : vector<16x16xf32>, vector<16x16xf32>, vector<16x16xf32> -> vector<16x16xf32>
    %396 = vector.extract_strided_slice %377 {offsets = [0, 16], sizes = [16, 16], strides = [1, 1]} : vector<16x192xf32> to vector<16x16xf32>
    %397 = vector.extract_strided_slice %377 {offsets = [0, 80], sizes = [16, 16], strides = [1, 1]} : vector<16x192xf32> to vector<16x16xf32>
    %398 = vector.extract_strided_slice %377 {offsets = [0, 144], sizes = [16, 16], strides = [1, 1]} : vector<16x192xf32> to vector<16x16xf32>
    %cst_151 = arith.constant dense<0.000000e+00> : vector<16x16xf32>
    %399 = tpu.matmul %396, %397, %cst_151 {dimension_numbers = #tpu.dot_dimension_numbers<[1], [1], [0], [0], [0, 0, 1, 0], [], []>} : vector<16x16xf32>, vector<16x16xf32>, vector<16x16xf32> -> vector<16x16xf32>
    %cst_152 = arith.constant 2.500000e-01 : f32
    %400 = vector.broadcast %cst_152 : f32 to vector<16x16xf32>
    %401 = arith.mulf %399, %400 : vector<16x16xf32>
    %402 = arith.addf %401, %9 : vector<16x16xf32>
    %cst_153 = arith.constant dense<0xFF800000> : vector<16xf32>
    %403 = vector.multi_reduction <maximumf>, %402, %cst_153 [1] : vector<16x16xf32> to vector<16xf32>
    %404 = vector.shape_cast %403 : vector<16xf32> to vector<16x1xf32>
    %405 = vector.broadcast %404 : vector<16x1xf32> to vector<16x16xf32>
    %406 = arith.subf %402, %405 : vector<16x16xf32>
    %407 = math.exp %406 : vector<16x16xf32>
    %cst_154 = arith.constant dense<0.000000e+00> : vector<16xf32>
    %408 = vector.multi_reduction <add>, %407, %cst_154 [1] : vector<16x16xf32> to vector<16xf32>
    %409 = vector.shape_cast %408 : vector<16xf32> to vector<16x1xf32>
    %410 = tpu.reciprocal %409 {approx = true} : vector<16x1xf32> -> vector<16x1xf32>
    %411 = vector.broadcast %410 : vector<16x1xf32> to vector<16x16xf32>
    %412 = arith.mulf %407, %411 : vector<16x16xf32>
    %cst_155 = arith.constant dense<0.000000e+00> : vector<16x16xf32>
    %413 = tpu.matmul %412, %398, %cst_155 {dimension_numbers = #tpu.dot_dimension_numbers<[1], [0], [0], [1], [0, 0, 1, 1], [], []>} : vector<16x16xf32>, vector<16x16xf32>, vector<16x16xf32> -> vector<16x16xf32>
    %414 = vector.extract_strided_slice %377 {offsets = [0, 32], sizes = [16, 16], strides = [1, 1]} : vector<16x192xf32> to vector<16x16xf32>
    %415 = vector.extract_strided_slice %377 {offsets = [0, 96], sizes = [16, 16], strides = [1, 1]} : vector<16x192xf32> to vector<16x16xf32>
    %416 = vector.extract_strided_slice %377 {offsets = [0, 160], sizes = [16, 16], strides = [1, 1]} : vector<16x192xf32> to vector<16x16xf32>
    %cst_156 = arith.constant dense<0.000000e+00> : vector<16x16xf32>
    %417 = tpu.matmul %414, %415, %cst_156 {dimension_numbers = #tpu.dot_dimension_numbers<[1], [1], [0], [0], [0, 0, 1, 0], [], []>} : vector<16x16xf32>, vector<16x16xf32>, vector<16x16xf32> -> vector<16x16xf32>
    %cst_157 = arith.constant 2.500000e-01 : f32
    %418 = vector.broadcast %cst_157 : f32 to vector<16x16xf32>
    %419 = arith.mulf %417, %418 : vector<16x16xf32>
    %420 = arith.addf %419, %9 : vector<16x16xf32>
    %cst_158 = arith.constant dense<0xFF800000> : vector<16xf32>
    %421 = vector.multi_reduction <maximumf>, %420, %cst_158 [1] : vector<16x16xf32> to vector<16xf32>
    %422 = vector.shape_cast %421 : vector<16xf32> to vector<16x1xf32>
    %423 = vector.broadcast %422 : vector<16x1xf32> to vector<16x16xf32>
    %424 = arith.subf %420, %423 : vector<16x16xf32>
    %425 = math.exp %424 : vector<16x16xf32>
    %cst_159 = arith.constant dense<0.000000e+00> : vector<16xf32>
    %426 = vector.multi_reduction <add>, %425, %cst_159 [1] : vector<16x16xf32> to vector<16xf32>
    %427 = vector.shape_cast %426 : vector<16xf32> to vector<16x1xf32>
    %428 = tpu.reciprocal %427 {approx = true} : vector<16x1xf32> -> vector<16x1xf32>
    %429 = vector.broadcast %428 : vector<16x1xf32> to vector<16x16xf32>
    %430 = arith.mulf %425, %429 : vector<16x16xf32>
    %cst_160 = arith.constant dense<0.000000e+00> : vector<16x16xf32>
    %431 = tpu.matmul %430, %416, %cst_160 {dimension_numbers = #tpu.dot_dimension_numbers<[1], [0], [0], [1], [0, 0, 1, 1], [], []>} : vector<16x16xf32>, vector<16x16xf32>, vector<16x16xf32> -> vector<16x16xf32>
    %432 = vector.extract_strided_slice %377 {offsets = [0, 48], sizes = [16, 16], strides = [1, 1]} : vector<16x192xf32> to vector<16x16xf32>
    %433 = vector.extract_strided_slice %377 {offsets = [0, 112], sizes = [16, 16], strides = [1, 1]} : vector<16x192xf32> to vector<16x16xf32>
    %434 = vector.extract_strided_slice %377 {offsets = [0, 176], sizes = [16, 16], strides = [1, 1]} : vector<16x192xf32> to vector<16x16xf32>
    %cst_161 = arith.constant dense<0.000000e+00> : vector<16x16xf32>
    %435 = tpu.matmul %432, %433, %cst_161 {dimension_numbers = #tpu.dot_dimension_numbers<[1], [1], [0], [0], [0, 0, 1, 0], [], []>} : vector<16x16xf32>, vector<16x16xf32>, vector<16x16xf32> -> vector<16x16xf32>
    %cst_162 = arith.constant 2.500000e-01 : f32
    %436 = vector.broadcast %cst_162 : f32 to vector<16x16xf32>
    %437 = arith.mulf %435, %436 : vector<16x16xf32>
    %438 = arith.addf %437, %9 : vector<16x16xf32>
    %cst_163 = arith.constant dense<0xFF800000> : vector<16xf32>
    %439 = vector.multi_reduction <maximumf>, %438, %cst_163 [1] : vector<16x16xf32> to vector<16xf32>
    %440 = vector.shape_cast %439 : vector<16xf32> to vector<16x1xf32>
    %441 = vector.broadcast %440 : vector<16x1xf32> to vector<16x16xf32>
    %442 = arith.subf %438, %441 : vector<16x16xf32>
    %443 = math.exp %442 : vector<16x16xf32>
    %cst_164 = arith.constant dense<0.000000e+00> : vector<16xf32>
    %444 = vector.multi_reduction <add>, %443, %cst_164 [1] : vector<16x16xf32> to vector<16xf32>
    %445 = vector.shape_cast %444 : vector<16xf32> to vector<16x1xf32>
    %446 = tpu.reciprocal %445 {approx = true} : vector<16x1xf32> -> vector<16x1xf32>
    %447 = vector.broadcast %446 : vector<16x1xf32> to vector<16x16xf32>
    %448 = arith.mulf %443, %447 : vector<16x16xf32>
    %cst_165 = arith.constant dense<0.000000e+00> : vector<16x16xf32>
    %449 = tpu.matmul %448, %434, %cst_165 {dimension_numbers = #tpu.dot_dimension_numbers<[1], [0], [0], [1], [0, 0, 1, 1], [], []>} : vector<16x16xf32>, vector<16x16xf32>, vector<16x16xf32> -> vector<16x16xf32>
    %450 = tpu.concatenate %395, %413, %431, %449 in 1 : vector<16x16xf32>, vector<16x16xf32>, vector<16x16xf32>, vector<16x16xf32> -> vector<16x64xf32>
    %c2_166 = arith.constant 2 : index
    %c0_167 = arith.constant 0 : index
    %c0_168 = arith.constant 0 : index
    %451 = vector.load %arg8[%c2_166, %c0_167, %c0_168] : memref<3x64x64xf32, #tpu.memory_space<vmem>>, vector<1x64x64xf32>
    %452 = vector.shape_cast %451 : vector<1x64x64xf32> to vector<64x64xf32>
    %cst_169 = arith.constant dense<0.000000e+00> : vector<16x64xf32>
    %453 = tpu.matmul %450, %452, %cst_169 {dimension_numbers = #tpu.dot_dimension_numbers<[1], [0], [0], [1], [0, 0, 1, 1], [], []>} : vector<16x64xf32>, vector<64x64xf32>, vector<16x64xf32> -> vector<16x64xf32>
    %c2_170 = arith.constant 2 : index
    %c0_171 = arith.constant 0 : index
    %454 = vector.load %arg9[%c2_170, %c0_171] : memref<3x64xf32, #tpu.memory_space<vmem>>, vector<1x64xf32>
    %455 = vector.shape_cast %454 : vector<1x64xf32> to vector<64xf32>
    %456 = vector.shape_cast %455 : vector<64xf32> to vector<1x64xf32>
    %457 = vector.broadcast %456 : vector<1x64xf32> to vector<16x64xf32>
    %458 = arith.addf %453, %457 : vector<16x64xf32>
    %459 = arith.addf %343, %458 : vector<16x64xf32>
    %c2_172 = arith.constant 2 : index
    %c0_173 = arith.constant 0 : index
    %460 = vector.load %arg10[%c2_172, %c0_173] : memref<3x64xf32, #tpu.memory_space<vmem>>, vector<1x64xf32>
    %461 = vector.shape_cast %460 : vector<1x64xf32> to vector<64xf32>
    %462 = vector.shape_cast %461 : vector<64xf32> to vector<1x64xf32>
    %c2_174 = arith.constant 2 : index
    %c0_175 = arith.constant 0 : index
    %463 = vector.load %arg11[%c2_174, %c0_175] : memref<3x64xf32, #tpu.memory_space<vmem>>, vector<1x64xf32>
    %464 = vector.shape_cast %463 : vector<1x64xf32> to vector<64xf32>
    %465 = vector.shape_cast %464 : vector<64xf32> to vector<1x64xf32>
    %cst_176 = arith.constant dense<0.000000e+00> : vector<16xf32>
    %466 = vector.multi_reduction <add>, %459, %cst_176 [1] : vector<16x64xf32> to vector<16xf32>
    %467 = vector.shape_cast %466 : vector<16xf32> to vector<16x1xf32>
    %cst_177 = arith.constant 6.400000e+01 : f32
    %468 = vector.broadcast %cst_177 : f32 to vector<16x1xf32>
    %469 = arith.divf %467, %468 : vector<16x1xf32>
    %470 = vector.broadcast %469 : vector<16x1xf32> to vector<16x64xf32>
    %471 = arith.subf %459, %470 : vector<16x64xf32>
    %472 = arith.mulf %471, %471 : vector<16x64xf32>
    %cst_178 = arith.constant dense<0.000000e+00> : vector<16xf32>
    %473 = vector.multi_reduction <add>, %472, %cst_178 [1] : vector<16x64xf32> to vector<16xf32>
    %474 = vector.shape_cast %473 : vector<16xf32> to vector<16x1xf32>
    %cst_179 = arith.constant 6.400000e+01 : f32
    %475 = vector.broadcast %cst_179 : f32 to vector<16x1xf32>
    %476 = arith.divf %474, %475 : vector<16x1xf32>
    %cst_180 = arith.constant 9.99999974E-6 : f32
    %477 = vector.broadcast %cst_180 : f32 to vector<16x1xf32>
    %478 = arith.addf %476, %477 : vector<16x1xf32>
    %479 = math.rsqrt %478 : vector<16x1xf32>
    %480 = vector.broadcast %479 : vector<16x1xf32> to vector<16x64xf32>
    %481 = arith.mulf %471, %480 : vector<16x64xf32>
    %482 = vector.broadcast %462 : vector<1x64xf32> to vector<16x64xf32>
    %483 = arith.mulf %481, %482 : vector<16x64xf32>
    %484 = vector.broadcast %465 : vector<1x64xf32> to vector<16x64xf32>
    %485 = arith.addf %483, %484 : vector<16x64xf32>
    %c2_181 = arith.constant 2 : index
    %c0_182 = arith.constant 0 : index
    %c0_183 = arith.constant 0 : index
    %486 = vector.load %arg12[%c2_181, %c0_182, %c0_183] : memref<3x64x256xf32, #tpu.memory_space<vmem>>, vector<1x64x256xf32>
    %487 = vector.shape_cast %486 : vector<1x64x256xf32> to vector<64x256xf32>
    %cst_184 = arith.constant dense<0.000000e+00> : vector<16x256xf32>
    %488 = tpu.matmul %485, %487, %cst_184 {dimension_numbers = #tpu.dot_dimension_numbers<[1], [0], [0], [1], [0, 0, 1, 1], [], []>} : vector<16x64xf32>, vector<64x256xf32>, vector<16x256xf32> -> vector<16x256xf32>
    %c2_185 = arith.constant 2 : index
    %c0_186 = arith.constant 0 : index
    %489 = vector.load %arg13[%c2_185, %c0_186] : memref<3x256xf32, #tpu.memory_space<vmem>>, vector<1x256xf32>
    %490 = vector.shape_cast %489 : vector<1x256xf32> to vector<256xf32>
    %491 = vector.shape_cast %490 : vector<256xf32> to vector<1x256xf32>
    %492 = vector.broadcast %491 : vector<1x256xf32> to vector<16x256xf32>
    %493 = arith.addf %488, %492 : vector<16x256xf32>
    %cst_187 = arith.constant 1.702000e+00 : f32
    %494 = vector.broadcast %cst_187 : f32 to vector<16x256xf32>
    %495 = arith.mulf %494, %493 : vector<16x256xf32>
    %496 = arith.negf %495 : vector<16x256xf32>
    %497 = math.exp %496 : vector<16x256xf32>
    %cst_188 = arith.constant 1.000000e+00 : f32
    %498 = vector.broadcast %cst_188 : f32 to vector<16x256xf32>
    %499 = arith.addf %498, %497 : vector<16x256xf32>
    %500 = arith.divf %498, %499 : vector<16x256xf32>
    %501 = arith.mulf %493, %500 : vector<16x256xf32>
    %c2_189 = arith.constant 2 : index
    %c0_190 = arith.constant 0 : index
    %c0_191 = arith.constant 0 : index
    %502 = vector.load %arg14[%c2_189, %c0_190, %c0_191] : memref<3x256x64xf32, #tpu.memory_space<vmem>>, vector<1x256x64xf32>
    %503 = vector.shape_cast %502 : vector<1x256x64xf32> to vector<256x64xf32>
    %cst_192 = arith.constant dense<0.000000e+00> : vector<16x64xf32>
    %504 = tpu.matmul %501, %503, %cst_192 {dimension_numbers = #tpu.dot_dimension_numbers<[1], [0], [0], [1], [0, 0, 1, 1], [], []>} : vector<16x256xf32>, vector<256x64xf32>, vector<16x64xf32> -> vector<16x64xf32>
    %c2_193 = arith.constant 2 : index
    %c0_194 = arith.constant 0 : index
    %505 = vector.load %arg15[%c2_193, %c0_194] : memref<3x64xf32, #tpu.memory_space<vmem>>, vector<1x64xf32>
    %506 = vector.shape_cast %505 : vector<1x64xf32> to vector<64xf32>
    %507 = vector.shape_cast %506 : vector<64xf32> to vector<1x64xf32>
    %508 = vector.broadcast %507 : vector<1x64xf32> to vector<16x64xf32>
    %509 = arith.addf %504, %508 : vector<16x64xf32>
    %510 = arith.addf %459, %509 : vector<16x64xf32>
    %c0_195 = arith.constant 0 : index
    %c0_196 = arith.constant 0 : index
    %c0_197 = arith.constant 0 : index
    %511 = vector.load %arg3[%c0_195, %c0_196, %c0_197] : memref<1x1x16xf32, #tpu.memory_space<vmem>>, vector<1x1x16xf32>
    %512 = vector.shape_cast %511 : vector<1x1x16xf32> to vector<1x16xf32>
    %cst_198 = arith.constant dense<0.000000e+00> : vector<1x64xf32>
    %513 = tpu.matmul %512, %510, %cst_198 {dimension_numbers = #tpu.dot_dimension_numbers<[1], [0], [0], [1], [0, 0, 1, 1], [], []>} : vector<1x16xf32>, vector<16x64xf32>, vector<1x64xf32> -> vector<1x64xf32>
    %c0_199 = arith.constant 0 : index
    %c0_200 = arith.constant 0 : index
    %514 = vector.load %arg16[%c0_199, %c0_200] : memref<1x64xf32, #tpu.memory_space<vmem>>, vector<1x64xf32>
    %c0_201 = arith.constant 0 : index
    %c0_202 = arith.constant 0 : index
    %515 = vector.load %arg17[%c0_201, %c0_202] : memref<1x64xf32, #tpu.memory_space<vmem>>, vector<1x64xf32>
    %cst_203 = arith.constant dense<0.000000e+00> : vector<1xf32>
    %516 = vector.multi_reduction <add>, %513, %cst_203 [1] : vector<1x64xf32> to vector<1xf32>
    %517 = vector.shape_cast %516 : vector<1xf32> to vector<1x1xf32>
    %cst_204 = arith.constant 6.400000e+01 : f32
    %518 = vector.broadcast %cst_204 : f32 to vector<1x1xf32>
    %519 = arith.divf %517, %518 : vector<1x1xf32>
    %520 = vector.broadcast %519 : vector<1x1xf32> to vector<1x64xf32>
    %521 = arith.subf %513, %520 : vector<1x64xf32>
    %522 = arith.mulf %521, %521 : vector<1x64xf32>
    %cst_205 = arith.constant dense<0.000000e+00> : vector<1xf32>
    %523 = vector.multi_reduction <add>, %522, %cst_205 [1] : vector<1x64xf32> to vector<1xf32>
    %524 = vector.shape_cast %523 : vector<1xf32> to vector<1x1xf32>
    %cst_206 = arith.constant 6.400000e+01 : f32
    %525 = vector.broadcast %cst_206 : f32 to vector<1x1xf32>
    %526 = arith.divf %524, %525 : vector<1x1xf32>
    %cst_207 = arith.constant 9.99999974E-6 : f32
    %527 = vector.broadcast %cst_207 : f32 to vector<1x1xf32>
    %528 = arith.addf %526, %527 : vector<1x1xf32>
    %529 = math.rsqrt %528 : vector<1x1xf32>
    %530 = vector.broadcast %529 : vector<1x1xf32> to vector<1x64xf32>
    %531 = arith.mulf %521, %530 : vector<1x64xf32>
    %532 = arith.mulf %531, %514 : vector<1x64xf32>
    %533 = arith.addf %532, %515 : vector<1x64xf32>
    %c0_208 = arith.constant 0 : index
    %c0_209 = arith.constant 0 : index
    %534 = vector.load %arg18[%c0_208, %c0_209] : memref<64x64xf32, #tpu.memory_space<vmem>>, vector<64x64xf32>
    %cst_210 = arith.constant dense<0.000000e+00> : vector<1x64xf32>
    %535 = tpu.matmul %533, %534, %cst_210 {dimension_numbers = #tpu.dot_dimension_numbers<[1], [0], [0], [1], [0, 0, 1, 1], [], []>} : vector<1x64xf32>, vector<64x64xf32>, vector<1x64xf32> -> vector<1x64xf32>
    %c0_211 = arith.constant 0 : index
    %c0_212 = arith.constant 0 : index
    %c0_213 = arith.constant 0 : index
    %536 = vector.load %arg19[%c0_211, %c0_212, %c0_213] : memref<1x1x64xf32, #tpu.memory_space<vmem>>, vector<1x1x64xf32>
    %537 = vector.shape_cast %536 : vector<1x1x64xf32> to vector<1x64xf32>
    %538 = vector.shape_cast %535 : vector<1x64xf32> to vector<1x1x64xf32>
    tpu.vector_store %arg19[%c0_211, %c0_212, %c0_213], %538 {strides = array<i32>} : memref<1x1x64xf32, #tpu.memory_space<vmem>>, vector<1x1x64xf32>,
    return
  }
  func.func @transform_0(%arg0: i32) -> (i32, i32, i32) {
    %c0_i32 = arith.constant 0 : i32
    %c0_i32_0 = arith.constant 0 : i32
    %c0_i32_1 = arith.constant 0 : i32
    return %arg0, %c0_i32, %c0_i32_0 : i32, i32, i32
  }
  func.func @transform_1(%arg0: i32) -> (i32, i32) {
    %c0_i32 = arith.constant 0 : i32
    %c0_i32_0 = arith.constant 0 : i32
    %c0_i32_1 = arith.constant 0 : i32
    return %c0_i32, %c0_i32_0 : i32, i32
  }
  func.func @transform_2(%arg0: i32) -> (i32, i32, i32) {
    %c0_i32 = arith.constant 0 : i32
    %c0_i32_0 = arith.constant 0 : i32
    %c0_i32_1 = arith.constant 0 : i32
    return %arg0, %c0_i32, %c0_i32_0 : i32, i32, i32
  }
  func.func @transform_3(%arg0: i32) -> (i32, i32) {
    %c0_i32 = arith.constant 0 : i32
    %c0_i32_0 = arith.constant 0 : i32
    %c0_i32_1 = arith.constant 0 : i32
    return %c0_i32, %c0_i32_0 : i32, i32
  }
  func.func @transform_4(%arg0: i32) -> (i32, i32) {
    %c0_i32 = arith.constant 0 : i32
    %c0_i32_0 = arith.constant 0 : i32
    %c0_i32_1 = arith.constant 0 : i32
    return %c0_i32, %c0_i32_0 : i32, i32
  }
  func.func @transform_5(%arg0: i32) -> (i32, i32, i32) {
    %c0_i32 = arith.constant 0 : i32
    %c0_i32_0 = arith.constant 0 : i32
    %c0_i32_1 = arith.constant 0 : i32
    %c0_i32_2 = arith.constant 0 : i32
    return %c0_i32, %c0_i32_0, %c0_i32_1 : i32, i32, i32
  }
  func.func @transform_6(%arg0: i32) -> (i32, i32) {
    %c0_i32 = arith.constant 0 : i32
    %c0_i32_0 = arith.constant 0 : i32
    %c0_i32_1 = arith.constant 0 : i32
    return %c0_i32, %c0_i32_0 : i32, i32
  }
  func.func @transform_7(%arg0: i32) -> (i32, i32, i32) {
    %c0_i32 = arith.constant 0 : i32
    %c0_i32_0 = arith.constant 0 : i32
    %c0_i32_1 = arith.constant 0 : i32
    %c0_i32_2 = arith.constant 0 : i32
    return %c0_i32, %c0_i32_0, %c0_i32_1 : i32, i32, i32
  }
  func.func @transform_8(%arg0: i32) -> (i32, i32) {
    %c0_i32 = arith.constant 0 : i32
    %c0_i32_0 = arith.constant 0 : i32
    %c0_i32_1 = arith.constant 0 : i32
    return %c0_i32, %c0_i32_0 : i32, i32
  }
  func.func @transform_9(%arg0: i32) -> (i32, i32) {
    %c0_i32 = arith.constant 0 : i32
    %c0_i32_0 = arith.constant 0 : i32
    %c0_i32_1 = arith.constant 0 : i32
    return %c0_i32, %c0_i32_0 : i32, i32
  }
  func.func @transform_10(%arg0: i32) -> (i32, i32) {
    %c0_i32 = arith.constant 0 : i32
    %c0_i32_0 = arith.constant 0 : i32
    %c0_i32_1 = arith.constant 0 : i32
    return %c0_i32, %c0_i32_0 : i32, i32
  }
  func.func @transform_11(%arg0: i32) -> (i32, i32, i32) {
    %c0_i32 = arith.constant 0 : i32
    %c0_i32_0 = arith.constant 0 : i32
    %c0_i32_1 = arith.constant 0 : i32
    %c0_i32_2 = arith.constant 0 : i32
    return %c0_i32, %c0_i32_0, %c0_i32_1 : i32, i32, i32
  }
  func.func @transform_12(%arg0: i32) -> (i32, i32) {
    %c0_i32 = arith.constant 0 : i32
    %c0_i32_0 = arith.constant 0 : i32
    %c0_i32_1 = arith.constant 0 : i32
    return %c0_i32, %c0_i32_0 : i32, i32
  }
  func.func @transform_13(%arg0: i32) -> (i32, i32, i32) {
    %c0_i32 = arith.constant 0 : i32
    %c0_i32_0 = arith.constant 0 : i32
    %c0_i32_1 = arith.constant 0 : i32
    %c0_i32_2 = arith.constant 0 : i32
    return %c0_i32, %c0_i32_0, %c0_i32_1 : i32, i32, i32
  }
  func.func @transform_14(%arg0: i32) -> (i32, i32) {
    %c0_i32 = arith.constant 0 : i32
    %c0_i32_0 = arith.constant 0 : i32
    %c0_i32_1 = arith.constant 0 : i32
    return %c0_i32, %c0_i32_0 : i32, i32
  }
  func.func @transform_15(%arg0: i32) -> (i32, i32) {
    %c0_i32 = arith.constant 0 : i32
    %c0_i32_0 = arith.constant 0 : i32
    %c0_i32_1 = arith.constant 0 : i32
    return %c0_i32, %c0_i32_0 : i32, i32
  }
  func.func @transform_16(%arg0: i32) -> (i32, i32) {
    %c0_i32 = arith.constant 0 : i32
    %c0_i32_0 = arith.constant 0 : i32
    %c0_i32_1 = arith.constant 0 : i32
    return %c0_i32, %c0_i32_0 : i32, i32
  }
  func.func @transform_17(%arg0: i32) -> (i32, i32) {
    %c0_i32 = arith.constant 0 : i32
    %c0_i32_0 = arith.constant 0 : i32
    %c0_i32_1 = arith.constant 0 : i32
    return %c0_i32, %c0_i32_0 : i32, i32
  }
  func.func @transform_18(%arg0: i32) -> (i32, i32, i32) {
    %c0_i32 = arith.constant 0 : i32
    %c0_i32_0 = arith.constant 0 : i32
    %c0_i32_1 = arith.constant 0 : i32
    return %arg0, %c0_i32, %c0_i32_0 : i32, i32, i32
  }
}

</mosaic_0001>

<bundles_post_ra>
// kernel: _lambda_.5
= control target key start
LH: loop header
LB: loop body
LE: loop exit
PB: predicated region body
PF: predicated region fallthrough
CT: control target
= control target key end

     0   :  { %vm27_vm0 = vcmask 519168   ;;  %s214_s0 = inlined_call_operand.vmem [shape: f32[2,64], index: 0, kind: input, shape index: {}]   ;;  %s215_s1 = inlined_call_operand.vmem [shape: f32[4,64], index: 1, kind: input, shape index: {}]   ;;  %s216_s2 = inlined_call_operand.<no memory space> [shape: f32[1,1], index: 2, kind: input, shape index: {}]   ;;  %s217_s3 = inlined_call_operand.hbm [shape: f32[2,4], index: 3, kind: output, shape index: {}]  }
   0x1   :  { %v17_v0 = vld [vmem:[%s215_s1] sm:$0xf] }
   0x2   :  { %v16_v1 = vld [vmem:[%s214_s0] sm:$0x3]  ;;  %v26_v2 = vmul.f32 %v17_v0, %v17_v0 }
   0x3   :  { %v18_v3 = vmul.f32 %v16_v1, %v16_v1 }
   0x4   :  { %9 = vsyncpa [#allocation4], 0  ;;  %vm19_vm1 = vcmask 517120   ;;  %v28_v4 = vsel %vm27_vm0, %v26_v2, 0.0  ;;  %v170_v6 = vmov 0.0   ;;  %vm171_vm2 = vmmov 0  }
   0x5   :  { %29 = vadd.xlane.f32.xlu0 %v28_v4  ;;  %v20_v5 = vsel %vm19_vm1, %v18_v3, 0.0  ;;  %134 = vmatprep.subr.mxu0 %v170_v6  ;;  %vm35_vm3 = vcmask 523264   ;;  %v112_v15 = vstv %s216_s2  ;;  %s172_s16 = smov [#allocation3]   ;;  %vm114_vm4 = vcmask 25600  }
   0x6   :  { %136 = vmatprep.mubr.msk.f32.mxu0 %vm171_vm2, %v170_v6  ;;  %s122_s17 = sshll.u32 %s172_s16, 4  ;;  %s123_s17 = int_to_ptr.vmem [resolvable:$true] %s122_s17 }
   0x7   :  { %s146_s18 = scalar_lea.vmem %s123_s17, 32  ;;  %p151_p1 = scmp.lt.s32.totalorder %s123_s17, %s123_s17 }
   0x8   :  { %p147_p0 = scmp.ne.s32.totalorder %s123_s17, %s146_s18  ;;  %p152_p2 = scmp.lt.s32.totalorder %s146_s18, %s146_s18 }
   0x9   :  { %21 = vadd.xlane.f32.xlu0 %v20_v5 }
   0xa   :  { %p153_p3 = por %p152_p2, %p151_p1 }
   0xc   :  { %p154_p4 = pnand %p153_p3, %p147_p0 }
  0x92   :  { %v30_v7 = vpop.xlane.xlu0 %29 }
  0x93   :  { %v31_v8 = vadd.f32 1e-12, %v30_v7 }
  0x95   :  { %142 = vrsqrt.f32 %v31_v8 }
  0x96   :  { %v22_v9 = vpop.xlane.xlu0 %21 }
  0x97   :  { %v23_v10 = vadd.f32 1e-12, %v22_v9 }
  0x99   :  { %144 = vrsqrt.f32 %v23_v10 }
  0x9f   :  { %v143_v11 = vpop.eup %142 }
  0xa0   :  { %v33_v12 = vmul.f32 %v143_v11, %v17_v0 }
  0xa2   :  { %135 = vmatpush3.xpose.msk.msra.mxu0 %vm35_vm3, %v33_v12 }
  0xa3   :  { %v145_v13 = vpop.eup %144 }
  0xa4   :  { %v25_v14 = vmul.f32 %v145_v13, %v16_v1 }
  0xa6   :  { %137 = vmatmul.mubr.msk.f32.vlgmr.msra.gmra.mrb[0].mxu0 %vm35_vm3, %v25_v14 }
 0x179   :  { %v108_v16 = vpop.f32.mrb[0].mxu0 }
 0x17a   :  { %v113_v17 = vmul.f32 %v112_v15, %v108_v16  ;;  %v138_v18 = vpop.f32.mrb[1].mxu0 }
 0x17c   :  { %115 = vst.msk [vmem:[#allocation3] sm:$0x3] %vm114_vm4, %v113_v17 }
 0x17d   :  { %157 = shalt.err (!%p154_p4)
}
 0x17e   :  { %s158_s21 = scalar_lea.hbm %s217_s3, 32 }
 0x17f   :  { %p159_p5 = scmp.ne.s32.totalorder %s217_s3, %s158_s21  ;;  %p162_p6 = scmp.lt.u32.totalorder %s158_s21, %s217_s3 }
 0x181   :  { %p164_p7 = pnand %p162_p6, %p159_p5 }
 0x183   :  { %167 = shalt.err (!%p164_p7)
}
 0x184   :  { %125 = dma.vmem_to_hbm [thread:$0]  %s123_s17, 32, %s217_s3, [#allocation4]  }
 0x185   :  { %168 = dma.done.wait [#allocation4], 32  }
 0x186   :  { %169 = vsyncadd [#allocation4], 4294967264 }
 0x187   :  { %129 = vsyncpa [#allocation4], 1 }

// kernel: _lambda_.3
= control target key start
LH: loop header
LB: loop body
LE: loop exit
PB: predicated region body
PF: predicated region fallthrough
CT: control target
= control target key end

     0   :  { %s6564_s27 = smov 0   ;;  %s7832_s0 = inlined_call_operand.vmem [shape: f32[4,16,64], index: 0, kind: input, shape index: {}]   ;;  %s7833_s1 = inlined_call_operand.vmem [shape: f32[16,64], index: 1, kind: input, shape index: {}]   ;;  %s7834_s2 = inlined_call_operand.vmem [shape: f32[4,1,16], index: 2, kind: input, shape index: {}]   ;;  %s7835_s3 = inlined_call_operand.vmem [shape: f32[3,64], index: 3, kind: input, shape index: {}]   ;;  %s7836_s4 = inlined_call_operand.vmem [shape: f32[3,64], index: 4, kind: input, shape index: {}]   ;;  %s7837_s5 = inlined_call_operand.vmem [shape: f32[3,64,192], index: 5, kind: input, shape index: {}]   ;;  %s7838_s6 = inlined_call_operand.vmem [shape: f32[3,192], index: 6, kind: input, shape index: {}]   ;;  %s7839_s7 = inlined_call_operand.vmem [shape: f32[3,64,64], index: 7, kind: input, shape index: {}]   ;;  %s7840_s8 = inlined_call_operand.vmem [shape: f32[3,64], index: 8, kind: input, shape index: {}]   ;;  %s7841_s9 = inlined_call_operand.vmem [shape: f32[3,64], index: 9, kind: input, shape index: {}]   ;;  %s7842_s10 = inlined_call_operand.vmem [shape: f32[3,64], index: 10, kind: input, shape index: {}]   ;;  %s7843_s11 = inlined_call_operand.vmem [shape: f32[3,64,256], index: 11, kind: input, shape index: {}]   ;;  %s7844_s12 = inlined_call_operand.vmem [shape: f32[3,256], index: 12, kind: input, shape index: {}]   ;;  %s7845_s13 = inlined_call_operand.vmem [shape: f32[3,256,64], index: 13, kind: input, shape index: {}]   ;;  %s7846_s14 = inlined_call_operand.vmem [shape: f32[3,64], index: 14, kind: input, shape index: {}]   ;;  %s7847_s15 = inlined_call_operand.vmem [shape: f32[1,64], index: 15, kind: input, shape index: {}]   ;;  %s7848_s16 = inlined_call_operand.vmem [shape: f32[1,64], index: 16, kind: input, shape index: {}]   ;;  %s7849_s17 = inlined_call_operand.vmem [shape: f32[64,64], index: 17, kind: input, shape index: {}]   ;;  %s7850_s18 = inlined_call_operand.vmem [shape: f32[4,1,64], index: 18, kind: output, shape index: {}]  }
   0x1   :  { %7867 = sst [smem:[#allocation3_spill]] %s7832_s0 }
   0x2   :  { %7868 = sst [smem:[#allocation4_spill]] %s7833_s1 }
   0x3   :  { %7869 = sst [smem:[#allocation5_spill]] %s7834_s2 }
   0x4   :  { %7870 = sst [smem:[#allocation6_spill]] %s7848_s16 }
   0x5   :  { %7871 = sst [smem:[#allocation7_spill]] %s7850_s18 }
   0x6 LB: > { %7872 = sst [smem:[#allocation2_spill]] %s6457_s27  ;;  %s5000_s28 = sadd.s32 4294967295, %s6457_s27   ;;  %s6457_s27 = sphi %s6564_s27, %s28_s27  }
   0x7   : > { %p5004_p0 = scmp.ge.s32.totalorder %s6457_s27, 1  ;;  %p520_p1 = scmp.lt.s32.totalorder %s6457_s27, 5 }
   0x9   : > { %p521_p2 = pnand %p5004_p0, %p520_p1 }
   0xa   : > { %p575_p3 = scmp.lt.s32.totalorder (!%p521_p2), %s5000_s28, 3  ;;  %s7873_s19 = sld [smem:[#allocation4_spill]] (!%p521_p2)  ;;  %vm603_vm0 = vcmask (!%p521_p2), 523264   ;;  %v644_v18 = vld [vmem:[%s7837_s5 + $0x8] sm:$0xff] (!%p521_p2)  ;;  %v646_v19 = vld [vmem:[%s7837_s5 + $0x18] sm:$0xff] (!%p521_p2)  ;;  %v643_v21 = vld [vmem:[%s7837_s5] sm:$0xff] (!%p521_p2)  ;;  %v592_v59 = vlaneseq (!%p521_p2) }
   0xb   : > { %524 = sbr.rel (%p521_p2) target bundleno = 11719 (0x2dc7), region = 92  ;;  %s7874_s2 = sld [smem:[#allocation3_spill]] (!%p521_p2)  ;;  %v5783_v20 = vpack.c.bf16 (!%p521_p2), %v646_v19, %v644_v18  ;;  %v645_v22 = vld [vmem:[%s7837_s5 + $0x10] sm:$0xff] (!%p521_p2)  ;;  %v648_v24 = vld [vmem:[%s7837_s5 + $0x28] sm:$0xff] (!%p521_p2)  ;;  %v650_v25 = vld [vmem:[%s7837_s5 + $0x38] sm:$0xff] (!%p521_p2)  ;;  %v6459_v37 = vmov (!%p521_p2), 0.0  }
   0xc   : > { %v5785_v23 = vpack.c.bf16 (!%p521_p2), %v645_v22, %v643_v21  ;;  %v5787_v26 = vpack.c.bf16 (!%p521_p2), %v650_v25, %v648_v24  ;;  %v647_v27 = vld [vmem:[%s7837_s5 + $0x20] sm:$0xff] (!%p521_p2)  ;;  %v649_v28 = vld [vmem:[%s7837_s5 + $0x30] sm:$0xff] (!%p521_p2)  ;;  %v652_v30 = vld [vmem:[%s7837_s5 + $0x48] sm:$0xff] (!%p521_p2)  ;;  %741 = vmatprep.mubr.f32.mxu0 (!%p521_p2), %v6459_v37  ;;  %v593_v60 = vshrl.u32 (!%p521_p2), %v592_v59, 7  ;;  %vm760_vm1 = vcmask (!%p521_p2), 130048   ;;  %s7862_s26 = smov (!%p521_p2), 64  }
   0xd   : > { %5784 = vmatprep.subr.bf16.mxu0 (!%p521_p2), %v5783_v20  ;;  %v5789_v29 = vpack.c.bf16 (!%p521_p2), %v649_v28, %v647_v27  ;;  %v654_v31 = vld [vmem:[%s7837_s5 + $0x58] sm:$0xff] (!%p521_p2)  ;;  %v651_v32 = vld [vmem:[%s7837_s5 + $0x40] sm:$0xff] (!%p521_p2)  ;;  %v653_v34 = vld [vmem:[%s7837_s5 + $0x50] sm:$0xff] (!%p521_p2)  ;;  %s7860_s30 = smov (!%p521_p2), 32   ;;  %s7856_s0 = smov (!%p521_p2), 96   ;;  %v596_v20 = vand.u32 (!%p521_p2), 127, %v592_v59 }
   0xe   : > { %5786 = vmatpush1.bf16.msra.mxu0 (!%p521_p2), %v5785_v23  ;;  %v5791_v33 = vpack.c.bf16 (!%p521_p2), %v654_v31, %v652_v30  ;;  %v656_v35 = vld [vmem:[%s7837_s5 + $0x68] sm:$0xff] (!%p521_p2)  ;;  %v658_v36 = vld [vmem:[%s7837_s5 + $0x78] sm:$0xff] (!%p521_p2)  ;;  %v5793_v38 = vpack.c.bf16 (!%p521_p2), %v653_v34, %v651_v32  ;;  %v655_v40 = vld [vmem:[%s7837_s5 + $0x60] sm:$0xff] (!%p521_p2)  ;;  %v6654_v61 = vsub.s32 (!%p521_p2), 0, %v593_v60  ;;  %v594_v21 = vadd.s32 (!%p521_p2), 8, %v593_v60  ;;  %s7863_s1 = smov (!%p521_p2), 48  }
   0xf   : > { %5788 = vmatprep.subr.bf16.mxu0 (!%p521_p2), %v5787_v26  ;;  %v5795_v39 = vpack.c.bf16 (!%p521_p2), %v658_v36, %v656_v35  ;;  %v657_v41 = vld [vmem:[%s7837_s5 + $0x70] sm:$0xff] (!%p521_p2)  ;;  %v5007_v50 = vld [vmem:[%s7835_s3] ss:$0 sm:$0xff] (!%p521_p2)  ;;  %vm6687_vm2 = vmpackc.low (!%p521_p2), %vm760_vm1, %vm760_vm1  ;;  %vm597_vm3 = vcmp.gt.s32.totalorder (!%p521_p2), %v596_v20, %v593_v60  ;;  %s7854_s20 = smov (!%p521_p2), 16   ;;  %s7852_s21 = smov (!%p521_p2), 80   ;;  %vm1591_vm5 = vcmask (!%p521_p2), 261120  }
  0x10   : > { %v588_v0 = vld [vmem:[%s7873_s19] sm:$0xff] (!%p521_p2)  ;;  %v589_v1 = vld [vmem:[%s7873_s19 + $0x8] sm:$0xff] (!%p521_p2)  ;;  %v5797_v42 = vpack.c.bf16 (!%p521_p2), %v657_v41, %v655_v40  ;;  %vm598_vm4 = vcmp.gt.s32.totalorder (!%p521_p2), %v596_v20, %v594_v21  ;;  %v6698_v23 = vsel (!%p521_p2), %vm597_vm3, -1e+09, %v6459_v37  ;;  %vm1594_vm6 = vcmask (!%p521_p2), 392192   ;;  %s7877_s22 = smov (!%p521_p2), 32  }
  0x11   : > { %v5008_v52 = vld [vmem:[%s7836_s4] ss:$0 sm:$0xff] (!%p521_p2)  ;;  %v6701_v27 = vsel (!%p521_p2), %vm598_vm4, -1e+09, %v6459_v37  ;;  %s7881_s24 = smov (!%p521_p2), 80   ;;  %s7882_s18 = smov (!%p521_p2), 48  }
  0x12   : > { %s7889_s28 = smov (!%p575_p3, %s5000_s28), 3  ;;  %5790 = vmatpush1.bf16.msra.mxu0 %v5789_v29  ;;  %v659_v62 = vld [vmem:[%s7838_s6] ss:$4 sm:$0x3]  ;;  %vm6468_vm7 = vmmov 0   ;;  %s7884_s25 = sld [smem:[#allocation5_spill]] }
  0x13   : > { %s5279_s29 = sshll.u32 %s7889_s28, 4  ;;  %5792 = vmatprep.subr.bf16.mxu0 %v5791_v33  ;;  %v664_v63 = vrot.slane %v659_v62, %v6654_v61  ;;  %vm4846_vm8 = vcmask 516096  }
  0x14   : > { %s579_s23 = scalar_lea.vmem %s7874_s2, %s5279_s29  ;;  %s7858_s29 = smov 112  }
  0x15   : > { %v586_v2 = vld [vmem:[%s579_s23] sm:$0xff]  ;;  %v587_v3 = vld [vmem:[%s579_s23 + $0x8] sm:$0xff]  ;;  %s7878_s2 = smov 112   ;;  %s7880_s23 = smov 16  }
  0x16   : > { %v6584_v4 = vadd.f32 %v588_v0, %v586_v2  ;;  %v6586_v5 = vadd.f32 %v589_v1, %v587_v3  ;;  %5794 = vmatpush1.bf16.msra.mxu0 %v5793_v38  ;;  %v6660_v0 = vsub.s32 1, %v593_v60 }
  0x17   : > { %5796 = vmatprep.subr.bf16.mxu0 %v5795_v39 }
  0x18   : > { %v604_v6 = vsel %vm603_vm0, %v6584_v4, 0.0  ;;  %v607_v7 = vsel %vm603_vm0, %v6586_v5, 0.0 }
  0x19   : > { %605 = vadd.xlane.f32.xlu0 %v604_v6  ;;  %v668_v6 = vrot.slane %v659_v62, %v6660_v0 }
  0x1a   : > { %5798 = vmatpush1.bf16.msra.mxu0 %v5797_v42 }
  0x1d   : > { %608 = vadd.xlane.f32.xlu0 %v607_v7 }
  0xa6   : > { %v606_v8 = vpop.xlane.xlu0 %605 }
  0xa7   : > { %v611_v9 = vmul.f32 0.015625, %v606_v8 }
  0xa9   : > { %v613_v10 = vsub.f32 %v6584_v4, %v611_v9 }
  0xaa   : > { %v609_v11 = vpop.xlane.xlu0 %608 }
  0xab   : > { %v612_v12 = vmul.f32 0.015625, %v609_v11  ;;  %v615_v13 = vmul.f32 %v613_v10, %v613_v10 }
  0xad   : > { %v614_v14 = vsub.f32 %v6586_v5, %v612_v12  ;;  %v617_v15 = vsel %vm603_vm0, %v615_v13, 0.0 }
  0xae   : > { %618 = vadd.xlane.f32.xlu1 %v617_v15 }
  0xaf   : > { %v616_v16 = vmul.f32 %v614_v14, %v614_v14 }
  0xb1   : > { %v620_v17 = vsel %vm603_vm0, %v616_v16, 0.0 }
  0xb2   : > { %621 = vadd.xlane.f32.xlu1 %v620_v17 }
 0x13b   : > { %v619_v43 = vpop.xlane.xlu1 %618 }
 0x13c   : > { %v623_v44 = vmul.f32 0.015625, %v619_v43 }
 0x13e   : > { %v625_v45 = vadd.f32 1e-05, %v623_v44 }
 0x13f   : > { %v622_v46 = vpop.xlane.xlu1 %621 }
 0x140   : > { %6281 = vrsqrt.f32 %v625_v45  ;;  %v624_v47 = vmul.f32 0.015625, %v622_v46 }
 0x142   : > { %v626_v48 = vadd.f32 1e-05, %v624_v47 }
 0x144   : > { %6283 = vrsqrt.f32 %v626_v48 }
 0x14a   : > { %v6282_v49 = vpop.eup %6281 }
 0x14b   : > { %v629_v51 = vmul.f32 %v6282_v49, %v613_v10 }
 0x14d   : > { %v635_v53 = vmul.f32 %v5007_v50, %v629_v51 }
 0x14e   : > { %v6284_v54 = vpop.eup %6283 }
 0x14f   : > { %v641_v55 = vadd.f32 %v5008_v52, %v635_v53  ;;  %v630_v56 = vmul.f32 %v6284_v54, %v614_v14 }
 0x151   : > { %5009 = vmatmul.mubr.msk.f32.vlgmr.msra.gmra.mrb[0].mxu0 %vm603_vm0, %v641_v55  ;;  %v636_v57 = vmul.f32 %v5007_v50, %v630_v56 }
 0x152   : > { %747 = vmatprep.mubr.f32.mxu0 %v6459_v37 }
 0x153   : > { %v642_v58 = vadd.f32 %v5008_v52, %v636_v57 }
 0x155   : > { %5010 = vmatmul.mubr.msk.f32.gmra.mrb[2].mxu0 %vm603_vm0, %v642_v58 }
 0x224   : > { %v743_v1 = vpop.f32.mrb[0].mxu0 }
 0x225   : > { %v6662_v2 = vadd.f32 %v743_v1, %v664_v63  ;;  %v745_v3 = vpop.f32.mrb[1].mxu0 }
 0x226   : > { %v746_v10 = vadd.f32 %v745_v3, %v668_v6 }
 0x227   : > { %5536 = vmatprep.mubr.msk.f32.mxu0 %vm760_vm1, %v6662_v2 }
 0x228   : > { %v749_v7 = vpop.f32.mrb[2].mxu0 }
 0x229   : > { %v6667_v8 = vadd.f32 %v749_v7, %v664_v63  ;;  %v751_v9 = vpop.f32.mrb[3].mxu0 }
 0x22a   : > { %v752_v11 = vadd.f32 %v751_v9, %v668_v6 }
 0x22b   : > { %v6671_v12 = vpack.i.bf16 %v6667_v8, %v6662_v2 }
 0x22c   : > { %v5805_v13 = vpack.c.bf16 %v752_v11, %v746_v10  ;;  %v6673_v14 = vpack.i.bf16 %v752_v11, %v746_v10 }
 0x22d   : > { %6177 = vrot.lane.b32.xlu0 %v6671_v12, %s7862_s26 }
 0x22e   : > { %5806 = vmatprep.subr.bf16.mxu1 %v5805_v13 }
 0x22f   : > { %5808 = vmatpush3.bf16.msra.mxu1 %v5805_v13 }
 0x231   : > { %951 = vrot.lane.b32.xlu0 %v6662_v2, %s7858_s29 }
 0x235   : > { %6187 = vrot.lane.b32.xlu0 %v6671_v12, %s7860_s30 }
 0x239   : > { %953 = vrot.lane.b32.xlu0 %v6667_v8, %s7858_s29 }
 0x23d   : > { %1159 = vrot.lane.b32.xlu0 %v6667_v8, %s7856_s0 }
 0x29f   : > { %v6178_v15 = vpop.permute.xlu0 %6177 }
 0x2a0   : > { %v6180_v16 = vunpack.i.h.bf16 %v6178_v15  ;;  %v6179_v17 = vunpack.i.l.bf16 %v6178_v15 }
 0x2a2   : > { %v5799_v19 = vpack.c.bf16 %v6180_v16, %v6179_v17 }
 0x2a3   : > { %v952_v45 = vpop.permute.xlu0 %951 }
 0x2a4   : > { %5801 = vmatprep.subr.msk.bf16.mxu0 %vm6687_vm2, %v5799_v19 }
 0x2a5   : > { %5804 = vmatpush3.bf16.xpose.msk.msra.mxu0 %vm6687_vm2, %v5799_v19 }
 0x2a7   : > { %v6188_v50 = vpop.permute.xlu0 %6187 }
 0x2a8   : > { %v6190_v53 = vunpack.i.h.bf16 %v6188_v50  ;;  %v6189_v54 = vunpack.i.l.bf16 %v6188_v50 }
 0x2aa   : > { %v5819_v57 = vpack.c.bf16 %v6190_v53, %v6189_v54 }
 0x2ab   : > { %v954_v58 = vpop.permute.xlu0 %953 }
 0x2ac   : > { %5537 = vmatmul.mubr.msk.f32.vlgmr.msra.gmra.mrb[4].mxu0 %vm760_vm1, %v6667_v8 }
 0x2af   : > { %v1160_v60 = vpop.permute.xlu0 %1159 }
 0x37f   : > { %v5538_v22 = vpop.f32.mrb[4].mxu0 }
 0x380   : > { %v835_v24 = vpop.f32.mrb[5].mxu0  ;;  %v845_v25 = vmul.f32 0.25, %v5538_v22 }
 0x381   : > { %v844_v26 = vmul.f32 0.25, %v835_v24 }
 0x382   : > { %v847_v30 = vadd.f32 %v845_v25, %v6701_v27 }
 0x383   : > { %v846_v28 = vadd.f32 %v844_v26, %v6698_v23 }
 0x384   : > { %v851_v31 = vsel %vm760_vm1, %v847_v30, -inf }
 0x385   : > { %v848_v29 = vsel %vm760_vm1, %v846_v28, -inf }
 0x386   : > { %849 = vmax.xlane.f32.xlu1 %v848_v29 }
 0x38a   : > { %852 = vmax.xlane.f32.xlu1 %v851_v31 }
 0x413   : > { %v850_v32 = vpop.xlane.xlu1 %849 }
 0x414   : > { %v854_v33 = vsub.f32 %v846_v28, %v850_v32 }
 0x416   : > { %v856_v36 = vmul.f32 1.442695, %v854_v33 }
 0x417   : > { %v853_v34 = vpop.xlane.xlu1 %852 }
 0x418   : > { %v855_v35 = vsub.f32 %v847_v30, %v853_v34 }
 0x41a   : > { %v858_v38 = vmul.f32 1.442695, %v855_v35 }
 0x41c   : > { %6285 = vpow2.f32 %v858_v38 }
 0x41d   : > { %6287 = vpow2.f32 %v856_v36 }
 0x426   : > { %v6286_v39 = vpop.eup %6285 }
 0x427   : > { %v863_v40 = vsel %vm760_vm1, %v6286_v39, 0.0  ;;  %v6288_v41 = vpop.eup %6287 }
 0x428   : > { %864 = vadd.xlane.f32.xlu1 %v863_v40  ;;  %v860_v42 = vsel %vm760_vm1, %v6288_v41, 0.0 }
 0x42c   : > { %861 = vadd.xlane.f32.xlu1 %v860_v42 }
 0x43d   : > { %6182 = vrot.lane.b32.xlu1 %v6671_v12, %s7863_s1 }
 0x441   : > { %1157 = vrot.lane.b32.xlu1 %v6662_v2, %s7856_s0 }
 0x4b5   : > { %v865_v43 = vpop.xlane.xlu1 %864 }
 0x4b6   : > { %6289 = vrcp.f32 %v865_v43 }
 0x4b9   : > { %v862_v44 = vpop.xlane.xlu1 %861 }
 0x4ba   : > { %6291 = vrcp.f32 %v862_v44 }
 0x4bd   : > { %v6183_v46 = vpop.permute.xlu1 %6182 }
 0x4be   : > { %v6185_v47 = vunpack.i.h.bf16 %v6183_v46  ;;  %v6184_v48 = vunpack.i.l.bf16 %v6183_v46 }
 0x4c0   : > { %v5809_v49 = vpack.c.bf16 %v6185_v47, %v6184_v48  ;;  %v6290_v51 = vpop.eup %6289 }
 0x4c1   : > { %v869_v56 = vmul.f32 %v6290_v51, %v6286_v39  ;;  %v1158_v59 = vpop.permute.xlu1 %1157 }
 0x4c2   : > { %5811 = vmatprep.subr.msk.bf16.mxu1 %vm6687_vm2, %v5809_v49 }
 0x4c4   : > { %v6292_v52 = vpop.eup %6291 }
 0x4c5   : > { %v868_v55 = vmul.f32 %v6292_v52, %v6288_v41 }
 0x4c7   : > { %5543 = vmatprep.mubr.msk.f32.mxu1 %vm760_vm1, %v868_v55 }
 0x4c8   : > { %5544 = vmatmul.mubr.msk.f32.vlgmr.msra.gmra.mrb[0].mxu1 %vm760_vm1, %v869_v56 }
 0x4c9   : > { %5814 = vmatpush3.bf16.xpose.msk.msra.mxu1 %vm6687_vm2, %v5809_v49  ;;  %5550 = vmatprep.mubr.msk.f32.mxu1 %vm760_vm1, %v952_v45 }
 0x4ca   : > { %5821 = vmatprep.subr.msk.bf16.mxu1 %vm6687_vm2, %v5819_v57 }
 0x4d0   : > { %5551 = vmatmul.mubr.msk.f32.vlgmr.msra.gmra.mrb[2].mxu1 %vm760_vm1, %v954_v58 }
 0x4d1   : > { %5824 = vmatpush3.bf16.xpose.msk.msra.mxu1 %vm6687_vm2, %v5819_v57  ;;  %5564 = vmatprep.mubr.msk.f32.mxu1 %vm760_vm1, %v1158_v59 }
 0x4d8   : > { %5565 = vmatmul.mubr.msk.f32.vlgmr.msra.gmra.mrb[4].mxu1 %vm760_vm1, %v1160_v60 }
 0x59b   : > { %v6727_v62 = vpop.f32.mrb[0].mxu1 }
 0x59c   : > { %v6729_v63 = vpop.f32.mrb[1].mxu1 }
 0x5a3   : > { %v5552_v1 = vpop.f32.mrb[2].mxu1 }
 0x5a4   : > { %v1043_v3 = vmul.f32 0.25, %v5552_v1  ;;  %v1033_v6 = vpop.f32.mrb[3].mxu1 }
 0x5a5   : > { %v1042_v7 = vmul.f32 0.25, %v1033_v6 }
 0x5a6   : > { %v1045_v9 = vadd.f32 %v1043_v3, %v6701_v27 }
 0x5a7   : > { %v1044_v10 = vadd.f32 %v1042_v7, %v6698_v23 }
 0x5a8   : > { %v1049_v11 = vsel %vm760_vm1, %v1045_v9, -inf }
 0x5a9   : > { %1050 = vmax.xlane.f32.xlu0 %v1049_v11  ;;  %v1046_v13 = vsel %vm760_vm1, %v1044_v10, -inf }
 0x5aa   : > { %1047 = vmax.xlane.f32.xlu1 %v1046_v13 }
 0x5ab   : > { %v5566_v15 = vpop.f32.mrb[4].mxu1 }
 0x5ac   : > { %v1239_v16 = vpop.f32.mrb[5].mxu1  ;;  %v1249_v17 = vmul.f32 0.25, %v5566_v15 }
 0x5ad   : > { %v1248_v19 = vmul.f32 0.25, %v1239_v16 }
 0x5ae   : > { %v1251_v22 = vadd.f32 %v1249_v17, %v6701_v27 }
 0x5af   : > { %v1250_v20 = vadd.f32 %v1248_v19, %v6698_v23 }
 0x5b0   : > { %v1255_v24 = vsel %vm760_vm1, %v1251_v22, -inf }
 0x5b1   : > { %v1252_v21 = vsel %vm760_vm1, %v1250_v20, -inf }
 0x5b2   : > { %1253 = vmax.xlane.f32.xlu0 %v1252_v21 }
 0x5b6   : > { %1256 = vmax.xlane.f32.xlu0 %v1255_v24 }
 0x5bb   : > { %6192 = vrot.lane.b32.xlu1 %v6673_v14, %s7858_s29  ;;  %s7883_s29 = smov 64  }
 0x636   : > { %v1051_v25 = vpop.xlane.xlu0 %1050 }
 0x637   : > { %v1053_v26 = vsub.f32 %v1045_v9, %v1051_v25  ;;  %v1048_v28 = vpop.xlane.xlu1 %1047 }
 0x638   : > { %v1052_v29 = vsub.f32 %v1044_v10, %v1048_v28 }
 0x639   : > { %v1056_v30 = vmul.f32 1.442695, %v1053_v26 }
 0x63a   : > { %v1054_v31 = vmul.f32 1.442695, %v1052_v29 }
 0x63b   : > { %6293 = vpow2.f32 %v1056_v30  ;;  %v6193_v32 = vpop.permute.xlu1 %6192 }
 0x63c   : > { %6295 = vpow2.f32 %v1054_v31  ;;  %v6195_v33 = vunpack.i.h.bf16 %v6193_v32  ;;  %v6194_v34 = vunpack.i.l.bf16 %v6193_v32 }
 0x63e   : > { %v5815_v35 = vpack.c.bf16 %v6195_v33, %v6194_v34 }
 0x63f   : > { %v1254_v36 = vpop.xlane.xlu0 %1253 }
 0x640   : > { %5816 = vmatprep.subr.bf16.mxu0 %v5815_v35  ;;  %v1258_v47 = vsub.f32 %v1250_v20, %v1254_v36 }
 0x641   : > { %5818 = vmatpush3.bf16.msra.mxu0 %v5815_v35 }
 0x642   : > { %v1260_v48 = vmul.f32 1.442695, %v1258_v47 }
 0x643   : > { %v1257_v38 = vpop.xlane.xlu0 %1256 }
 0x644   : > { %v1259_v39 = vsub.f32 %v1251_v22, %v1257_v38 }
 0x645   : > { %v6294_v40 = vpop.eup %6293 }
 0x646   : > { %v6296_v41 = vpop.eup %6295  ;;  %v1262_v42 = vmul.f32 1.442695, %v1259_v39  ;;  %v1061_v43 = vsel %vm760_vm1, %v6294_v40, 0.0 }
 0x647   : > { %1062 = vadd.xlane.f32.xlu0 %v1061_v43  ;;  %v1058_v44 = vsel %vm760_vm1, %v6296_v41, 0.0 }
 0x648   : > { %6297 = vpow2.f32 %v1262_v42  ;;  %1059 = vadd.xlane.f32.xlu1 %v1058_v44 }
 0x649   : > { %6299 = vpow2.f32 %v1260_v48 }
 0x652   : > { %v6298_v45 = vpop.eup %6297 }
 0x653   : > { %v1267_v46 = vsel %vm760_vm1, %v6298_v45, 0.0  ;;  %v6300_v49 = vpop.eup %6299 }
 0x654   : > { %1268 = vadd.xlane.f32.xlu0 %v1267_v46  ;;  %v1264_v50 = vsel %vm760_vm1, %v6300_v49, 0.0 }
 0x659   : > { %6202 = vrot.lane.b32.xlu1 %v6671_v12, %s7854_s20 }
 0x65d   : > { %1361 = vrot.lane.b32.xlu1 %v6662_v2, %s7852_s21 }
 0x66a   : > { %6197 = vrot.lane.b32.xlu0 %v6673_v14, %s7856_s0  ;;  %s582_s0 = scalar_lea.vmem %s7884_s25, %s7889_s28 }
 0x681   : > { %1265 = vadd.xlane.f32.xlu1 %v1264_v50 }
 0x692   : > { %1363 = vrot.lane.b32.xlu1 %v6667_v8, %s7852_s21 }
 0x6d4   : > { %v1063_v51 = vpop.xlane.xlu0 %1062 }
 0x6d5   : > { %6301 = vrcp.f32 %v1063_v51  ;;  %v1060_v12 = vpop.xlane.xlu1 %1059 }
 0x6d6   : > { %6303 = vrcp.f32 %v1060_v12  ;;  %v1598_v12 = vld [vmem:[%s7839_s7 + $0x8] sm:$0xff] }
 0x6d9   : > { %v6203_v56 = vpop.permute.xlu1 %6202 }
 0x6da   : > { %v6205_v58 = vunpack.i.h.bf16 %v6203_v56  ;;  %v6204_v59 = vunpack.i.l.bf16 %v6203_v56  ;;  %v1602_v56 = vld [vmem:[%s7839_s7 + $0x28] sm:$0xff] }
 0x6dc   : > { %v5829_v3 = vpack.c.bf16 %v6205_v58, %v6204_v59  ;;  %v1603_v58 = vld [vmem:[%s7839_s7 + $0x30] sm:$0xff]  ;;  %v1604_v59 = vld [vmem:[%s7839_s7 + $0x38] sm:$0xff] }
 0x6dd   : > { %v1362_v6 = vpop.permute.xlu1 %1361 }
 0x6df   : > { %v6302_v52 = vpop.eup %6301 }
 0x6e0   : > { %v6304_v53 = vpop.eup %6303  ;;  %v1067_v55 = vmul.f32 %v6302_v52, %v6294_v40  ;;  %v1599_v52 = vld [vmem:[%s7839_s7 + $0x10] sm:$0xff] }
 0x6e1   : > { %v1269_v2 = vpop.xlane.xlu0 %1268  ;;  %v1066_v54 = vmul.f32 %v6304_v53, %v6296_v41 }
 0x6e2   : > { %6305 = vrcp.f32 %v1269_v2  ;;  %v1600_v2 = vld [vmem:[%s7839_s7 + $0x18] sm:$0xff] }
 0x6e3   : > { %5557 = vmatprep.mubr.msk.f32.mxu0 %vm760_vm1, %v1066_v54  ;;  %v5843_v54 = vpack.c.bf16 %v1600_v2, %v1599_v52  ;;  %v1741_v52 = vld [vmem:[%s7843_s11 + $0x40] sm:$0xff] }
 0x6e4   : > { %5558 = vmatmul.mubr.msk.f32.vlgmr.msra.gmra.mrb[6].mxu0 %vm760_vm1, %v1067_v55  ;;  %v1601_v55 = vld [vmem:[%s7839_s7 + $0x20] sm:$0xff] }
 0x6e5   : > { %v6198_v57 = vpop.permute.xlu0 %6197 }
 0x6e6   : > { %v6200_v60 = vunpack.i.h.bf16 %v6198_v57  ;;  %v6199_v1 = vunpack.i.l.bf16 %v6198_v57  ;;  %v5847_v57 = vpack.c.bf16 %v1602_v56, %v1601_v55  ;;  %v1748_v55 = vld [vmem:[%s7843_s11 + $0x78] sm:$0xff] }
 0x6e8   : > { %v5825_v8 = vpack.c.bf16 %v6200_v60, %v6199_v1  ;;  %v5851_v60 = vpack.c.bf16 %v1604_v59, %v1603_v58  ;;  %v1747_v58 = vld [vmem:[%s7843_s11 + $0x70] sm:$0xff] }
 0x6ea   : > { %5826 = vmatprep.subr.bf16.mxu0 %v5825_v8 }
 0x6eb   : > { %5828 = vmatpush3.bf16.msra.mxu0 %v5825_v8 }
 0x6ec   : > { %5831 = vmatprep.subr.msk.bf16.mxu0 %vm6687_vm2, %v5829_v3  ;;  %v6306_v9 = vpop.eup %6305 }
 0x6ed   : > { %v1273_v13 = vmul.f32 %v6306_v9, %v6298_v45 }
 0x70e   : > { %v1266_v7 = vpop.xlane.xlu1 %1265 }
 0x70f   : > { %6307 = vrcp.f32 %v1266_v7 }
 0x712   : > { %v1364_v15 = vpop.permute.xlu1 %1363 }
 0x719   : > { %v6308_v10 = vpop.eup %6307 }
 0x71a   : > { %v1272_v11 = vmul.f32 %v6308_v10, %v6300_v49 }
 0x71c   : > { %5571 = vmatprep.mubr.msk.f32.mxu0 %vm760_vm1, %v1272_v11 }
 0x71d   : > { %5572 = vmatmul.mubr.msk.f32.vlgmr.msra.gmra.mrb[8].mxu0 %vm760_vm1, %v1273_v13 }
 0x71e   : > { %5834 = vmatpush3.bf16.xpose.msk.msra.mxu0 %vm6687_vm2, %v5829_v3  ;;  %5578 = vmatprep.mubr.msk.f32.mxu0 %vm760_vm1, %v1362_v6 }
 0x725   : > { %5579 = vmatmul.mubr.msk.f32.vlgmr.msra.gmra.mrb[10].mxu0 %vm760_vm1, %v1364_v15 }
 0x726   : > { %1831 = vmatprep.mubr.f32.mxu0 %v6459_v37 }
 0x7b7   : > { %v5559_v16 = vpop.f32.mrb[6].mxu0 }
 0x7b8   : > { %v1148_v17 = vpop.f32.mrb[7].mxu0 }
 0x7f0   : > { %v5573_v19 = vpop.f32.mrb[8].mxu0 }
 0x7f1   : > { %v1352_v20 = vpop.f32.mrb[9].mxu0 }
 0x7f8   : > { %v5580_v21 = vpop.f32.mrb[10].mxu0 }
 0x7f9   : > { %v1453_v22 = vmul.f32 0.25, %v5580_v21  ;;  %v1443_v24 = vpop.f32.mrb[11].mxu0 }
 0x7fa   : > { %v1452_v25 = vmul.f32 0.25, %v1443_v24 }
 0x7fb   : > { %v1455_v26 = vadd.f32 %v1453_v22, %v6701_v27 }
 0x7fc   : > { %v1454_v28 = vadd.f32 %v1452_v25, %v6698_v23 }
 0x7fd   : > { %v1459_v29 = vsel %vm760_vm1, %v1455_v26, -inf }
 0x7fe   : > { %1460 = vmax.xlane.f32.xlu1 %v1459_v29  ;;  %v1456_v30 = vsel %vm760_vm1, %v1454_v28, -inf }
 0x7ff   : > { %1457 = vmax.xlane.f32.xlu0 %v1456_v30 }
 0x80f   : > { %1567 = vrot.lane.b32.xlu1 %v1148_v17, %s7854_s20 }
 0x813   : > { %1569 = vrot.lane.b32.xlu1 %v5559_v16, %s7854_s20 }
 0x817   : > { %1575 = vrot.lane.b32.xlu1 %v1352_v20, %s7860_s30 }
 0x88b   : > { %v1461_v31 = vpop.xlane.xlu1 %1460 }
 0x88c   : > { %v1463_v32 = vsub.f32 %v1455_v26, %v1461_v31  ;;  %v1458_v33 = vpop.xlane.xlu0 %1457 }
 0x88d   : > { %v1462_v34 = vsub.f32 %v1454_v28, %v1458_v33 }
 0x88e   : > { %v1466_v35 = vmul.f32 1.442695, %v1463_v32 }
 0x88f   : > { %v1464_v36 = vmul.f32 1.442695, %v1462_v34  ;;  %v1568_v3 = vpop.permute.xlu1 %1567 }
 0x890   : > { %6309 = vpow2.f32 %v1466_v35  ;;  %v1589_v10 = vsel %vm760_vm1, %v6729_v63, %v1568_v3  ;;  %v5035_v63 = vld [vmem:[%s7840_s8] ss:$0 sm:$0xff] }
 0x891   : > { %6311 = vpow2.f32 %v1464_v36 }
 0x893   : > { %v1570_v6 = vpop.permute.xlu1 %1569 }
 0x894   : > { %v1590_v13 = vsel %vm760_vm1, %v6727_v62, %v1570_v6 }
 0x897   : > { %v1576_v9 = vpop.permute.xlu1 %1575 }
 0x898   : > { %v1592_v15 = vsel %vm1591_vm5, %v1589_v10, %v1576_v9  ;;  %v5038_v10 = vld [vmem:[%s7841_s9] ss:$0 sm:$0xff] }
 0x89a   : > { %v6310_v38 = vpop.eup %6309 }
 0x89b   : > { %v1471_v39 = vsel %vm760_vm1, %v6310_v38, 0.0  ;;  %v6312_v40 = vpop.eup %6311 }
 0x89c   : > { %1472 = vadd.xlane.f32.xlu0 %v1471_v39  ;;  %v1468_v41 = vsel %vm760_vm1, %v6312_v40, 0.0  ;;  %v1734_v39 = vld [vmem:[%s7843_s11 + $0x8] sm:$0xff] }
 0x8a0   : > { %1469 = vadd.xlane.f32.xlu0 %v1468_v41 }
 0x8b6   : > { %6207 = vrot.lane.b32.xlu0 %v6673_v14, %s7852_s21  ;;  %v1597_v14 = vld [vmem:[%s7839_s7] sm:$0xff]  ;;  %s7879_s21 = smov 96  }
 0x8b7   : > { %v5839_v53 = vpack.c.bf16 %v1598_v12, %v1597_v14  ;;  %v1744_v14 = vld [vmem:[%s7843_s11 + $0x58] sm:$0xff] }
 0x8ba   : > { %1577 = vrot.lane.b32.xlu0 %v5573_v19, %s7860_s30 }
 0x929   : > { %v1473_v42 = vpop.xlane.xlu0 %1472 }
 0x92a   : > { %6313 = vrcp.f32 %v1473_v42  ;;  %v1733_v42 = vld [vmem:[%s7843_s11] sm:$0xff] }
 0x92d   : > { %v1470_v43 = vpop.xlane.xlu0 %1469 }
 0x92e   : > { %6315 = vrcp.f32 %v1470_v43  ;;  %v1735_v43 = vld [vmem:[%s7843_s11 + $0x10] sm:$0xff] }
 0x931   : > { %v6208_v44 = vpop.permute.xlu0 %6207 }
 0x932   : > { %v6210_v45 = vunpack.i.h.bf16 %v6208_v44  ;;  %v6209_v46 = vunpack.i.l.bf16 %v6208_v44  ;;  %v5857_v44 = vpack.c.bf16 %v1735_v43, %v1733_v42  ;;  %v1899_v42 = vld [vmem:[%s7845_s13 + $0xb8] sm:$0xff] }
 0x934   : > { %v5835_v47 = vpack.c.bf16 %v6210_v45, %v6209_v46  ;;  %v6314_v48 = vpop.eup %6313  ;;  %v1738_v45 = vld [vmem:[%s7843_s11 + $0x28] sm:$0xff]  ;;  %v1740_v46 = vld [vmem:[%s7843_s11 + $0x38] sm:$0xff] }
 0x935   : > { %v1477_v51 = vmul.f32 %v6314_v48, %v6310_v38  ;;  %v1578_v7 = vpop.permute.xlu0 %1577  ;;  %v1737_v48 = vld [vmem:[%s7843_s11 + $0x20] sm:$0xff] }
 0x936   : > { %5836 = vmatprep.subr.bf16.mxu1 %v5835_v47  ;;  %v1593_v17 = vsel %vm1591_vm5, %v1590_v13, %v1578_v7  ;;  %v5039_v13 = vld [vmem:[%s7842_s10] ss:$0 sm:$0xff] }
 0x937   : > { %5838 = vmatpush3.bf16.msra.mxu1 %v5835_v47  ;;  %v5859_v47 = vpack.c.bf16 %v1740_v46, %v1738_v45  ;;  %v1883_v45 = vld [vmem:[%s7845_s13 + $0x38] sm:$0xff] }
 0x938   : > { %v6316_v49 = vpop.eup %6315  ;;  %5840 = vmatprep.subr.bf16.mxu1 %v5839_v53 }
 0x939   : > { %v1476_v50 = vmul.f32 %v6316_v49, %v6312_v40  ;;  %v1736_v40 = vld [vmem:[%s7843_s11 + $0x18] sm:$0xff]  ;;  %v1739_v49 = vld [vmem:[%s7843_s11 + $0x30] sm:$0xff] }
 0x93a   : > { %v5855_v41 = vpack.c.bf16 %v1736_v40, %v1734_v39  ;;  %v1881_v39 = vld [vmem:[%s7845_s13 + $0x28] sm:$0xff] }
 0x93b   : > { %5585 = vmatprep.mubr.msk.f32.mxu1 %vm760_vm1, %v1476_v50  ;;  %v5861_v50 = vpack.c.bf16 %v1739_v49, %v1737_v48  ;;  %v1901_v48 = vld [vmem:[%s7845_s13 + $0xc8] sm:$0xff] }
 0x93c   : > { %5586 = vmatmul.mubr.msk.f32.vlgmr.msra.gmra.mrb[6].mxu1 %vm760_vm1, %v1477_v51  ;;  %5856 = vmatprep.subr.bf16.mxu0 %v5855_v41  ;;  %v1742_v51 = vld [vmem:[%s7843_s11 + $0x48] sm:$0xff]  ;;  %v1898_v41 = vld [vmem:[%s7845_s13 + $0xb0] sm:$0xff] }
 0x93d   : > { %5842 = vmatpush3.bf16.msra.mxu1 %v5839_v53  ;;  %5858 = vmatpush1.bf16.msra.mxu0 %v5857_v44  ;;  %v5863_v12 = vpack.c.bf16 %v1744_v14, %v1742_v51  ;;  %v1743_v53 = vld [vmem:[%s7843_s11 + $0x50] sm:$0xff]  ;;  %v5883_v43 = vpack.c.bf16 %v1899_v42, %v1898_v41  ;;  %v1885_v51 = vld [vmem:[%s7845_s13 + $0x48] sm:$0xff] }
 0x93e   : > { %5844 = vmatprep.subr.bf16.mxu1 %v5843_v54  ;;  %5860 = vmatprep.subr.bf16.mxu0 %v5859_v47  ;;  %v5865_v2 = vpack.c.bf16 %v1743_v53, %v1741_v52  ;;  %v1882_v44 = vld [vmem:[%s7845_s13 + $0x30] sm:$0xff]  ;;  %v1900_v47 = vld [vmem:[%s7845_s13 + $0xc0] sm:$0xff]  ;;  %v1903_v52 = vld [vmem:[%s7845_s13 + $0xd8] sm:$0xff] }
 0x93f   : > { %v5885_v46 = vpack.c.bf16 %v1883_v45, %v1882_v44  ;;  %v5887_v49 = vpack.c.bf16 %v1901_v48, %v1900_v47 }
 0x941   : > { %5846 = vmatpush3.bf16.msra.mxu1 %v5843_v54  ;;  %5862 = vmatpush1.bf16.msra.mxu0 %v5861_v50  ;;  %v1746_v54 = vld [vmem:[%s7843_s11 + $0x68] sm:$0xff]  ;;  %v1884_v50 = vld [vmem:[%s7845_s13 + $0x40] sm:$0xff] }
 0x942   : > { %5848 = vmatprep.subr.bf16.mxu1 %v5847_v57  ;;  %5864 = vmatprep.subr.bf16.mxu0 %v5863_v12  ;;  %v5867_v56 = vpack.c.bf16 %v1748_v55, %v1746_v54  ;;  %v5889_v14 = vpack.c.bf16 %v1885_v51, %v1884_v50  ;;  %v1902_v12 = vld [vmem:[%s7845_s13 + $0xd0] sm:$0xff]  ;;  %v1887_v54 = vld [vmem:[%s7845_s13 + $0x58] sm:$0xff]  ;;  %v5046_v51 = vld [vmem:[%s7846_s14] ss:$0 sm:$0xff] }
 0x943   : > { %v5891_v53 = vpack.c.bf16 %v1903_v52, %v1902_v12 }
 0x945   : > { %5850 = vmatpush3.bf16.msra.mxu1 %v5847_v57  ;;  %5866 = vmatpush1.bf16.msra.mxu0 %v5865_v2  ;;  %v1745_v57 = vld [vmem:[%s7843_s11 + $0x60] sm:$0xff]  ;;  %v1886_v2 = vld [vmem:[%s7845_s13 + $0x50] sm:$0xff] }
 0x946   : > { %5852 = vmatprep.subr.bf16.mxu1 %v5851_v60  ;;  %v5869_v59 = vpack.c.bf16 %v1747_v58, %v1745_v57  ;;  %5868 = vmatprep.subr.bf16.mxu0 %v5867_v56  ;;  %v5893_v55 = vpack.c.bf16 %v1887_v54, %v1886_v2  ;;  %v1904_v56 = vld [vmem:[%s7845_s13 + $0xe0] sm:$0xff]  ;;  %v1905_v57 = vld [vmem:[%s7845_s13 + $0xe8] sm:$0xff] }
 0x947   : > { %v5895_v58 = vpack.c.bf16 %v1905_v57, %v1904_v56 }
 0x949   : > { %5854 = vmatpush3.bf16.msra.mxu1 %v5851_v60  ;;  %5870 = vmatpush1.bf16.msra.mxu0 %v5869_v59  ;;  %v1888_v59 = vld [vmem:[%s7845_s13 + $0x60] sm:$0xff] }
 0xa0f   : > { %v5587_v1 = vpop.f32.mrb[6].mxu1 }
 0xa10   : > { %1585 = vrot.lane.b32.xlu0 %v5587_v1, %s7863_s1  ;;  %v1556_v8 = vpop.f32.mrb[7].mxu1 }
 0xa11   : > { %1583 = vrot.lane.b32.xlu1 %v1556_v8, %s7863_s1 }
 0xa82   : > { %v1586_v11 = vpop.permute.xlu0 %1585 }
 0xa83   : > { %v1584_v16 = vpop.permute.xlu1 %1583  ;;  %v1596_v20 = vsel %vm1594_vm6, %v1593_v17, %v1586_v11 }
 0xa84   : > { %v1595_v19 = vsel %vm1594_vm6, %v1592_v15, %v1584_v16 }
 0xa85   : > { %5604 = vmatprep.mubr.msk.f32.mxu1 %vm603_vm0, %v1595_v19 }
 0xa86   : > { %5605 = vmatmul.mubr.msk.f32.vlgmr.msra.gmra.mrb[8].mxu1 %vm603_vm0, %v1596_v20 }
 0xb59   : > { %v5606_v21 = vpop.f32.mrb[8].mxu1 }
 0xb5a   : > { %v1688_v22 = vadd.f32 %v5606_v21, %v5035_v63  ;;  %v1682_v62 = vpop.f32.mrb[9].mxu1  ;;  %v1892_v21 = vld [vmem:[%s7845_s13 + $0x80] sm:$0xff] }
 0xb5b   : > { %v1683_v24 = vadd.f32 %v5035_v63, %v1682_v62 }
 0xb5c   : > { %v6818_v25 = vadd.f32 %v1688_v22, %v6586_v5  ;;  %v1893_v22 = vld [vmem:[%s7845_s13 + $0x88] sm:$0xff] }
 0xb5d   : > { %v6821_v26 = vadd.f32 %v1683_v24, %v6584_v4  ;;  %v5871_v62 = vpack.c.bf16 %v1893_v22, %v1892_v21  ;;  %v1876_v24 = vld [vmem:[%s7845_s13] sm:$0xff] }
 0xb5e   : > { %v1698_v28 = vsel %vm603_vm0, %v6818_v25, 0.0 }
 0xb5f   : > { %1699 = vadd.xlane.f32.xlu0 %v1698_v28  ;;  %v1695_v29 = vsel %vm603_vm0, %v6821_v26, 0.0  ;;  %v1877_v28 = vld [vmem:[%s7845_s13 + $0x8] sm:$0xff]  ;;  %5872 = vmatprep.subr.bf16.mxu1 %v5871_v62 }
 0xb60   : > { %1696 = vadd.xlane.f32.xlu1 %v1695_v29  ;;  %v5873_v29 = vpack.c.bf16 %v1877_v28, %v1876_v24 }
 0xb62   : > { %5874 = vmatpush3.bf16.msra.mxu1 %v5873_v29 }
 0xbec   : > { %v1700_v30 = vpop.xlane.xlu0 %1699 }
 0xbed   : > { %v1702_v31 = vmul.f32 0.015625, %v1700_v30  ;;  %v1697_v32 = vpop.xlane.xlu1 %1696  ;;  %v1894_v30 = vld [vmem:[%s7845_s13 + $0x90] sm:$0xff] }
 0xbee   : > { %v1701_v33 = vmul.f32 0.015625, %v1697_v32 }
 0xbef   : > { %v1704_v34 = vsub.f32 %v6818_v25, %v1702_v31  ;;  %v1895_v31 = vld [vmem:[%s7845_s13 + $0x98] sm:$0xff] }
 0xbf0   : > { %v1703_v5 = vsub.f32 %v6821_v26, %v1701_v33  ;;  %v5875_v32 = vpack.c.bf16 %v1895_v31, %v1894_v30  ;;  %v1878_v33 = vld [vmem:[%s7845_s13 + $0x10] sm:$0xff] }
 0xbf1   : > { %v1706_v36 = vmul.f32 %v1704_v34, %v1704_v34 }
 0xbf2   : > { %v1705_v35 = vmul.f32 %v1703_v5, %v1703_v5  ;;  %5876 = vmatprep.subr.bf16.mxu1 %v5875_v32 }
 0xbf3   : > { %v1710_v38 = vsel %vm603_vm0, %v1706_v36, 0.0 }
 0xbf4   : > { %v1707_v4 = vsel %vm603_vm0, %v1705_v35, 0.0  ;;  %v1896_v35 = vld [vmem:[%s7845_s13 + $0xa0] sm:$0xff] }
 0xbf5   : > { %1708 = vadd.xlane.f32.xlu0 %v1707_v4  ;;  %v1897_v4 = vld [vmem:[%s7845_s13 + $0xa8] sm:$0xff] }
 0xbf6   : > { %v5879_v36 = vpack.c.bf16 %v1897_v4, %v1896_v35 }
 0xbf9   : > { %1711 = vadd.xlane.f32.xlu0 %v1710_v38  ;;  %v1880_v38 = vld [vmem:[%s7845_s13 + $0x20] sm:$0xff] }
 0xbfa   : > { %v5881_v40 = vpack.c.bf16 %v1881_v39, %v1880_v38 }
 0xc82   : > { %v1709_v60 = vpop.xlane.xlu0 %1708 }
 0xc83   : > { %v1713_v1 = vmul.f32 0.015625, %v1709_v60  ;;  %v1889_v60 = vld [vmem:[%s7845_s13 + $0x68] sm:$0xff] }
 0xc85   : > { %v1715_v8 = vadd.f32 1e-05, %v1713_v1  ;;  %v5897_v1 = vpack.c.bf16 %v1889_v60, %v1888_v59 }
 0xc86   : > { %v1712_v3 = vpop.xlane.xlu0 %1711 }
 0xc87   : > { %6317 = vrsqrt.f32 %v1715_v8  ;;  %v1714_v6 = vmul.f32 0.015625, %v1712_v3  ;;  %v1906_v8 = vld [vmem:[%s7845_s13 + $0xf0] sm:$0xff]  ;;  %v1907_v3 = vld [vmem:[%s7845_s13 + $0xf8] sm:$0xff] }
 0xc89   : > { %v1716_v7 = vadd.f32 1e-05, %v1714_v6  ;;  %v5899_v6 = vpack.c.bf16 %v1907_v3, %v1906_v8 }
 0xc8b   : > { %6319 = vrsqrt.f32 %v1716_v7  ;;  %v1890_v7 = vld [vmem:[%s7845_s13 + $0x70] sm:$0xff] }
 0xc91   : > { %v6318_v9 = vpop.eup %6317 }
 0xc92   : > { %v1719_v11 = vmul.f32 %v6318_v9, %v1703_v5  ;;  %v1891_v9 = vld [vmem:[%s7845_s13 + $0x78] sm:$0xff] }
 0xc94   : > { %v1725_v15 = vmul.f32 %v5038_v10, %v1719_v11  ;;  %v1749_v11 = vld [vmem:[%s7844_s12] ss:$4 sm:$0x3] }
 0xc95   : > { %v6320_v16 = vpop.eup %6319 }
 0xc96   : > { %v1731_v17 = vadd.f32 %v5039_v13, %v1725_v15  ;;  %v1720_v19 = vmul.f32 %v6320_v16, %v1704_v34  ;;  %v1879_v34 = vld [vmem:[%s7845_s13 + $0x18] sm:$0xff]  ;;  %v1758_v15 = vrot.slane %v1749_v11, %v6660_v0 }
 0xc97   : > { %v5877_v5 = vpack.c.bf16 %v1879_v34, %v1878_v33 }
 0xc98   : > { %5040 = vmatmul.mubr.msk.f32.vlgmr.msra.gmra.mrb[12].mxu0 %vm603_vm0, %v1731_v17  ;;  %v1726_v20 = vmul.f32 %v5038_v10, %v1720_v19  ;;  %v5901_v10 = vpack.c.bf16 %v1891_v9, %v1890_v7 }
 0xc99   : > { %1837 = vmatprep.mubr.f32.mxu0 %v6459_v37  ;;  %5878 = vmatpush3.bf16.msra.mxu1 %v5877_v5 }
 0xc9a   : > { %v1732_v63 = vadd.f32 %v5039_v13, %v1726_v20  ;;  %5880 = vmatprep.subr.bf16.mxu1 %v5879_v36  ;;  %v1754_v13 = vrot.slane %v1749_v11, %v6654_v61  ;;  %v5050_v11 = vld [vmem:[%s7837_s5 + $0x88] sm:$0xff] }
 0xc9c   : > { %5041 = vmatmul.mubr.msk.f32.gmra.mrb[14].mxu0 %vm603_vm0, %v1732_v63 }
 0xc9d   : > { %2130 = vmatprep.mubr.f32.mxu0 %v6459_v37  ;;  %5882 = vmatpush3.bf16.msra.mxu1 %v5881_v40 }
 0xc9e   : > { %5884 = vmatprep.subr.bf16.mxu1 %v5883_v43 }
 0xca1   : > { %5886 = vmatpush3.bf16.msra.mxu1 %v5885_v46 }
 0xca2   : > { %5888 = vmatprep.subr.bf16.mxu1 %v5887_v49 }
 0xca5   : > { %5890 = vmatpush3.bf16.msra.mxu1 %v5889_v14 }
 0xca6   : > { %5892 = vmatprep.subr.bf16.mxu1 %v5891_v53 }
 0xca9   : > { %5894 = vmatpush3.bf16.msra.mxu1 %v5893_v55 }
 0xcaa   : > { %5896 = vmatprep.subr.bf16.mxu1 %v5895_v58 }
 0xcad   : > { %5898 = vmatpush3.bf16.msra.mxu1 %v5897_v1 }
 0xcae   : > { %5900 = vmatprep.subr.bf16.mxu1 %v5899_v6 }
 0xcb1   : > { %5902 = vmatpush3.bf16.msra.mxu1 %v5901_v10 }
 0xd6b   : > { %v1833_v16 = vpop.f32.mrb[12].mxu0 }
 0xd6c   : > { %v1834_v17 = vadd.f32 %v1833_v16, %v1754_v13  ;;  %v1835_v19 = vpop.f32.mrb[13].mxu0  ;;  %v5049_v16 = vld [vmem:[%s7837_s5 + $0x80] sm:$0xff] }
 0xd6d   : > { %v1836_v20 = vadd.f32 %v1835_v19, %v1758_v15 }
 0xd6e   : > { %v5042_v63 = vmul.f32 -1.702, %v1834_v17 }
 0xd6f   : > { %v5043_v21 = vmul.f32 -1.702, %v1836_v20  ;;  %v1839_v22 = vpop.f32.mrb[14].mxu0 }
 0xd70   : > { %v1852_v62 = vmul.f32 1.442695, %v5042_v63  ;;  %v1840_v24 = vadd.f32 %v1839_v22, %v1754_v13  ;;  %v1841_v28 = vpop.f32.mrb[15].mxu0  ;;  %v5052_v13 = vld [vmem:[%s7837_s5 + $0x98] sm:$0xff]  ;;  %v5053_v22 = vld [vmem:[%s7837_s5 + $0xa0] sm:$0xff] }
 0xd71   : > { %v1854_v29 = vmul.f32 1.442695, %v5043_v21  ;;  %v1842_v30 = vadd.f32 %v1841_v28, %v1758_v15  ;;  %v5903_v15 = vpack.c.bf16 %v5052_v13, %v5050_v11  ;;  %v5056_v63 = vld [vmem:[%s7837_s5 + $0xb8] sm:$0xff]  ;;  %v5058_v28 = vld [vmem:[%s7837_s5 + $0xc8] sm:$0xff] }
 0xd72   : > { %6321 = vpow2.f32 %v1852_v62  ;;  %v5044_v31 = vmul.f32 -1.702, %v1840_v24  ;;  %v5055_v62 = vld [vmem:[%s7837_s5 + $0xb0] sm:$0xff] }
 0xd73   : > { %6323 = vpow2.f32 %v1854_v29  ;;  %v5045_v32 = vmul.f32 -1.702, %v1842_v30  ;;  %5904 = vmatprep.subr.bf16.mxu0 %v5903_v15  ;;  %v5060_v29 = vld [vmem:[%s7837_s5 + $0xd8] sm:$0xff] }
 0xd74   : > { %v1856_v33 = vmul.f32 1.442695, %v5044_v31  ;;  %v5057_v31 = vld [vmem:[%s7837_s5 + $0xc0] sm:$0xff] }
 0xd75   : > { %v1858_v34 = vmul.f32 1.442695, %v5045_v32  ;;  %v5059_v32 = vld [vmem:[%s7837_s5 + $0xd0] sm:$0xff] }
 0xd76   : > { %6325 = vpow2.f32 %v1856_v33  ;;  %v5913_v33 = vpack.c.bf16 %v5059_v32, %v5057_v31 }
 0xd77   : > { %6327 = vpow2.f32 %v1858_v34  ;;  %v5062_v34 = vld [vmem:[%s7837_s5 + $0xe8] sm:$0xff] }
 0xd7c   : > { %v6322_v5 = vpop.eup %6321 }
 0xd7d   : > { %v6324_v35 = vpop.eup %6323  ;;  %v1860_v4 = vadd.f32 1.0, %v6322_v5  ;;  %v5064_v5 = vld [vmem:[%s7837_s5 + $0xf8] sm:$0xff] }
 0xd7e   : > { %v1861_v36 = vadd.f32 1.0, %v6324_v35  ;;  %v5915_v35 = vpack.c.bf16 %v5064_v5, %v5062_v34 }
 0xd7f   : > { %6329 = vrcp.f32 %v1860_v4  ;;  %v5061_v4 = vld [vmem:[%s7837_s5 + $0xe0] sm:$0xff] }
 0xd80   : > { %v6326_v38 = vpop.eup %6325  ;;  %6331 = vrcp.f32 %v1861_v36  ;;  %v5063_v36 = vld [vmem:[%s7837_s5 + $0xf0] sm:$0xff] }
 0xd81   : > { %v6328_v39 = vpop.eup %6327  ;;  %v1862_v40 = vadd.f32 1.0, %v6326_v38  ;;  %v5917_v38 = vpack.c.bf16 %v5063_v36, %v5061_v4 }
 0xd82   : > { %v1863_v41 = vadd.f32 1.0, %v6328_v39 }
 0xd83   : > { %6333 = vrcp.f32 %v1862_v40 }
 0xd84   : > { %6335 = vrcp.f32 %v1863_v41 }
 0xd89   : > { %v6330_v42 = vpop.eup %6329 }
 0xd8a   : > { %v6332_v43 = vpop.eup %6331  ;;  %v1872_v45 = vmul.f32 %v6330_v42, %v1834_v17  ;;  %v5051_v17 = vld [vmem:[%s7837_s5 + $0x90] sm:$0xff] }
 0xd8b   : > { %v1873_v44 = vmul.f32 %v6332_v43, %v1836_v20  ;;  %v5905_v19 = vpack.c.bf16 %v5051_v17, %v5049_v16  ;;  %v5054_v20 = vld [vmem:[%s7837_s5 + $0xa8] sm:$0xff] }
 0xd8c   : > { %v5907_v21 = vpack.c.bf16 %v5056_v63, %v5054_v20 }
 0xd8d   : > { %v6334_v46 = vpop.eup %6333  ;;  %1977 = vmatprep.mubr.f32.mxu1 %v1873_v44  ;;  %5906 = vmatpush1.bf16.msra.mxu0 %v5905_v19 }
 0xd8e   : > { %v6336_v47 = vpop.eup %6335  ;;  %1978 = vmatmul.mubr.f32.vlgmr.msra.gmra.mrb[10].mxu1 %v1872_v45  ;;  %v1874_v49 = vmul.f32 %v6334_v46, %v1840_v24  ;;  %v5909_v24 = vpack.c.bf16 %v5055_v62, %v5053_v22  ;;  %5908 = vmatprep.subr.bf16.mxu0 %v5907_v21  ;;  %v5047_v46 = vld [vmem:[%s7835_s3 + $0x1] ss:$0 sm:$0xff] }
 0xd8f   : > { %v1875_v48 = vmul.f32 %v6336_v47, %v1842_v30  ;;  %v5911_v30 = vpack.c.bf16 %v5060_v29, %v5058_v28 }
 0xd91   : > { %1982 = vmatprep.mubr.f32.mxu1 %v1875_v48  ;;  %5910 = vmatpush1.bf16.msra.mxu0 %v5909_v24  ;;  %v5048_v48 = vld [vmem:[%s7836_s4 + $0x1] ss:$0 sm:$0xff] }
 0xd92   : > { %1983 = vmatmul.mubr.f32.gmra.mrb[12].mxu1 %v1874_v49  ;;  %5912 = vmatprep.subr.bf16.mxu0 %v5911_v30 }
 0xd95   : > { %5914 = vmatpush1.bf16.msra.mxu0 %v5913_v33 }
 0xd96   : > { %5916 = vmatprep.subr.bf16.mxu0 %v5915_v35 }
 0xd99   : > { %5918 = vmatpush1.bf16.msra.mxu0 %v5917_v38 }
 0xe61   : > { %v5354_v50 = vpop.f32.mrb[10].mxu1 }
 0xe62   : > { %v5355_v14 = vpop.f32.mrb[11].mxu1 }
 0xe63   : > { %v5356_v12 = vadd.f32 %v5355_v14, %v5354_v50 }
 0xe65   : > { %v1980_v52 = vadd.f32 %v5356_v12, %v5046_v51  ;;  %v5357_v53 = vpop.f32.mrb[12].mxu1 }
 0xe66   : > { %v5358_v2 = vpop.f32.mrb[13].mxu1 }
 0xe67   : > { %v6994_v54 = vadd.f32 %v1980_v52, %v6821_v26  ;;  %v5359_v55 = vadd.f32 %v5358_v2, %v5357_v53  ;;  %v5065_v53 = vld [vmem:[%s7838_s6 + $0x1] ss:$4 sm:$0x3] }
 0xe68   : > { %v2053_v2 = vrot.slane %v5065_v53, %v6654_v61 }
 0xe69   : > { %v1985_v56 = vadd.f32 %v5359_v55, %v5046_v51  ;;  %v1992_v57 = vsel %vm603_vm0, %v6994_v54, 0.0 }
 0xe6a   : > { %1993 = vadd.xlane.f32.xlu1 %v1992_v57 }
 0xe6b   : > { %v6999_v58 = vadd.f32 %v1985_v56, %v6818_v25 }
 0xe6d   : > { %v1995_v59 = vsel %vm603_vm0, %v6999_v58, 0.0 }
 0xe6e   : > { %1996 = vadd.xlane.f32.xlu0 %v1995_v59  ;;  %v2057_v59 = vrot.slane %v5065_v53, %v6660_v0 }
 0xef7   : > { %v1994_v60 = vpop.xlane.xlu1 %1993 }
 0xef8   : > { %v1998_v1 = vmul.f32 0.015625, %v1994_v60 }
 0xefa   : > { %v2000_v8 = vsub.f32 %v6994_v54, %v1998_v1 }
 0xefb   : > { %v1997_v3 = vpop.xlane.xlu0 %1996 }
 0xefc   : > { %v1999_v26 = vmul.f32 0.015625, %v1997_v3  ;;  %v2002_v6 = vmul.f32 %v2000_v8, %v2000_v8 }
 0xefe   : > { %v2001_v7 = vsub.f32 %v6999_v58, %v1999_v26  ;;  %v2004_v9 = vsel %vm603_vm0, %v2002_v6, 0.0 }
 0xeff   : > { %2005 = vadd.xlane.f32.xlu1 %v2004_v9 }
 0xf00   : > { %v2003_v10 = vmul.f32 %v2001_v7, %v2001_v7 }
 0xf02   : > { %v2007_v25 = vsel %vm603_vm0, %v2003_v10, 0.0 }
 0xf03   : > { %2008 = vadd.xlane.f32.xlu0 %v2007_v25 }
 0xf8c   : > { %v2006_v39 = vpop.xlane.xlu1 %2005 }
 0xf8d   : > { %v2010_v40 = vmul.f32 0.015625, %v2006_v39 }
 0xf8f   : > { %v2012_v41 = vadd.f32 1e-05, %v2010_v40 }
 0xf90   : > { %v2009_v42 = vpop.xlane.xlu0 %2008 }
 0xf91   : > { %6337 = vrsqrt.f32 %v2012_v41  ;;  %v2011_v43 = vmul.f32 0.015625, %v2009_v42 }
 0xf93   : > { %v2013_v44 = vadd.f32 1e-05, %v2011_v43 }
 0xf95   : > { %6339 = vrsqrt.f32 %v2013_v44 }
 0xf9b   : > { %v6338_v45 = vpop.eup %6337 }
 0xf9c   : > { %v2016_v47 = vmul.f32 %v6338_v45, %v2000_v8 }
 0xf9e   : > { %v2022_v49 = vmul.f32 %v5047_v46, %v2016_v47 }
 0xf9f   : > { %v6340_v50 = vpop.eup %6339 }
 0xfa0   : > { %v2028_v51 = vadd.f32 %v5048_v48, %v2022_v49  ;;  %v2017_v14 = vmul.f32 %v6340_v50, %v2001_v7 }
 0xfa2   : > { %5066 = vmatmul.mubr.msk.f32.vlgmr.msra.gmra.mrb[16].mxu0 %vm603_vm0, %v2028_v51  ;;  %v2023_v12 = vmul.f32 %v5047_v46, %v2017_v14 }
 0xfa3   : > { %2136 = vmatprep.mubr.f32.mxu0 %v6459_v37 }
 0xfa4   : > { %v2029_v52 = vadd.f32 %v5048_v48, %v2023_v12 }
 0xfa6   : > { %5067 = vmatmul.mubr.msk.f32.gmra.mrb[18].mxu0 %vm603_vm0, %v2029_v52 }
0x1075   : > { %v2132_v55 = vpop.f32.mrb[16].mxu0 }
0x1076   : > { %v7068_v56 = vadd.f32 %v2132_v55, %v2053_v2  ;;  %v2134_v57 = vpop.f32.mrb[17].mxu0 }
0x1077   : > { %v2135_v3 = vadd.f32 %v2134_v57, %v2057_v59 }
0x1078   : > { %5611 = vmatprep.mubr.msk.f32.mxu0 %vm760_vm1, %v7068_v56 }
0x1079   : > { %v2138_v60 = vpop.f32.mrb[18].mxu0 }
0x107a   : > { %v7073_v1 = vadd.f32 %v2138_v60, %v2053_v2  ;;  %v2140_v8 = vpop.f32.mrb[19].mxu0 }
0x107b   : > { %v2141_v26 = vadd.f32 %v2140_v8, %v2057_v59 }
0x107c   : > { %v7077_v6 = vpack.i.bf16 %v7073_v1, %v7068_v56 }
0x107d   : > { %v5925_v7 = vpack.c.bf16 %v2141_v26, %v2135_v3  ;;  %v7079_v9 = vpack.i.bf16 %v2141_v26, %v2135_v3 }
0x107e   : > { %6212 = vrot.lane.b32.xlu1 %v7077_v6, %s7862_s26  ;;  %s7886_s26 = sld [smem:[#allocation7_spill]] }
0x1082   : > { %6217 = vrot.lane.b32.xlu1 %v7077_v6, %s7863_s1 }
0x1084   : > { %s585_s30 = scalar_lea.vmem %s7886_s26, %s7889_s28 }
0x1086   : > { %6222 = vrot.lane.b32.xlu1 %v7077_v6, %s7877_s22 }
0x108a   : > { %2341 = vrot.lane.b32.xlu1 %v7073_v1, %s7878_s2 }
0x108e   : > { %2545 = vrot.lane.b32.xlu1 %v7068_v56, %s7879_s21 }
0x1092   : > { %2547 = vrot.lane.b32.xlu1 %v7073_v1, %s7879_s21 }
0x10f0   : > { %v6213_v10 = vpop.permute.xlu1 %6212 }
0x10f1   : > { %v6215_v25 = vunpack.i.h.bf16 %v6213_v10  ;;  %v6214_v11 = vunpack.i.l.bf16 %v6213_v10 }
0x10f3   : > { %v5919_v13 = vpack.c.bf16 %v6215_v25, %v6214_v11 }
0x10f4   : > { %v6218_v15 = vpop.permute.xlu1 %6217 }
0x10f5   : > { %5921 = vmatprep.subr.msk.bf16.mxu0 %vm6687_vm2, %v5919_v13  ;;  %v6220_v16 = vunpack.i.h.bf16 %v6218_v15  ;;  %v6219_v17 = vunpack.i.l.bf16 %v6218_v15 }
0x10f6   : > { %5924 = vmatpush3.bf16.xpose.msk.msra.mxu0 %vm6687_vm2, %v5919_v13 }
0x10f7   : > { %5926 = vmatprep.subr.bf16.mxu0 %v5925_v7  ;;  %v5929_v19 = vpack.c.bf16 %v6220_v16, %v6219_v17 }
0x10f8   : > { %v6223_v42 = vpop.permute.xlu1 %6222 }
0x10f9   : > { %v6225_v44 = vunpack.i.h.bf16 %v6223_v42  ;;  %v6224_v45 = vunpack.i.l.bf16 %v6223_v42 }
0x10fb   : > { %v5939_v48 = vpack.c.bf16 %v6225_v44, %v6224_v45 }
0x10fc   : > { %v2342_v50 = vpop.permute.xlu1 %2341 }
0x10fd   : > { %5612 = vmatmul.mubr.msk.f32.vlgmr.msra.gmra.mrb[20].mxu0 %vm760_vm1, %v7073_v1 }
0x10fe   : > { %5928 = vmatpush3.bf16.msra.mxu0 %v5925_v7 }
0x10ff   : > { %5931 = vmatprep.subr.msk.bf16.mxu0 %vm6687_vm2, %v5929_v19 }
0x1100   : > { %v2546_v51 = vpop.permute.xlu1 %2545 }
0x1104   : > { %v2548_v14 = vpop.permute.xlu1 %2547 }
0x11d0   : > { %v5613_v20 = vpop.f32.mrb[20].mxu0 }
0x11d1   : > { %v2223_v63 = vpop.f32.mrb[21].mxu0  ;;  %v2233_v21 = vmul.f32 0.25, %v5613_v20 }
0x11d2   : > { %v2232_v22 = vmul.f32 0.25, %v2223_v63 }
0x11d3   : > { %v2235_v28 = vadd.f32 %v2233_v21, %v6701_v27 }
0x11d4   : > { %v2234_v62 = vadd.f32 %v2232_v22, %v6698_v23 }
0x11d5   : > { %v2239_v29 = vsel %vm760_vm1, %v2235_v28, -inf }
0x11d6   : > { %v2236_v24 = vsel %vm760_vm1, %v2234_v62, -inf }
0x11d7   : > { %2237 = vmax.xlane.f32.xlu0 %v2236_v24 }
0x11db   : > { %2240 = vmax.xlane.f32.xlu0 %v2239_v29 }
0x1264   : > { %v2238_v30 = vpop.xlane.xlu0 %2237 }
0x1265   : > { %v2242_v31 = vsub.f32 %v2234_v62, %v2238_v30 }
0x1267   : > { %v2244_v32 = vmul.f32 1.442695, %v2242_v31 }
0x1268   : > { %v2241_v33 = vpop.xlane.xlu0 %2240 }
0x1269   : > { %6341 = vpow2.f32 %v2244_v32  ;;  %v2243_v34 = vsub.f32 %v2235_v28, %v2241_v33 }
0x126b   : > { %v2246_v5 = vmul.f32 1.442695, %v2243_v34 }
0x126d   : > { %6343 = vpow2.f32 %v2246_v5 }
0x1273   : > { %v6342_v35 = vpop.eup %6341 }
0x1274   : > { %v2248_v4 = vsel %vm760_vm1, %v6342_v35, 0.0 }
0x1275   : > { %2249 = vadd.xlane.f32.xlu0 %v2248_v4 }
0x1277   : > { %v6344_v36 = vpop.eup %6343 }
0x1278   : > { %v2251_v38 = vsel %vm760_vm1, %v6344_v36, 0.0 }
0x1279   : > { %2252 = vadd.xlane.f32.xlu0 %v2251_v38 }
0x128f   : > { %2339 = vrot.lane.b32.xlu0 %v7068_v56, %s7878_s2 }
0x1302   : > { %v2250_v39 = vpop.xlane.xlu0 %2249 }
0x1303   : > { %6345 = vrcp.f32 %v2250_v39 }
0x1306   : > { %v2253_v40 = vpop.xlane.xlu0 %2252 }
0x1307   : > { %6347 = vrcp.f32 %v2253_v40 }
0x130a   : > { %v2340_v49 = vpop.permute.xlu0 %2339 }
0x130d   : > { %v6346_v41 = vpop.eup %6345 }
0x130e   : > { %v2256_v43 = vmul.f32 %v6346_v41, %v6342_v35 }
0x1310   : > { %5618 = vmatprep.mubr.msk.f32.mxu0 %vm760_vm1, %v2256_v43 }
0x1311   : > { %v6348_v46 = vpop.eup %6347 }
0x1312   : > { %v2257_v47 = vmul.f32 %v6348_v46, %v6344_v36 }
0x1314   : > { %5619 = vmatmul.mubr.msk.f32.vlgmr.msra.gmra.mrb[22].mxu0 %vm760_vm1, %v2257_v47 }
0x1315   : > { %5934 = vmatpush3.bf16.xpose.msk.msra.mxu0 %vm6687_vm2, %v5929_v19  ;;  %5625 = vmatprep.mubr.msk.f32.mxu0 %vm760_vm1, %v2340_v49 }
0x1316   : > { %5941 = vmatprep.subr.msk.bf16.mxu0 %vm6687_vm2, %v5939_v48 }
0x131c   : > { %5626 = vmatmul.mubr.msk.f32.vlgmr.msra.gmra.mrb[24].mxu0 %vm760_vm1, %v2342_v50 }
0x131d   : > { %5944 = vmatpush3.bf16.xpose.msk.msra.mxu0 %vm6687_vm2, %v5939_v48  ;;  %5639 = vmatprep.mubr.msk.f32.mxu0 %vm760_vm1, %v2546_v51 }
0x1324   : > { %5640 = vmatmul.mubr.msk.f32.vlgmr.msra.gmra.mrb[26].mxu0 %vm760_vm1, %v2548_v14 }
0x13e7   : > { %v7121_v12 = vpop.f32.mrb[22].mxu0 }
0x13e8   : > { %v7123_v52 = vpop.f32.mrb[23].mxu0 }
0x13ef   : > { %v5627_v53 = vpop.f32.mrb[24].mxu0 }
0x13f0   : > { %v2431_v2 = vmul.f32 0.25, %v5627_v53  ;;  %v2421_v55 = vpop.f32.mrb[25].mxu0 }
0x13f1   : > { %v2430_v57 = vmul.f32 0.25, %v2421_v55 }
0x13f2   : > { %v2433_v59 = vadd.f32 %v2431_v2, %v6701_v27 }
0x13f3   : > { %v2432_v60 = vadd.f32 %v2430_v57, %v6698_v23 }
0x13f4   : > { %v2437_v8 = vsel %vm760_vm1, %v2433_v59, -inf }
0x13f5   : > { %2438 = vmax.xlane.f32.xlu0 %v2437_v8  ;;  %v2434_v3 = vsel %vm760_vm1, %v2432_v60, -inf }
0x13f6   : > { %2435 = vmax.xlane.f32.xlu1 %v2434_v3 }
0x13f7   : > { %v5641_v26 = vpop.f32.mrb[26].mxu0 }
0x13f8   : > { %v2637_v7 = vmul.f32 0.25, %v5641_v26  ;;  %v2627_v10 = vpop.f32.mrb[27].mxu0 }
0x13f9   : > { %v2636_v25 = vmul.f32 0.25, %v2627_v10 }
0x13fa   : > { %v2639_v11 = vadd.f32 %v2637_v7, %v6701_v27 }
0x13fb   : > { %v2638_v13 = vadd.f32 %v2636_v25, %v6698_v23 }
0x13fc   : > { %v2643_v15 = vsel %vm760_vm1, %v2639_v11, -inf }
0x13fd   : > { %2644 = vmax.xlane.f32.xlu1 %v2643_v15  ;;  %v2640_v16 = vsel %vm760_vm1, %v2638_v13, -inf }
0x13fe   : > { %2641 = vmax.xlane.f32.xlu0 %v2640_v16 }
0x1482   : > { %v2439_v17 = vpop.xlane.xlu0 %2438 }
0x1483   : > { %v2441_v19 = vsub.f32 %v2433_v59, %v2439_v17  ;;  %v2436_v20 = vpop.xlane.xlu1 %2435 }
0x1484   : > { %v2440_v63 = vsub.f32 %v2432_v60, %v2436_v20 }
0x1485   : > { %v2444_v21 = vmul.f32 1.442695, %v2441_v19 }
0x1486   : > { %v2442_v22 = vmul.f32 1.442695, %v2440_v63 }
0x1487   : > { %6349 = vpow2.f32 %v2444_v21 }
0x1488   : > { %6351 = vpow2.f32 %v2442_v22 }
0x148a   : > { %v2645_v62 = vpop.xlane.xlu1 %2644 }
0x148b   : > { %v2647_v24 = vsub.f32 %v2639_v11, %v2645_v62  ;;  %v2642_v28 = vpop.xlane.xlu0 %2641 }
0x148c   : > { %v2646_v29 = vsub.f32 %v2638_v13, %v2642_v28 }
0x148d   : > { %v2650_v30 = vmul.f32 1.442695, %v2647_v24 }
0x148e   : > { %v2648_v31 = vmul.f32 1.442695, %v2646_v29 }
0x148f   : > { %6353 = vpow2.f32 %v2650_v30 }
0x1490   : > { %6355 = vpow2.f32 %v2648_v31 }
0x1491   : > { %v6350_v32 = vpop.eup %6349 }
0x1492   : > { %v6352_v33 = vpop.eup %6351  ;;  %v2449_v34 = vsel %vm760_vm1, %v6350_v32, 0.0 }
0x1493   : > { %2450 = vadd.xlane.f32.xlu1 %v2449_v34  ;;  %v2446_v5 = vsel %vm760_vm1, %v6352_v33, 0.0 }
0x1494   : > { %2447 = vadd.xlane.f32.xlu0 %v2446_v5 }
0x1499   : > { %v6354_v35 = vpop.eup %6353 }
0x149a   : > { %v6356_v4 = vpop.eup %6355  ;;  %v2655_v36 = vsel %vm760_vm1, %v6354_v35, 0.0 }
0x149b   : > { %2656 = vadd.xlane.f32.xlu1 %v2655_v36  ;;  %v2652_v38 = vsel %vm760_vm1, %v6356_v4, 0.0 }
0x149c   : > { %2653 = vadd.xlane.f32.xlu0 %v2652_v38 }
0x14ac   : > { %6232 = vrot.lane.b32.xlu1 %v7079_v9, %s7879_s21 }
0x14b0   : > { %6237 = vrot.lane.b32.xlu1 %v7077_v6, %s7880_s23 }
0x14b2   : > { %6227 = vrot.lane.b32.xlu0 %v7079_v9, %s7878_s2 }
0x14b4   : > { %2749 = vrot.lane.b32.xlu1 %v7068_v56, %s7881_s24 }
0x14b6   : > { %2751 = vrot.lane.b32.xlu0 %v7073_v1, %s7881_s24 }
0x1520   : > { %v2451_v40 = vpop.xlane.xlu1 %2450 }
0x1521   : > { %v2448_v39 = vpop.xlane.xlu0 %2447 }
0x1522   : > { %6357 = vrcp.f32 %v2448_v39 }
0x1523   : > { %6359 = vrcp.f32 %v2451_v40 }
0x1528   : > { %v2657_v41 = vpop.xlane.xlu1 %2656 }
0x1529   : > { %v2654_v42 = vpop.xlane.xlu0 %2653 }
0x152a   : > { %6361 = vrcp.f32 %v2654_v42 }
0x152b   : > { %6363 = vrcp.f32 %v2657_v41 }
0x152c   : > { %v6358_v43 = vpop.eup %6357  ;;  %v6233_v44 = vpop.permute.xlu1 %6232 }
0x152d   : > { %v6228_v6 = vpop.permute.xlu0 %6227  ;;  %v2454_v45 = vmul.f32 %v6358_v43, %v6352_v33  ;;  %v6235_v46 = vunpack.i.h.bf16 %v6233_v44  ;;  %v6234_v47 = vunpack.i.l.bf16 %v6233_v44  ;;  %v6360_v50 = vpop.eup %6359  ;;  %v5092_v43 = vld [vmem:[%s7839_s7 + $0x40] sm:$0xff]  ;;  %v5093_v44 = vld [vmem:[%s7839_s7 + $0x48] sm:$0xff] }
0x152e   : > { %v6230_v48 = vunpack.i.h.bf16 %v6228_v6  ;;  %v6229_v49 = vunpack.i.l.bf16 %v6228_v6  ;;  %v2455_v55 = vmul.f32 %v6360_v50, %v6350_v32  ;;  %v5094_v6 = vld [vmem:[%s7839_s7 + $0x50] sm:$0xff]  ;;  %v5099_v50 = vld [vmem:[%s7839_s7 + $0x78] sm:$0xff] }
0x152f   : > { %5632 = vmatprep.mubr.msk.f32.mxu1 %vm760_vm1, %v2454_v45  ;;  %v5945_v51 = vpack.c.bf16 %v6235_v46, %v6234_v47  ;;  %v5959_v45 = vpack.c.bf16 %v5093_v44, %v5092_v43  ;;  %v5095_v46 = vld [vmem:[%s7839_s7 + $0x58] sm:$0xff] }
0x1530   : > { %v5935_v56 = vpack.c.bf16 %v6230_v48, %v6229_v49  ;;  %v6238_v1 = vpop.permute.xlu1 %6237  ;;  %v5963_v47 = vpack.c.bf16 %v5095_v46, %v5094_v6  ;;  %v5096_v48 = vld [vmem:[%s7839_s7 + $0x60] sm:$0xff]  ;;  %v5097_v49 = vld [vmem:[%s7839_s7 + $0x68] sm:$0xff]  ;;  %v5116_v43 = vld [vmem:[%s7843_s11 + $0xd8] sm:$0xff] }
0x1531   : > { %v6240_v14 = vunpack.i.h.bf16 %v6238_v1  ;;  %v6239_v53 = vunpack.i.l.bf16 %v6238_v1  ;;  %v2752_v26 = vpop.permute.xlu0 %2751  ;;  %v5098_v1 = vld [vmem:[%s7839_s7 + $0x70] sm:$0xff]  ;;  %v5113_v6 = vld [vmem:[%s7843_s11 + $0xc0] sm:$0xff] }
0x1532   : > { %5936 = vmatprep.subr.bf16.mxu1 %v5935_v56 }
0x1533   : > { %5938 = vmatpush3.bf16.msra.mxu1 %v5935_v56  ;;  %v5949_v60 = vpack.c.bf16 %v6240_v14, %v6239_v53  ;;  %v5967_v56 = vpack.c.bf16 %v5097_v49, %v5096_v48  ;;  %v5120_v48 = vld [vmem:[%s7843_s11 + $0xf8] sm:$0xff] }
0x1534   : > { %v6362_v2 = vpop.eup %6361  ;;  %5946 = vmatprep.subr.bf16.mxu1 %v5945_v51  ;;  %v2750_v3 = vpop.permute.xlu1 %2749 }
0x1535   : > { %v6364_v57 = vpop.eup %6363  ;;  %v2660_v59 = vmul.f32 %v6362_v2, %v6356_v4 }
0x1536   : > { %5633 = vmatmul.mubr.msk.f32.vlgmr.msra.gmra.mrb[14].mxu1 %vm760_vm1, %v2455_v55  ;;  %v2661_v8 = vmul.f32 %v6364_v57, %v6354_v35 }
0x1537   : > { %5948 = vmatpush3.bf16.msra.mxu1 %v5945_v51  ;;  %5646 = vmatprep.mubr.msk.f32.mxu1 %vm760_vm1, %v2660_v59  ;;  %v5971_v51 = vpack.c.bf16 %v5099_v50, %v5098_v1  ;;  %v5119_v1 = vld [vmem:[%s7843_s11 + $0xf0] sm:$0xff] }
0x1538   : > { %5951 = vmatprep.subr.msk.bf16.mxu1 %vm6687_vm2, %v5949_v60 }
0x153a   : > { %5647 = vmatmul.mubr.msk.f32.vlgmr.msra.gmra.mrb[16].mxu1 %vm760_vm1, %v2661_v8 }
0x153b   : > { %5653 = vmatprep.mubr.msk.f32.mxu1 %vm760_vm1, %v2750_v3 }
0x1540   : > { %5954 = vmatpush3.bf16.xpose.msk.msra.mxu1 %vm6687_vm2, %v5949_v60 }
0x1547   : > { %5654 = vmatmul.mubr.msk.f32.vlgmr.msra.gmra.mrb[18].mxu1 %vm760_vm1, %v2752_v26 }
0x1548   : > { %3220 = vmatprep.mubr.f32.mxu1 %v6459_v37 }
0x1609   : > { %v5634_v7 = vpop.f32.mrb[14].mxu1 }
0x160a   : > { %v2536_v10 = vpop.f32.mrb[15].mxu1 }
0x160d   : > { %v5648_v25 = vpop.f32.mrb[16].mxu1 }
0x160e   : > { %v2740_v11 = vpop.f32.mrb[17].mxu1 }
0x161a   : > { %v5655_v13 = vpop.f32.mrb[18].mxu1 }
0x161b   : > { %v2841_v15 = vmul.f32 0.25, %v5655_v13  ;;  %v2831_v16 = vpop.f32.mrb[19].mxu1 }
0x161c   : > { %v2840_v17 = vmul.f32 0.25, %v2831_v16 }
0x161d   : > { %v2843_v19 = vadd.f32 %v2841_v15, %v6701_v27 }
0x161e   : > { %v2842_v20 = vadd.f32 %v2840_v17, %v6698_v23 }
0x161f   : > { %v2847_v63 = vsel %vm760_vm1, %v2843_v19, -inf }
0x1620   : > { %2848 = vmax.xlane.f32.xlu0 %v2847_v63  ;;  %v2844_v21 = vsel %vm760_vm1, %v2842_v20, -inf }
0x1621   : > { %2845 = vmax.xlane.f32.xlu1 %v2844_v21 }
0x1632   : > { %6242 = vrot.lane.b32.xlu1 %v7079_v9, %s7881_s24 }
0x1636   : > { %2957 = vrot.lane.b32.xlu1 %v5634_v7, %s7880_s23 }
0x163a   : > { %2963 = vrot.lane.b32.xlu1 %v2740_v11, %s7877_s22 }
0x163e   : > { %2965 = vrot.lane.b32.xlu1 %v5648_v25, %s7877_s22 }
0x16ad   : > { %v2849_v22 = vpop.xlane.xlu0 %2848 }
0x16ae   : > { %v2851_v62 = vsub.f32 %v2843_v19, %v2849_v22  ;;  %v2846_v24 = vpop.xlane.xlu1 %2845 }
0x16af   : > { %v2850_v28 = vsub.f32 %v2842_v20, %v2846_v24 }
0x16b0   : > { %v2854_v29 = vmul.f32 1.442695, %v2851_v62 }
0x16b1   : > { %v2852_v30 = vmul.f32 1.442695, %v2850_v28 }
0x16b2   : > { %v6243_v31 = vpop.permute.xlu1 %6242 }
0x16b3   : > { %6365 = vpow2.f32 %v2852_v30  ;;  %v6245_v32 = vunpack.i.h.bf16 %v6243_v31  ;;  %v6244_v33 = vunpack.i.l.bf16 %v6243_v31 }
0x16b4   : > { %6367 = vpow2.f32 %v2854_v29 }
0x16b5   : > { %v5955_v34 = vpack.c.bf16 %v6245_v32, %v6244_v33  ;;  %v5106_v32 = vld [vmem:[%s7843_s11 + $0x88] sm:$0xff]  ;;  %v5108_v33 = vld [vmem:[%s7843_s11 + $0x98] sm:$0xff] }
0x16b6   : > { %v2958_v2 = vpop.permute.xlu1 %2957 }
0x16b7   : > { %5956 = vmatprep.subr.bf16.mxu0 %v5955_v34  ;;  %v2978_v3 = vsel %vm760_vm1, %v7121_v12, %v2958_v2 }
0x16b8   : > { %5958 = vmatpush3.bf16.msra.mxu0 %v5955_v34  ;;  %v5975_v34 = vpack.c.bf16 %v5108_v33, %v5106_v32  ;;  %v5133_v32 = vld [vmem:[%s7845_s13 + $0x128] sm:$0xff] }
0x16b9   : > { %5960 = vmatprep.subr.bf16.mxu0 %v5959_v45 }
0x16ba   : > { %v2964_v55 = vpop.permute.xlu1 %2963  ;;  %5976 = vmatprep.subr.bf16.mxu1 %v5975_v34  ;;  %v5150_v34 = vld [vmem:[%s7845_s13 + $0x1b0] sm:$0xff] }
0x16bd   : > { %v6366_v9 = vpop.eup %6365 }
0x16be   : > { %v2856_v5 = vsel %vm760_vm1, %v6366_v9, 0.0  ;;  %v6368_v35 = vpop.eup %6367  ;;  %v2966_v59 = vpop.permute.xlu1 %2965 }
0x16bf   : > { %2857 = vadd.xlane.f32.xlu0 %v2856_v5  ;;  %v2859_v4 = vsel %vm760_vm1, %v6368_v35, 0.0  ;;  %v5107_v5 = vld [vmem:[%s7843_s11 + $0x90] sm:$0xff] }
0x16c3   : > { %2860 = vadd.xlane.f32.xlu0 %v2859_v4  ;;  %v5110_v4 = vld [vmem:[%s7843_s11 + $0xa8] sm:$0xff] }
0x16d9   : > { %2955 = vrot.lane.b32.xlu0 %v2536_v10, %s7880_s23  ;;  %v2980_v10 = vsel %vm1591_vm5, %v2978_v3, %v2966_v59  ;;  %v5104_v3 = vld [vmem:[%s7842_s10 + $0x1] ss:$0 sm:$0xff] }
0x174c   : > { %v2858_v36 = vpop.xlane.xlu0 %2857 }
0x174d   : > { %6369 = vrcp.f32 %v2858_v36  ;;  %v5112_v36 = vld [vmem:[%s7843_s11 + $0xb8] sm:$0xff] }
0x1750   : > { %v2861_v38 = vpop.xlane.xlu0 %2860 }
0x1751   : > { %6371 = vrcp.f32 %v2861_v38  ;;  %v5979_v38 = vpack.c.bf16 %v5112_v36, %v5110_v4  ;;  %v5135_v4 = vld [vmem:[%s7845_s13 + $0x138] sm:$0xff] }
0x1754   : > { %v2956_v57 = vpop.permute.xlu0 %2955 }
0x1755   : > { %v2977_v60 = vsel %vm760_vm1, %v7123_v52, %v2956_v57  ;;  %v5100_v52 = vld [vmem:[%s7840_s8 + $0x1] ss:$0 sm:$0xff] }
0x1756   : > { %v2979_v26 = vsel %vm1591_vm5, %v2977_v60, %v2964_v55  ;;  %v5103_v60 = vld [vmem:[%s7841_s9 + $0x1] ss:$0 sm:$0xff] }
0x1757   : > { %v6370_v39 = vpop.eup %6369 }
0x1758   : > { %v2864_v40 = vmul.f32 %v6370_v39, %v6366_v9  ;;  %v5105_v9 = vld [vmem:[%s7843_s11 + $0x80] sm:$0xff] }
0x1759   : > { %v5109_v39 = vld [vmem:[%s7843_s11 + $0xa0] sm:$0xff] }
0x175a   : > { %5660 = vmatprep.mubr.msk.f32.mxu0 %vm760_vm1, %v2864_v40  ;;  %v5111_v40 = vld [vmem:[%s7843_s11 + $0xb0] sm:$0xff] }
0x175b   : > { %v6372_v41 = vpop.eup %6371 }
0x175c   : > { %v2865_v42 = vmul.f32 %v6372_v41, %v6368_v35  ;;  %v5977_v35 = vpack.c.bf16 %v5107_v5, %v5105_v9  ;;  %v5981_v41 = vpack.c.bf16 %v5111_v40, %v5109_v39  ;;  %v5151_v9 = vld [vmem:[%s7845_s13 + $0x1b8] sm:$0xff]  ;;  %v5153_v39 = vld [vmem:[%s7845_s13 + $0x1c8] sm:$0xff] }
0x175d   : > { %v6003_v5 = vpack.c.bf16 %v5151_v9, %v5150_v34 }
0x175e   : > { %5661 = vmatmul.mubr.msk.f32.vlgmr.msra.gmra.mrb[28].mxu0 %vm760_vm1, %v2865_v42  ;;  %5978 = vmatpush1.bf16.msra.mxu1 %v5977_v35  ;;  %v5114_v42 = vld [vmem:[%s7843_s11 + $0xc8] sm:$0xff]  ;;  %v5134_v35 = vld [vmem:[%s7845_s13 + $0x130] sm:$0xff] }
0x175f   : > { %5962 = vmatpush3.bf16.msra.mxu0 %v5959_v45  ;;  %5980 = vmatprep.subr.bf16.mxu1 %v5979_v38  ;;  %v5983_v44 = vpack.c.bf16 %v5116_v43, %v5114_v42  ;;  %v5115_v45 = vld [vmem:[%s7843_s11 + $0xd0] sm:$0xff]  ;;  %v6005_v36 = vpack.c.bf16 %v5135_v4, %v5134_v35  ;;  %v5152_v38 = vld [vmem:[%s7845_s13 + $0x1c0] sm:$0xff]  ;;  %v5137_v42 = vld [vmem:[%s7845_s13 + $0x148] sm:$0xff] }
0x1760   : > { %5964 = vmatprep.subr.bf16.mxu0 %v5963_v47  ;;  %v5985_v46 = vpack.c.bf16 %v5115_v45, %v5113_v6  ;;  %v6007_v40 = vpack.c.bf16 %v5153_v39, %v5152_v38  ;;  %v5155_v6 = vld [vmem:[%s7845_s13 + $0x1d8] sm:$0xff] }
0x1762   : > { %5982 = vmatpush1.bf16.msra.mxu1 %v5981_v41  ;;  %v5136_v41 = vld [vmem:[%s7845_s13 + $0x140] sm:$0xff] }
0x1763   : > { %5966 = vmatpush3.bf16.msra.mxu0 %v5963_v47  ;;  %5984 = vmatprep.subr.bf16.mxu1 %v5983_v44  ;;  %v5118_v47 = vld [vmem:[%s7843_s11 + $0xe8] sm:$0xff]  ;;  %v6009_v43 = vpack.c.bf16 %v5137_v42, %v5136_v41  ;;  %v5154_v44 = vld [vmem:[%s7845_s13 + $0x1d0] sm:$0xff]  ;;  %v5160_v42 = vld [vmem:[%s7846_s14 + $0x1] ss:$0 sm:$0xff] }
0x1764   : > { %5968 = vmatprep.subr.bf16.mxu0 %v5967_v56  ;;  %v5987_v49 = vpack.c.bf16 %v5120_v48, %v5118_v47  ;;  %v6011_v45 = vpack.c.bf16 %v5155_v6, %v5154_v44  ;;  %v5139_v47 = vld [vmem:[%s7845_s13 + $0x158] sm:$0xff] }
0x1766   : > { %5986 = vmatpush1.bf16.msra.mxu1 %v5985_v46  ;;  %v5138_v46 = vld [vmem:[%s7845_s13 + $0x150] sm:$0xff] }
0x1767   : > { %5970 = vmatpush3.bf16.msra.mxu0 %v5967_v56  ;;  %v5117_v56 = vld [vmem:[%s7843_s11 + $0xe0] sm:$0xff]  ;;  %5988 = vmatprep.subr.bf16.mxu1 %v5987_v49  ;;  %v6013_v48 = vpack.c.bf16 %v5139_v47, %v5138_v46 }
0x1768   : > { %5972 = vmatprep.subr.bf16.mxu0 %v5971_v51  ;;  %v5989_v50 = vpack.c.bf16 %v5119_v1, %v5117_v56  ;;  %v5156_v49 = vld [vmem:[%s7845_s13 + $0x1e0] sm:$0xff]  ;;  %v5157_v56 = vld [vmem:[%s7845_s13 + $0x1e8] sm:$0xff] }
0x1769   : > { %v6015_v1 = vpack.c.bf16 %v5157_v56, %v5156_v49 }
0x176a   : > { %5990 = vmatpush1.bf16.msra.mxu1 %v5989_v50  ;;  %v5140_v50 = vld [vmem:[%s7845_s13 + $0x160] sm:$0xff] }
0x176b   : > { %5974 = vmatpush3.bf16.msra.mxu0 %v5971_v51 }
0x1831   : > { %v5662_v14 = vpop.f32.mrb[28].mxu0 }
0x1832   : > { %2973 = vrot.lane.b32.xlu1 %v5662_v14, %s7882_s18  ;;  %v2944_v53 = vpop.f32.mrb[29].mxu0 }
0x1833   : > { %2971 = vrot.lane.b32.xlu0 %v2944_v53, %s7882_s18 }
0x18a4   : > { %v2974_v8 = vpop.permute.xlu1 %2973 }
0x18a5   : > { %v2972_v7 = vpop.permute.xlu0 %2971  ;;  %v2982_v11 = vsel %vm1594_vm6, %v2980_v10, %v2974_v8 }
0x18a6   : > { %v2981_v25 = vsel %vm1594_vm6, %v2979_v26, %v2972_v7 }
0x18a7   : > { %5679 = vmatprep.mubr.msk.f32.mxu0 %vm603_vm0, %v2981_v25 }
0x18a8   : > { %5680 = vmatmul.mubr.msk.f32.vlgmr.msra.gmra.mrb[30].mxu0 %vm603_vm0, %v2982_v11 }
0x197b   : > { %v5681_v13 = vpop.f32.mrb[30].mxu0 }
0x197c   : > { %v3075_v15 = vadd.f32 %v5681_v13, %v5100_v52  ;;  %v3069_v12 = vpop.f32.mrb[31].mxu0  ;;  %v5144_v13 = vld [vmem:[%s7845_s13 + $0x180] sm:$0xff] }
0x197d   : > { %v3070_v16 = vadd.f32 %v5100_v52, %v3069_v12 }
0x197e   : > { %v7212_v17 = vadd.f32 %v3075_v15, %v6999_v58  ;;  %v5145_v15 = vld [vmem:[%s7845_s13 + $0x188] sm:$0xff] }
0x197f   : > { %v7215_v19 = vadd.f32 %v3070_v16, %v6994_v54  ;;  %v5991_v12 = vpack.c.bf16 %v5145_v15, %v5144_v13  ;;  %v5128_v16 = vld [vmem:[%s7845_s13 + $0x100] sm:$0xff] }
0x1980   : > { %v3085_v20 = vsel %vm603_vm0, %v7212_v17, 0.0 }
0x1981   : > { %3086 = vadd.xlane.f32.xlu1 %v3085_v20  ;;  %v3082_v63 = vsel %vm603_vm0, %v7215_v19, 0.0  ;;  %v5129_v20 = vld [vmem:[%s7845_s13 + $0x108] sm:$0xff]  ;;  %5992 = vmatprep.subr.bf16.mxu0 %v5991_v12 }
0x1982   : > { %3083 = vadd.xlane.f32.xlu0 %v3082_v63  ;;  %v5993_v63 = vpack.c.bf16 %v5129_v20, %v5128_v16 }
0x1984   : > { %5994 = vmatpush3.bf16.msra.mxu0 %v5993_v63 }
0x1a0e   : > { %v3087_v21 = vpop.xlane.xlu1 %3086 }
0x1a0f   : > { %v3089_v22 = vmul.f32 0.015625, %v3087_v21  ;;  %v3084_v62 = vpop.xlane.xlu0 %3083  ;;  %v5146_v21 = vld [vmem:[%s7845_s13 + $0x190] sm:$0xff] }
0x1a10   : > { %v3088_v24 = vmul.f32 0.015625, %v3084_v62 }
0x1a11   : > { %v3091_v28 = vsub.f32 %v7212_v17, %v3089_v22  ;;  %v5147_v22 = vld [vmem:[%s7845_s13 + $0x198] sm:$0xff] }
0x1a12   : > { %v3090_v58 = vsub.f32 %v7215_v19, %v3088_v24  ;;  %v5995_v62 = vpack.c.bf16 %v5147_v22, %v5146_v21  ;;  %v5130_v24 = vld [vmem:[%s7845_s13 + $0x110] sm:$0xff] }
0x1a13   : > { %v3093_v30 = vmul.f32 %v3091_v28, %v3091_v28 }
0x1a14   : > { %v3092_v29 = vmul.f32 %v3090_v58, %v3090_v58  ;;  %5996 = vmatprep.subr.bf16.mxu0 %v5995_v62 }
0x1a15   : > { %v3097_v31 = vsel %vm603_vm0, %v3093_v30, 0.0 }
0x1a16   : > { %v3094_v54 = vsel %vm603_vm0, %v3092_v29, 0.0  ;;  %v5148_v29 = vld [vmem:[%s7845_s13 + $0x1a0] sm:$0xff] }
0x1a17   : > { %3095 = vadd.xlane.f32.xlu0 %v3094_v54  ;;  %v5149_v54 = vld [vmem:[%s7845_s13 + $0x1a8] sm:$0xff] }
0x1a18   : > { %v5999_v30 = vpack.c.bf16 %v5149_v54, %v5148_v29 }
0x1a1b   : > { %3098 = vadd.xlane.f32.xlu0 %v3097_v31  ;;  %v5132_v31 = vld [vmem:[%s7845_s13 + $0x120] sm:$0xff] }
0x1a1c   : > { %v6001_v33 = vpack.c.bf16 %v5133_v32, %v5132_v31 }
0x1aa4   : > { %v3096_v51 = vpop.xlane.xlu0 %3095 }
0x1aa5   : > { %v3100_v14 = vmul.f32 0.015625, %v3096_v51  ;;  %v5141_v51 = vld [vmem:[%s7845_s13 + $0x168] sm:$0xff] }
0x1aa7   : > { %v3102_v53 = vadd.f32 1e-05, %v3100_v14  ;;  %v6017_v14 = vpack.c.bf16 %v5141_v51, %v5140_v50 }
0x1aa8   : > { %v3099_v2 = vpop.xlane.xlu0 %3098 }
0x1aa9   : > { %6373 = vrsqrt.f32 %v3102_v53  ;;  %v3101_v55 = vmul.f32 0.015625, %v3099_v2  ;;  %v5158_v53 = vld [vmem:[%s7845_s13 + $0x1f0] sm:$0xff]  ;;  %v5159_v2 = vld [vmem:[%s7845_s13 + $0x1f8] sm:$0xff] }
0x1aab   : > { %v3103_v57 = vadd.f32 1e-05, %v3101_v55  ;;  %v6019_v55 = vpack.c.bf16 %v5159_v2, %v5158_v53 }
0x1aad   : > { %6375 = vrsqrt.f32 %v3103_v57  ;;  %v5142_v57 = vld [vmem:[%s7845_s13 + $0x170] sm:$0xff] }
0x1ab3   : > { %v6374_v59 = vpop.eup %6373 }
0x1ab4   : > { %v3106_v8 = vmul.f32 %v6374_v59, %v3090_v58  ;;  %v5143_v59 = vld [vmem:[%s7845_s13 + $0x178] sm:$0xff] }
0x1ab6   : > { %v3112_v26 = vmul.f32 %v5103_v60, %v3106_v8  ;;  %v5121_v8 = vld [vmem:[%s7844_s12 + $0x1] ss:$4 sm:$0x3] }
0x1ab7   : > { %v6376_v7 = vpop.eup %6375 }
0x1ab8   : > { %v3118_v10 = vadd.f32 %v5104_v3, %v3112_v26  ;;  %v3107_v25 = vmul.f32 %v6376_v7, %v3091_v28  ;;  %v5131_v28 = vld [vmem:[%s7845_s13 + $0x118] sm:$0xff]  ;;  %v3147_v26 = vrot.slane %v5121_v8, %v6660_v0 }
0x1ab9   : > { %v5997_v58 = vpack.c.bf16 %v5131_v28, %v5130_v24 }
0x1aba   : > { %5122 = vmatmul.mubr.msk.f32.vlgmr.msra.gmra.mrb[20].mxu1 %vm603_vm0, %v3118_v10  ;;  %v3113_v11 = vmul.f32 %v5103_v60, %v3107_v25  ;;  %v6021_v60 = vpack.c.bf16 %v5143_v59, %v5142_v57 }
0x1abb   : > { %3226 = vmatprep.mubr.f32.mxu1 %v6459_v37  ;;  %5998 = vmatpush3.bf16.msra.mxu0 %v5997_v58 }
0x1abc   : > { %v3119_v52 = vadd.f32 %v5104_v3, %v3113_v11  ;;  %6000 = vmatprep.subr.bf16.mxu0 %v5999_v30  ;;  %v3143_v3 = vrot.slane %v5121_v8, %v6654_v61  ;;  %v5164_v8 = vld [vmem:[%s7837_s5 + $0x108] sm:$0xff] }
0x1abe   : > { %5123 = vmatmul.mubr.msk.f32.gmra.mrb[22].mxu1 %vm603_vm0, %v3119_v52 }
0x1abf   : > { %3520 = vmatprep.mubr.f32.mxu1 %v6459_v37  ;;  %6002 = vmatpush3.bf16.msra.mxu0 %v6001_v33 }
0x1ac0   : > { %6004 = vmatprep.subr.bf16.mxu0 %v6003_v5 }
0x1ac3   : > { %6006 = vmatpush3.bf16.msra.mxu0 %v6005_v36 }
0x1ac4   : > { %6008 = vmatprep.subr.bf16.mxu0 %v6007_v40 }
0x1ac7   : > { %6010 = vmatpush3.bf16.msra.mxu0 %v6009_v43 }
0x1ac8   : > { %6012 = vmatprep.subr.bf16.mxu0 %v6011_v45 }
0x1acb   : > { %6014 = vmatpush3.bf16.msra.mxu0 %v6013_v48 }
0x1acc   : > { %6016 = vmatprep.subr.bf16.mxu0 %v6015_v1 }
0x1acf   : > { %6018 = vmatpush3.bf16.msra.mxu0 %v6017_v14 }
0x1ad0   : > { %6020 = vmatprep.subr.bf16.mxu0 %v6019_v55 }
0x1ad3   : > { %6022 = vmatpush3.bf16.msra.mxu0 %v6021_v60 }
0x1b8d   : > { %v3222_v7 = vpop.f32.mrb[20].mxu1 }
0x1b8e   : > { %v3223_v10 = vadd.f32 %v3222_v7, %v3143_v3  ;;  %v3224_v25 = vpop.f32.mrb[21].mxu1  ;;  %v5163_v7 = vld [vmem:[%s7837_s5 + $0x100] sm:$0xff] }
0x1b8f   : > { %v3225_v11 = vadd.f32 %v3224_v25, %v3147_v26 }
0x1b90   : > { %v5124_v52 = vmul.f32 -1.702, %v3223_v10 }
0x1b91   : > { %v5125_v13 = vmul.f32 -1.702, %v3225_v11  ;;  %v3228_v15 = vpop.f32.mrb[22].mxu1 }
0x1b92   : > { %v3241_v12 = vmul.f32 1.442695, %v5124_v52  ;;  %v3229_v16 = vadd.f32 %v3228_v15, %v3143_v3  ;;  %v3230_v20 = vpop.f32.mrb[23].mxu1  ;;  %v5166_v3 = vld [vmem:[%s7837_s5 + $0x118] sm:$0xff]  ;;  %v5167_v15 = vld [vmem:[%s7837_s5 + $0x120] sm:$0xff] }
0x1b93   : > { %v3243_v63 = vmul.f32 1.442695, %v5125_v13  ;;  %v3231_v21 = vadd.f32 %v3230_v20, %v3147_v26  ;;  %v6023_v26 = vpack.c.bf16 %v5166_v3, %v5164_v8  ;;  %v5170_v52 = vld [vmem:[%s7837_s5 + $0x138] sm:$0xff]  ;;  %v5172_v20 = vld [vmem:[%s7837_s5 + $0x148] sm:$0xff] }
0x1b94   : > { %6377 = vpow2.f32 %v3241_v12  ;;  %v5126_v22 = vmul.f32 -1.702, %v3229_v16  ;;  %v5169_v12 = vld [vmem:[%s7837_s5 + $0x130] sm:$0xff] }
0x1b95   : > { %6379 = vpow2.f32 %v3243_v63  ;;  %v5127_v62 = vmul.f32 -1.702, %v3231_v21  ;;  %6024 = vmatprep.subr.bf16.mxu1 %v6023_v26  ;;  %v5174_v63 = vld [vmem:[%s7837_s5 + $0x158] sm:$0xff] }
0x1b96   : > { %v3245_v24 = vmul.f32 1.442695, %v5126_v22  ;;  %v5171_v22 = vld [vmem:[%s7837_s5 + $0x140] sm:$0xff] }
0x1b97   : > { %v3247_v28 = vmul.f32 1.442695, %v5127_v62  ;;  %v5173_v62 = vld [vmem:[%s7837_s5 + $0x150] sm:$0xff] }
0x1b98   : > { %6381 = vpow2.f32 %v3245_v24  ;;  %v6033_v24 = vpack.c.bf16 %v5173_v62, %v5171_v22 }
0x1b99   : > { %6383 = vpow2.f32 %v3247_v28  ;;  %v5176_v28 = vld [vmem:[%s7837_s5 + $0x168] sm:$0xff] }
0x1b9e   : > { %v6378_v58 = vpop.eup %6377 }
0x1b9f   : > { %v6380_v29 = vpop.eup %6379  ;;  %v3249_v54 = vadd.f32 1.0, %v6378_v58  ;;  %v5178_v58 = vld [vmem:[%s7837_s5 + $0x178] sm:$0xff] }
0x1ba0   : > { %v3250_v30 = vadd.f32 1.0, %v6380_v29  ;;  %v6035_v29 = vpack.c.bf16 %v5178_v58, %v5176_v28 }
0x1ba1   : > { %6385 = vrcp.f32 %v3249_v54  ;;  %v5175_v54 = vld [vmem:[%s7837_s5 + $0x160] sm:$0xff] }
0x1ba2   : > { %v6382_v31 = vpop.eup %6381  ;;  %6387 = vrcp.f32 %v3250_v30  ;;  %v5177_v30 = vld [vmem:[%s7837_s5 + $0x170] sm:$0xff] }
0x1ba3   : > { %v6384_v32 = vpop.eup %6383  ;;  %v3251_v33 = vadd.f32 1.0, %v6382_v31  ;;  %v6037_v31 = vpack.c.bf16 %v5177_v30, %v5175_v54 }
0x1ba4   : > { %v3252_v34 = vadd.f32 1.0, %v6384_v32 }
0x1ba5   : > { %6389 = vrcp.f32 %v3251_v33 }
0x1ba6   : > { %6391 = vrcp.f32 %v3252_v34 }
0x1bab   : > { %v6386_v9 = vpop.eup %6385 }
0x1bac   : > { %v6388_v5 = vpop.eup %6387  ;;  %v3261_v4 = vmul.f32 %v6386_v9, %v3223_v10  ;;  %v5165_v10 = vld [vmem:[%s7837_s5 + $0x110] sm:$0xff] }
0x1bad   : > { %v3262_v35 = vmul.f32 %v6388_v5, %v3225_v11  ;;  %v6025_v25 = vpack.c.bf16 %v5165_v10, %v5163_v7  ;;  %v5168_v11 = vld [vmem:[%s7837_s5 + $0x128] sm:$0xff] }
0x1bae   : > { %v6027_v13 = vpack.c.bf16 %v5170_v52, %v5168_v11 }
0x1baf   : > { %v6390_v36 = vpop.eup %6389  ;;  %3367 = vmatprep.mubr.f32.mxu0 %v3262_v35  ;;  %6026 = vmatpush1.bf16.msra.mxu1 %v6025_v25 }
0x1bb0   : > { %v6392_v38 = vpop.eup %6391  ;;  %3368 = vmatmul.mubr.f32.vlgmr.msra.gmra.mrb[32].mxu0 %v3261_v4  ;;  %v3263_v40 = vmul.f32 %v6390_v36, %v3229_v16  ;;  %v6029_v16 = vpack.c.bf16 %v5169_v12, %v5167_v15  ;;  %6028 = vmatprep.subr.bf16.mxu1 %v6027_v13  ;;  %v5161_v36 = vld [vmem:[%s7835_s3 + $0x2] ss:$0 sm:$0xff] }
0x1bb1   : > { %v3264_v39 = vmul.f32 %v6392_v38, %v3231_v21  ;;  %v6031_v21 = vpack.c.bf16 %v5174_v63, %v5172_v20 }
0x1bb3   : > { %3372 = vmatprep.mubr.f32.mxu0 %v3264_v39  ;;  %6030 = vmatpush1.bf16.msra.mxu1 %v6029_v16  ;;  %v5162_v39 = vld [vmem:[%s7836_s4 + $0x2] ss:$0 sm:$0xff] }
0x1bb4   : > { %3373 = vmatmul.mubr.f32.gmra.mrb[34].mxu0 %v3263_v40  ;;  %6032 = vmatprep.subr.bf16.mxu1 %v6031_v21 }
0x1bb7   : > { %6034 = vmatpush1.bf16.msra.mxu1 %v6033_v24 }
0x1bb8   : > { %6036 = vmatprep.subr.bf16.mxu1 %v6035_v29 }
0x1bbb   : > { %6038 = vmatpush1.bf16.msra.mxu1 %v6037_v31 }
0x1c83   : > { %v5434_v41 = vpop.f32.mrb[32].mxu0 }
0x1c84   : > { %v5435_v43 = vpop.f32.mrb[33].mxu0 }
0x1c85   : > { %v5436_v44 = vadd.f32 %v5435_v43, %v5434_v41 }
0x1c87   : > { %v3370_v6 = vadd.f32 %v5436_v44, %v5160_v42  ;;  %v5437_v45 = vpop.f32.mrb[34].mxu0 }
0x1c88   : > { %v5438_v46 = vpop.f32.mrb[35].mxu0 }
0x1c89   : > { %v7388_v47 = vadd.f32 %v3370_v6, %v7215_v19  ;;  %v5439_v48 = vadd.f32 %v5438_v46, %v5437_v45  ;;  %v5179_v45 = vld [vmem:[%s7838_s6 + $0x2] ss:$4 sm:$0x3] }
0x1c8a   : > { %v3443_v46 = vrot.slane %v5179_v45, %v6654_v61 }
0x1c8b   : > { %v3375_v49 = vadd.f32 %v5439_v48, %v5160_v42  ;;  %v3382_v56 = vsel %vm603_vm0, %v7388_v47, 0.0 }
0x1c8c   : > { %3383 = vadd.xlane.f32.xlu0 %v3382_v56 }
0x1c8d   : > { %v7393_v1 = vadd.f32 %v3375_v49, %v7212_v17 }
0x1c8f   : > { %v3385_v50 = vsel %vm603_vm0, %v7393_v1, 0.0 }
0x1c90   : > { %3386 = vadd.xlane.f32.xlu1 %v3385_v50  ;;  %v3447_v50 = vrot.slane %v5179_v45, %v6660_v0 }
0x1d19   : > { %v3384_v51 = vpop.xlane.xlu0 %3383 }
0x1d1a   : > { %v3388_v14 = vmul.f32 0.015625, %v3384_v51 }
0x1d1c   : > { %v3390_v53 = vsub.f32 %v7388_v47, %v3388_v14 }
0x1d1d   : > { %v3387_v2 = vpop.xlane.xlu1 %3386 }
0x1d1e   : > { %v3389_v19 = vmul.f32 0.015625, %v3387_v2  ;;  %v3392_v55 = vmul.f32 %v3390_v53, %v3390_v53 }
0x1d20   : > { %v3391_v57 = vsub.f32 %v7393_v1, %v3389_v19  ;;  %v3394_v59 = vsel %vm603_vm0, %v3392_v55, 0.0 }
0x1d21   : > { %3395 = vadd.xlane.f32.xlu0 %v3394_v59 }
0x1d22   : > { %v3393_v60 = vmul.f32 %v3391_v57, %v3391_v57 }
0x1d24   : > { %v3397_v17 = vsel %vm603_vm0, %v3393_v60, 0.0 }
0x1d25   : > { %3398 = vadd.xlane.f32.xlu1 %v3397_v17 }
0x1dae   : > { %v3396_v32 = vpop.xlane.xlu0 %3395 }
0x1daf   : > { %v3400_v33 = vmul.f32 0.015625, %v3396_v32 }
0x1db1   : > { %v3402_v34 = vadd.f32 1e-05, %v3400_v33 }
0x1db2   : > { %v3399_v9 = vpop.xlane.xlu1 %3398 }
0x1db3   : > { %6393 = vrsqrt.f32 %v3402_v34  ;;  %v3401_v5 = vmul.f32 0.015625, %v3399_v9 }
0x1db5   : > { %v3403_v35 = vadd.f32 1e-05, %v3401_v5 }
0x1db7   : > { %6395 = vrsqrt.f32 %v3403_v35 }
0x1dbd   : > { %v6394_v4 = vpop.eup %6393 }
0x1dbe   : > { %v3406_v38 = vmul.f32 %v6394_v4, %v3390_v53 }
0x1dc0   : > { %v3412_v40 = vmul.f32 %v5161_v36, %v3406_v38 }
0x1dc1   : > { %v6396_v41 = vpop.eup %6395 }
0x1dc2   : > { %v3418_v42 = vadd.f32 %v5162_v39, %v3412_v40  ;;  %v3407_v43 = vmul.f32 %v6396_v41, %v3391_v57 }
0x1dc4   : > { %5180 = vmatmul.mubr.msk.f32.vlgmr.msra.gmra.mrb[24].mxu1 %vm603_vm0, %v3418_v42  ;;  %v3413_v44 = vmul.f32 %v5161_v36, %v3407_v43 }
0x1dc5   : > { %3526 = vmatprep.mubr.f32.mxu1 %v6459_v37 }
0x1dc6   : > { %v3419_v6 = vadd.f32 %v5162_v39, %v3413_v44 }
0x1dc8   : > { %5181 = vmatmul.mubr.msk.f32.gmra.mrb[26].mxu1 %vm603_vm0, %v3419_v6 }
0x1e97   : > { %v3522_v48 = vpop.f32.mrb[24].mxu1 }
0x1e98   : > { %v7462_v49 = vadd.f32 %v3522_v48, %v3443_v46  ;;  %v3524_v56 = vpop.f32.mrb[25].mxu1 }
0x1e99   : > { %v3525_v2 = vadd.f32 %v3524_v56, %v3447_v50 }
0x1e9a   : > { %5686 = vmatprep.mubr.msk.f32.mxu1 %vm760_vm1, %v7462_v49 }
0x1e9b   : > { %v3528_v51 = vpop.f32.mrb[26].mxu1 }
0x1e9c   : > { %v7467_v14 = vadd.f32 %v3528_v51, %v3443_v46  ;;  %v3530_v53 = vpop.f32.mrb[27].mxu1 }
0x1e9d   : > { %v3531_v19 = vadd.f32 %v3530_v53, %v3447_v50 }
0x1e9e   : > { %v7471_v55 = vpack.i.bf16 %v7467_v14, %v7462_v49 }
0x1e9f   : > { %v6045_v57 = vpack.c.bf16 %v3531_v19, %v3525_v2  ;;  %v7473_v59 = vpack.i.bf16 %v3531_v19, %v3525_v2 }
0x1ea0   : > { %6247 = vrot.lane.b32.xlu0 %v7471_v55, %s7883_s29 }
0x1ea4   : > { %3729 = vrot.lane.b32.xlu0 %v7462_v49, %s7878_s2 }
0x1ea8   : > { %6257 = vrot.lane.b32.xlu0 %v7471_v55, %s7877_s22 }
0x1eac   : > { %3731 = vrot.lane.b32.xlu0 %v7467_v14, %s7878_s2 }
0x1eb0   : > { %3937 = vrot.lane.b32.xlu0 %v7467_v14, %s7879_s21 }
0x1f12   : > { %v6248_v60 = vpop.permute.xlu0 %6247 }
0x1f13   : > { %v6250_v17 = vunpack.i.h.bf16 %v6248_v60  ;;  %v6249_v8 = vunpack.i.l.bf16 %v6248_v60 }
0x1f15   : > { %v6039_v3 = vpack.c.bf16 %v6250_v17, %v6249_v8 }
0x1f16   : > { %v3730_v30 = vpop.permute.xlu0 %3729 }
0x1f17   : > { %6041 = vmatprep.subr.msk.bf16.mxu1 %vm6687_vm2, %v6039_v3 }
0x1f18   : > { %6044 = vmatpush3.bf16.xpose.msk.msra.mxu1 %vm6687_vm2, %v6039_v3 }
0x1f19   : > { %6046 = vmatprep.subr.bf16.mxu1 %v6045_v57 }
0x1f1a   : > { %v6258_v9 = vpop.permute.xlu0 %6257 }
0x1f1b   : > { %v6260_v4 = vunpack.i.h.bf16 %v6258_v9  ;;  %v6259_v36 = vunpack.i.l.bf16 %v6258_v9 }
0x1f1d   : > { %v6059_v40 = vpack.c.bf16 %v6260_v4, %v6259_v36 }
0x1f1e   : > { %v3732_v41 = vpop.permute.xlu0 %3731 }
0x1f1f   : > { %5687 = vmatmul.mubr.msk.f32.vlgmr.msra.gmra.mrb[28].mxu1 %vm760_vm1, %v7467_v14 }
0x1f20   : > { %6048 = vmatpush3.bf16.msra.mxu1 %v6045_v57 }
0x1f22   : > { %v3938_v43 = vpop.permute.xlu0 %3937 }
0x1ff2   : > { %v5688_v26 = vpop.f32.mrb[28].mxu1 }
0x1ff3   : > { %v3613_v7 = vpop.f32.mrb[29].mxu1  ;;  %v3623_v10 = vmul.f32 0.25, %v5688_v26 }
0x1ff4   : > { %v3622_v25 = vmul.f32 0.25, %v3613_v7 }
0x1ff5   : > { %v3625_v13 = vadd.f32 %v3623_v10, %v6701_v27 }
0x1ff6   : > { %v3624_v11 = vadd.f32 %v3622_v25, %v6698_v23 }
0x1ff7   : > { %v3629_v15 = vsel %vm760_vm1, %v3625_v13, -inf }
0x1ff8   : > { %v3626_v52 = vsel %vm760_vm1, %v3624_v11, -inf }
0x1ff9   : > { %3627 = vmax.xlane.f32.xlu1 %v3626_v52 }
0x1ffd   : > { %3630 = vmax.xlane.f32.xlu1 %v3629_v15 }
0x2086   : > { %v3628_v12 = vpop.xlane.xlu1 %3627 }
0x2087   : > { %v3632_v16 = vsub.f32 %v3624_v11, %v3628_v12 }
0x2089   : > { %v3634_v21 = vmul.f32 1.442695, %v3632_v16 }
0x208a   : > { %v3631_v20 = vpop.xlane.xlu1 %3630 }
0x208b   : > { %v3633_v63 = vsub.f32 %v3625_v13, %v3631_v20 }
0x208d   : > { %v3636_v22 = vmul.f32 1.442695, %v3633_v63 }
0x208f   : > { %6397 = vpow2.f32 %v3636_v22 }
0x2090   : > { %6399 = vpow2.f32 %v3634_v21 }
0x2099   : > { %v6398_v62 = vpop.eup %6397 }
0x209a   : > { %v3641_v24 = vsel %vm760_vm1, %v6398_v62, 0.0  ;;  %v6400_v28 = vpop.eup %6399 }
0x209b   : > { %3642 = vadd.xlane.f32.xlu1 %v3641_v24  ;;  %v3638_v58 = vsel %vm760_vm1, %v6400_v28, 0.0 }
0x209f   : > { %3639 = vadd.xlane.f32.xlu1 %v3638_v58 }
0x20b0   : > { %6252 = vrot.lane.b32.xlu1 %v7471_v55, %s7882_s18 }
0x20b4   : > { %3935 = vrot.lane.b32.xlu1 %v7462_v49, %s7879_s21 }
0x2128   : > { %v3643_v29 = vpop.xlane.xlu1 %3642 }
0x2129   : > { %6401 = vrcp.f32 %v3643_v29 }
0x212c   : > { %v3640_v54 = vpop.xlane.xlu1 %3639 }
0x212d   : > { %6403 = vrcp.f32 %v3640_v54 }
0x2130   : > { %v6253_v31 = vpop.permute.xlu1 %6252 }
0x2131   : > { %v6255_v32 = vunpack.i.h.bf16 %v6253_v31  ;;  %v6254_v33 = vunpack.i.l.bf16 %v6253_v31 }
0x2133   : > { %v6049_v34 = vpack.c.bf16 %v6255_v32, %v6254_v33  ;;  %v6402_v5 = vpop.eup %6401 }
0x2134   : > { %v3647_v39 = vmul.f32 %v6402_v5, %v6398_v62  ;;  %v3936_v42 = vpop.permute.xlu1 %3935 }
0x2135   : > { %6051 = vmatprep.subr.msk.bf16.mxu1 %vm6687_vm2, %v6049_v34 }
0x2137   : > { %v6404_v35 = vpop.eup %6403 }
0x2138   : > { %v3646_v38 = vmul.f32 %v6404_v35, %v6400_v28 }
0x213a   : > { %5693 = vmatprep.mubr.msk.f32.mxu1 %vm760_vm1, %v3646_v38 }
0x213b   : > { %5694 = vmatmul.mubr.msk.f32.vlgmr.msra.gmra.mrb[30].mxu1 %vm760_vm1, %v3647_v39 }
0x213c   : > { %6054 = vmatpush3.bf16.xpose.msk.msra.mxu1 %vm6687_vm2, %v6049_v34  ;;  %5700 = vmatprep.mubr.msk.f32.mxu1 %vm760_vm1, %v3730_v30 }
0x213d   : > { %6061 = vmatprep.subr.msk.bf16.mxu1 %vm6687_vm2, %v6059_v40 }
0x2143   : > { %5701 = vmatmul.mubr.msk.f32.vlgmr.msra.gmra.mrb[32].mxu1 %vm760_vm1, %v3732_v41 }
0x2144   : > { %6064 = vmatpush3.bf16.xpose.msk.msra.mxu1 %vm6687_vm2, %v6059_v40  ;;  %5714 = vmatprep.mubr.msk.f32.mxu1 %vm760_vm1, %v3936_v42 }
0x214b   : > { %5715 = vmatmul.mubr.msk.f32.vlgmr.msra.gmra.mrb[34].mxu1 %vm760_vm1, %v3938_v43 }
0x220e   : > { %v7515_v44 = vpop.f32.mrb[30].mxu1 }
0x220f   : > { %v7517_v6 = vpop.f32.mrb[31].mxu1 }
0x2216   : > { %v5702_v45 = vpop.f32.mrb[32].mxu1 }
0x2217   : > { %v3821_v46 = vmul.f32 0.25, %v5702_v45  ;;  %v3811_v48 = vpop.f32.mrb[33].mxu1 }
0x2218   : > { %v3820_v56 = vmul.f32 0.25, %v3811_v48 }
0x2219   : > { %v3823_v50 = vadd.f32 %v3821_v46, %v6701_v27 }
0x221a   : > { %v3822_v51 = vadd.f32 %v3820_v56, %v6698_v23 }
0x221b   : > { %v3827_v53 = vsel %vm760_vm1, %v3823_v50, -inf }
0x221c   : > { %3828 = vmax.xlane.f32.xlu0 %v3827_v53  ;;  %v3824_v2 = vsel %vm760_vm1, %v3822_v51, -inf }
0x221d   : > { %3825 = vmax.xlane.f32.xlu1 %v3824_v2 }
0x221e   : > { %v5716_v19 = vpop.f32.mrb[34].mxu1 }
0x221f   : > { %v4017_v57 = vpop.f32.mrb[35].mxu1  ;;  %v4027_v60 = vmul.f32 0.25, %v5716_v19 }
0x2220   : > { %v4026_v17 = vmul.f32 0.25, %v4017_v57 }
0x2221   : > { %v4029_v3 = vadd.f32 %v4027_v60, %v6701_v27 }
0x2222   : > { %v4028_v8 = vadd.f32 %v4026_v17, %v6698_v23 }
0x2223   : > { %v4033_v7 = vsel %vm760_vm1, %v4029_v3, -inf }
0x2224   : > { %v4030_v26 = vsel %vm760_vm1, %v4028_v8, -inf }
0x2225   : > { %4031 = vmax.xlane.f32.xlu0 %v4030_v26 }
0x2229   : > { %4034 = vmax.xlane.f32.xlu0 %v4033_v7 }
0x222e   : > { %6262 = vrot.lane.b32.xlu1 %v7473_v59, %s7878_s2 }
0x22a9   : > { %v3829_v10 = vpop.xlane.xlu0 %3828 }
0x22aa   : > { %v3831_v25 = vsub.f32 %v3823_v50, %v3829_v10  ;;  %v3826_v11 = vpop.xlane.xlu1 %3825 }
0x22ab   : > { %v3830_v52 = vsub.f32 %v3822_v51, %v3826_v11 }
0x22ac   : > { %v3834_v13 = vmul.f32 1.442695, %v3831_v25 }
0x22ad   : > { %v3832_v15 = vmul.f32 1.442695, %v3830_v52 }
0x22ae   : > { %6405 = vpow2.f32 %v3834_v13  ;;  %v6263_v12 = vpop.permute.xlu1 %6262 }
0x22af   : > { %6407 = vpow2.f32 %v3832_v15  ;;  %v6265_v16 = vunpack.i.h.bf16 %v6263_v12  ;;  %v6264_v20 = vunpack.i.l.bf16 %v6263_v12 }
0x22b1   : > { %v6055_v63 = vpack.c.bf16 %v6265_v16, %v6264_v20 }
0x22b2   : > { %v4032_v21 = vpop.xlane.xlu0 %4031 }
0x22b3   : > { %6056 = vmatprep.subr.bf16.mxu0 %v6055_v63  ;;  %v4036_v32 = vsub.f32 %v4028_v8, %v4032_v21 }
0x22b4   : > { %6058 = vmatpush3.bf16.msra.mxu0 %v6055_v63 }
0x22b5   : > { %v4038_v33 = vmul.f32 1.442695, %v4036_v32 }
0x22b6   : > { %v4035_v22 = vpop.xlane.xlu0 %4034 }
0x22b7   : > { %v4037_v62 = vsub.f32 %v4029_v3, %v4035_v22 }
0x22b8   : > { %v6406_v24 = vpop.eup %6405 }
0x22b9   : > { %v6408_v28 = vpop.eup %6407  ;;  %v4040_v58 = vmul.f32 1.442695, %v4037_v62  ;;  %v3839_v29 = vsel %vm760_vm1, %v6406_v24, 0.0 }
0x22ba   : > { %3840 = vadd.xlane.f32.xlu0 %v3839_v29  ;;  %v3836_v54 = vsel %vm760_vm1, %v6408_v28, 0.0 }
0x22bb   : > { %6409 = vpow2.f32 %v4040_v58  ;;  %3837 = vadd.xlane.f32.xlu1 %v3836_v54 }
0x22bc   : > { %6411 = vpow2.f32 %v4038_v33 }
0x22c5   : > { %v6410_v30 = vpop.eup %6409 }
0x22c6   : > { %v4045_v31 = vsel %vm760_vm1, %v6410_v30, 0.0  ;;  %v6412_v34 = vpop.eup %6411 }
0x22c7   : > { %4046 = vadd.xlane.f32.xlu0 %v4045_v31  ;;  %v4042_v9 = vsel %vm760_vm1, %v6412_v34, 0.0 }
0x22cc   : > { %6272 = vrot.lane.b32.xlu1 %v7471_v55, %s7880_s23 }
0x22d0   : > { %4139 = vrot.lane.b32.xlu1 %v7462_v49, %s7881_s24 }
0x22dd   : > { %6267 = vrot.lane.b32.xlu0 %v7473_v59, %s7879_s21  ;;  %s7885_s21 = sld [smem:[#allocation6_spill]] }
0x22f4   : > { %4043 = vadd.xlane.f32.xlu1 %v4042_v9  ;;  %v5208_v9 = vld [vmem:[%s7839_s7 + $0x90] sm:$0xff] }
0x2305   : > { %4141 = vrot.lane.b32.xlu1 %v7467_v14, %s7881_s24 }
0x2347   : > { %v3841_v5 = vpop.xlane.xlu0 %3840 }
0x2348   : > { %6413 = vrcp.f32 %v3841_v5  ;;  %v3838_v35 = vpop.xlane.xlu1 %3837 }
0x2349   : > { %6415 = vrcp.f32 %v3838_v35  ;;  %v5209_v35 = vld [vmem:[%s7839_s7 + $0x98] sm:$0xff] }
0x234c   : > { %v6273_v39 = vpop.permute.xlu1 %6272 }
0x234d   : > { %v6275_v41 = vunpack.i.h.bf16 %v6273_v39  ;;  %v6274_v42 = vunpack.i.l.bf16 %v6273_v39  ;;  %v5213_v39 = vld [vmem:[%s7839_s7 + $0xb8] sm:$0xff] }
0x234f   : > { %v6069_v46 = vpack.c.bf16 %v6275_v41, %v6274_v42 }
0x2350   : > { %v4140_v48 = vpop.permute.xlu1 %4139 }
0x2352   : > { %v6414_v55 = vpop.eup %6413 }
0x2353   : > { %v6416_v4 = vpop.eup %6415  ;;  %v3845_v38 = vmul.f32 %v6414_v55, %v6406_v24  ;;  %v6083_v55 = vpack.c.bf16 %v5209_v35, %v5208_v9  ;;  %v5232_v9 = vld [vmem:[%s7843_s11 + $0x168] sm:$0xff] }
0x2354   : > { %v4047_v49 = vpop.xlane.xlu0 %4046  ;;  %v3844_v36 = vmul.f32 %v6416_v4, %v6408_v28  ;;  %v5210_v4 = vld [vmem:[%s7839_s7 + $0xa0] sm:$0xff] }
0x2355   : > { %6417 = vrcp.f32 %v4047_v49  ;;  %v5211_v49 = vld [vmem:[%s7839_s7 + $0xa8] sm:$0xff] }
0x2356   : > { %5707 = vmatprep.mubr.msk.f32.mxu0 %vm760_vm1, %v3844_v36  ;;  %v6087_v36 = vpack.c.bf16 %v5211_v49, %v5210_v4  ;;  %v5233_v4 = vld [vmem:[%s7843_s11 + $0x170] sm:$0xff] }
0x2357   : > { %5708 = vmatmul.mubr.msk.f32.vlgmr.msra.gmra.mrb[36].mxu0 %vm760_vm1, %v3845_v38  ;;  %v5212_v38 = vld [vmem:[%s7839_s7 + $0xb0] sm:$0xff] }
0x2358   : > { %v6268_v40 = vpop.permute.xlu0 %6267 }
0x2359   : > { %v6270_v43 = vunpack.i.h.bf16 %v6268_v40  ;;  %v6269_v45 = vunpack.i.l.bf16 %v6268_v40  ;;  %v6091_v40 = vpack.c.bf16 %v5213_v39, %v5212_v38 }
0x235b   : > { %v6065_v14 = vpack.c.bf16 %v6270_v43, %v6269_v45 }
0x235d   : > { %6066 = vmatprep.subr.bf16.mxu0 %v6065_v14 }
0x235e   : > { %6068 = vmatpush3.bf16.msra.mxu0 %v6065_v14 }
0x235f   : > { %6071 = vmatprep.subr.msk.bf16.mxu0 %vm6687_vm2, %v6069_v46  ;;  %v6418_v50 = vpop.eup %6417 }
0x2360   : > { %v4051_v2 = vmul.f32 %v6418_v50, %v6410_v30 }
0x2381   : > { %v4044_v56 = vpop.xlane.xlu1 %4043 }
0x2382   : > { %6419 = vrcp.f32 %v4044_v56 }
0x2385   : > { %v4142_v19 = vpop.permute.xlu1 %4141 }
0x238c   : > { %v6420_v51 = vpop.eup %6419 }
0x238d   : > { %v4050_v53 = vmul.f32 %v6420_v51, %v6412_v34  ;;  %v5207_v34 = vld [vmem:[%s7839_s7 + $0x88] sm:$0xff] }
0x238f   : > { %5721 = vmatprep.mubr.msk.f32.mxu0 %vm760_vm1, %v4050_v53 }
0x2390   : > { %5722 = vmatmul.mubr.msk.f32.vlgmr.msra.gmra.mrb[38].mxu0 %vm760_vm1, %v4051_v2 }
0x2391   : > { %6074 = vmatpush3.bf16.xpose.msk.msra.mxu0 %vm6687_vm2, %v6069_v46  ;;  %5728 = vmatprep.mubr.msk.f32.mxu0 %vm760_vm1, %v4140_v48 }
0x2398   : > { %5729 = vmatmul.mubr.msk.f32.vlgmr.msra.gmra.mrb[40].mxu0 %vm760_vm1, %v4142_v19 }
0x2399   : > { %4610 = vmatprep.mubr.f32.mxu0 %v6459_v37 }
0x242a   : > { %v5709_v57 = vpop.f32.mrb[36].mxu0 }
0x242b   : > { %v3926_v60 = vpop.f32.mrb[37].mxu0 }
0x2463   : > { %v5723_v17 = vpop.f32.mrb[38].mxu0 }
0x2464   : > { %v4130_v8 = vpop.f32.mrb[39].mxu0 }
0x246b   : > { %v5730_v3 = vpop.f32.mrb[40].mxu0 }
0x246c   : > { %v4231_v26 = vmul.f32 0.25, %v5730_v3  ;;  %v4221_v7 = vpop.f32.mrb[41].mxu0 }
0x246d   : > { %v4230_v10 = vmul.f32 0.25, %v4221_v7 }
0x246e   : > { %v4233_v25 = vadd.f32 %v4231_v26, %v6701_v27 }
0x246f   : > { %v4232_v18 = vadd.f32 %v4230_v10, %v6698_v23 }
0x2470   : > { %v4237_v11 = vsel %vm760_vm1, %v4233_v25, -inf }
0x2471   : > { %4238 = vmax.xlane.f32.xlu1 %v4237_v11  ;;  %v4234_v52 = vsel %vm760_vm1, %v4232_v18, -inf }
0x2472   : > { %4235 = vmax.xlane.f32.xlu0 %v4234_v52 }
0x2482   : > { %4345 = vrot.lane.b32.xlu1 %v3926_v60, %s7880_s23 }
0x2486   : > { %4347 = vrot.lane.b32.xlu1 %v5709_v57, %s7880_s23 }
0x248a   : > { %4353 = vrot.lane.b32.xlu1 %v4130_v8, %s7877_s22 }
0x24fe   : > { %v4239_v13 = vpop.xlane.xlu1 %4238 }
0x24ff   : > { %v4241_v15 = vsub.f32 %v4233_v25, %v4239_v13  ;;  %v4236_v12 = vpop.xlane.xlu0 %4235 }
0x2500   : > { %v4240_v16 = vsub.f32 %v4232_v18, %v4236_v12 }
0x2501   : > { %v4244_v20 = vmul.f32 1.442695, %v4241_v15 }
0x2502   : > { %v4242_v27 = vmul.f32 1.442695, %v4240_v16  ;;  %v4346_v43 = vpop.permute.xlu1 %4345 }
0x2503   : > { %6421 = vpow2.f32 %v4244_v20  ;;  %v4367_v48 = vsel %vm760_vm1, %v7517_v6, %v4346_v43  ;;  %v5214_v6 = vld [vmem:[%s7840_s8 + $0x2] ss:$0 sm:$0xff]  ;;  %v5220_v20 = vld [vmem:[%s7843_s11 + $0x108] sm:$0xff] }
0x2504   : > { %6423 = vpow2.f32 %v4242_v27  ;;  %v5222_v27 = vld [vmem:[%s7843_s11 + $0x118] sm:$0xff] }
0x2506   : > { %v4348_v45 = vpop.permute.xlu1 %4347 }
0x2507   : > { %v4368_v50 = vsel %vm760_vm1, %v7515_v44, %v4348_v45  ;;  %v5217_v45 = vld [vmem:[%s7841_s9 + $0x2] ss:$0 sm:$0xff] }
0x250a   : > { %v4354_v46 = vpop.permute.xlu1 %4353 }
0x250b   : > { %v4369_v51 = vsel %vm1591_vm5, %v4367_v48, %v4354_v46  ;;  %v5218_v46 = vld [vmem:[%s7842_s10 + $0x2] ss:$0 sm:$0xff] }
0x250d   : > { %v6422_v23 = vpop.eup %6421 }
0x250e   : > { %v4249_v63 = vsel %vm760_vm1, %v6422_v23, 0.0  ;;  %v6424_v21 = vpop.eup %6423 }
0x250f   : > { %4250 = vadd.xlane.f32.xlu0 %v4249_v63  ;;  %v4246_v22 = vsel %vm760_vm1, %v6424_v21, 0.0  ;;  %v5219_v63 = vld [vmem:[%s7843_s11 + $0x100] sm:$0xff] }
0x2513   : > { %4247 = vadd.xlane.f32.xlu0 %v4246_v22 }
0x2529   : > { %6277 = vrot.lane.b32.xlu0 %v7473_v59, %s7881_s24  ;;  %v5206_v59 = vld [vmem:[%s7839_s7 + $0x80] sm:$0xff] }
0x252a   : > { %v6079_v5 = vpack.c.bf16 %v5207_v34, %v5206_v59  ;;  %v5229_v59 = vld [vmem:[%s7843_s11 + $0x150] sm:$0xff] }
0x252d   : > { %4355 = vrot.lane.b32.xlu0 %v5723_v17, %s7877_s22 }
0x259c   : > { %v4251_v62 = vpop.xlane.xlu0 %4250 }
0x259d   : > { %6425 = vrcp.f32 %v4251_v62  ;;  %v5224_v62 = vld [vmem:[%s7843_s11 + $0x128] sm:$0xff] }
0x25a0   : > { %v4248_v24 = vpop.xlane.xlu0 %4247 }
0x25a1   : > { %6427 = vrcp.f32 %v4248_v24  ;;  %v5226_v24 = vld [vmem:[%s7843_s11 + $0x138] sm:$0xff] }
0x25a4   : > { %v6278_v28 = vpop.permute.xlu0 %6277 }
0x25a5   : > { %v6280_v58 = vunpack.i.h.bf16 %v6278_v28  ;;  %v6279_v29 = vunpack.i.l.bf16 %v6278_v28  ;;  %v6099_v28 = vpack.c.bf16 %v5226_v24, %v5224_v62  ;;  %v5267_v62 = vld [vmem:[%s7845_s13 + $0x2c8] sm:$0xff] }
0x25a7   : > { %v6075_v54 = vpack.c.bf16 %v6280_v58, %v6279_v29  ;;  %v6426_v30 = vpop.eup %6425  ;;  %v5223_v58 = vld [vmem:[%s7843_s11 + $0x120] sm:$0xff]  ;;  %v5225_v29 = vld [vmem:[%s7843_s11 + $0x130] sm:$0xff] }
0x25a8   : > { %v4255_v33 = vmul.f32 %v6426_v30, %v6422_v23  ;;  %v4356_v14 = vpop.permute.xlu0 %4355  ;;  %v6095_v23 = vpack.c.bf16 %v5222_v27, %v5220_v20  ;;  %v5228_v30 = vld [vmem:[%s7843_s11 + $0x148] sm:$0xff]  ;;  %v5265_v20 = vld [vmem:[%s7845_s13 + $0x2b8] sm:$0xff] }
0x25a9   : > { %6076 = vmatprep.subr.bf16.mxu1 %v6075_v54  ;;  %v4370_v2 = vsel %vm1591_vm5, %v4368_v50, %v4356_v14 }
0x25aa   : > { %6078 = vmatpush3.bf16.msra.mxu1 %v6075_v54  ;;  %6096 = vmatprep.subr.bf16.mxu0 %v6095_v23  ;;  %v6101_v54 = vpack.c.bf16 %v5225_v29, %v5223_v58  ;;  %v5248_v23 = vld [vmem:[%s7845_s13 + $0x230] sm:$0xff]  ;;  %v5251_v58 = vld [vmem:[%s7845_s13 + $0x248] sm:$0xff] }
0x25ab   : > { %v6428_v31 = vpop.eup %6427  ;;  %6080 = vmatprep.subr.bf16.mxu1 %v6079_v5 }
0x25ac   : > { %v4254_v32 = vmul.f32 %v6428_v31, %v6424_v21  ;;  %v5221_v21 = vld [vmem:[%s7843_s11 + $0x110] sm:$0xff]  ;;  %v5230_v31 = vld [vmem:[%s7843_s11 + $0x158] sm:$0xff] }
0x25ad   : > { %v6097_v22 = vpack.c.bf16 %v5221_v21, %v5219_v63  ;;  %v5249_v63 = vld [vmem:[%s7845_s13 + $0x238] sm:$0xff] }
0x25ae   : > { %5735 = vmatprep.mubr.msk.f32.mxu1 %vm760_vm1, %v4254_v32  ;;  %v6103_v32 = vpack.c.bf16 %v5230_v31, %v5228_v30  ;;  %v6125_v21 = vpack.c.bf16 %v5249_v63, %v5248_v23  ;;  %v5269_v30 = vld [vmem:[%s7845_s13 + $0x2d8] sm:$0xff]  ;;  %v6467_v63 = vmov 0.0|0.0  }
0x25af   : > { %5736 = vmatmul.mubr.msk.f32.vlgmr.msra.gmra.mrb[36].mxu1 %vm760_vm1, %v4255_v33  ;;  %6098 = vmatpush1.bf16.msra.mxu0 %v6097_v22  ;;  %v5227_v33 = vld [vmem:[%s7843_s11 + $0x140] sm:$0xff] }
0x25b0   : > { %6082 = vmatpush3.bf16.msra.mxu1 %v6079_v5  ;;  %6100 = vmatprep.subr.bf16.mxu0 %v6099_v28  ;;  %v6105_v34 = vpack.c.bf16 %v5229_v59, %v5227_v33  ;;  %v5234_v5 = vld [vmem:[%s7843_s11 + $0x178] sm:$0xff]  ;;  %v5266_v22 = vld [vmem:[%s7845_s13 + $0x2c0] sm:$0xff] }
0x25b1   : > { %6084 = vmatprep.subr.bf16.mxu1 %v6083_v55  ;;  %v6107_v35 = vpack.c.bf16 %v5234_v5, %v5232_v9  ;;  %v6127_v24 = vpack.c.bf16 %v5267_v62, %v5266_v22  ;;  %v5250_v28 = vld [vmem:[%s7845_s13 + $0x240] sm:$0xff]  ;;  %v5253_v33 = vld [vmem:[%s7845_s13 + $0x258] sm:$0xff]  ;;  %v5271_v9 = vld [vmem:[%s7845_s13 + $0x2e8] sm:$0xff] }
0x25b2   : > { %v6129_v29 = vpack.c.bf16 %v5251_v58, %v5250_v28 }
0x25b3   : > { %6102 = vmatpush1.bf16.msra.mxu0 %v6101_v54  ;;  %v5268_v54 = vld [vmem:[%s7845_s13 + $0x2d0] sm:$0xff] }
0x25b4   : > { %6086 = vmatpush3.bf16.msra.mxu1 %v6083_v55  ;;  %6104 = vmatprep.subr.bf16.mxu0 %v6103_v32  ;;  %v5231_v55 = vld [vmem:[%s7843_s11 + $0x160] sm:$0xff]  ;;  %v6131_v31 = vpack.c.bf16 %v5269_v30, %v5268_v54  ;;  %v5252_v32 = vld [vmem:[%s7845_s13 + $0x250] sm:$0xff] }
0x25b5   : > { %6088 = vmatprep.subr.bf16.mxu1 %v6087_v36  ;;  %v6109_v49 = vpack.c.bf16 %v5233_v4, %v5231_v55  ;;  %v6133_v59 = vpack.c.bf16 %v5253_v33, %v5252_v32  ;;  %v5255_v55 = vld [vmem:[%s7845_s13 + $0x268] sm:$0xff] }
0x25b7   : > { %6106 = vmatpush1.bf16.msra.mxu0 %v6105_v34  ;;  %v5270_v34 = vld [vmem:[%s7845_s13 + $0x2e0] sm:$0xff] }
0x25b8   : > { %6090 = vmatpush3.bf16.msra.mxu1 %v6087_v36  ;;  %6108 = vmatprep.subr.bf16.mxu0 %v6107_v35  ;;  %v6135_v5 = vpack.c.bf16 %v5271_v9, %v5270_v34  ;;  %v5254_v35 = vld [vmem:[%s7845_s13 + $0x260] sm:$0xff] }
0x25b9   : > { %6092 = vmatprep.subr.bf16.mxu1 %v6091_v40  ;;  %v6137_v4 = vpack.c.bf16 %v5255_v55, %v5254_v35 }
0x25bb   : > { %6110 = vmatpush1.bf16.msra.mxu0 %v6109_v49  ;;  %v5272_v49 = vld [vmem:[%s7845_s13 + $0x2f0] sm:$0xff] }
0x25bc   : > { %6094 = vmatpush3.bf16.msra.mxu1 %v6091_v40  ;;  %6143 = vmatprep.subr.bf16.mxu0 %v6467_v63 }
0x2682   : > { %v5737_v41 = vpop.f32.mrb[36].mxu1 }
0x2683   : > { %4363 = vrot.lane.b32.xlu0 %v5737_v41, %s7882_s18  ;;  %v4334_v42 = vpop.f32.mrb[37].mxu1 }
0x2684   : > { %4361 = vrot.lane.b32.xlu1 %v4334_v42, %s7882_s18 }
0x26f5   : > { %v4364_v56 = vpop.permute.xlu0 %4363 }
0x26f6   : > { %v4362_v53 = vpop.permute.xlu1 %4361  ;;  %v4372_v57 = vsel %vm1594_vm6, %v4370_v2, %v4364_v56 }
0x26f7   : > { %v4371_v19 = vsel %vm1594_vm6, %v4369_v51, %v4362_v53 }
0x26f8   : > { %5754 = vmatprep.mubr.msk.f32.mxu1 %vm603_vm0, %v4371_v19  ;;  %v5258_v19 = vld [vmem:[%s7845_s13 + $0x280] sm:$0xff] }
0x26f9   : > { %5755 = vmatmul.mubr.msk.f32.vlgmr.msra.gmra.mrb[38].mxu1 %vm603_vm0, %v4372_v57  ;;  %v5259_v57 = vld [vmem:[%s7845_s13 + $0x288] sm:$0xff] }
0x27cc   : > { %v5756_v60 = vpop.f32.mrb[38].mxu1 }
0x27cd   : > { %v4465_v17 = vadd.f32 %v5756_v60, %v5214_v6  ;;  %v4459_v44 = vpop.f32.mrb[39].mxu1  ;;  %v5242_v60 = vld [vmem:[%s7845_s13 + $0x200] sm:$0xff] }
0x27ce   : > { %v4460_v8 = vadd.f32 %v5214_v6, %v4459_v44  ;;  %v6111_v6 = vpack.c.bf16 %v5259_v57, %v5258_v19 }
0x27cf   : > { %v7606_v3 = vadd.f32 %v4465_v17, %v7393_v1  ;;  %v5243_v17 = vld [vmem:[%s7845_s13 + $0x208] sm:$0xff] }
0x27d0   : > { %v7609_v26 = vadd.f32 %v4460_v8, %v7388_v47  ;;  %v6113_v44 = vpack.c.bf16 %v5243_v17, %v5242_v60  ;;  %6112 = vmatprep.subr.bf16.mxu1 %v6111_v6  ;;  %v5260_v8 = vld [vmem:[%s7845_s13 + $0x290] sm:$0xff] }
0x27d1   : > { %v4475_v7 = vsel %vm603_vm0, %v7606_v3, 0.0 }
0x27d2   : > { %4476 = vadd.xlane.f32.xlu0 %v4475_v7  ;;  %v4472_v10 = vsel %vm603_vm0, %v7609_v26, 0.0  ;;  %6114 = vmatpush3.bf16.msra.mxu1 %v6113_v44  ;;  %v5261_v7 = vld [vmem:[%s7845_s13 + $0x298] sm:$0xff] }
0x27d3   : > { %4473 = vadd.xlane.f32.xlu1 %v4472_v10  ;;  %v6115_v10 = vpack.c.bf16 %v5261_v7, %v5260_v8 }
0x27d5   : > { %6116 = vmatprep.subr.bf16.mxu1 %v6115_v10 }
0x285f   : > { %v4477_v25 = vpop.xlane.xlu0 %4476 }
0x2860   : > { %v4479_v18 = vmul.f32 0.015625, %v4477_v25  ;;  %v4474_v11 = vpop.xlane.xlu1 %4473  ;;  %v5244_v25 = vld [vmem:[%s7845_s13 + $0x210] sm:$0xff] }
0x2861   : > { %v4478_v52 = vmul.f32 0.015625, %v4474_v11 }
0x2862   : > { %v4481_v13 = vsub.f32 %v7606_v3, %v4479_v18  ;;  %v5245_v18 = vld [vmem:[%s7845_s13 + $0x218] sm:$0xff] }
0x2863   : > { %v4480_v1 = vsub.f32 %v7609_v26, %v4478_v52  ;;  %v6117_v11 = vpack.c.bf16 %v5245_v18, %v5244_v25  ;;  %v5262_v52 = vld [vmem:[%s7845_s13 + $0x2a0] sm:$0xff] }
0x2864   : > { %v4483_v12 = vmul.f32 %v4481_v13, %v4481_v13 }
0x2865   : > { %v4482_v15 = vmul.f32 %v4480_v1, %v4480_v1  ;;  %6118 = vmatpush3.bf16.msra.mxu1 %v6117_v11 }
0x2866   : > { %v4487_v16 = vsel %vm603_vm0, %v4483_v12, 0.0 }
0x2867   : > { %v4484_v47 = vsel %vm603_vm0, %v4482_v15, 0.0  ;;  %v5246_v15 = vld [vmem:[%s7845_s13 + $0x220] sm:$0xff] }
0x2868   : > { %4485 = vadd.xlane.f32.xlu0 %v4484_v47  ;;  %v5247_v47 = vld [vmem:[%s7845_s13 + $0x228] sm:$0xff] }
0x2869   : > { %v6121_v12 = vpack.c.bf16 %v5247_v47, %v5246_v15 }
0x286c   : > { %4488 = vadd.xlane.f32.xlu0 %v4487_v16  ;;  %v5264_v16 = vld [vmem:[%s7845_s13 + $0x2b0] sm:$0xff] }
0x286d   : > { %v6123_v27 = vpack.c.bf16 %v5265_v20, %v5264_v16 }
0x28f5   : > { %v4486_v36 = vpop.xlane.xlu0 %4485 }
0x28f6   : > { %v4490_v38 = vmul.f32 0.015625, %v4486_v36  ;;  %v5273_v36 = vld [vmem:[%s7845_s13 + $0x2f8] sm:$0xff] }
0x28f8   : > { %v4492_v39 = vadd.f32 1e-05, %v4490_v38  ;;  %v6139_v38 = vpack.c.bf16 %v5273_v36, %v5272_v49  ;;  %v4862_v49 = vld [vmem:[%s7849_s17] sm:$0xff] }
0x28f9   : > { %v4489_v40 = vpop.xlane.xlu0 %4488 }
0x28fa   : > { %6429 = vrsqrt.f32 %v4492_v39  ;;  %v4491_v41 = vmul.f32 0.015625, %v4489_v40  ;;  %v5256_v39 = vld [vmem:[%s7845_s13 + $0x270] sm:$0xff]  ;;  %v5257_v40 = vld [vmem:[%s7845_s13 + $0x278] sm:$0xff] }
0x28fc   : > { %v4493_v42 = vadd.f32 1e-05, %v4491_v41  ;;  %v6141_v41 = vpack.c.bf16 %v5257_v40, %v5256_v39  ;;  %v4865_v39 = vld [vmem:[%s7849_s17 + $0x18] sm:$0xff] }
0x28fe   : > { %6431 = vrsqrt.f32 %v4493_v42  ;;  %v5235_v42 = vld [vmem:[%s7844_s12 + $0x2] ss:$4 sm:$0x3] }
0x2904   : > { %v6430_v43 = vpop.eup %6429 }
0x2905   : > { %v4496_v14 = vmul.f32 %v6430_v43, %v4480_v1  ;;  %v4533_v43 = vrot.slane %v5235_v42, %v6654_v61 }
0x2907   : > { %v4502_v48 = vmul.f32 %v5217_v45, %v4496_v14 }
0x2908   : > { %v6432_v56 = vpop.eup %6431 }
0x2909   : > { %v4508_v50 = vadd.f32 %v5218_v46, %v4502_v48  ;;  %v4497_v51 = vmul.f32 %v6432_v56, %v4481_v13  ;;  %v5263_v13 = vld [vmem:[%s7845_s13 + $0x2a8] sm:$0xff] }
0x290a   : > { %v6119_v1 = vpack.c.bf16 %v5263_v13, %v5262_v52 }
0x290b   : > { %5236 = vmatmul.mubr.msk.f32.vlgmr.msra.gmra.mrb[42].mxu0 %vm603_vm0, %v4508_v50  ;;  %v4503_v53 = vmul.f32 %v5217_v45, %v4497_v51  ;;  %v4537_v45 = vrot.slane %v5235_v42, %v6660_v0  ;;  %v4867_v42 = vld [vmem:[%s7849_s17 + $0x28] sm:$0xff] }
0x290c   : > { %4616 = vmatprep.mubr.f32.mxu0 %v6459_v37  ;;  %6120 = vmatprep.subr.bf16.mxu1 %v6119_v1 }
0x290d   : > { %v4509_v2 = vadd.f32 %v5218_v46, %v4503_v53  ;;  %6122 = vmatpush3.bf16.msra.mxu1 %v6121_v12 }
0x290e   : > { %6124 = vmatprep.subr.bf16.mxu1 %v6123_v27 }
0x290f   : > { %5237 = vmatmul.mubr.msk.f32.gmra.mrb[44].mxu0 %vm603_vm0, %v4509_v2 }
0x2910   : > { %5761 = vmatprep.mubr.msk.f32.mxu0 %vm6468_vm7, %v6459_v37 }
0x2911   : > { %6126 = vmatpush3.bf16.msra.mxu1 %v6125_v21 }
0x2912   : > { %6128 = vmatprep.subr.bf16.mxu1 %v6127_v24  ;;  %v5274_v24 = vld [vmem:[%s7846_s14 + $0x2] ss:$0 sm:$0xff] }
0x2915   : > { %6130 = vmatpush3.bf16.msra.mxu1 %v6129_v29 }
0x2916   : > { %6132 = vmatprep.subr.bf16.mxu1 %v6131_v31 }
0x2919   : > { %6134 = vmatpush3.bf16.msra.mxu1 %v6133_v59  ;;  %v4770_v59 = vld [vmem:[%s582_s0] sm:$0x1] }
0x291a   : > { %6136 = vmatprep.subr.bf16.mxu1 %v6135_v5 }
0x291d   : > { %6138 = vmatpush3.bf16.msra.mxu1 %v6137_v4 }
0x291e   : > { %6140 = vmatprep.subr.bf16.mxu1 %v6139_v38  ;;  %v4864_v38 = vld [vmem:[%s7849_s17 + $0x10] sm:$0xff] }
0x291f   : > { %v6150_v40 = vpack.c.bf16 %v4865_v39, %v4864_v38 }
0x2921   : > { %6142 = vmatpush3.bf16.msra.mxu1 %v6141_v41  ;;  %v4866_v41 = vld [vmem:[%s7849_s17 + $0x20] sm:$0xff] }
0x29de   : > { %v4612_v14 = vpop.f32.mrb[42].mxu0 }
0x29df   : > { %v4613_v46 = vadd.f32 %v4612_v14, %v4533_v43  ;;  %v4614_v48 = vpop.f32.mrb[43].mxu0  ;;  %v4869_v14 = vld [vmem:[%s7849_s17 + $0x38] sm:$0xff] }
0x29e0   : > { %v4615_v56 = vadd.f32 %v4614_v48, %v4537_v45 }
0x29e1   : > { %v5238_v50 = vmul.f32 -1.702, %v4613_v46 }
0x29e2   : > { %v5239_v51 = vmul.f32 -1.702, %v4615_v56  ;;  %v4618_v53 = vpop.f32.mrb[44].mxu0 }
0x29e3   : > { %v4631_v2 = vmul.f32 1.442695, %v5238_v50  ;;  %v4619_v19 = vadd.f32 %v4618_v53, %v4533_v43  ;;  %v4620_v57 = vpop.f32.mrb[45].mxu0  ;;  %v6153_v43 = vpack.c.bf16 %v4867_v42, %v4866_v41  ;;  %v4844_v53 = vld [vmem:[%s7847_s15] sm:$0x1] }
0x29e4   : > { %v4633_v6 = vmul.f32 1.442695, %v5239_v51  ;;  %v4621_v60 = vadd.f32 %v4620_v57, %v4537_v45  ;;  %v4868_v45 = vld [vmem:[%s7849_s17 + $0x30] sm:$0xff] }
0x29e5   : > { %6433 = vpow2.f32 %v4631_v2  ;;  %v5240_v17 = vmul.f32 -1.702, %v4619_v19 }
0x29e6   : > { %6435 = vpow2.f32 %v4633_v6  ;;  %v5241_v44 = vmul.f32 -1.702, %v4621_v60 }
0x29e7   : > { %v4635_v8 = vmul.f32 1.442695, %v5240_v17 }
0x29e8   : > { %v4637_v61 = vmul.f32 1.442695, %v5241_v44 }
0x29e9   : > { %6437 = vpow2.f32 %v4635_v8 }
0x29ea   : > { %6439 = vpow2.f32 %v4637_v61 }
0x29ef   : > { %v6434_v0 = vpop.eup %6433 }
0x29f0   : > { %v6436_v7 = vpop.eup %6435  ;;  %v4639_v10 = vadd.f32 1.0, %v6434_v0 }
0x29f1   : > { %v4640_v25 = vadd.f32 1.0, %v6436_v7 }
0x29f2   : > { %6441 = vrcp.f32 %v4639_v10 }
0x29f3   : > { %v6438_v18 = vpop.eup %6437  ;;  %6443 = vrcp.f32 %v4640_v25 }
0x29f4   : > { %v6440_v11 = vpop.eup %6439  ;;  %v4641_v52 = vadd.f32 1.0, %v6438_v18 }
0x29f5   : > { %v4642_v13 = vadd.f32 1.0, %v6440_v11 }
0x29f6   : > { %6445 = vrcp.f32 %v4641_v52 }
0x29f7   : > { %6447 = vrcp.f32 %v4642_v13 }
0x29fc   : > { %v6442_v1 = vpop.eup %6441 }
0x29fd   : > { %v6444_v15 = vpop.eup %6443  ;;  %v4651_v12 = vmul.f32 %v6442_v1, %v4613_v46  ;;  %v6156_v46 = vpack.c.bf16 %v4869_v14, %v4868_v45 }
0x29fe   : > { %v4652_v47 = vmul.f32 %v6444_v15, %v4615_v56 }
0x2a00   : > { %v6446_v16 = vpop.eup %6445  ;;  %4757 = vmatprep.mubr.f32.mxu1 %v4652_v47 }
0x2a01   : > { %v6448_v20 = vpop.eup %6447  ;;  %4758 = vmatmul.mubr.f32.vlgmr.msra.gmra.mrb[40].mxu1 %v4651_v12  ;;  %v4653_v23 = vmul.f32 %v6446_v16, %v4619_v19  ;;  %v4845_v19 = vld [vmem:[%s7885_s21] sm:$0x1] }
0x2a02   : > { %v4654_v27 = vmul.f32 %v6448_v20, %v4621_v60 }
0x2a04   : > { %4762 = vmatprep.mubr.f32.mxu1 %v4654_v27 }
0x2a05   : > { %4763 = vmatmul.mubr.f32.gmra.mrb[42].mxu1 %v4653_v23 }
0x2ad4   : > { %v5514_v21 = vpop.f32.mrb[40].mxu1 }
0x2ad5   : > { %v5515_v22 = vpop.f32.mrb[41].mxu1 }
0x2ad6   : > { %v5516_v62 = vadd.f32 %v5515_v22, %v5514_v21 }
0x2ad8   : > { %v5517_v28 = vpop.f32.mrb[42].mxu1  ;;  %v4760_v29 = vadd.f32 %v5516_v62, %v5274_v24 }
0x2ad9   : > { %v5518_v58 = vpop.f32.mrb[43].mxu1 }
0x2ada   : > { %v5519_v54 = vadd.f32 %v5518_v58, %v5517_v28  ;;  %v4768_v31 = vadd.f32 %v4760_v29, %v7609_v26 }
0x2adc   : > { %v4765_v30 = vadd.f32 %v5519_v54, %v5274_v24 }
0x2ade   : > { %v4769_v32 = vadd.f32 %v4765_v30, %v7606_v3 }
0x2ae0   : > { %v6144_v33 = vpack.c.bf16 %v4769_v32, %v4768_v31 }
0x2ae2   : > { %6145 = vmatpush3.bf16.msra.mxu0 %v6144_v33 }
0x2ae3   : > { %6146 = vmatprep.subr.bf16.mxu0 %v6467_v63 }
0x2ae5   : > { %5762 = vmatmul.mubr.msk.f32.vlgmr.msra.gmra.mrb[46].mxu0 %vm760_vm1, %v4770_v59 }
0x2ae6   : > { %5780 = vmatprep.mubr.msk.f32.mxu0 %vm6468_vm7, %v6459_v37  ;;  %v4863_v37 = vld [vmem:[%s7849_s17 + $0x8] sm:$0xff] }
0x2ae7   : > { %v6147_v36 = vpack.c.bf16 %v4863_v37, %v4862_v49 }
0x2ae9   : > { %6148 = vmatpush3.bf16.msra.mxu0 %v6147_v36 }
0x2aea   : > { %6149 = vmatprep.subr.bf16.mxu0 %v6467_v63 }
0x2aed   : > { %6151 = vmatpush3.bf16.msra.mxu0 %v6150_v40 }
0x2aee   : > { %6152 = vmatprep.subr.bf16.mxu0 %v6467_v63 }
0x2af1   : > { %6154 = vmatpush3.bf16.msra.mxu0 %v6153_v43 }
0x2af2   : > { %6155 = vmatprep.subr.bf16.mxu0 %v6467_v63 }
0x2af5   : > { %6157 = vmatpush3.bf16.msra.mxu0 %v6156_v46 }
0x2bb8   : > { %v4840_v34 = vpop.f32.mrb[46].mxu0 }
0x2bb9   : > { %v4847_v9 = vsel %vm4846_vm8, %v4840_v34, 0.0  ;;  %v5763_v26 = vpop.f32.mrb[47].mxu0 }
0x2bba   : > { %4848 = vadd.xlane.f32.xlu1 %v4847_v9 }
0x2c47   : > { %v4849_v3 = vpop.xlane.xlu1 %4848 }
0x2c48   : > { %v4850_v5 = vmul.f32 0.015625, %v4849_v3 }
0x2c4a   : > { %v4851_v35 = vsub.f32 %v4840_v34, %v4850_v5 }
0x2c4c   : > { %v4852_v55 = vmul.f32 %v4851_v35, %v4851_v35 }
0x2c4e   : > { %v4853_v4 = vsel %vm4846_vm8, %v4852_v55, 0.0 }
0x2c4f   : > { %4854 = vadd.xlane.f32.xlu0 %v4853_v4 }
0x2cdc   : > { %v4855_v48 = vpop.xlane.xlu0 %4854 }
0x2cdd   : > { %v4856_v56 = vmul.f32 0.015625, %v4855_v48 }
0x2cdf   : > { %v4857_v50 = vadd.f32 1e-05, %v4856_v56 }
0x2ce1   : > { %6449 = vrsqrt.f32 %v4857_v50 }
0x2ceb   : > { %v6450_v51 = vpop.eup %6449 }
0x2cec   : > { %v4859_v2 = vmul.f32 %v6450_v51, %v4851_v35 }
0x2cee   : > { %v4860_v57 = vmul.f32 %v4859_v2, %v4844_v53 }
0x2cf0   : > { %v4861_v6 = vadd.f32 %v4860_v57, %v4845_v19 }
0x2cf2   : > { %5781 = vmatmul.mubr.msk.f32.vlgmr.msra.gmra.mrb[48].mxu0 %vm603_vm0, %v4861_v6 }
0x2dc5   : > { %v4939_v60 = vpop.f32.mrb[48].mxu0 }
0x2dc6   : > { %4943 = vst.msk [vmem:[%s585_s30] sm:$0x1] %vm4846_vm8, %v4939_v60  ;;  %v5782_v17 = vpop.f32.mrb[49].mxu0 }
0x2dc7 PF: > { %s7887_s20 = sld [smem:[#allocation2_spill]] }
0x2dcd   : > { %s28_s27 = sadd.s32 1, %s7887_s20  }
0x2dce   : > { %p25_p4 = scmp.ge.s32.totalorder %s28_s27, 6  }
0x2dd0   :  { %27 = sbr.rel (!%p25_p4) target bundleno = 6 (0x6), region = 137 }

// kernel: _lambda_.4
= control target key start
LH: loop header
LB: loop body
LE: loop exit
PB: predicated region body
PF: predicated region fallthrough
CT: control target
= control target key end

     0   :  { %s9763_s0 = inlined_call_operand.vmem [shape: f32[2,16,192], index: 0, kind: input, shape index: {}]   ;;  %s9764_s1 = inlined_call_operand.vmem [shape: f32[192,64], index: 1, kind: input, shape index: {}]   ;;  %s9765_s2 = inlined_call_operand.vmem [shape: f32[1,64], index: 2, kind: input, shape index: {}]   ;;  %s9766_s3 = inlined_call_operand.vmem [shape: f32[17,64], index: 3, kind: input, shape index: {}]   ;;  %s9767_s4 = inlined_call_operand.vmem [shape: f32[1,64], index: 4, kind: input, shape index: {}]   ;;  %s9768_s5 = inlined_call_operand.vmem [shape: f32[1,64], index: 5, kind: input, shape index: {}]   ;;  %s9769_s6 = inlined_call_operand.vmem [shape: f32[3,64], index: 6, kind: input, shape index: {}]   ;;  %s9770_s7 = inlined_call_operand.vmem [shape: f32[3,64], index: 7, kind: input, shape index: {}]   ;;  %s9771_s8 = inlined_call_operand.vmem [shape: f32[3,64,192], index: 8, kind: input, shape index: {}]   ;;  %s9772_s9 = inlined_call_operand.vmem [shape: f32[3,192], index: 9, kind: input, shape index: {}]   ;;  %s9773_s10 = inlined_call_operand.vmem [shape: f32[3,64,64], index: 10, kind: input, shape index: {}]   ;;  %s9774_s11 = inlined_call_operand.vmem [shape: f32[3,64], index: 11, kind: input, shape index: {}]   ;;  %s9775_s12 = inlined_call_operand.vmem [shape: f32[3,64], index: 12, kind: input, shape index: {}]   ;;  %s9776_s13 = inlined_call_operand.vmem [shape: f32[3,64], index: 13, kind: input, shape index: {}]   ;;  %s9777_s14 = inlined_call_operand.vmem [shape: f32[3,64,256], index: 14, kind: input, shape index: {}]   ;;  %s9778_s15 = inlined_call_operand.vmem [shape: f32[3,256], index: 15, kind: input, shape index: {}]   ;;  %s9779_s16 = inlined_call_operand.vmem [shape: f32[3,256,64], index: 16, kind: input, shape index: {}]   ;;  %s9780_s17 = inlined_call_operand.vmem [shape: f32[3,64], index: 17, kind: input, shape index: {}]   ;;  %s9781_s18 = inlined_call_operand.vmem [shape: f32[1,64], index: 18, kind: input, shape index: {}]   ;;  %s9782_s19 = inlined_call_operand.vmem [shape: f32[1,64], index: 19, kind: input, shape index: {}]   ;;  %s9783_s20 = inlined_call_operand.vmem [shape: f32[64,64], index: 20, kind: input, shape index: {}]   ;;  %s9784_s21 = inlined_call_operand.vmem [shape: f32[2,1,64], index: 21, kind: output, shape index: {}]  }
   0x1   :  { %9805 = sst [smem:[#allocation4_spill]] %s9763_s0 }
   0x2   :  { %9806 = sst [smem:[#allocation5_spill]] %s9764_s1 }
   0x3   :  { %9807 = sst [smem:[#allocation6_spill]] %s9765_s2  ;;  %s7828_s2 = smov 0  }
   0x4   :  { %9808 = sst [smem:[#allocation7_spill]] %s9766_s3 }
   0x5   :  { %9809 = sst [smem:[#allocation8_spill]] %s9767_s4 }
   0x6   :  { %9810 = sst [smem:[#allocation9_spill]] %s9768_s5 }
   0x7   :  { %9811 = sst [smem:[#allocation10_spill]] %s9782_s19 }
   0x8   :  { %9812 = sst [smem:[#allocation11_spill]] %s9784_s21 }
   0x9 LB: > { %9813 = sst [smem:[#allocation2_spill]] %s7706_s2  ;;  %s5848_s25 = sadd.s32 4294967295, %s7706_s2   ;;  %s7706_s2 = sphi %s7828_s2, %s31_s2  }
   0xa   : > { %p5852_p0 = scmp.ge.s32.totalorder %s7706_s2, 1  ;;  %p587_p1 = scmp.lt.s32.totalorder %s7706_s2, 3 }
   0xc   : > { %p588_p2 = pnand %p5852_p0, %p587_p1 }
   0xe   : > { %591 = sbr.rel (%p588_p2) target bundleno = 10093 (0x276d), region = 104 }
  0x15   : > { %s9814_s3 = sld [smem:[#allocation5_spill]]  ;;  %p645_p3 = scmp.lt.s32.totalorder %s5848_s25, 1  ;;  %v7708_v3 = vmov 0.0|0.0   ;;  %vm681_vm0 = vcmask 523264   ;;  %vm766_vm1 = vcmask 1040384   ;;  %vm788_vm2 = vcmask 516096  }
  0x16   : > { %6957 = vmatprep.subr.bf16.mxu0 %v7708_v3  ;;  %s9816_s29 = sld [smem:[#allocation4_spill]]  ;;  %s9817_s1 = sld [smem:[#allocation6_spill]]  ;;  %vm7711_vm3 = vmmov 0   ;;  %vm1025_vm4 = vcmask 130048   ;;  %vm1121_vm6 = vcmask 138240   ;;  %vm1128_vm7 = vcmask 131072  }
  0x17   : > { %s9835_s25 = smov (!%p645_p3, %s5848_s25), 1  ;;  %s9818_s27 = sld [smem:[#allocation7_spill]]  ;;  %vm8086_vm5 = vmpackc.low %vm1025_vm4, %vm1025_vm4  ;;  %vm2006_vm8 = vcmask 261120   ;;  %vm2010_vm9 = vcmask 392192  }
  0x18   : > { %9815 = sst [smem:[#allocation3_spill]] %s9835_s25  ;;  %s6193_s26 = sshll.u32 %s9835_s25, 5 }
  0x19   : > { %s9819_s22 = sld [smem:[#allocation8_spill]]  ;;  %s9820_s24 = sld [smem:[#allocation9_spill]] }
  0x1a   : > { %s9795_s30 = smov 64   ;;  %s9797_s5 = smov 48  }
  0x1b   : > { %v657_v0 = vld [vmem:[%s9814_s3] sm:$0xff]  ;;  %v658_v1 = vld [vmem:[%s9814_s3 + $0x8] sm:$0xff]  ;;  %v659_v2 = vld [vmem:[%s9814_s3 + $0x10] sm:$0xff]  ;;  %s9799_s23 = smov 32   ;;  %s9826_s4 = smov 112  }
  0x1c   : > { %v6958_v4 = vpack.c.bf16 %v658_v1, %v657_v0  ;;  %v660_v5 = vld [vmem:[%s9814_s3 + $0x18] sm:$0xff]  ;;  %v661_v7 = vld [vmem:[%s9814_s3 + $0x20] sm:$0xff]  ;;  %v662_v8 = vld [vmem:[%s9814_s3 + $0x28] sm:$0xff]  ;;  %s7862_s0 = scalar_lea.vmem %s9816_s29, %s6193_s26  ;;  %s9787_s26 = smov 80  }
  0x1d   : > { %v6961_v6 = vpack.c.bf16 %v660_v5, %v659_v2  ;;  %v6964_v9 = vpack.c.bf16 %v662_v8, %v661_v7  ;;  %v663_v10 = vld [vmem:[%s9814_s3 + $0x30] sm:$0xff]  ;;  %v664_v11 = vld [vmem:[%s9814_s3 + $0x38] sm:$0xff]  ;;  %v654_v12 = vld [vmem:[%s7862_s0 + $0x8] sm:$0xff]  ;;  %s9824_s29 = smov 64  }
  0x1e   : > { %6959 = vmatpush1.bf16.msra.mxu0 %v6958_v4  ;;  %5855 = vmatprep.mubr.msk.f32.mxu0 %vm681_vm0, %v654_v12  ;;  %v6967_v13 = vpack.c.bf16 %v664_v11, %v663_v10  ;;  %v665_v14 = vld [vmem:[%s9814_s3 + $0x40] sm:$0xff]  ;;  %v666_v15 = vld [vmem:[%s9814_s3 + $0x48] sm:$0xff]  ;;  %v667_v17 = vld [vmem:[%s9814_s3 + $0x50] sm:$0xff] }
  0x1f   : > { %6960 = vmatprep.subr.bf16.mxu0 %v7708_v3  ;;  %v6970_v16 = vpack.c.bf16 %v666_v15, %v665_v14  ;;  %v668_v18 = vld [vmem:[%s9814_s3 + $0x58] sm:$0xff]  ;;  %v669_v20 = vld [vmem:[%s9814_s3 + $0x60] sm:$0xff]  ;;  %v670_v21 = vld [vmem:[%s9814_s3 + $0x68] sm:$0xff] }
  0x20   : > { %v6973_v19 = vpack.c.bf16 %v668_v18, %v667_v17  ;;  %v6976_v22 = vpack.c.bf16 %v670_v21, %v669_v20  ;;  %v671_v23 = vld [vmem:[%s9814_s3 + $0x70] sm:$0xff]  ;;  %v672_v24 = vld [vmem:[%s9814_s3 + $0x78] sm:$0xff]  ;;  %v673_v26 = vld [vmem:[%s9814_s3 + $0x80] sm:$0xff] }
  0x21   : > { %v6979_v25 = vpack.c.bf16 %v672_v24, %v671_v23  ;;  %v674_v27 = vld [vmem:[%s9814_s3 + $0x88] sm:$0xff]  ;;  %v675_v29 = vld [vmem:[%s9814_s3 + $0x90] sm:$0xff]  ;;  %v676_v30 = vld [vmem:[%s9814_s3 + $0x98] sm:$0xff] }
  0x22   : > { %6962 = vmatpush1.bf16.msra.mxu0 %v6961_v6  ;;  %v6982_v28 = vpack.c.bf16 %v674_v27, %v673_v26  ;;  %v6985_v31 = vpack.c.bf16 %v676_v30, %v675_v29  ;;  %v677_v32 = vld [vmem:[%s9814_s3 + $0xa0] sm:$0xff]  ;;  %v678_v33 = vld [vmem:[%s9814_s3 + $0xa8] sm:$0xff]  ;;  %v679_v35 = vld [vmem:[%s9814_s3 + $0xb0] sm:$0xff] }
  0x23   : > { %6963 = vmatprep.subr.bf16.mxu0 %v7708_v3  ;;  %v6988_v34 = vpack.c.bf16 %v678_v33, %v677_v32  ;;  %v680_v36 = vld [vmem:[%s9814_s3 + $0xb8] sm:$0xff]  ;;  %v653_v38 = vld [vmem:[%s7862_s0] sm:$0xff]  ;;  %v655_v40 = vld [vmem:[%s7862_s0 + $0x10] sm:$0xff]  ;;  %s9830_s3 = sld [smem:[#allocation10_spill]] }
  0x24   : > { %v6991_v37 = vpack.c.bf16 %v680_v36, %v679_v35  ;;  %v656_v39 = vld [vmem:[%s7862_s0 + $0x18] sm:$0xff]  ;;  %v763_v42 = vld [vmem:[%s9817_s1] sm:$0x1]  ;;  %v776_v49 = vld [vmem:[%s9818_s27 + $0x10] sm:$0x1]  ;;  %s9791_s1 = smov 16  }
  0x25   : > { %v774_v45 = vld [vmem:[%s9818_s27] sm:$0xff]  ;;  %v775_v52 = vld [vmem:[%s9818_s27 + $0x8] sm:$0xff]  ;;  %s9825_s0 = smov 32   ;;  %s9831_s27 = sld [smem:[#allocation3_spill]] }
  0x26   : > { %6965 = vmatpush1.bf16.msra.mxu0 %v6964_v9  ;;  %v5857_v21 = vld [vmem:[%s9819_s22] ss:$0 sm:$0xff]  ;;  %s9793_s22 = smov 112  }
  0x27   : > { %6966 = vmatprep.subr.bf16.mxu0 %v7708_v3  ;;  %v5858_v23 = vld [vmem:[%s9820_s24] ss:$0 sm:$0xff]  ;;  %s9789_s24 = smov 96  }
  0x2a   : > { %6968 = vmatpush1.bf16.msra.mxu0 %v6967_v13 }
  0x2b   : > { %6969 = vmatprep.subr.bf16.mxu0 %v7708_v3 }
  0x2e   : > { %6971 = vmatpush1.bf16.msra.mxu0 %v6970_v16 }
  0x2f   : > { %6972 = vmatprep.subr.bf16.mxu0 %v7708_v3 }
  0x32   : > { %6974 = vmatpush1.bf16.msra.mxu0 %v6973_v19 }
  0x33   : > { %6975 = vmatprep.subr.bf16.mxu0 %v7708_v3 }
  0x36   : > { %6977 = vmatpush1.bf16.msra.mxu0 %v6976_v22 }
  0x37   : > { %6978 = vmatprep.subr.bf16.mxu0 %v7708_v3 }
  0x3a   : > { %6980 = vmatpush1.bf16.msra.mxu0 %v6979_v25 }
  0x3b   : > { %6981 = vmatprep.subr.bf16.mxu0 %v7708_v3 }
  0x3e   : > { %6983 = vmatpush1.bf16.msra.mxu0 %v6982_v28 }
  0x3f   : > { %6984 = vmatprep.subr.bf16.mxu0 %v7708_v3 }
  0x42   : > { %6986 = vmatpush1.bf16.msra.mxu0 %v6985_v31 }
  0x43   : > { %6987 = vmatprep.subr.bf16.mxu0 %v7708_v3 }
  0x46   : > { %6989 = vmatpush1.bf16.msra.mxu0 %v6988_v34 }
  0x47   : > { %6990 = vmatprep.subr.bf16.mxu0 %v7708_v3 }
  0x4a   : > { %6992 = vmatpush1.bf16.msra.mxu0 %v6991_v37 }
  0x4b   : > { %7027 = vmatprep.subr.bf16.mxu0 %v7708_v3 }
  0x4d   : > { %753 = vmatmul.mubr.f32.vlgmr.msra.gmra.mrb[0].mxu0 %v653_v38 }
  0x4e   : > { %5856 = vmatprep.mubr.msk.f32.mxu0 %vm681_vm0, %v656_v39 }
  0x51   : > { %758 = vmatmul.mubr.f32.gmra.mrb[2].mxu0 %v655_v40 }
 0x120   : > { %v754_v41 = vpop.f32.mrb[0].mxu0 }
 0x121   : > { %v767_v43 = vrot.slane %v754_v41, 7  ;;  %v756_v44 = vpop.f32.mrb[1].mxu0 }
 0x123   : > { %v773_v46 = vsel %vm766_vm1, %v763_v42, %v767_v43 }
 0x124   : > { %v759_v47 = vpop.f32.mrb[2].mxu0  ;;  %v777_v48 = vadd.f32 %v774_v45, %v773_v46 }
 0x125   : > { %v768_v50 = vrot.slane %v759_v47, 7  ;;  %v761_v51 = vpop.f32.mrb[3].mxu0 }
 0x126   : > { %v782_v53 = vsel %vm681_vm0, %v777_v48, 0.0 }
 0x127   : > { %783 = vadd.xlane.f32.xlu0 %v782_v53  ;;  %v779_v54 = vadd.f32 %v776_v49, %v768_v50  ;;  %v769_v55 = vsel %vm766_vm1, %v767_v43, %v768_v50  ;;  %v899_v53 = vld [vmem:[%s9771_s8 + $0x18] sm:$0xff] }
 0x128   : > { %v778_v56 = vadd.f32 %v775_v52, %v769_v55  ;;  %v897_v52 = vld [vmem:[%s9771_s8 + $0x8] sm:$0xff]  ;;  %v896_v55 = vld [vmem:[%s9771_s8] sm:$0xff] }
 0x129   : > { %v789_v57 = vsel %vm788_vm2, %v779_v54, 0.0 }
 0x12a   : > { %790 = vadd.xlane.f32.xlu1 %v789_v57  ;;  %v785_v58 = vsel %vm681_vm0, %v778_v56, 0.0 }
 0x12b   : > { %786 = vadd.xlane.f32.xlu0 %v785_v58  ;;  %v901_v58 = vld [vmem:[%s9771_s8 + $0x28] sm:$0xff] }
 0x1b4   : > { %v784_v59 = vpop.xlane.xlu0 %783 }
 0x1b5   : > { %v793_v60 = vmul.f32 0.015625, %v784_v59  ;;  %v903_v59 = vld [vmem:[%s9771_s8 + $0x38] sm:$0xff] }
 0x1b7   : > { %v796_v61 = vsub.f32 %v777_v48, %v793_v60  ;;  %v791_v62 = vpop.xlane.xlu1 %790  ;;  %v6997_v60 = vpack.c.bf16 %v903_v59, %v901_v58 }
 0x1b8   : > { %v795_v63 = vmul.f32 0.015625, %v791_v62  ;;  %v787_v0 = vpop.xlane.xlu0 %786  ;;  %v902_v62 = vld [vmem:[%s9771_s8 + $0x30] sm:$0xff] }
 0x1b9   : > { %v794_v1 = vmul.f32 0.015625, %v787_v0  ;;  %v799_v2 = vmul.f32 %v796_v61, %v796_v61  ;;  %v905_v0 = vld [vmem:[%s9771_s8 + $0x48] sm:$0xff] }
 0x1ba   : > { %v798_v4 = vsub.f32 %v779_v54, %v795_v63  ;;  %v6993_v54 = vpack.c.bf16 %v899_v53, %v897_v52 }
 0x1bb   : > { %v797_v5 = vsub.f32 %v778_v56, %v794_v1  ;;  %v802_v6 = vsel %vm681_vm0, %v799_v2, 0.0  ;;  %v898_v56 = vld [vmem:[%s9771_s8 + $0x10] sm:$0xff]  ;;  %v907_v1 = vld [vmem:[%s9771_s8 + $0x58] sm:$0xff]  ;;  %v904_v2 = vld [vmem:[%s9771_s8 + $0x40] sm:$0xff] }
 0x1bc   : > { %803 = vadd.xlane.f32.xlu1 %v802_v6  ;;  %v801_v7 = vmul.f32 %v798_v4, %v798_v4  ;;  %v6995_v57 = vpack.c.bf16 %v898_v56, %v896_v55  ;;  %6994 = vmatprep.subr.bf16.mxu1 %v6993_v54  ;;  %v909_v6 = vld [vmem:[%s9771_s8 + $0x68] sm:$0xff] }
 0x1bd   : > { %v800_v8 = vmul.f32 %v797_v5, %v797_v5 }
 0x1be   : > { %v808_v9 = vsel %vm788_vm2, %v801_v7, 0.0  ;;  %6996 = vmatpush1.bf16.msra.mxu1 %v6995_v57  ;;  %v911_v7 = vld [vmem:[%s9771_s8 + $0x78] sm:$0xff] }
 0x1bf   : > { %v805_v10 = vsel %vm681_vm0, %v800_v8, 0.0  ;;  %6998 = vmatprep.subr.bf16.mxu1 %v6997_v60  ;;  %v7709_v8 = vmov 0.0  }
 0x1c0   : > { %809 = vadd.xlane.f32.xlu1 %v808_v9  ;;  %806 = vadd.xlane.f32.xlu0 %v805_v10  ;;  %v7005_v10 = vpack.c.bf16 %v911_v7, %v909_v6 }
 0x1c1   : > { %997 = vmatprep.mubr.f32.mxu1 %v7709_v8  ;;  %6584 = vmatprep.mubr.msk.f32.mxu0 %vm7711_vm3, %v7709_v8 }
 0x249   : > { %v804_v11 = vpop.xlane.xlu1 %803 }
 0x24a   : > { %v811_v12 = vmul.f32 0.015625, %v804_v11  ;;  %v908_v11 = vld [vmem:[%s9771_s8 + $0x60] sm:$0xff] }
 0x24c   : > { %v814_v13 = vadd.f32 1e-05, %v811_v12  ;;  %v910_v12 = vld [vmem:[%s9771_s8 + $0x70] sm:$0xff] }
 0x24d   : > { %v810_v14 = vpop.xlane.xlu1 %809  ;;  %v807_v15 = vpop.xlane.xlu0 %806 }
 0x24e   : > { %7440 = vrsqrt.f32 %v814_v13  ;;  %v813_v16 = vmul.f32 0.015625, %v810_v14  ;;  %v812_v17 = vmul.f32 0.015625, %v807_v15  ;;  %v7007_v13 = vpack.c.bf16 %v910_v12, %v908_v11 }
 0x250   : > { %v816_v18 = vadd.f32 1e-05, %v813_v16  ;;  %v815_v19 = vadd.f32 1e-05, %v812_v17 }
 0x252   : > { %7442 = vrsqrt.f32 %v816_v18 }
 0x253   : > { %7444 = vrsqrt.f32 %v815_v19 }
 0x258   : > { %v7441_v20 = vpop.eup %7440 }
 0x259   : > { %v820_v22 = vmul.f32 %v7441_v20, %v796_v61  ;;  %v900_v61 = vld [vmem:[%s9771_s8 + $0x20] sm:$0xff] }
 0x25a   : > { %v6999_v63 = vpack.c.bf16 %v902_v62, %v900_v61 }
 0x25b   : > { %v829_v24 = vmul.f32 %v5857_v21, %v820_v22 }
 0x25c   : > { %v7443_v25 = vpop.eup %7442  ;;  %7000 = vmatpush1.bf16.msra.mxu1 %v6999_v63 }
 0x25d   : > { %v7445_v26 = vpop.eup %7444  ;;  %v7961_v27 = vadd.f32 %v5858_v23, %v829_v24  ;;  %v822_v28 = vmul.f32 %v7443_v25, %v798_v4  ;;  %v7001_v4 = vpack.c.bf16 %v907_v1, %v905_v0  ;;  %v5859_v24 = vld [vmem:[%s9769_s6] ss:$0 sm:$0xff] }
 0x25e   : > { %v821_v29 = vmul.f32 %v7445_v26, %v797_v5  ;;  %v906_v5 = vld [vmem:[%s9771_s8 + $0x50] sm:$0xff]  ;;  %v5860_v26 = vld [vmem:[%s9770_s7] ss:$0 sm:$0xff] }
 0x25f   : > { %v843_v30 = vsel %vm681_vm0, %v7961_v27, 0.0  ;;  %v831_v31 = vmul.f32 %v5857_v21, %v822_v28  ;;  %v7003_v9 = vpack.c.bf16 %v906_v5, %v904_v2  ;;  %7002 = vmatprep.subr.bf16.mxu1 %v7001_v4 }
 0x260   : > { %844 = vadd.xlane.f32.xlu0 %v843_v30  ;;  %v830_v32 = vmul.f32 %v5857_v21, %v821_v29 }
 0x261   : > { %v7965_v33 = vadd.f32 %v5858_v23, %v831_v31  ;;  %7004 = vmatpush1.bf16.msra.mxu1 %v7003_v9 }
 0x262   : > { %v7967_v34 = vadd.f32 %v5858_v23, %v830_v32  ;;  %7006 = vmatprep.subr.bf16.mxu1 %v7005_v10 }
 0x263   : > { %v849_v35 = vsel %vm788_vm2, %v7965_v33, 0.0 }
 0x264   : > { %850 = vadd.xlane.f32.xlu0 %v849_v35  ;;  %v846_v36 = vsel %vm681_vm0, %v7967_v34, 0.0 }
 0x265   : > { %847 = vadd.xlane.f32.xlu1 %v846_v36  ;;  %7008 = vmatpush1.bf16.msra.mxu1 %v7007_v13 }
 0x266   : > { %7009 = vmatprep.subr.bf16.mxu1 %v7708_v3 }
 0x2ed   : > { %v845_v37 = vpop.xlane.xlu0 %844 }
 0x2ee   : > { %v852_v38 = vmul.f32 0.015625, %v845_v37 }
 0x2f0   : > { %v7974_v39 = vsub.f32 %v7961_v27, %v852_v38 }
 0x2f1   : > { %v851_v40 = vpop.xlane.xlu0 %850 }
 0x2f2   : > { %v848_v41 = vpop.xlane.xlu1 %847  ;;  %v854_v42 = vmul.f32 0.015625, %v851_v40  ;;  %v858_v43 = vmul.f32 %v7974_v39, %v7974_v39  ;;  %v914_v40 = vlaneseq }
 0x2f3   : > { %v853_v44 = vmul.f32 0.015625, %v848_v41 }
 0x2f4   : > { %v7979_v45 = vsub.f32 %v7965_v33, %v854_v42  ;;  %v861_v46 = vsel %vm681_vm0, %v858_v43, 0.0  ;;  %v915_v41 = vshrl.u32 %v914_v40, 7  ;;  %v912_v43 = vld [vmem:[%s9772_s9] ss:$4 sm:$0x3] }
 0x2f5   : > { %v7983_v47 = vsub.f32 %v7967_v34, %v853_v44  ;;  %862 = vadd.xlane.f32.xlu1 %v861_v46 }
 0x2f6   : > { %v860_v48 = vmul.f32 %v7979_v45, %v7979_v45  ;;  %v8055_v42 = vsub.s32 0, %v915_v41  ;;  %v8060_v44 = vsub.s32 1, %v915_v41 }
 0x2f7   : > { %v859_v49 = vmul.f32 %v7983_v47, %v7983_v47 }
 0x2f8   : > { %v867_v50 = vsel %vm788_vm2, %v860_v48, 0.0  ;;  %v921_v48 = vrot.slane %v912_v43, %v8060_v44 }
 0x2f9   : > { %v864_v51 = vsel %vm681_vm0, %v859_v49, 0.0  ;;  %868 = vadd.xlane.f32.xlu1 %v867_v50 }
 0x2fa   : > { %865 = vadd.xlane.f32.xlu0 %v864_v51 }
 0x382   : > { %v863_v14 = vpop.xlane.xlu1 %862 }
 0x383   : > { %v870_v15 = vmul.f32 0.015625, %v863_v14 }
 0x385   : > { %v873_v16 = vadd.f32 1e-05, %v870_v15 }
 0x386   : > { %v869_v17 = vpop.xlane.xlu1 %868 }
 0x387   : > { %7446 = vrsqrt.f32 %v873_v16  ;;  %v872_v18 = vmul.f32 0.015625, %v869_v17  ;;  %v866_v19 = vpop.xlane.xlu0 %865 }
 0x388   : > { %v871_v20 = vmul.f32 0.015625, %v866_v19 }
 0x389   : > { %v875_v21 = vadd.f32 1e-05, %v872_v18 }
 0x38a   : > { %v874_v22 = vadd.f32 1e-05, %v871_v20 }
 0x38b   : > { %7448 = vrsqrt.f32 %v875_v21 }
 0x38c   : > { %7450 = vrsqrt.f32 %v874_v22 }
 0x391   : > { %v7447_v23 = vpop.eup %7446 }
 0x392   : > { %v879_v25 = vmul.f32 %v7447_v23, %v7974_v39 }
 0x394   : > { %v886_v28 = vmul.f32 %v5859_v24, %v879_v25 }
 0x395   : > { %v7449_v29 = vpop.eup %7448 }
 0x396   : > { %v7451_v30 = vpop.eup %7450  ;;  %v893_v31 = vadd.f32 %v5860_v26, %v886_v28  ;;  %v881_v35 = vmul.f32 %v7449_v29, %v7979_v45 }
 0x397   : > { %v880_v32 = vmul.f32 %v7451_v30, %v7983_v47  ;;  %v917_v47 = vrot.slane %v912_v43, %v8055_v42 }
 0x398   : > { %5861 = vmatmul.mubr.msk.f32.vlgmr.msra.gmra.mrb[0].mxu1 %vm681_vm0, %v893_v31  ;;  %v888_v38 = vmul.f32 %v5859_v24, %v881_v35 }
 0x399   : > { %1003 = vmatprep.mubr.f32.mxu1 %v7709_v8  ;;  %v887_v36 = vmul.f32 %v5859_v24, %v880_v32 }
 0x39a   : > { %v895_v39 = vadd.f32 %v5860_v26, %v888_v38 }
 0x39b   : > { %v894_v37 = vadd.f32 %v5860_v26, %v887_v36 }
 0x39d   : > { %5862 = vmatmul.mubr.msk.f32.gmra.mrb[2].mxu1 %vm681_vm0, %v894_v37 }
 0x39e   : > { %1009 = vmatprep.mubr.f32.mxu1 %v7709_v8 }
 0x3a1   : > { %5863 = vmatmul.mubr.msk.f32.gmra.mrb[4].mxu1 %vm681_vm0, %v895_v39 }
 0x3a2   : > { %6509 = vmatprep.mubr.msk.f32.mxu1 %vm7711_vm3, %v7709_v8 }
 0x46b   : > { %v999_v45 = vpop.f32.mrb[0].mxu1 }
 0x46c   : > { %v1001_v46 = vpop.f32.mrb[1].mxu1  ;;  %v8064_v50 = vadd.f32 %v999_v45, %v917_v47 }
 0x46d   : > { %v1002_v53 = vadd.f32 %v1001_v46, %v921_v48 }
 0x470   : > { %v1005_v49 = vpop.f32.mrb[2].mxu1 }
 0x471   : > { %v8066_v51 = vadd.f32 %v1005_v49, %v917_v47  ;;  %v1007_v52 = vpop.f32.mrb[3].mxu1 }
 0x472   : > { %v1008_v54 = vadd.f32 %v1007_v52, %v921_v48 }
 0x473   : > { %v8070_v55 = vpack.i.bf16 %v8066_v51, %v8064_v50 }
 0x474   : > { %v1011_v56 = vpop.f32.mrb[4].mxu1  ;;  %v7014_v57 = vpack.c.bf16 %v1008_v54, %v1002_v53  ;;  %v8072_v58 = vpack.i.bf16 %v1008_v54, %v1002_v53 }
 0x475   : > { %v8074_v59 = vadd.f32 %v1011_v56, %v917_v47  ;;  %v1013_v60 = vpop.f32.mrb[5].mxu1  ;;  %7336 = vrot.lane.b32.xlu0 %v8070_v55, %s9795_s30 }
 0x476   : > { %v8100_v4 = vadd.f32 %v1013_v60, %v921_v48 }
 0x477   : > { %1023 = vrot.lane.b32.xlu1 %v8074_v59, %s9795_s30  ;;  %s9823_s30 = smov 48  }
 0x4e7   : > { %v7337_v61 = vpop.permute.xlu0 %7336 }
 0x4e8   : > { %v7339_v62 = vunpack.i.h.bf16 %v7337_v61  ;;  %v7338_v63 = vunpack.i.l.bf16 %v7337_v61 }
 0x4e9   : > { %v1024_v2 = vpop.permute.xlu1 %1023 }
 0x4ea   : > { %v7010_v1 = vpack.c.bf16 %v7339_v62, %v7338_v63 }
 0x4ec   : > { %7012 = vmatpush3.bf16.xpose.msk.msra.mxu1 %vm8086_vm5, %v7010_v1 }
 0x4ed   : > { %6507 = vmatprep.subr.mxu1 %v7709_v8 }
 0x4f4   : > { %6508 = vmatpush3.xpose.msk.msra.mxu1 %vm1025_vm4, %v1024_v2 }
 0x4f5   : > { %7013 = vmatprep.subr.bf16.mxu1 %v7708_v3 }
 0x4f7   : > { %6510 = vmatmul.mubr.msk.f32.vlgmr.msra.gmra.mrb[6].mxu1 %vm1025_vm4, %v8064_v50 }
 0x4f8   : > { %7015 = vmatpush3.bf16.msra.mxu1 %v7014_v57  ;;  %6512 = vmatprep.mubr.msk.f32.mxu1 %vm7711_vm3, %v7709_v8 }
 0x4f9   : > { %6522 = vmatprep.subr.mxu1 %v7709_v8 }
 0x4fb   : > { %6513 = vmatmul.mubr.msk.f32.gmra.mrb[8].mxu1 %vm1025_vm4, %v8066_v51 }
 0x4fc   : > { %6523 = vmatpush3.msk.msra.mxu1 %vm766_vm1, %v8100_v4  ;;  %6515 = vmatprep.mubr.msk.f32.mxu1 %vm7711_vm3, %v7709_v8 }
 0x4fd   : > { %7016 = vmatprep.subr.bf16.mxu1 %v7708_v3 }
 0x4ff   : > { %6516 = vmatmul.mubr.msk.f32.gmra.mrb[10].mxu1 %vm1025_vm4, %v8074_v59 }
 0x500   : > { %6524 = vmatprep.mubr.msk.f32.mxu1 %vm7711_vm3, %v7709_v8 }
 0x5ca   : > { %v1104_v5 = vpop.f32.mrb[6].mxu1 }
 0x5cb   : > { %v1118_v6 = vmul.f32 0.25, %v1104_v5  ;;  %v6511_v7 = vpop.f32.mrb[7].mxu1 }
 0x5cd   : > { %v1122_v9 = vsel %vm1121_vm6, %v1118_v6, -inf }
 0x5ce   : > { %1123 = vmax.xlane.f32.xlu1 %v1122_v9  ;;  %v1109_v10 = vpop.f32.mrb[8].mxu1 }
 0x5cf   : > { %v1119_v11 = vmul.f32 0.25, %v1109_v10  ;;  %v6514_v12 = vpop.f32.mrb[9].mxu1 }
 0x5d1   : > { %v1125_v13 = vsel %vm1121_vm6, %v1119_v11, -inf }
 0x5d2   : > { %1126 = vmax.xlane.f32.xlu0 %v1125_v13  ;;  %v1114_v14 = vpop.f32.mrb[10].mxu1 }
 0x5d3   : > { %v1120_v15 = vmul.f32 0.25, %v1114_v14  ;;  %v6517_v16 = vpop.f32.mrb[11].mxu1 }
 0x5d5   : > { %v1129_v17 = vsel %vm1128_vm7, %v1120_v15, -inf }
 0x5d6   : > { %1130 = vmax.xlane.f32.xlu0 %v1129_v17 }
 0x65b   : > { %v1124_v18 = vpop.xlane.xlu1 %1123 }
 0x65c   : > { %v1132_v19 = vsub.f32 %v1118_v6, %v1124_v18 }
 0x65e   : > { %v1135_v20 = vmul.f32 1.442695, %v1132_v19 }
 0x65f   : > { %v1127_v21 = vpop.xlane.xlu0 %1126 }
 0x660   : > { %7452 = vpow2.f32 %v1135_v20  ;;  %v1133_v22 = vsub.f32 %v1119_v11, %v1127_v21 }
 0x662   : > { %v1137_v23 = vmul.f32 1.442695, %v1133_v22 }
 0x663   : > { %v1131_v29 = vpop.xlane.xlu0 %1130 }
 0x664   : > { %7454 = vpow2.f32 %v1137_v23  ;;  %v1134_v30 = vsub.f32 %v1120_v15, %v1131_v29 }
 0x666   : > { %v1139_v31 = vmul.f32 1.442695, %v1134_v30 }
 0x668   : > { %7456 = vpow2.f32 %v1139_v31 }
 0x66a   : > { %v7453_v24 = vpop.eup %7452 }
 0x66b   : > { %v1141_v25 = vsel %vm1121_vm6, %v7453_v24, 0.0 }
 0x66c   : > { %1142 = vadd.xlane.f32.xlu1 %v1141_v25 }
 0x66e   : > { %v7455_v26 = vpop.eup %7454 }
 0x66f   : > { %v1144_v28 = vsel %vm1121_vm6, %v7455_v26, 0.0 }
 0x670   : > { %1145 = vadd.xlane.f32.xlu0 %v1144_v28 }
 0x672   : > { %v7457_v32 = vpop.eup %7456 }
 0x673   : > { %v1147_v35 = vsel %vm1128_vm7, %v7457_v32, 0.0 }
 0x67d   : > { %1258 = vrot.lane.b32.xlu1 %v8074_v59, %s9797_s5 }
 0x681   : > { %1248 = vrot.lane.b32.xlu1 %v8064_v50, %s9793_s22 }
 0x686   : > { %7341 = vrot.lane.b32.xlu0 %v8070_v55, %s9797_s5  ;;  %s9829_s5 = smov 80  }
 0x68a   : > { %1252 = vrot.lane.b32.xlu0 %v8074_v59, %s9793_s22 }
 0x6a5   : > { %1148 = vadd.xlane.f32.xlu1 %v1147_v35 }
 0x6b6   : > { %1250 = vrot.lane.b32.xlu1 %v8066_v51, %s9793_s22 }
 0x6f9   : > { %v1143_v36 = vpop.xlane.xlu1 %1142 }
 0x6fa   : > { %7458 = vrcp.f32 %v1143_v36 }
 0x6fd   : > { %v1146_v37 = vpop.xlane.xlu0 %1145  ;;  %v1259_v48 = vpop.permute.xlu1 %1258 }
 0x6fe   : > { %7460 = vrcp.f32 %v1146_v37 }
 0x701   : > { %v7342_v38 = vpop.permute.xlu0 %7341  ;;  %v1249_v49 = vpop.permute.xlu1 %1248 }
 0x702   : > { %v7344_v39 = vunpack.i.h.bf16 %v7342_v38  ;;  %v7343_v40 = vunpack.i.l.bf16 %v7342_v38 }
 0x704   : > { %v7459_v41 = vpop.eup %7458  ;;  %v7017_v43 = vpack.c.bf16 %v7344_v39, %v7343_v40 }
 0x705   : > { %v1153_v45 = vmul.f32 %v7459_v41, %v7453_v24  ;;  %v1253_v57 = vpop.permute.xlu0 %1252 }
 0x707   : > { %6525 = vmatmul.mubr.msk.f32.vlgmr.msra.gmra.mrb[12].mxu1 %vm1121_vm6, %v1153_v45 }
 0x708   : > { %v7461_v46 = vpop.eup %7460  ;;  %7019 = vmatpush3.bf16.xpose.msk.msra.mxu1 %vm8086_vm5, %v7017_v43  ;;  %6527 = vmatprep.mubr.msk.f32.mxu1 %vm7711_vm3, %v7709_v8 }
 0x709   : > { %v1154_v47 = vmul.f32 %v7461_v46, %v7455_v26  ;;  %6537 = vmatprep.subr.mxu1 %v7709_v8 }
 0x70b   : > { %6528 = vmatmul.mubr.msk.f32.gmra.mrb[14].mxu1 %vm1121_vm6, %v1154_v47 }
 0x70c   : > { %6530 = vmatprep.mubr.msk.f32.mxu1 %vm7711_vm3, %v7709_v8 }
 0x710   : > { %6538 = vmatpush3.xpose.msk.msra.mxu1 %vm1025_vm4, %v1259_v48 }
 0x711   : > { %7020 = vmatprep.subr.bf16.mxu1 %v7708_v3 }
 0x732   : > { %v1149_v52 = vpop.xlane.xlu1 %1148 }
 0x733   : > { %7462 = vrcp.f32 %v1149_v52 }
 0x736   : > { %v1251_v56 = vpop.permute.xlu1 %1250 }
 0x73d   : > { %v7463_v53 = vpop.eup %7462 }
 0x73e   : > { %v1155_v54 = vmul.f32 %v7463_v53, %v7457_v32 }
 0x740   : > { %6531 = vmatmul.mubr.msk.f32.gmra.mrb[16].mxu1 %vm1121_vm6, %v1155_v54 }
 0x741   : > { %6539 = vmatprep.mubr.msk.f32.mxu1 %vm7711_vm3, %v7709_v8 }
 0x744   : > { %6540 = vmatmul.mubr.msk.f32.vlgmr.msra.gmra.mrb[18].mxu1 %vm1025_vm4, %v1249_v49 }
 0x745   : > { %6542 = vmatprep.mubr.msk.f32.mxu1 %vm7711_vm3, %v7709_v8 }
 0x748   : > { %6543 = vmatmul.mubr.msk.f32.gmra.mrb[20].mxu1 %vm1025_vm4, %v1251_v56 }
 0x749   : > { %6545 = vmatprep.mubr.msk.f32.mxu1 %vm7711_vm3, %v7709_v8 }
 0x74c   : > { %6546 = vmatmul.mubr.msk.f32.gmra.mrb[22].mxu1 %vm1025_vm4, %v1253_v57 }
 0x74d   : > { %6554 = vmatprep.mubr.msk.f32.mxu1 %vm7711_vm3, %v7709_v8 }
 0x7da   : > { %v8152_v60 = vpop.f32.mrb[12].mxu1 }
 0x7db   : > { %v6526_v61 = vpop.f32.mrb[13].mxu1 }
 0x7de   : > { %v8154_v62 = vpop.f32.mrb[14].mxu1 }
 0x7df   : > { %v6529_v63 = vpop.f32.mrb[15].mxu1 }
 0x813   : > { %v8156_v1 = vpop.f32.mrb[16].mxu1 }
 0x814   : > { %v6532_v2 = vpop.f32.mrb[17].mxu1 }
 0x817   : > { %v1338_v5 = vpop.f32.mrb[18].mxu1 }
 0x818   : > { %v1352_v6 = vmul.f32 0.25, %v1338_v5  ;;  %v6541_v7 = vpop.f32.mrb[19].mxu1 }
 0x81a   : > { %v1355_v9 = vsel %vm1121_vm6, %v1352_v6, -inf }
 0x81b   : > { %1356 = vmax.xlane.f32.xlu1 %v1355_v9  ;;  %v1343_v10 = vpop.f32.mrb[20].mxu1 }
 0x81c   : > { %v1353_v11 = vmul.f32 0.25, %v1343_v10  ;;  %v6544_v12 = vpop.f32.mrb[21].mxu1 }
 0x81e   : > { %v1358_v13 = vsel %vm1121_vm6, %v1353_v11, -inf }
 0x81f   : > { %1359 = vmax.xlane.f32.xlu0 %v1358_v13  ;;  %v1348_v14 = vpop.f32.mrb[22].mxu1 }
 0x820   : > { %v1354_v15 = vmul.f32 0.25, %v1348_v14  ;;  %v6547_v16 = vpop.f32.mrb[23].mxu1 }
 0x822   : > { %v1361_v17 = vsel %vm1128_vm7, %v1354_v15, -inf }
 0x823   : > { %1362 = vmax.xlane.f32.xlu0 %v1361_v17 }
 0x82c   : > { %7346 = vrot.lane.b32.xlu1 %v8072_v58, %s9793_s22 }
 0x830   : > { %7351 = vrot.lane.b32.xlu1 %v8070_v55, %s9799_s23 }
 0x834   : > { %1499 = vrot.lane.b32.xlu1 %v8074_v59, %s9799_s23 }
 0x8a8   : > { %v1357_v18 = vpop.xlane.xlu1 %1356 }
 0x8a9   : > { %v1364_v19 = vsub.f32 %v1352_v6, %v1357_v18 }
 0x8ab   : > { %v1367_v20 = vmul.f32 1.442695, %v1364_v19 }
 0x8ac   : > { %v7347_v21 = vpop.permute.xlu1 %7346  ;;  %v1360_v22 = vpop.xlane.xlu0 %1359 }
 0x8ad   : > { %7464 = vpow2.f32 %v1367_v20  ;;  %v7349_v23 = vunpack.i.h.bf16 %v7347_v21  ;;  %v7348_v24 = vunpack.i.l.bf16 %v7347_v21  ;;  %v1365_v25 = vsub.f32 %v1353_v11, %v1360_v22 }
 0x8af   : > { %v7021_v26 = vpack.c.bf16 %v7349_v23, %v7348_v24  ;;  %v1369_v28 = vmul.f32 1.442695, %v1365_v25 }
 0x8b0   : > { %v1363_v35 = vpop.xlane.xlu0 %1362  ;;  %v7352_v39 = vpop.permute.xlu1 %7351 }
 0x8b1   : > { %7466 = vpow2.f32 %v1369_v28  ;;  %7022 = vmatpush3.bf16.msra.mxu1 %v7021_v26  ;;  %v1366_v36 = vsub.f32 %v1354_v15, %v1363_v35  ;;  %v7354_v45 = vunpack.i.h.bf16 %v7352_v39  ;;  %v7353_v46 = vunpack.i.l.bf16 %v7352_v39 }
 0x8b2   : > { %6552 = vmatprep.subr.mxu1 %v7709_v8 }
 0x8b3   : > { %v1371_v37 = vmul.f32 1.442695, %v1366_v36  ;;  %v7024_v49 = vpack.c.bf16 %v7354_v45, %v7353_v46 }
 0x8b5   : > { %7468 = vpow2.f32 %v1371_v37 }
 0x8b7   : > { %v7465_v29 = vpop.eup %7464 }
 0x8b8   : > { %v1373_v30 = vsel %vm1121_vm6, %v7465_v29, 0.0 }
 0x8b9   : > { %1374 = vadd.xlane.f32.xlu0 %v1373_v30 }
 0x8bb   : > { %v7467_v31 = vpop.eup %7466 }
 0x8bc   : > { %v1376_v32 = vsel %vm1121_vm6, %v7467_v31, 0.0 }
 0x8bd   : > { %1377 = vadd.xlane.f32.xlu1 %v1376_v32 }
 0x8bf   : > { %v7469_v38 = vpop.eup %7468 }
 0x8ce   : > { %7356 = vrot.lane.b32.xlu1 %v8070_v55, %s9791_s1  ;;  %v1379_v55 = vsel %vm1128_vm7, %v7469_v38, 0.0 }
 0x8cf   : > { %1394 = vrot.lane.b32.xlu0 %v8100_v4, %s9793_s22  ;;  %s9828_s22 = smov 96  }
 0x8d2   : > { %1491 = vrot.lane.b32.xlu1 %v8066_v51, %s9789_s24 }
 0x8d6   : > { %1738 = vrot.lane.b32.xlu1 %v8074_v59, %s9791_s1 }
 0x8da   : > { %1730 = vrot.lane.b32.xlu1 %v8066_v51, %s9787_s26  ;;  %v1500_v51 = vpop.permute.xlu1 %1499 }
 0x8ee   : > { %1380 = vadd.xlane.f32.xlu0 %v1379_v55 }
 0x904   : > { %1489 = vrot.lane.b32.xlu0 %v8064_v50, %s9789_s24 }
 0x908   : > { %1493 = vrot.lane.b32.xlu0 %v8074_v59, %s9789_s24 }
 0x90c   : > { %1728 = vrot.lane.b32.xlu0 %v8064_v50, %s9787_s26 }
 0x910   : > { %1732 = vrot.lane.b32.xlu0 %v8074_v59, %s9787_s26 }
 0x946   : > { %v1375_v40 = vpop.xlane.xlu0 %1374 }
 0x947   : > { %7470 = vrcp.f32 %v1375_v40 }
 0x94a   : > { %v1378_v41 = vpop.xlane.xlu1 %1377  ;;  %v1395_v43 = vpop.permute.xlu0 %1394 }
 0x94b   : > { %7472 = vrcp.f32 %v1378_v41  ;;  %6553 = vmatpush3.msk.msra.mxu1 %vm766_vm1, %v1395_v43 }
 0x94c   : > { %7023 = vmatprep.subr.bf16.mxu1 %v7708_v3 }
 0x94e   : > { %v7357_v53 = vpop.permute.xlu1 %7356 }
 0x94f   : > { %v7359_v57 = vunpack.i.h.bf16 %v7357_v53  ;;  %v7358_v61 = vunpack.i.l.bf16 %v7357_v53 }
 0x951   : > { %v7471_v47 = vpop.eup %7470  ;;  %v7031_v63 = vpack.c.bf16 %v7359_v57, %v7358_v61 }
 0x952   : > { %v1385_v48 = vmul.f32 %v7471_v47, %v7465_v29  ;;  %v1492_v5 = vpop.permute.xlu1 %1491 }
 0x954   : > { %6555 = vmatmul.mubr.msk.f32.vlgmr.msra.gmra.mrb[24].mxu1 %vm1121_vm6, %v1385_v48 }
 0x955   : > { %v7473_v50 = vpop.eup %7472  ;;  %7026 = vmatpush3.bf16.xpose.msk.msra.mxu1 %vm8086_vm5, %v7024_v49  ;;  %6557 = vmatprep.mubr.msk.f32.mxu1 %vm7711_vm3, %v7709_v8 }
 0x956   : > { %v1386_v59 = vmul.f32 %v7473_v50, %v7467_v31  ;;  %6567 = vmatprep.subr.mxu1 %v7709_v8  ;;  %v1739_v7 = vpop.permute.xlu1 %1738 }
 0x958   : > { %6558 = vmatmul.mubr.msk.f32.gmra.mrb[26].mxu1 %vm1121_vm6, %v1386_v59 }
 0x959   : > { %6560 = vmatprep.mubr.msk.f32.mxu1 %vm7711_vm3, %v7709_v8 }
 0x95a   : > { %v1731_v10 = vpop.permute.xlu1 %1730 }
 0x95d   : > { %6568 = vmatpush3.xpose.msk.msra.mxu1 %vm1025_vm4, %v1500_v51 }
 0x95e   : > { %7030 = vmatprep.subr.bf16.mxu1 %v7708_v3 }
 0x97b   : > { %v1381_v52 = vpop.xlane.xlu0 %1380 }
 0x97c   : > { %7474 = vrcp.f32 %v1381_v52 }
 0x97f   : > { %v1490_v2 = vpop.permute.xlu0 %1489 }
 0x983   : > { %v1494_v6 = vpop.permute.xlu0 %1493 }
 0x986   : > { %v7475_v54 = vpop.eup %7474 }
 0x987   : > { %v1387_v56 = vmul.f32 %v7475_v54, %v7469_v38  ;;  %v1729_v9 = vpop.permute.xlu0 %1728 }
 0x989   : > { %6561 = vmatmul.mubr.msk.f32.gmra.mrb[28].mxu1 %vm1121_vm6, %v1387_v56 }
 0x98a   : > { %6569 = vmatprep.mubr.msk.f32.mxu1 %vm7711_vm3, %v7709_v8 }
 0x98b   : > { %v1733_v11 = vpop.permute.xlu0 %1732 }
 0x98d   : > { %6570 = vmatmul.mubr.msk.f32.vlgmr.msra.gmra.mrb[30].mxu1 %vm1025_vm4, %v1490_v2 }
 0x98e   : > { %7033 = vmatpush3.bf16.xpose.msk.msra.mxu1 %vm8086_vm5, %v7031_v63  ;;  %6572 = vmatprep.mubr.msk.f32.mxu1 %vm7711_vm3, %v7709_v8 }
 0x98f   : > { %6597 = vmatprep.subr.mxu1 %v7709_v8 }
 0x991   : > { %6573 = vmatmul.mubr.msk.f32.gmra.mrb[32].mxu1 %vm1025_vm4, %v1492_v5 }
 0x992   : > { %6575 = vmatprep.mubr.msk.f32.mxu1 %vm7711_vm3, %v7709_v8 }
 0x995   : > { %6576 = vmatmul.mubr.msk.f32.gmra.mrb[34].mxu1 %vm1025_vm4, %v1494_v6 }
 0x996   : > { %6598 = vmatpush3.xpose.msk.msra.mxu1 %vm1025_vm4, %v1739_v7  ;;  %6599 = vmatprep.mubr.msk.f32.mxu1 %vm7711_vm3, %v7709_v8 }
 0x997   : > { %7037 = vmatprep.subr.bf16.mxu1 %v7708_v3 }
 0x999   : > { %6600 = vmatmul.mubr.msk.f32.vlgmr.msra.gmra.mrb[36].mxu1 %vm1025_vm4, %v1729_v9 }
 0x99a   : > { %6602 = vmatprep.mubr.msk.f32.mxu1 %vm7711_vm3, %v7709_v8 }
 0x99d   : > { %6603 = vmatmul.mubr.msk.f32.gmra.mrb[38].mxu1 %vm1025_vm4, %v1731_v10 }
 0x99e   : > { %6605 = vmatprep.mubr.msk.f32.mxu1 %vm7711_vm3, %v7709_v8 }
 0x9a1   : > { %6606 = vmatmul.mubr.msk.f32.gmra.mrb[40].mxu1 %vm1025_vm4, %v1733_v11 }
 0x9a2   : > { %6639 = vmatprep.mubr.msk.f32.mxu1 %vm7711_vm3, %v7709_v8 }
 0xa27   : > { %v8228_v12 = vpop.f32.mrb[24].mxu1 }
 0xa28   : > { %v6556_v13 = vpop.f32.mrb[25].mxu1 }
 0xa2b   : > { %v8230_v14 = vpop.f32.mrb[26].mxu1 }
 0xa2c   : > { %v6559_v15 = vpop.f32.mrb[27].mxu1 }
 0xa5c   : > { %v8232_v16 = vpop.f32.mrb[28].mxu1 }
 0xa5d   : > { %v6562_v17 = vpop.f32.mrb[29].mxu1 }
 0xa60   : > { %v1579_v18 = vpop.f32.mrb[30].mxu1 }
 0xa61   : > { %v1593_v19 = vmul.f32 0.25, %v1579_v18  ;;  %v6571_v20 = vpop.f32.mrb[31].mxu1 }
 0xa63   : > { %v1596_v21 = vsel %vm1121_vm6, %v1593_v19, -inf }
 0xa64   : > { %1597 = vmax.xlane.f32.xlu1 %v1596_v21  ;;  %v1584_v22 = vpop.f32.mrb[32].mxu1 }
 0xa65   : > { %v1594_v23 = vmul.f32 0.25, %v1584_v22  ;;  %v6574_v24 = vpop.f32.mrb[33].mxu1 }
 0xa67   : > { %v1599_v25 = vsel %vm1121_vm6, %v1594_v23, -inf }
 0xa68   : > { %1600 = vmax.xlane.f32.xlu0 %v1599_v25  ;;  %v1589_v26 = vpop.f32.mrb[34].mxu1 }
 0xa69   : > { %v1595_v28 = vmul.f32 0.25, %v1589_v26  ;;  %v6577_v29 = vpop.f32.mrb[35].mxu1 }
 0xa6b   : > { %v1602_v30 = vsel %vm1128_vm7, %v1595_v28, -inf }
 0xa6c   : > { %1603 = vmax.xlane.f32.xlu0 %v1602_v30  ;;  %v1818_v31 = vpop.f32.mrb[36].mxu1 }
 0xa6d   : > { %v1832_v32 = vmul.f32 0.25, %v1818_v31  ;;  %v6601_v35 = vpop.f32.mrb[37].mxu1 }
 0xa6f   : > { %v1835_v36 = vsel %vm1121_vm6, %v1832_v32, -inf }
 0xa70   : > { %1836 = vmax.xlane.f32.xlu0 %v1835_v36  ;;  %v1823_v37 = vpop.f32.mrb[38].mxu1 }
 0xa71   : > { %v1833_v38 = vmul.f32 0.25, %v1823_v37  ;;  %v6604_v55 = vpop.f32.mrb[39].mxu1 }
 0xa73   : > { %v1838_v39 = vsel %vm1121_vm6, %v1833_v38, -inf }
 0xa74   : > { %1839 = vmax.xlane.f32.xlu1 %v1838_v39  ;;  %v1828_v51 = vpop.f32.mrb[40].mxu1 }
 0xa75   : > { %v1834_v40 = vmul.f32 0.25, %v1828_v51  ;;  %v6607_v41 = vpop.f32.mrb[41].mxu1 }
 0xa77   : > { %v1841_v43 = vsel %vm1128_vm7, %v1834_v40, -inf }
 0xa78   : > { %1842 = vmax.xlane.f32.xlu0 %v1841_v43 }
 0xa8e   : > { %7361 = vrot.lane.b32.xlu0 %v8072_v58, %s9789_s24 }
 0xaf1   : > { %v1598_v45 = vpop.xlane.xlu1 %1597 }
 0xaf2   : > { %v1605_v46 = vsub.f32 %v1593_v19, %v1598_v45 }
 0xaf4   : > { %v1608_v47 = vmul.f32 1.442695, %v1605_v46 }
 0xaf5   : > { %v1601_v48 = vpop.xlane.xlu0 %1600 }
 0xaf6   : > { %7476 = vpow2.f32 %v1608_v47  ;;  %v1606_v49 = vsub.f32 %v1594_v23, %v1601_v48 }
 0xaf8   : > { %v1610_v50 = vmul.f32 1.442695, %v1606_v49 }
 0xaf9   : > { %v1604_v59 = vpop.xlane.xlu0 %1603 }
 0xafa   : > { %7478 = vpow2.f32 %v1610_v50  ;;  %v1607_v52 = vsub.f32 %v1595_v28, %v1604_v59  ;;  %v2014_v50 = vld [vmem:[%s9773_s10] sm:$0xff]  ;;  %v2015_v59 = vld [vmem:[%s9773_s10 + $0x8] sm:$0xff] }
 0xafc   : > { %v1612_v53 = vmul.f32 1.442695, %v1607_v52  ;;  %v7038_v52 = vpack.c.bf16 %v2015_v59, %v2014_v50 }
 0xafd   : > { %v1837_v54 = vpop.xlane.xlu0 %1836 }
 0xafe   : > { %7480 = vpow2.f32 %v1612_v53  ;;  %v1844_v56 = vsub.f32 %v1832_v32, %v1837_v54  ;;  %7039 = vmatpush3.bf16.msra.mxu1 %v7038_v52  ;;  %v2016_v53 = vld [vmem:[%s9773_s10 + $0x10] sm:$0xff]  ;;  %v2017_v54 = vld [vmem:[%s9773_s10 + $0x18] sm:$0xff] }
 0xaff   : > { %7040 = vmatprep.subr.bf16.mxu1 %v7708_v3 }
 0xb00   : > { %v7477_v57 = vpop.eup %7476  ;;  %v1847_v61 = vmul.f32 1.442695, %v1844_v56  ;;  %v7041_v56 = vpack.c.bf16 %v2017_v54, %v2016_v53 }
 0xb01   : > { %v1840_v63 = vpop.xlane.xlu1 %1839  ;;  %v1614_v2 = vsel %vm1121_vm6, %v7477_v57, 0.0 }
 0xb02   : > { %7482 = vpow2.f32 %v1847_v61  ;;  %v1845_v5 = vsub.f32 %v1833_v38, %v1840_v63  ;;  %1615 = vadd.xlane.f32.xlu1 %v1614_v2  ;;  %7042 = vmatpush3.bf16.msra.mxu1 %v7041_v56  ;;  %v2019_v61 = vld [vmem:[%s9773_s10 + $0x28] sm:$0xff]  ;;  %v2020_v63 = vld [vmem:[%s9773_s10 + $0x30] sm:$0xff] }
 0xb03   : > { %7043 = vmatprep.subr.bf16.mxu1 %v7708_v3 }
 0xb04   : > { %v7479_v6 = vpop.eup %7478  ;;  %v1849_v7 = vmul.f32 1.442695, %v1845_v5  ;;  %v2021_v5 = vld [vmem:[%s9773_s10 + $0x38] sm:$0xff] }
 0xb05   : > { %v1843_v9 = vpop.xlane.xlu0 %1842  ;;  %v1617_v10 = vsel %vm1121_vm6, %v7479_v6, 0.0 }
 0xb06   : > { %7484 = vpow2.f32 %v1849_v7  ;;  %1618 = vadd.xlane.f32.xlu0 %v1617_v10  ;;  %v1846_v24 = vsub.f32 %v1834_v40, %v1843_v9 }
 0xb08   : > { %v7481_v11 = vpop.eup %7480  ;;  %v1851_v25 = vmul.f32 1.442695, %v1846_v24 }
 0xb09   : > { %v7362_v13 = vpop.permute.xlu0 %7361  ;;  %v1620_v15 = vsel %vm1128_vm7, %v7481_v11, 0.0 }
 0xb0a   : > { %v7364_v17 = vunpack.i.h.bf16 %v7362_v13  ;;  %v7363_v18 = vunpack.i.l.bf16 %v7362_v13  ;;  %1621 = vadd.xlane.f32.xlu1 %v1620_v15  ;;  %7486 = vpow2.f32 %v1851_v25 }
 0xb0c   : > { %v7483_v19 = vpop.eup %7482  ;;  %v7028_v20 = vpack.c.bf16 %v7364_v17, %v7363_v18 }
 0xb0d   : > { %v1853_v21 = vsel %vm1121_vm6, %v7483_v19, 0.0 }
 0xb0e   : > { %1854 = vadd.xlane.f32.xlu0 %v1853_v21  ;;  %7029 = vmatpush3.bf16.msra.mxu0 %v7028_v20 }
 0xb0f   : > { %6582 = vmatprep.subr.mxu0 %v7709_v8 }
 0xb10   : > { %v7485_v22 = vpop.eup %7484 }
 0xb11   : > { %v1856_v23 = vsel %vm1121_vm6, %v7485_v22, 0.0 }
 0xb12   : > { %1857 = vadd.xlane.f32.xlu1 %v1856_v23 }
 0xb14   : > { %v7487_v26 = vpop.eup %7486 }
 0xb15   : > { %v1859_v28 = vsel %vm1128_vm7, %v7487_v26, 0.0 }
 0xb23   : > { %1633 = vrot.lane.b32.xlu1 %v8100_v4, %s9789_s24  ;;  %s9827_s24 = smov 16  }
 0xb24   : > { %7366 = vrot.lane.b32.xlu0 %v8072_v58, %s9787_s26 }
 0xb28   : > { %1872 = vrot.lane.b32.xlu0 %v8100_v4, %s9787_s26 }
 0xb2c   : > { %1970 = vrot.lane.b32.xlu0 %v8228_v12, %s9791_s1 }
 0xb30   : > { %1972 = vrot.lane.b32.xlu0 %v8230_v14, %s9791_s1 }
 0xb47   : > { %1860 = vadd.xlane.f32.xlu1 %v1859_v28 }
 0xb58   : > { %1974 = vrot.lane.b32.xlu1 %v8232_v16, %s9791_s1 }
 0xb8f   : > { %v1616_v58 = vpop.xlane.xlu1 %1615 }
 0xb90   : > { %7488 = vrcp.f32 %v1616_v58 }
 0xb93   : > { %v1619_v29 = vpop.xlane.xlu0 %1618 }
 0xb94   : > { %7490 = vrcp.f32 %v1619_v29 }
 0xb97   : > { %v1622_v4 = vpop.xlane.xlu1 %1621 }
 0xb98   : > { %7492 = vrcp.f32 %v1622_v4 }
 0xb9a   : > { %v7489_v14 = vpop.eup %7488 }
 0xb9b   : > { %v1855_v30 = vpop.xlane.xlu0 %1854  ;;  %v1626_v36 = vmul.f32 %v7489_v14, %v7477_v57  ;;  %v2018_v57 = vld [vmem:[%s9773_s10 + $0x20] sm:$0xff] }
 0xb9c   : > { %7494 = vrcp.f32 %v1855_v30  ;;  %v7044_v2 = vpack.c.bf16 %v2019_v61, %v2018_v57 }
 0xb9e   : > { %v7491_v38 = vpop.eup %7490  ;;  %7045 = vmatpush3.bf16.msra.mxu1 %v7044_v2  ;;  %v2175_v2 = vld [vmem:[%s9777_s14 + $0x8] sm:$0xff] }
 0xb9f   : > { %v1858_v12 = vpop.xlane.xlu1 %1857  ;;  %v7367_v31 = vpop.permute.xlu0 %7366  ;;  %v1627_v16 = vmul.f32 %v7491_v38, %v7479_v6  ;;  %v7047_v6 = vpack.c.bf16 %v2021_v5, %v2020_v63  ;;  %7046 = vmatprep.subr.bf16.mxu1 %v7708_v3  ;;  %v5904_v38 = vld [vmem:[%s9774_s11] ss:$0 sm:$0xff]  ;;  %v2177_v5 = vld [vmem:[%s9777_s14 + $0x18] sm:$0xff] }
 0xba0   : > { %v7369_v32 = vunpack.i.h.bf16 %v7367_v31  ;;  %v7368_v35 = vunpack.i.l.bf16 %v7367_v31  ;;  %7496 = vrcp.f32 %v1858_v12 }
 0xba2   : > { %v7035_v55 = vpack.c.bf16 %v7369_v32, %v7368_v35  ;;  %v7493_v39 = vpop.eup %7492  ;;  %7048 = vmatpush3.bf16.msra.mxu1 %v7047_v6  ;;  %v7049_v6 = vpack.c.bf16 %v2177_v5, %v2175_v2  ;;  %v2343_v2 = vld [vmem:[%s9779_s16 + $0x8] sm:$0xff] }
 0xba3   : > { %v1634_v37 = vpop.permute.xlu1 %1633  ;;  %v1873_v51 = vpop.permute.xlu0 %1872  ;;  %v1628_v40 = vmul.f32 %v7493_v39, %v7481_v11 }
 0xba4   : > { %6583 = vmatpush3.msk.msra.mxu0 %vm766_vm1, %v1634_v37 }
 0xba5   : > { %6585 = vmatmul.mubr.msk.f32.vlgmr.msra.gmra.mrb[4].mxu0 %vm1121_vm6, %v1626_v36  ;;  %7034 = vmatprep.subr.bf16.mxu0 %v7708_v3 }
 0xba6   : > { %7036 = vmatpush3.bf16.msra.mxu0 %v7035_v55  ;;  %6587 = vmatprep.mubr.msk.f32.mxu0 %vm7711_vm3, %v7709_v8  ;;  %v7495_v41 = vpop.eup %7494 }
 0xba7   : > { %6612 = vmatprep.subr.mxu0 %v7709_v8  ;;  %v1865_v43 = vmul.f32 %v7495_v41, %v7483_v19  ;;  %v1971_v23 = vpop.permute.xlu0 %1970 }
 0xba8   : > { %v2003_v28 = vsel %vm1025_vm4, %v8152_v60, %v1971_v23  ;;  %v2182_v23 = vld [vmem:[%s9777_s14 + $0x40] sm:$0xff] }
 0xba9   : > { %6588 = vmatmul.mubr.msk.f32.gmra.mrb[6].mxu0 %vm1121_vm6, %v1627_v16 }
 0xbaa   : > { %6613 = vmatpush3.msk.msra.mxu0 %vm766_vm1, %v1873_v51  ;;  %6590 = vmatprep.mubr.msk.f32.mxu0 %vm7711_vm3, %v7709_v8  ;;  %v7497_v45 = vpop.eup %7496 }
 0xbab   : > { %v1866_v46 = vmul.f32 %v7497_v45, %v7485_v22  ;;  %v1973_v24 = vpop.permute.xlu0 %1972  ;;  %7050 = vmatprep.subr.bf16.mxu0 %v7049_v6  ;;  %v2360_v6 = vld [vmem:[%s9779_s16 + $0x90] sm:$0xff] }
 0xbac   : > { %v2004_v30 = vsel %vm1025_vm4, %v8154_v62, %v1973_v24  ;;  %v2184_v24 = vld [vmem:[%s9777_s14 + $0x50] sm:$0xff] }
 0xbad   : > { %6591 = vmatmul.mubr.msk.f32.gmra.mrb[8].mxu0 %vm1121_vm6, %v1628_v40 }
 0xbae   : > { %6614 = vmatprep.mubr.msk.f32.mxu0 %vm7711_vm3, %v7709_v8 }
 0xbb1   : > { %6615 = vmatmul.mubr.msk.f32.vlgmr.msra.gmra.mrb[10].mxu0 %vm1121_vm6, %v1865_v43 }
 0xbb2   : > { %6617 = vmatprep.mubr.msk.f32.mxu0 %vm7711_vm3, %v7709_v8 }
 0xbb5   : > { %6618 = vmatmul.mubr.msk.f32.gmra.mrb[12].mxu0 %vm1121_vm6, %v1866_v46 }
 0xbb6   : > { %6620 = vmatprep.mubr.msk.f32.mxu0 %vm7711_vm3, %v7709_v8 }
 0xbd4   : > { %v1861_v47 = vpop.xlane.xlu1 %1860 }
 0xbd5   : > { %7498 = vrcp.f32 %v1861_v47 }
 0xbd8   : > { %v1975_v60 = vpop.permute.xlu1 %1974 }
 0xbd9   : > { %v2005_v35 = vsel %vm1025_vm4, %v8156_v1, %v1975_v60 }
 0xbdf   : > { %v7499_v48 = vpop.eup %7498 }
 0xbe0   : > { %v1867_v49 = vmul.f32 %v7499_v48, %v7487_v26 }
 0xbe2   : > { %6621 = vmatmul.mubr.msk.f32.gmra.mrb[14].mxu0 %vm1121_vm6, %v1867_v49 }
 0xbe3   : > { %2275 = vmatprep.mubr.f32.mxu0 %v7709_v8 }
 0xc78   : > { %v1714_v7 = vpop.f32.mrb[4].mxu0 }
 0xc79   : > { %1982 = vrot.lane.b32.xlu0 %v1714_v7, %s9799_s23  ;;  %v6586_v9 = vpop.f32.mrb[5].mxu0  ;;  %v2174_v7 = vld [vmem:[%s9777_s14] sm:$0xff] }
 0xc7a   : > { %v2176_v9 = vld [vmem:[%s9777_s14 + $0x10] sm:$0xff] }
 0xc7c   : > { %v1719_v10 = vpop.f32.mrb[6].mxu0 }
 0xc7d   : > { %1984 = vrot.lane.b32.xlu0 %v1719_v10, %s9799_s23  ;;  %v6589_v11 = vpop.f32.mrb[7].mxu0  ;;  %v7051_v10 = vpack.c.bf16 %v2176_v9, %v2174_v7  ;;  %v2361_v7 = vld [vmem:[%s9779_s16 + $0x98] sm:$0xff] }
 0xc7e   : > { %v2179_v11 = vld [vmem:[%s9777_s14 + $0x28] sm:$0xff]  ;;  %v7069_v9 = vpack.c.bf16 %v2361_v7, %v2360_v6 }
 0xc7f   : > { %7052 = vmatpush1.bf16.msra.mxu0 %v7051_v10  ;;  %v2344_v10 = vld [vmem:[%s9779_s16 + $0x10] sm:$0xff] }
 0xc80   : > { %v1724_v13 = vpop.f32.mrb[8].mxu0 }
 0xc81   : > { %v6592_v15 = vpop.f32.mrb[9].mxu0 }
 0xc84   : > { %v1953_v17 = vpop.f32.mrb[10].mxu0 }
 0xc85   : > { %1994 = vrot.lane.b32.xlu0 %v1953_v17, %s9823_s30  ;;  %v6616_v18 = vpop.f32.mrb[11].mxu0  ;;  %v2178_v17 = vld [vmem:[%s9777_s14 + $0x20] sm:$0xff] }
 0xc86   : > { %v2180_v18 = vld [vmem:[%s9777_s14 + $0x30] sm:$0xff] }
 0xc88   : > { %v1958_v19 = vpop.f32.mrb[12].mxu0 }
 0xc89   : > { %1996 = vrot.lane.b32.xlu0 %v1958_v19, %s9823_s30  ;;  %v6619_v20 = vpop.f32.mrb[13].mxu0  ;;  %v7055_v19 = vpack.c.bf16 %v2180_v18, %v2178_v17  ;;  %v2363_v17 = vld [vmem:[%s9779_s16 + $0xa8] sm:$0xff] }
 0xc8a   : > { %v2183_v20 = vld [vmem:[%s9777_s14 + $0x48] sm:$0xff] }
 0xc8d   : > { %1986 = vrot.lane.b32.xlu0 %v1724_v13, %s9799_s23  ;;  %v2181_v13 = vld [vmem:[%s9777_s14 + $0x38] sm:$0xff] }
 0xc8e   : > { %v7053_v15 = vpack.c.bf16 %v2181_v13, %v2179_v11  ;;  %v2345_v11 = vld [vmem:[%s9779_s16 + $0x18] sm:$0xff] }
 0xc8f   : > { %v7071_v13 = vpack.c.bf16 %v2345_v11, %v2344_v10 }
 0xc90   : > { %7054 = vmatprep.subr.bf16.mxu0 %v7053_v15  ;;  %v2362_v15 = vld [vmem:[%s9779_s16 + $0xa0] sm:$0xff] }
 0xc91   : > { %7056 = vmatpush1.bf16.msra.mxu0 %v7055_v19  ;;  %v7073_v18 = vpack.c.bf16 %v2363_v17, %v2362_v15  ;;  %v2346_v19 = vld [vmem:[%s9779_s16 + $0x20] sm:$0xff] }
 0xcb5   : > { %v1963_v21 = vpop.f32.mrb[14].mxu0 }
 0xcb6   : > { %1998 = vrot.lane.b32.xlu0 %v1963_v21, %s9823_s30  ;;  %v6622_v22 = vpop.f32.mrb[15].mxu0  ;;  %v2185_v21 = vld [vmem:[%s9777_s14 + $0x58] sm:$0xff] }
 0xcb7   : > { %v7057_v22 = vpack.c.bf16 %v2185_v21, %v2183_v20  ;;  %v2347_v20 = vld [vmem:[%s9779_s16 + $0x28] sm:$0xff] }
 0xcb8   : > { %v7075_v21 = vpack.c.bf16 %v2347_v20, %v2346_v19 }
 0xcb9   : > { %7058 = vmatprep.subr.bf16.mxu0 %v7057_v22  ;;  %v2364_v22 = vld [vmem:[%s9779_s16 + $0xb0] sm:$0xff] }
 0xceb   : > { %v1983_v25 = vpop.permute.xlu0 %1982 }
 0xcec   : > { %v2007_v58 = vsel %vm2006_vm8, %v2003_v28, %v1983_v25  ;;  %v7059_v25 = vpack.c.bf16 %v2184_v24, %v2182_v23  ;;  %v2189_v28 = vld [vmem:[%s9777_s14 + $0x78] sm:$0xff] }
 0xced   : > { %v2365_v23 = vld [vmem:[%s9779_s16 + $0xb8] sm:$0xff] }
 0xcee   : > { %7060 = vmatpush1.bf16.msra.mxu0 %v7059_v25  ;;  %v7077_v24 = vpack.c.bf16 %v2365_v23, %v2364_v22  ;;  %v2348_v25 = vld [vmem:[%s9779_s16 + $0x30] sm:$0xff] }
 0xcef   : > { %v1985_v26 = vpop.permute.xlu0 %1984 }
 0xcf0   : > { %v2008_v12 = vsel %vm2006_vm8, %v2004_v30, %v1985_v26  ;;  %v2187_v26 = vld [vmem:[%s9777_s14 + $0x68] sm:$0xff] }
 0xcf7   : > { %v1995_v29 = vpop.permute.xlu0 %1994 }
 0xcf8   : > { %v2011_v4 = vsel %vm2010_vm9, %v2007_v58, %v1995_v29  ;;  %v7061_v58 = vpack.c.bf16 %v2189_v28, %v2187_v26  ;;  %v2186_v29 = vld [vmem:[%s9777_s14 + $0x60] sm:$0xff]  ;;  %v2349_v26 = vld [vmem:[%s9779_s16 + $0x38] sm:$0xff] }
 0xcf9   : > { %6640 = vmatmul.mubr.msk.f32.vlgmr.msra.gmra.mrb[42].mxu1 %vm681_vm0, %v2011_v4  ;;  %v2188_v4 = vld [vmem:[%s9777_s14 + $0x70] sm:$0xff]  ;;  %v7079_v28 = vpack.c.bf16 %v2349_v26, %v2348_v25 }
 0xcfa   : > { %6642 = vmatprep.mubr.msk.f32.mxu1 %vm7711_vm3, %v7709_v8  ;;  %v7063_v30 = vpack.c.bf16 %v2188_v4, %v2186_v29  ;;  %7062 = vmatprep.subr.bf16.mxu0 %v7061_v58  ;;  %v2366_v58 = vld [vmem:[%s9779_s16 + $0xc0] sm:$0xff]  ;;  %v2367_v29 = vld [vmem:[%s9779_s16 + $0xc8] sm:$0xff] }
 0xcfb   : > { %v1997_v31 = vpop.permute.xlu0 %1996  ;;  %v7081_v4 = vpack.c.bf16 %v2367_v29, %v2366_v58 }
 0xcfc   : > { %v2012_v14 = vsel %vm2010_vm9, %v2008_v12, %v1997_v31  ;;  %7064 = vmatpush1.bf16.msra.mxu0 %v7063_v30  ;;  %v2350_v30 = vld [vmem:[%s9779_s16 + $0x40] sm:$0xff] }
 0xcfd   : > { %6643 = vmatmul.mubr.msk.f32.gmra.mrb[44].mxu1 %vm681_vm0, %v2012_v14 }
 0xcfe   : > { %6645 = vmatprep.mubr.msk.f32.mxu1 %vm7711_vm3, %v7709_v8 }
 0xcff   : > { %v1987_v32 = vpop.permute.xlu0 %1986 }
 0xd00   : > { %v2009_v62 = vsel %vm2006_vm8, %v2005_v35, %v1987_v32 }
 0xd28   : > { %v1999_v36 = vpop.permute.xlu0 %1998 }
 0xd29   : > { %v2013_v37 = vsel %vm2010_vm9, %v2009_v62, %v1999_v36 }
 0xd2a   : > { %6646 = vmatmul.mubr.msk.f32.gmra.mrb[46].mxu1 %vm681_vm0, %v2013_v37 }
 0xdcc   : > { %v2102_v55 = vpop.f32.mrb[42].mxu1 }
 0xdcd   : > { %v2103_v16 = vadd.f32 %v5904_v38, %v2102_v55  ;;  %v6641_v39 = vpop.f32.mrb[43].mxu1 }
 0xdce   : > { %v5908_v39 = vld [vmem:[%s9775_s12] ss:$0 sm:$0xff] }
 0xdcf   : > { %v8338_v51 = vadd.f32 %v2103_v16, %v7961_v27 }
 0xdd0   : > { %v2107_v40 = vpop.f32.mrb[44].mxu1 }
 0xdd1   : > { %v2108_v41 = vadd.f32 %v5904_v38, %v2107_v40  ;;  %v6644_v1 = vpop.f32.mrb[45].mxu1  ;;  %v2121_v43 = vsel %vm681_vm0, %v8338_v51, 0.0 }
 0xdd2   : > { %2122 = vadd.xlane.f32.xlu0 %v2121_v43 }
 0xdd3   : > { %v8343_v45 = vadd.f32 %v2108_v41, %v7967_v34  ;;  %v5909_v41 = vld [vmem:[%s9776_s13] ss:$0 sm:$0xff] }
 0xdd5   : > { %v2124_v46 = vsel %vm681_vm0, %v8343_v45, 0.0 }
 0xdd6   : > { %2125 = vadd.xlane.f32.xlu1 %v2124_v46 }
 0xdfd   : > { %v2112_v47 = vpop.f32.mrb[46].mxu1 }
 0xdfe   : > { %v2113_v48 = vadd.f32 %v5904_v38, %v2112_v47  ;;  %v6647_v49 = vpop.f32.mrb[47].mxu1 }
 0xe00   : > { %v8348_v27 = vadd.f32 %v2113_v48, %v7965_v33 }
 0xe02   : > { %v2127_v50 = vsel %vm788_vm2, %v8348_v27, 0.0 }
 0xe03   : > { %2128 = vadd.xlane.f32.xlu0 %v2127_v50 }
 0xe5f   : > { %v2123_v59 = vpop.xlane.xlu0 %2122 }
 0xe60   : > { %v2130_v52 = vmul.f32 0.015625, %v2123_v59 }
 0xe62   : > { %v2133_v53 = vsub.f32 %v8338_v51, %v2130_v52 }
 0xe63   : > { %v2126_v34 = vpop.xlane.xlu1 %2125 }
 0xe64   : > { %v2131_v54 = vmul.f32 0.015625, %v2126_v34  ;;  %v2136_v56 = vmul.f32 %v2133_v53, %v2133_v53 }
 0xe66   : > { %v2134_v57 = vsub.f32 %v8343_v45, %v2131_v54  ;;  %v2139_v61 = vsel %vm681_vm0, %v2136_v56, 0.0 }
 0xe67   : > { %2140 = vadd.xlane.f32.xlu0 %v2139_v61  ;;  %v2359_v61 = vld [vmem:[%s9779_s16 + $0x88] sm:$0xff] }
 0xe68   : > { %v2137_v63 = vmul.f32 %v2134_v57, %v2134_v57 }
 0xe6a   : > { %v2142_v33 = vsel %vm681_vm0, %v2137_v63, 0.0 }
 0xe6b   : > { %2143 = vadd.xlane.f32.xlu0 %v2142_v33  ;;  %v2342_v33 = vld [vmem:[%s9779_s16] sm:$0xff] }
 0xe6c   : > { %v7067_v5 = vpack.c.bf16 %v2343_v2, %v2342_v33 }
 0xe90   : > { %v2129_v12 = vpop.xlane.xlu0 %2128 }
 0xe91   : > { %v2132_v31 = vmul.f32 0.015625, %v2129_v12  ;;  %v2351_v12 = vld [vmem:[%s9779_s16 + $0x48] sm:$0xff] }
 0xe93   : > { %v2135_v14 = vsub.f32 %v8348_v27, %v2132_v31  ;;  %v7083_v31 = vpack.c.bf16 %v2351_v12, %v2350_v30 }
 0xe95   : > { %v2138_v60 = vmul.f32 %v2135_v14, %v2135_v14 }
 0xe97   : > { %v2145_v32 = vsel %vm788_vm2, %v2138_v60, 0.0  ;;  %v2369_v60 = vld [vmem:[%s9779_s16 + $0xd8] sm:$0xff] }
 0xe98   : > { %2146 = vadd.xlane.f32.xlu0 %v2145_v32 }
 0xef4   : > { %v2141_v35 = vpop.xlane.xlu0 %2140 }
 0xef5   : > { %v2148_v62 = vmul.f32 0.015625, %v2141_v35  ;;  %v2352_v35 = vld [vmem:[%s9779_s16 + $0x50] sm:$0xff] }
 0xef7   : > { %v2151_v36 = vadd.f32 1e-05, %v2148_v62  ;;  %v2353_v62 = vld [vmem:[%s9779_s16 + $0x58] sm:$0xff] }
 0xef8   : > { %v2144_v37 = vpop.xlane.xlu0 %2143 }
 0xef9   : > { %7500 = vrsqrt.f32 %v2151_v36  ;;  %v2149_v38 = vmul.f32 0.015625, %v2144_v37  ;;  %v7087_v36 = vpack.c.bf16 %v2353_v62, %v2352_v35  ;;  %v2370_v37 = vld [vmem:[%s9779_s16 + $0xe0] sm:$0xff] }
 0xefb   : > { %v2152_v55 = vadd.f32 1e-05, %v2149_v38  ;;  %v2371_v38 = vld [vmem:[%s9779_s16 + $0xe8] sm:$0xff] }
 0xefd   : > { %7502 = vrsqrt.f32 %v2152_v55  ;;  %v7089_v55 = vpack.c.bf16 %v2371_v38, %v2370_v37 }
 0xf03   : > { %v7501_v16 = vpop.eup %7500 }
 0xf04   : > { %v2157_v40 = vmul.f32 %v7501_v16, %v2133_v53  ;;  %v2354_v16 = vld [vmem:[%s9779_s16 + $0x60] sm:$0xff] }
 0xf06   : > { %v2164_v1 = vmul.f32 %v5908_v39, %v2157_v40 }
 0xf07   : > { %v7503_v43 = vpop.eup %7502 }
 0xf08   : > { %v2171_v46 = vadd.f32 %v5909_v41, %v2164_v1  ;;  %v2158_v47 = vmul.f32 %v7503_v43, %v2134_v57  ;;  %v2358_v57 = vld [vmem:[%s9779_s16 + $0x80] sm:$0xff]  ;;  %v2373_v1 = vld [vmem:[%s9779_s16 + $0xf8] sm:$0xff] }
 0xf09   : > { %v7065_v63 = vpack.c.bf16 %v2359_v61, %v2358_v57 }
 0xf0a   : > { %5910 = vmatmul.mubr.msk.f32.vlgmr.msra.gmra.mrb[16].mxu0 %vm681_vm0, %v2171_v46  ;;  %v2165_v48 = vmul.f32 %v5908_v39, %v2158_v47  ;;  %v2356_v46 = vld [vmem:[%s9779_s16 + $0x70] sm:$0xff]  ;;  %v2357_v47 = vld [vmem:[%s9779_s16 + $0x78] sm:$0xff] }
 0xf0b   : > { %2281 = vmatprep.mubr.f32.mxu0 %v7709_v8  ;;  %7066 = vmatprep.subr.bf16.mxu1 %v7065_v63 }
 0xf0c   : > { %v2172_v49 = vadd.f32 %v5909_v41, %v2165_v48  ;;  %7068 = vmatpush3.bf16.msra.mxu1 %v7067_v5  ;;  %v7095_v48 = vpack.c.bf16 %v2357_v47, %v2356_v46 }
 0xf0d   : > { %7070 = vmatprep.subr.bf16.mxu1 %v7069_v9 }
 0xf0e   : > { %5911 = vmatmul.mubr.msk.f32.gmra.mrb[18].mxu0 %vm681_vm0, %v2172_v49  ;;  %v2190_v49 = vld [vmem:[%s9778_s15] ss:$4 sm:$0x3] }
 0xf0f   : > { %2287 = vmatprep.mubr.f32.mxu0 %v7709_v8 }
 0xf10   : > { %7072 = vmatpush3.bf16.msra.mxu1 %v7071_v13 }
 0xf11   : > { %7074 = vmatprep.subr.bf16.mxu1 %v7073_v18 }
 0xf14   : > { %7076 = vmatpush3.bf16.msra.mxu1 %v7075_v21 }
 0xf15   : > { %7078 = vmatprep.subr.bf16.mxu1 %v7077_v24 }
 0xf18   : > { %7080 = vmatpush3.bf16.msra.mxu1 %v7079_v28 }
 0xf19   : > { %7082 = vmatprep.subr.bf16.mxu1 %v7081_v4 }
 0xf1c   : > { %7084 = vmatpush3.bf16.msra.mxu1 %v7083_v31 }
 0xf25   : > { %v2147_v50 = vpop.xlane.xlu0 %2146 }
 0xf26   : > { %v2150_v59 = vmul.f32 0.015625, %v2147_v50  ;;  %v2195_v50 = vrot.slane %v2190_v49, %v8055_v42 }
 0xf28   : > { %v2153_v52 = vadd.f32 1e-05, %v2150_v59  ;;  %v2199_v59 = vrot.slane %v2190_v49, %v8060_v44 }
 0xf2a   : > { %7504 = vrsqrt.f32 %v2153_v52 }
 0xf34   : > { %v7505_v53 = vpop.eup %7504 }
 0xf35   : > { %v2159_v34 = vmul.f32 %v7505_v53, %v2135_v14  ;;  %v2368_v14 = vld [vmem:[%s9779_s16 + $0xd0] sm:$0xff] }
 0xf36   : > { %v7085_v32 = vpack.c.bf16 %v2369_v60, %v2368_v14 }
 0xf37   : > { %v2166_v54 = vmul.f32 %v5908_v39, %v2159_v34  ;;  %v2355_v39 = vld [vmem:[%s9779_s16 + $0x68] sm:$0xff] }
 0xf38   : > { %7086 = vmatprep.subr.bf16.mxu1 %v7085_v32  ;;  %v7091_v40 = vpack.c.bf16 %v2355_v39, %v2354_v16 }
 0xf39   : > { %v2173_v56 = vadd.f32 %v5909_v41, %v2166_v54  ;;  %7088 = vmatpush3.bf16.msra.mxu1 %v7087_v36  ;;  %v2372_v41 = vld [vmem:[%s9779_s16 + $0xf0] sm:$0xff] }
 0xf3a   : > { %7090 = vmatprep.subr.bf16.mxu1 %v7089_v55  ;;  %v7093_v43 = vpack.c.bf16 %v2373_v1, %v2372_v41 }
 0xf3b   : > { %5912 = vmatmul.mubr.msk.f32.gmra.mrb[20].mxu0 %vm681_vm0, %v2173_v56 }
 0xf3c   : > { %2620 = vmatprep.mubr.f32.mxu0 %v7709_v8 }
 0xf3d   : > { %7092 = vmatpush3.bf16.msra.mxu1 %v7091_v40 }
 0xf3e   : > { %7094 = vmatprep.subr.bf16.mxu1 %v7093_v43  ;;  %v5919_v43 = vld [vmem:[%s9780_s17] ss:$0 sm:$0xff] }
 0xf41   : > { %7096 = vmatpush3.bf16.msra.mxu1 %v7095_v48 }
 0xf42   : > { %7120 = vmatprep.subr.bf16.mxu1 %v7708_v3 }
 0xfdd   : > { %v2277_v52 = vpop.f32.mrb[16].mxu0 }
 0xfde   : > { %v2278_v53 = vadd.f32 %v2277_v52, %v2195_v50  ;;  %v2279_v34 = vpop.f32.mrb[17].mxu0 }
 0xfdf   : > { %v2280_v54 = vadd.f32 %v2279_v34, %v2199_v59 }
 0xfe0   : > { %v5913_v56 = vmul.f32 -1.702, %v2278_v53 }
 0xfe1   : > { %v5914_v57 = vmul.f32 -1.702, %v2280_v54  ;;  %v2283_v61 = vpop.f32.mrb[18].mxu0 }
 0xfe2   : > { %v2306_v63 = vmul.f32 1.442695, %v5913_v56  ;;  %v2284_v33 = vadd.f32 %v2283_v61, %v2195_v50  ;;  %v2285_v2 = vpop.f32.mrb[19].mxu0 }
 0xfe3   : > { %v2308_v5 = vmul.f32 1.442695, %v5914_v57  ;;  %v2286_v6 = vadd.f32 %v2285_v2, %v2199_v59 }
 0xfe4   : > { %7506 = vpow2.f32 %v2306_v63  ;;  %v5915_v7 = vmul.f32 -1.702, %v2284_v33 }
 0xfe5   : > { %7508 = vpow2.f32 %v2308_v5  ;;  %v5916_v9 = vmul.f32 -1.702, %v2286_v6 }
 0xfe6   : > { %v2310_v10 = vmul.f32 1.442695, %v5915_v7 }
 0xfe7   : > { %v2312_v11 = vmul.f32 1.442695, %v5916_v9 }
 0xfe8   : > { %7510 = vpow2.f32 %v2310_v10 }
 0xfe9   : > { %7512 = vpow2.f32 %v2312_v11 }
 0xfee   : > { %v7507_v13 = vpop.eup %7506 }
 0xfef   : > { %v7509_v15 = vpop.eup %7508  ;;  %v2318_v17 = vadd.f32 1.0, %v7507_v13 }
 0xff0   : > { %v2319_v18 = vadd.f32 1.0, %v7509_v15 }
 0xff1   : > { %7514 = vrcp.f32 %v2318_v17  ;;  %v5923_v17 = vld [vmem:[%s9771_s8 + $0x88] sm:$0xff] }
 0xff2   : > { %v7511_v19 = vpop.eup %7510  ;;  %7516 = vrcp.f32 %v2319_v18  ;;  %v5925_v18 = vld [vmem:[%s9771_s8 + $0x98] sm:$0xff] }
 0xff3   : > { %v7513_v20 = vpop.eup %7512  ;;  %v2320_v21 = vadd.f32 1.0, %v7511_v19  ;;  %v7097_v19 = vpack.c.bf16 %v5925_v18, %v5923_v17 }
 0xff4   : > { %v2321_v22 = vadd.f32 1.0, %v7513_v20  ;;  %v5922_v20 = vld [vmem:[%s9771_s8 + $0x80] sm:$0xff] }
 0xff5   : > { %7518 = vrcp.f32 %v2320_v21  ;;  %v5924_v21 = vld [vmem:[%s9771_s8 + $0x90] sm:$0xff]  ;;  %7098 = vmatprep.subr.bf16.mxu0 %v7097_v19 }
 0xff6   : > { %7520 = vrcp.f32 %v2321_v22  ;;  %v7099_v22 = vpack.c.bf16 %v5924_v21, %v5922_v20 }
 0xff8   : > { %7100 = vmatpush1.bf16.msra.mxu0 %v7099_v22 }
 0xffb   : > { %v7515_v23 = vpop.eup %7514 }
 0xffc   : > { %v7517_v24 = vpop.eup %7516  ;;  %v2336_v26 = vmul.f32 %v7515_v23, %v2278_v53  ;;  %v5927_v23 = vld [vmem:[%s9771_s8 + $0xa8] sm:$0xff] }
 0xffd   : > { %v2337_v25 = vmul.f32 %v7517_v24, %v2280_v54  ;;  %v5929_v24 = vld [vmem:[%s9771_s8 + $0xb8] sm:$0xff] }
 0xfff   : > { %v7519_v28 = vpop.eup %7518  ;;  %2443 = vmatprep.mubr.f32.mxu1 %v2337_v25  ;;  %v7101_v25 = vpack.c.bf16 %v5929_v24, %v5927_v23 }
0x1000   : > { %v7521_v58 = vpop.eup %7520  ;;  %2444 = vmatmul.mubr.f32.vlgmr.msra.gmra.mrb[48].mxu1 %v2336_v26  ;;  %v2338_v4 = vmul.f32 %v7519_v28, %v2284_v33  ;;  %v5926_v26 = vld [vmem:[%s9771_s8 + $0xa0] sm:$0xff]  ;;  %v5928_v28 = vld [vmem:[%s9771_s8 + $0xb0] sm:$0xff] }
0x1001   : > { %v2339_v29 = vmul.f32 %v7521_v58, %v2286_v6  ;;  %v7103_v58 = vpack.c.bf16 %v5928_v28, %v5926_v26  ;;  %7102 = vmatprep.subr.bf16.mxu0 %v7101_v25 }
0x1003   : > { %2448 = vmatprep.mubr.f32.mxu1 %v2339_v29  ;;  %7104 = vmatpush1.bf16.msra.mxu0 %v7103_v58  ;;  %v5931_v29 = vld [vmem:[%s9771_s8 + $0xc8] sm:$0xff] }
0x1004   : > { %2449 = vmatmul.mubr.f32.gmra.mrb[50].mxu1 %v2338_v4  ;;  %v5933_v4 = vld [vmem:[%s9771_s8 + $0xd8] sm:$0xff] }
0x100e   : > { %v2289_v30 = vpop.f32.mrb[20].mxu0 }
0x100f   : > { %v2290_v12 = vadd.f32 %v2289_v30, %v2195_v50  ;;  %v2291_v31 = vpop.f32.mrb[21].mxu0  ;;  %v7105_v30 = vpack.c.bf16 %v5933_v4, %v5931_v29 }
0x1010   : > { %v2292_v14 = vadd.f32 %v2291_v31, %v2199_v59  ;;  %v5932_v31 = vld [vmem:[%s9771_s8 + $0xd0] sm:$0xff] }
0x1011   : > { %v5917_v60 = vmul.f32 -1.702, %v2290_v12  ;;  %7106 = vmatprep.subr.bf16.mxu0 %v7105_v30 }
0x1012   : > { %v5918_v32 = vmul.f32 -1.702, %v2292_v14 }
0x1013   : > { %v2314_v35 = vmul.f32 1.442695, %v5917_v60  ;;  %v5935_v60 = vld [vmem:[%s9771_s8 + $0xe8] sm:$0xff] }
0x1014   : > { %v2316_v62 = vmul.f32 1.442695, %v5918_v32  ;;  %v5937_v32 = vld [vmem:[%s9771_s8 + $0xf8] sm:$0xff] }
0x1015   : > { %7522 = vpow2.f32 %v2314_v35  ;;  %v7109_v35 = vpack.c.bf16 %v5937_v32, %v5935_v60 }
0x1016   : > { %7524 = vpow2.f32 %v2316_v62  ;;  %v5934_v62 = vld [vmem:[%s9771_s8 + $0xe0] sm:$0xff] }
0x101f   : > { %v7523_v36 = vpop.eup %7522 }
0x1020   : > { %v7525_v37 = vpop.eup %7524  ;;  %v2322_v38 = vadd.f32 1.0, %v7523_v36  ;;  %v5936_v36 = vld [vmem:[%s9771_s8 + $0xf0] sm:$0xff] }
0x1021   : > { %v2323_v55 = vadd.f32 1.0, %v7525_v37  ;;  %v7111_v37 = vpack.c.bf16 %v5936_v36, %v5934_v62 }
0x1022   : > { %7526 = vrcp.f32 %v2322_v38 }
0x1023   : > { %7528 = vrcp.f32 %v2323_v55 }
0x102c   : > { %v7527_v16 = vpop.eup %7526 }
0x102d   : > { %v7529_v39 = vpop.eup %7528  ;;  %v2340_v41 = vmul.f32 %v7527_v16, %v2290_v12  ;;  %v5930_v12 = vld [vmem:[%s9771_s8 + $0xc0] sm:$0xff] }
0x102e   : > { %v2341_v40 = vmul.f32 %v7529_v39, %v2292_v14  ;;  %v7107_v14 = vpack.c.bf16 %v5932_v31, %v5930_v12 }
0x1030   : > { %2453 = vmatprep.mubr.f32.mxu1 %v2341_v40  ;;  %7108 = vmatpush1.bf16.msra.mxu0 %v7107_v14 }
0x1031   : > { %2454 = vmatmul.mubr.f32.gmra.mrb[52].mxu1 %v2340_v41  ;;  %7110 = vmatprep.subr.bf16.mxu0 %v7109_v35 }
0x1032   : > { %6684 = vmatprep.mubr.msk.f32.mxu1 %vm7711_vm3, %v7709_v8 }
0x1034   : > { %7112 = vmatpush1.bf16.msra.mxu0 %v7111_v37 }
0x1035   : > { %7113 = vmatprep.subr.bf16.mxu0 %v7708_v3 }
0x10d3   : > { %v6285_v1 = vpop.f32.mrb[48].mxu1 }
0x10d4   : > { %v6286_v46 = vpop.f32.mrb[49].mxu1 }
0x10d5   : > { %v6287_v47 = vadd.f32 %v6286_v46, %v6285_v1 }
0x10d7   : > { %v2446_v48 = vadd.f32 %v6287_v47, %v5919_v43  ;;  %v6288_v49 = vpop.f32.mrb[50].mxu1 }
0x10d8   : > { %v6289_v50 = vpop.f32.mrb[51].mxu1 }
0x10d9   : > { %v8526_v59 = vadd.f32 %v2446_v48, %v8338_v51  ;;  %v6290_v52 = vadd.f32 %v6289_v50, %v6288_v49  ;;  %v5920_v50 = vld [vmem:[%s9769_s6 + $0x1] ss:$0 sm:$0xff] }
0x10db   : > { %v2451_v53 = vadd.f32 %v6290_v52, %v5919_v43  ;;  %v2464_v34 = vsel %vm681_vm0, %v8526_v59, 0.0 }
0x10dc   : > { %2465 = vadd.xlane.f32.xlu1 %v2464_v34 }
0x10dd   : > { %v8531_v54 = vadd.f32 %v2451_v53, %v8343_v45  ;;  %v5921_v53 = vld [vmem:[%s9770_s7 + $0x1] ss:$0 sm:$0xff] }
0x10df   : > { %v2467_v56 = vsel %vm681_vm0, %v8531_v54, 0.0 }
0x10e0   : > { %2468 = vadd.xlane.f32.xlu0 %v2467_v56 }
0x1104   : > { %v6291_v57 = vpop.f32.mrb[52].mxu1 }
0x1105   : > { %v6292_v61 = vpop.f32.mrb[53].mxu1 }
0x1106   : > { %v6293_v63 = vadd.f32 %v6292_v61, %v6291_v57 }
0x1108   : > { %v2456_v33 = vadd.f32 %v6293_v63, %v5919_v43 }
0x110a   : > { %v8536_v51 = vadd.f32 %v2456_v33, %v8348_v27 }
0x110c   : > { %v2470_v2 = vsel %vm788_vm2, %v8536_v51, 0.0 }
0x110d   : > { %2471 = vadd.xlane.f32.xlu1 %v2470_v2 }
0x1169   : > { %v2466_v5 = vpop.xlane.xlu1 %2465 }
0x116a   : > { %v2473_v6 = vmul.f32 0.015625, %v2466_v5 }
0x116c   : > { %v2476_v45 = vsub.f32 %v8526_v59, %v2473_v6 }
0x116d   : > { %v2469_v7 = vpop.xlane.xlu0 %2468 }
0x116e   : > { %v2474_v9 = vmul.f32 0.015625, %v2469_v7  ;;  %v2479_v10 = vmul.f32 %v2476_v45, %v2476_v45 }
0x1170   : > { %v2477_v11 = vsub.f32 %v8531_v54, %v2474_v9  ;;  %v2482_v13 = vsel %vm681_vm0, %v2479_v10, 0.0 }
0x1171   : > { %2483 = vadd.xlane.f32.xlu0 %v2482_v13 }
0x1172   : > { %v2480_v15 = vmul.f32 %v2477_v11, %v2477_v11 }
0x1174   : > { %v2485_v27 = vsel %vm681_vm0, %v2480_v15, 0.0 }
0x1175   : > { %2486 = vadd.xlane.f32.xlu1 %v2485_v27 }
0x119a   : > { %v2472_v38 = vpop.xlane.xlu1 %2471 }
0x119b   : > { %v2475_v55 = vmul.f32 0.015625, %v2472_v38 }
0x119d   : > { %v2478_v16 = vsub.f32 %v8536_v51, %v2475_v55 }
0x119f   : > { %v2481_v39 = vmul.f32 %v2478_v16, %v2478_v16 }
0x11a1   : > { %v2488_v40 = vsel %vm788_vm2, %v2481_v39, 0.0 }
0x11a2   : > { %2489 = vadd.xlane.f32.xlu0 %v2488_v40 }
0x11fe   : > { %v2484_v41 = vpop.xlane.xlu0 %2483 }
0x11ff   : > { %v2491_v1 = vmul.f32 0.015625, %v2484_v41 }
0x1201   : > { %v2494_v43 = vadd.f32 1e-05, %v2491_v1 }
0x1202   : > { %v2487_v46 = vpop.xlane.xlu1 %2486 }
0x1203   : > { %7530 = vrsqrt.f32 %v2494_v43  ;;  %v2492_v47 = vmul.f32 0.015625, %v2487_v46 }
0x1205   : > { %v2495_v48 = vadd.f32 1e-05, %v2492_v47 }
0x1207   : > { %7532 = vrsqrt.f32 %v2495_v48 }
0x120d   : > { %v7531_v49 = vpop.eup %7530 }
0x120e   : > { %v2500_v52 = vmul.f32 %v7531_v49, %v2476_v45 }
0x1210   : > { %v2507_v34 = vmul.f32 %v5920_v50, %v2500_v52 }
0x1211   : > { %v7533_v56 = vpop.eup %7532 }
0x1212   : > { %v2514_v57 = vadd.f32 %v5921_v53, %v2507_v34  ;;  %v2501_v61 = vmul.f32 %v7533_v56, %v2477_v11  ;;  %v5938_v11 = vld [vmem:[%s9772_s9 + $0x1] ss:$4 sm:$0x3] }
0x1213   : > { %v2540_v15 = vrot.slane %v5938_v11, %v8055_v42  ;;  %v2544_v17 = vrot.slane %v5938_v11, %v8060_v44 }
0x1214   : > { %5939 = vmatmul.mubr.msk.f32.vlgmr.msra.gmra.mrb[22].mxu0 %vm681_vm0, %v2514_v57  ;;  %v2508_v63 = vmul.f32 %v5920_v50, %v2501_v61 }
0x1215   : > { %2626 = vmatprep.mubr.f32.mxu0 %v7709_v8 }
0x1216   : > { %v2515_v33 = vadd.f32 %v5921_v53, %v2508_v63 }
0x1218   : > { %5940 = vmatmul.mubr.msk.f32.gmra.mrb[24].mxu0 %vm681_vm0, %v2515_v33 }
0x1219   : > { %2632 = vmatprep.mubr.f32.mxu0 %v7709_v8 }
0x122f   : > { %v2490_v2 = vpop.xlane.xlu0 %2489 }
0x1230   : > { %v2493_v5 = vmul.f32 0.015625, %v2490_v2 }
0x1232   : > { %v2496_v6 = vadd.f32 1e-05, %v2493_v5 }
0x1234   : > { %7534 = vrsqrt.f32 %v2496_v6 }
0x123e   : > { %v7535_v45 = vpop.eup %7534 }
0x123f   : > { %v2502_v7 = vmul.f32 %v7535_v45, %v2478_v16 }
0x1241   : > { %v2509_v9 = vmul.f32 %v5920_v50, %v2502_v7 }
0x1243   : > { %v2516_v10 = vadd.f32 %v5921_v53, %v2509_v9 }
0x1245   : > { %5941 = vmatmul.mubr.msk.f32.gmra.mrb[26].mxu0 %vm681_vm0, %v2516_v10 }
0x1246   : > { %6654 = vmatprep.mubr.msk.f32.mxu0 %vm7711_vm3, %v7709_v8 }
0x12e7   : > { %v2622_v13 = vpop.f32.mrb[22].mxu0 }
0x12e8   : > { %v2624_v27 = vpop.f32.mrb[23].mxu0  ;;  %v2623_v19 = vadd.f32 %v2622_v13, %v2540_v15 }
0x12e9   : > { %v2625_v22 = vadd.f32 %v2624_v27, %v2544_v17 }
0x12eb   : > { %v2628_v18 = vpop.f32.mrb[24].mxu0 }
0x12ec   : > { %v2629_v20 = vadd.f32 %v2628_v18, %v2540_v15  ;;  %v2630_v21 = vpop.f32.mrb[25].mxu0 }
0x12ed   : > { %v2631_v23 = vadd.f32 %v2630_v21, %v2544_v17 }
0x12ee   : > { %v7370_v24 = vpack.i.bf16 %v2629_v20, %v2623_v19 }
0x12ef   : > { %v7118_v25 = vpack.c.bf16 %v2631_v23, %v2625_v22  ;;  %v8613_v26 = vpack.i.bf16 %v2631_v23, %v2625_v22 }
0x12f0   : > { %7371 = vrot.lane.b32.xlu1 %v7370_v24, %s9824_s29 }
0x12f4   : > { %7376 = vrot.lane.b32.xlu1 %v7370_v24, %s9823_s30 }
0x1318   : > { %v2634_v28 = vpop.f32.mrb[26].mxu0 }
0x1319   : > { %v2635_v58 = vadd.f32 %v2634_v28, %v2540_v15  ;;  %v2636_v29 = vpop.f32.mrb[27].mxu0 }
0x131a   : > { %v8647_v39 = vadd.f32 %v2636_v29, %v2544_v17 }
0x131b   : > { %2646 = vrot.lane.b32.xlu0 %v2635_v58, %s9824_s29  ;;  %2878 = vrot.lane.b32.xlu1 %v2635_v58, %s9823_s30 }
0x131f   : > { %7381 = vrot.lane.b32.xlu0 %v7370_v24, %s9825_s0  ;;  %2868 = vrot.lane.b32.xlu1 %v2623_v19, %s9826_s4 }
0x1323   : > { %2870 = vrot.lane.b32.xlu0 %v2629_v20, %s9826_s4  ;;  %2872 = vrot.lane.b32.xlu1 %v2635_v58, %s9826_s4 }
0x1327   : > { %3119 = vrot.lane.b32.xlu0 %v2635_v58, %s9825_s0  ;;  %7386 = vrot.lane.b32.xlu1 %v7370_v24, %s9827_s24 }
0x132b   : > { %3109 = vrot.lane.b32.xlu0 %v2623_v19, %s9828_s22  ;;  %3111 = vrot.lane.b32.xlu1 %v2629_v20, %s9828_s22 }
0x132f   : > { %3113 = vrot.lane.b32.xlu0 %v2635_v58, %s9828_s22  ;;  %3358 = vrot.lane.b32.xlu1 %v2635_v58, %s9827_s24 }
0x1333   : > { %3348 = vrot.lane.b32.xlu0 %v2623_v19, %s9829_s5  ;;  %3350 = vrot.lane.b32.xlu1 %v2629_v20, %s9829_s5 }
0x1337   : > { %3352 = vrot.lane.b32.xlu0 %v2635_v58, %s9829_s5 }
0x1362   : > { %v7372_v4 = vpop.permute.xlu1 %7371 }
0x1363   : > { %v7374_v30 = vunpack.i.h.bf16 %v7372_v4  ;;  %v7373_v12 = vunpack.i.l.bf16 %v7372_v4 }
0x1365   : > { %v7114_v31 = vpack.c.bf16 %v7374_v30, %v7373_v12 }
0x1366   : > { %v7377_v14 = vpop.permute.xlu1 %7376 }
0x1367   : > { %v7379_v60 = vunpack.i.h.bf16 %v7377_v14  ;;  %v7378_v32 = vunpack.i.l.bf16 %v7377_v14  ;;  %7116 = vmatpush3.bf16.xpose.msk.msra.mxu0 %vm8086_vm5, %v7114_v31 }
0x1368   : > { %6652 = vmatprep.subr.mxu0 %v7709_v8 }
0x1369   : > { %v7121_v35 = vpack.c.bf16 %v7379_v60, %v7378_v32 }
0x136b   : > { %7123 = vmatpush3.bf16.xpose.msk.msra.mxu1 %vm8086_vm5, %v7121_v35 }
0x136c   : > { %6682 = vmatprep.subr.mxu1 %v7709_v8 }
0x138d   : > { %v2647_v62 = vpop.permute.xlu0 %2646  ;;  %v2879_v36 = vpop.permute.xlu1 %2878 }
0x138e   : > { %6653 = vmatpush3.xpose.msk.msra.mxu0 %vm1025_vm4, %v2647_v62  ;;  %6683 = vmatpush3.xpose.msk.msra.mxu1 %vm1025_vm4, %v2879_v36 }
0x138f   : > { %7117 = vmatprep.subr.bf16.mxu0 %v7708_v3  ;;  %7127 = vmatprep.subr.bf16.mxu1 %v7708_v3 }
0x1391   : > { %v7382_v37 = vpop.permute.xlu0 %7381  ;;  %v2869_v38 = vpop.permute.xlu1 %2868  ;;  %6655 = vmatmul.mubr.msk.f32.vlgmr.msra.gmra.mrb[28].mxu0 %vm1025_vm4, %v2623_v19 }
0x1392   : > { %v7384_v55 = vunpack.i.h.bf16 %v7382_v37  ;;  %v7383_v16 = vunpack.i.l.bf16 %v7382_v37  ;;  %7119 = vmatpush3.bf16.msra.mxu0 %v7118_v25  ;;  %6685 = vmatmul.mubr.msk.f32.vlgmr.msra.gmra.mrb[54].mxu1 %vm1025_vm4, %v2869_v38 }
0x1393   : > { %6657 = vmatprep.mubr.msk.f32.mxu0 %vm7711_vm3, %v7709_v8  ;;  %6667 = vmatprep.subr.mxu0 %v7709_v8 }
0x1394   : > { %v7128_v40 = vpack.c.bf16 %v7384_v55, %v7383_v16  ;;  %6687 = vmatprep.mubr.msk.f32.mxu1 %vm7711_vm3, %v7709_v8 }
0x1395   : > { %v2871_v41 = vpop.permute.xlu0 %2870  ;;  %v2873_v1 = vpop.permute.xlu1 %2872  ;;  %6658 = vmatmul.mubr.msk.f32.gmra.mrb[30].mxu0 %vm1025_vm4, %v2629_v20 }
0x1396   : > { %6668 = vmatpush3.msk.msra.mxu0 %vm766_vm1, %v8647_v39  ;;  %6688 = vmatmul.mubr.msk.f32.gmra.mrb[56].mxu1 %vm1025_vm4, %v2871_v41 }
0x1397   : > { %7130 = vmatpush3.bf16.xpose.msk.msra.mxu1 %vm8086_vm5, %v7128_v40  ;;  %6660 = vmatprep.mubr.msk.f32.mxu0 %vm7711_vm3, %v7709_v8 }
0x1398   : > { %6690 = vmatprep.mubr.msk.f32.mxu1 %vm7711_vm3, %v7709_v8  ;;  %6712 = vmatprep.subr.mxu1 %v7709_v8 }
0x1399   : > { %6661 = vmatmul.mubr.msk.f32.gmra.mrb[32].mxu0 %vm1025_vm4, %v2635_v58  ;;  %7124 = vmatprep.subr.bf16.mxu0 %v7708_v3  ;;  %v7387_v43 = vpop.permute.xlu1 %7386  ;;  %v3120_v46 = vpop.permute.xlu0 %3119 }
0x139a   : > { %6691 = vmatmul.mubr.msk.f32.gmra.mrb[58].mxu1 %vm1025_vm4, %v2873_v1  ;;  %6669 = vmatprep.mubr.msk.f32.mxu0 %vm7711_vm3, %v7709_v8  ;;  %v7389_v47 = vunpack.i.h.bf16 %v7387_v43  ;;  %v7388_v48 = vunpack.i.l.bf16 %v7387_v43 }
0x139b   : > { %6714 = vmatprep.mubr.msk.f32.mxu1 %vm7711_vm3, %v7709_v8 }
0x139c   : > { %v7135_v49 = vpack.c.bf16 %v7389_v47, %v7388_v48 }
0x139d   : > { %v3110_v50 = vpop.permute.xlu0 %3109  ;;  %v3112_v52 = vpop.permute.xlu1 %3111 }
0x139f   : > { %6713 = vmatpush3.xpose.msk.msra.mxu1 %vm1025_vm4, %v3120_v46 }
0x13a0   : > { %7134 = vmatprep.subr.bf16.mxu1 %v7708_v3 }
0x13a1   : > { %v3114_v53 = vpop.permute.xlu0 %3113  ;;  %v3359_v34 = vpop.permute.xlu1 %3358 }
0x13a2   : > { %6715 = vmatmul.mubr.msk.f32.vlgmr.msra.gmra.mrb[60].mxu1 %vm1025_vm4, %v3110_v50 }
0x13a3   : > { %7137 = vmatpush3.bf16.xpose.msk.msra.mxu1 %vm8086_vm5, %v7135_v49  ;;  %6717 = vmatprep.mubr.msk.f32.mxu1 %vm7711_vm3, %v7709_v8 }
0x13a4   : > { %6742 = vmatprep.subr.mxu1 %v7709_v8 }
0x13a5   : > { %v3349_v56 = vpop.permute.xlu0 %3348  ;;  %v3351_v57 = vpop.permute.xlu1 %3350 }
0x13a6   : > { %6718 = vmatmul.mubr.msk.f32.gmra.mrb[62].mxu1 %vm1025_vm4, %v3112_v52 }
0x13a7   : > { %6720 = vmatprep.mubr.msk.f32.mxu1 %vm7711_vm3, %v7709_v8 }
0x13a9   : > { %v3353_v61 = vpop.permute.xlu0 %3352 }
0x13aa   : > { %6721 = vmatmul.mubr.msk.f32.gmra.mrb[64].mxu1 %vm1025_vm4, %v3114_v53 }
0x13ab   : > { %6743 = vmatpush3.xpose.msk.msra.mxu1 %vm1025_vm4, %v3359_v34  ;;  %6744 = vmatprep.mubr.msk.f32.mxu1 %vm7711_vm3, %v7709_v8 }
0x13ac   : > { %7141 = vmatprep.subr.bf16.mxu1 %v7708_v3 }
0x13ae   : > { %6745 = vmatmul.mubr.msk.f32.vlgmr.msra.gmra.mrb[66].mxu1 %vm1025_vm4, %v3349_v56 }
0x13af   : > { %6747 = vmatprep.mubr.msk.f32.mxu1 %vm7711_vm3, %v7709_v8 }
0x13b2   : > { %6748 = vmatmul.mubr.msk.f32.gmra.mrb[68].mxu1 %vm1025_vm4, %v3351_v57 }
0x13b3   : > { %6750 = vmatprep.mubr.msk.f32.mxu1 %vm7711_vm3, %v7709_v8 }
0x13b6   : > { %6751 = vmatmul.mubr.msk.f32.gmra.mrb[70].mxu1 %vm1025_vm4, %v3353_v61 }
0x13b7   : > { %6784 = vmatprep.mubr.msk.f32.mxu1 %vm7711_vm3, %v7709_v8 }
0x1464   : > { %v2726_v63 = vpop.f32.mrb[28].mxu0 }
0x1465   : > { %v2740_v33 = vmul.f32 0.25, %v2726_v63  ;;  %v6656_v2 = vpop.f32.mrb[29].mxu0  ;;  %v2958_v5 = vpop.f32.mrb[54].mxu1 }
0x1466   : > { %v6686_v6 = vpop.f32.mrb[55].mxu1  ;;  %v8694_v45 = vmul.f32 0.25, %v2958_v5 }
0x1467   : > { %v2743_v7 = vsel %vm1121_vm6, %v2740_v33, -inf }
0x1468   : > { %2744 = vmax.xlane.f32.xlu1 %v2743_v7  ;;  %v2731_v9 = vpop.f32.mrb[30].mxu0  ;;  %v2975_v27 = vsel %vm1121_vm6, %v8694_v45, -inf }
0x1469   : > { %v2741_v10 = vmul.f32 0.25, %v2731_v9  ;;  %v6659_v11 = vpop.f32.mrb[31].mxu0  ;;  %v2963_v13 = vpop.f32.mrb[56].mxu1 }
0x146a   : > { %v6689_v15 = vpop.f32.mrb[57].mxu1  ;;  %v2973_v24 = vmul.f32 0.25, %v2963_v13 }
0x146b   : > { %v2746_v17 = vsel %vm1121_vm6, %v2741_v10, -inf }
0x146c   : > { %2976 = vmax.xlane.f32.xlu1 %v2975_v27  ;;  %2747 = vmax.xlane.f32.xlu0 %v2746_v17  ;;  %v2736_v18 = vpop.f32.mrb[32].mxu0  ;;  %v2978_v58 = vsel %vm1121_vm6, %v2973_v24, -inf }
0x146d   : > { %v2742_v19 = vmul.f32 0.25, %v2736_v18  ;;  %v6662_v20 = vpop.f32.mrb[33].mxu0  ;;  %v2968_v21 = vpop.f32.mrb[58].mxu1 }
0x146e   : > { %v8700_v22 = vmul.f32 0.25, %v2968_v21  ;;  %v6692_v23 = vpop.f32.mrb[59].mxu1 }
0x146f   : > { %v2749_v25 = vsel %vm1128_vm7, %v2742_v19, -inf }
0x1470   : > { %2750 = vmax.xlane.f32.xlu0 %v2749_v25  ;;  %v2981_v28 = vsel %vm1128_vm7, %v8700_v22, -inf }
0x1471   : > { %2982 = vmax.xlane.f32.xlu1 %v2981_v28 }
0x1474   : > { %2979 = vmax.xlane.f32.xlu0 %v2978_v58 }
0x1475   : > { %v3199_v29 = vpop.f32.mrb[60].mxu1 }
0x1476   : > { %v8706_v4 = vmul.f32 0.25, %v3199_v29  ;;  %v6716_v30 = vpop.f32.mrb[61].mxu1 }
0x1478   : > { %v3216_v12 = vsel %vm1121_vm6, %v8706_v4, -inf }
0x1479   : > { %v3204_v31 = vpop.f32.mrb[62].mxu1  ;;  %3217 = vmax.xlane.f32.xlu0 %v3216_v12 }
0x147a   : > { %v8710_v14 = vmul.f32 0.25, %v3204_v31  ;;  %v6719_v60 = vpop.f32.mrb[63].mxu1 }
0x147c   : > { %v3219_v32 = vsel %vm1121_vm6, %v8710_v14, -inf }
0x147d   : > { %v3209_v35 = vpop.f32.mrb[64].mxu1  ;;  %3220 = vmax.xlane.f32.xlu1 %v3219_v32 }
0x147e   : > { %v8714_v62 = vmul.f32 0.25, %v3209_v35  ;;  %v6722_v36 = vpop.f32.mrb[65].mxu1 }
0x1480   : > { %v3222_v37 = vsel %vm1128_vm7, %v8714_v62, -inf }
0x1481   : > { %v3438_v38 = vpop.f32.mrb[66].mxu1  ;;  %3223 = vmax.xlane.f32.xlu0 %v3222_v37 }
0x1482   : > { %v8718_v55 = vmul.f32 0.25, %v3438_v38  ;;  %v6746_v16 = vpop.f32.mrb[67].mxu1 }
0x1484   : > { %v3455_v40 = vsel %vm1121_vm6, %v8718_v55, -inf }
0x1485   : > { %v3443_v41 = vpop.f32.mrb[68].mxu1  ;;  %3456 = vmax.xlane.f32.xlu1 %v3455_v40 }
0x1486   : > { %v8722_v1 = vmul.f32 0.25, %v3443_v41  ;;  %v6749_v43 = vpop.f32.mrb[69].mxu1 }
0x1488   : > { %v3458_v46 = vsel %vm1121_vm6, %v8722_v1, -inf }
0x1489   : > { %v3448_v47 = vpop.f32.mrb[70].mxu1  ;;  %3459 = vmax.xlane.f32.xlu0 %v3458_v46 }
0x148a   : > { %v8726_v48 = vmul.f32 0.25, %v3448_v47  ;;  %v6752_v49 = vpop.f32.mrb[71].mxu1 }
0x148c   : > { %v3461_v50 = vsel %vm1128_vm7, %v8726_v48, -inf }
0x148d   : > { %3462 = vmax.xlane.f32.xlu1 %v3461_v50 }
0x14f5   : > { %v2745_v52 = vpop.xlane.xlu1 %2744 }
0x14f6   : > { %v2752_v53 = vsub.f32 %v2740_v33, %v2745_v52 }
0x14f8   : > { %v2755_v34 = vmul.f32 1.442695, %v2752_v53 }
0x14f9   : > { %v2977_v56 = vpop.xlane.xlu1 %2976  ;;  %v2748_v57 = vpop.xlane.xlu0 %2747 }
0x14fa   : > { %7536 = vpow2.f32 %v2755_v34  ;;  %v2984_v61 = vsub.f32 %v8694_v45, %v2977_v56  ;;  %v2753_v63 = vsub.f32 %v2741_v10, %v2748_v57 }
0x14fc   : > { %v2987_v2 = vmul.f32 1.442695, %v2984_v61  ;;  %v2757_v5 = vmul.f32 1.442695, %v2753_v63 }
0x14fd   : > { %v2751_v6 = vpop.xlane.xlu0 %2750 }
0x14fe   : > { %7538 = vpow2.f32 %v2987_v2  ;;  %v2754_v7 = vsub.f32 %v2742_v19, %v2751_v6  ;;  %v2983_v25 = vpop.xlane.xlu1 %2982 }
0x14ff   : > { %7540 = vpow2.f32 %v2757_v5  ;;  %v2986_v58 = vsub.f32 %v8700_v22, %v2983_v25 }
0x1500   : > { %v2759_v15 = vmul.f32 1.442695, %v2754_v7 }
0x1501   : > { %v2980_v9 = vpop.xlane.xlu0 %2979  ;;  %v2991_v31 = vmul.f32 1.442695, %v2986_v58 }
0x1502   : > { %v2985_v11 = vsub.f32 %v2973_v24, %v2980_v9 }
0x1504   : > { %v8731_v13 = vpop.eup %7536  ;;  %v2989_v27 = vmul.f32 1.442695, %v2985_v11 }
0x1505   : > { %v2761_v33 = vsel %vm1121_vm6, %v8731_v13, 0.0 }
0x1506   : > { %7542 = vpow2.f32 %v2989_v27  ;;  %2762 = vadd.xlane.f32.xlu0 %v2761_v33  ;;  %v3218_v24 = vpop.xlane.xlu0 %3217 }
0x1507   : > { %7544 = vpow2.f32 %v2759_v15  ;;  %v3225_v29 = vsub.f32 %v8706_v4, %v3218_v24 }
0x1508   : > { %v8735_v17 = vpop.eup %7538  ;;  %7546 = vpow2.f32 %v2991_v31 }
0x1509   : > { %v2993_v45 = vsel %vm1121_vm6, %v8735_v17, 0.0  ;;  %v8739_v10 = vpop.eup %7540  ;;  %v3228_v32 = vmul.f32 1.442695, %v3225_v29 }
0x150a   : > { %2994 = vadd.xlane.f32.xlu1 %v2993_v45  ;;  %v2764_v18 = vsel %vm1121_vm6, %v8739_v10, 0.0  ;;  %v3221_v30 = vpop.xlane.xlu1 %3220 }
0x150b   : > { %v3226_v60 = vsub.f32 %v8710_v14, %v3221_v30  ;;  %7548 = vpow2.f32 %v3228_v32 }
0x150d   : > { %v3230_v36 = vmul.f32 1.442695, %v3226_v60 }
0x150e   : > { %2765 = vadd.xlane.f32.xlu1 %v2764_v18  ;;  %v3224_v28 = vpop.xlane.xlu0 %3223 }
0x150f   : > { %v3227_v37 = vsub.f32 %v8714_v62, %v3224_v28  ;;  %7550 = vpow2.f32 %v3230_v36 }
0x1510   : > { %v8743_v19 = vpop.eup %7542 }
0x1511   : > { %v2996_v20 = vsel %vm1121_vm6, %v8743_v19, 0.0  ;;  %v8747_v21 = vpop.eup %7544  ;;  %v3232_v40 = vmul.f32 1.442695, %v3227_v37 }
0x1512   : > { %2997 = vadd.xlane.f32.xlu0 %v2996_v20  ;;  %v2767_v23 = vsel %vm1128_vm7, %v8747_v21, 0.0  ;;  %v3457_v16 = vpop.xlane.xlu1 %3456  ;;  %v8766_v43 = vpop.eup %7546 }
0x1513   : > { %v3464_v22 = vsub.f32 %v8718_v55, %v3457_v16  ;;  %v2999_v62 = vsel %vm1128_vm7, %v8766_v43, 0.0 }
0x1515   : > { %v3467_v41 = vmul.f32 1.442695, %v3464_v22 }
0x1516   : > { %2768 = vadd.xlane.f32.xlu0 %v2767_v23  ;;  %v3460_v12 = vpop.xlane.xlu0 %3459 }
0x1517   : > { %v3465_v35 = vsub.f32 %v8722_v1, %v3460_v12  ;;  %v8768_v1 = vpop.eup %7548 }
0x1518   : > { %v3234_v55 = vsel %vm1121_vm6, %v8768_v1, 0.0 }
0x1519   : > { %v3469_v38 = vmul.f32 1.442695, %v3465_v35  ;;  %v8770_v47 = vpop.eup %7550 }
0x151a   : > { %v3463_v4 = vpop.xlane.xlu1 %3462 }
0x151b   : > { %7552 = vpow2.f32 %v3469_v38  ;;  %v3466_v14 = vsub.f32 %v8726_v48, %v3463_v4  ;;  %v3237_v48 = vsel %vm1121_vm6, %v8770_v47, 0.0 }
0x151c   : > { %7554 = vpow2.f32 %v3232_v40 }
0x151d   : > { %7556 = vpow2.f32 %v3467_v41  ;;  %v3471_v46 = vmul.f32 1.442695, %v3466_v14 }
0x151f   : > { %3014 = vrot.lane.b32.xlu1 %v8647_v39, %s9826_s4  ;;  %7558 = vpow2.f32 %v3471_v46 }
0x1523   : > { %7396 = vrot.lane.b32.xlu1 %v8613_v26, %s9828_s22 }
0x1525   : > { %v8776_v49 = vpop.eup %7552 }
0x1526   : > { %v3476_v50 = vsel %vm1121_vm6, %v8776_v49, 0.0  ;;  %v8782_v52 = vpop.eup %7554 }
0x1527   : > { %3253 = vrot.lane.b32.xlu1 %v8647_v39, %s9828_s22  ;;  %v3240_v53 = vsel %vm1128_vm7, %v8782_v52, 0.0  ;;  %v8786_v34 = vpop.eup %7556 }
0x1528   : > { %v3473_v56 = vsel %vm1121_vm6, %v8786_v34, 0.0 }
0x1529   : > { %v8790_v57 = vpop.eup %7558 }
0x152a   : > { %v3479_v61 = vsel %vm1128_vm7, %v8790_v57, 0.0 }
0x152c   : > { %7391 = vrot.lane.b32.xlu0 %v8613_v26, %s9826_s4 }
0x154b   : > { %3000 = vadd.xlane.f32.xlu1 %v2999_v62  ;;  %3235 = vadd.xlane.f32.xlu0 %v3234_v55 }
0x154f   : > { %3238 = vadd.xlane.f32.xlu1 %v3237_v48  ;;  %3477 = vadd.xlane.f32.xlu0 %v3476_v50 }
0x1553   : > { %3241 = vadd.xlane.f32.xlu1 %v3240_v53 }
0x1557   : > { %3474 = vadd.xlane.f32.xlu1 %v3473_v56 }
0x155b   : > { %3480 = vadd.xlane.f32.xlu1 %v3479_v61 }
0x1565   : > { %7401 = vrot.lane.b32.xlu0 %v8613_v26, %s9829_s5 }
0x156c   : > { %3492 = vrot.lane.b32.xlu1 %v8647_v39, %s9829_s5 }
0x1593   : > { %v2763_v63 = vpop.xlane.xlu0 %2762 }
0x1594   : > { %7560 = vrcp.f32 %v2763_v63 }
0x1597   : > { %v2995_v2 = vpop.xlane.xlu1 %2994 }
0x159b   : > { %v2766_v5 = vpop.xlane.xlu1 %2765 }
0x159c   : > { %7562 = vrcp.f32 %v2766_v5 }
0x159e   : > { %v7561_v6 = vpop.eup %7560 }
0x159f   : > { %v2773_v7 = vmul.f32 %v7561_v6, %v8731_v13  ;;  %v2998_v9 = vpop.xlane.xlu0 %2997  ;;  %v3015_v15 = vpop.permute.xlu1 %3014 }
0x15a1   : > { %6670 = vmatmul.mubr.msk.f32.vlgmr.msra.gmra.mrb[34].mxu0 %vm1121_vm6, %v2773_v7 }
0x15a2   : > { %6672 = vmatprep.mubr.msk.f32.mxu0 %vm7711_vm3, %v7709_v8 }
0x15a3   : > { %v2769_v11 = vpop.xlane.xlu0 %2768  ;;  %v7397_v18 = vpop.permute.xlu1 %7396 }
0x15a4   : > { %7564 = vrcp.f32 %v2769_v11  ;;  %v7399_v25 = vunpack.i.h.bf16 %v7397_v18  ;;  %v7398_v28 = vunpack.i.l.bf16 %v7397_v18 }
0x15a5   : > { %7566 = vrcp.f32 %v2995_v2  ;;  %v5983_v2 = vld [vmem:[%s9773_s10 + $0x48] sm:$0xff] }
0x15a6   : > { %v7563_v26 = vpop.eup %7562  ;;  %7568 = vrcp.f32 %v2998_v9  ;;  %v7132_v29 = vpack.c.bf16 %v7399_v25, %v7398_v28 }
0x15a7   : > { %v7392_v39 = vpop.permute.xlu0 %7391  ;;  %v2774_v27 = vmul.f32 %v7563_v26, %v8739_v10  ;;  %v3254_v30 = vpop.permute.xlu1 %3253 }
0x15a8   : > { %v7394_v33 = vunpack.i.h.bf16 %v7392_v39  ;;  %v7393_v45 = vunpack.i.l.bf16 %v7392_v39  ;;  %v5985_v39 = vld [vmem:[%s9773_s10 + $0x58] sm:$0xff] }
0x15a9   : > { %6673 = vmatmul.mubr.msk.f32.gmra.mrb[36].mxu0 %vm1121_vm6, %v2774_v27 }
0x15aa   : > { %v7125_v13 = vpack.c.bf16 %v7394_v33, %v7393_v45  ;;  %6675 = vmatprep.mubr.msk.f32.mxu0 %vm7711_vm3, %v7709_v8  ;;  %v5986_v33 = vld [vmem:[%s9773_s10 + $0x60] sm:$0xff]  ;;  %v5987_v45 = vld [vmem:[%s9773_s10 + $0x68] sm:$0xff] }
0x15ac   : > { %7126 = vmatpush3.bf16.msra.mxu0 %v7125_v13  ;;  %v7148_v13 = vpack.c.bf16 %v5987_v45, %v5986_v33 }
0x15ad   : > { %6697 = vmatprep.subr.mxu0 %v7709_v8 }
0x15ae   : > { %v7565_v20 = vpop.eup %7564 }
0x15af   : > { %v2775_v23 = vmul.f32 %v7565_v20, %v8747_v21  ;;  %v7567_v24 = vpop.eup %7566  ;;  %v5988_v20 = vld [vmem:[%s9773_s10 + $0x70] sm:$0xff] }
0x15b0   : > { %6698 = vmatpush3.msk.msra.mxu0 %vm766_vm1, %v3015_v15  ;;  %v3005_v10 = vmul.f32 %v7567_v24, %v8735_v17  ;;  %v7569_v58 = vpop.eup %7568  ;;  %v5984_v15 = vld [vmem:[%s9773_s10 + $0x50] sm:$0xff] }
0x15b1   : > { %6676 = vmatmul.mubr.msk.f32.gmra.mrb[38].mxu0 %vm1121_vm6, %v2775_v23  ;;  %7131 = vmatprep.subr.bf16.mxu0 %v7708_v3  ;;  %v3006_v21 = vmul.f32 %v7569_v58, %v8743_v19  ;;  %v7145_v27 = vpack.c.bf16 %v5985_v39, %v5984_v15  ;;  %v5989_v23 = vld [vmem:[%s9773_s10 + $0x78] sm:$0xff] }
0x15b2   : > { %6699 = vmatprep.mubr.msk.f32.mxu0 %vm7711_vm3, %v7709_v8  ;;  %v7151_v25 = vpack.c.bf16 %v5989_v23, %v5988_v20 }
0x15b5   : > { %6700 = vmatmul.mubr.msk.f32.vlgmr.msra.gmra.mrb[40].mxu0 %vm1121_vm6, %v3005_v10 }
0x15b6   : > { %7133 = vmatpush3.bf16.msra.mxu0 %v7132_v29  ;;  %6702 = vmatprep.mubr.msk.f32.mxu0 %vm7711_vm3, %v7709_v8 }
0x15b7   : > { %6727 = vmatprep.subr.mxu0 %v7709_v8 }
0x15b9   : > { %6703 = vmatmul.mubr.msk.f32.gmra.mrb[42].mxu0 %vm1121_vm6, %v3006_v21 }
0x15ba   : > { %6728 = vmatpush3.msk.msra.mxu0 %vm766_vm1, %v3254_v30  ;;  %6705 = vmatprep.mubr.msk.f32.mxu0 %vm7711_vm3, %v7709_v8 }
0x15bb   : > { %7138 = vmatprep.subr.bf16.mxu0 %v7708_v3 }
0x15d8   : > { %v3001_v17 = vpop.xlane.xlu1 %3000  ;;  %v3236_v12 = vpop.xlane.xlu0 %3235 }
0x15d9   : > { %7570 = vrcp.f32 %v3001_v17 }
0x15da   : > { %7572 = vrcp.f32 %v3236_v12 }
0x15dc   : > { %v3239_v31 = vpop.xlane.xlu1 %3238  ;;  %v3478_v60 = vpop.xlane.xlu0 %3477 }
0x15dd   : > { %7574 = vrcp.f32 %v3239_v31 }
0x15e0   : > { %v3242_v32 = vpop.xlane.xlu1 %3241  ;;  %v7402_v35 = vpop.permute.xlu0 %7401 }
0x15e1   : > { %7576 = vrcp.f32 %v3242_v32  ;;  %v7404_v16 = vunpack.i.h.bf16 %v7402_v35  ;;  %v7403_v40 = vunpack.i.l.bf16 %v7402_v35 }
0x15e3   : > { %v7571_v19 = vpop.eup %7570  ;;  %v7139_v14 = vpack.c.bf16 %v7404_v16, %v7403_v40 }
0x15e4   : > { %v3475_v36 = vpop.xlane.xlu1 %3474  ;;  %v3007_v37 = vmul.f32 %v7571_v19, %v8766_v43  ;;  %v7573_v38 = vpop.eup %7572 }
0x15e5   : > { %7578 = vrcp.f32 %v3475_v36  ;;  %v3246_v22 = vmul.f32 %v7573_v38, %v8768_v1 }
0x15e6   : > { %6706 = vmatmul.mubr.msk.f32.gmra.mrb[44].mxu0 %vm1121_vm6, %v3007_v37  ;;  %7580 = vrcp.f32 %v3478_v60 }
0x15e7   : > { %6729 = vmatprep.mubr.msk.f32.mxu0 %vm7711_vm3, %v7709_v8  ;;  %v7575_v41 = vpop.eup %7574 }
0x15e8   : > { %v3481_v4 = vpop.xlane.xlu1 %3480  ;;  %v3247_v46 = vmul.f32 %v7575_v41, %v8770_v47 }
0x15e9   : > { %7582 = vrcp.f32 %v3481_v4 }
0x15ea   : > { %6730 = vmatmul.mubr.msk.f32.vlgmr.msra.gmra.mrb[46].mxu0 %vm1121_vm6, %v3246_v22 }
0x15eb   : > { %7140 = vmatpush3.bf16.msra.mxu0 %v7139_v14  ;;  %6732 = vmatprep.mubr.msk.f32.mxu0 %vm7711_vm3, %v7709_v8  ;;  %v7577_v62 = vpop.eup %7576 }
0x15ec   : > { %v3493_v43 = vpop.permute.xlu1 %3492  ;;  %6757 = vmatprep.subr.mxu0 %v7709_v8  ;;  %v3248_v1 = vmul.f32 %v7577_v62, %v8782_v52 }
0x15ee   : > { %6733 = vmatmul.mubr.msk.f32.gmra.mrb[48].mxu0 %vm1121_vm6, %v3247_v46 }
0x15ef   : > { %6758 = vmatpush3.msk.msra.mxu0 %vm766_vm1, %v3493_v43  ;;  %6735 = vmatprep.mubr.msk.f32.mxu0 %vm7711_vm3, %v7709_v8  ;;  %v7579_v55 = vpop.eup %7578 }
0x15f0   : > { %v3485_v48 = vmul.f32 %v7579_v55, %v8786_v34  ;;  %v7581_v47 = vpop.eup %7580 }
0x15f1   : > { %v3486_v50 = vmul.f32 %v7581_v47, %v8776_v49  ;;  %v5982_v49 = vld [vmem:[%s9773_s10 + $0x40] sm:$0xff] }
0x15f2   : > { %6736 = vmatmul.mubr.msk.f32.gmra.mrb[50].mxu0 %vm1121_vm6, %v3248_v1  ;;  %v7142_v5 = vpack.c.bf16 %v5983_v2, %v5982_v49 }
0x15f3   : > { %6759 = vmatprep.mubr.msk.f32.mxu0 %vm7711_vm3, %v7709_v8  ;;  %v7583_v53 = vpop.eup %7582 }
0x15f4   : > { %v3487_v52 = vmul.f32 %v7583_v53, %v8790_v57  ;;  %7143 = vmatpush3.bf16.msra.mxu1 %v7142_v5  ;;  %v5990_v53 = vld [vmem:[%s9774_s11 + $0x1] ss:$0 sm:$0xff] }
0x15f5   : > { %7144 = vmatprep.subr.bf16.mxu1 %v7708_v3 }
0x15f6   : > { %6760 = vmatmul.mubr.msk.f32.vlgmr.msra.gmra.mrb[52].mxu0 %vm1121_vm6, %v3485_v48 }
0x15f7   : > { %6762 = vmatprep.mubr.msk.f32.mxu0 %vm7711_vm3, %v7709_v8 }
0x15f8   : > { %7146 = vmatpush3.bf16.msra.mxu1 %v7145_v27 }
0x15f9   : > { %7147 = vmatprep.subr.bf16.mxu1 %v7708_v3 }
0x15fa   : > { %6763 = vmatmul.mubr.msk.f32.gmra.mrb[54].mxu0 %vm1121_vm6, %v3486_v50 }
0x15fb   : > { %6765 = vmatprep.mubr.msk.f32.mxu0 %vm7711_vm3, %v7709_v8 }
0x15fc   : > { %7149 = vmatpush3.bf16.msra.mxu1 %v7148_v13 }
0x15fd   : > { %7150 = vmatprep.subr.bf16.mxu1 %v7708_v3 }
0x15fe   : > { %6766 = vmatmul.mubr.msk.f32.gmra.mrb[56].mxu0 %vm1121_vm6, %v3487_v52 }
0x15ff   : > { %3896 = vmatprep.mubr.f32.mxu0 %v7709_v8 }
0x1600   : > { %7152 = vmatpush3.bf16.msra.mxu1 %v7151_v25 }
0x1674   : > { %v2854_v34 = vpop.f32.mrb[34].mxu0 }
0x1675   : > { %v6671_v56 = vpop.f32.mrb[35].mxu0 }
0x167c   : > { %v2859_v61 = vpop.f32.mrb[36].mxu0 }
0x167d   : > { %v6674_v63 = vpop.f32.mrb[37].mxu0 }
0x1684   : > { %v2864_v6 = vpop.f32.mrb[38].mxu0 }
0x1685   : > { %v6677_v57 = vpop.f32.mrb[39].mxu0 }
0x1688   : > { %v3095_v7 = vpop.f32.mrb[40].mxu0 }
0x1689   : > { %3590 = vrot.lane.b32.xlu0 %v3095_v7, %s9827_s24  ;;  %v6701_v9 = vpop.f32.mrb[41].mxu0 }
0x168c   : > { %v3100_v11 = vpop.f32.mrb[42].mxu0 }
0x168d   : > { %3592 = vrot.lane.b32.xlu0 %v3100_v11, %s9827_s24  ;;  %v6704_v26 = vpop.f32.mrb[43].mxu0 }
0x16b9   : > { %v3105_v18 = vpop.f32.mrb[44].mxu0 }
0x16ba   : > { %v6707_v24 = vpop.f32.mrb[45].mxu0 }
0x16bd   : > { %v3334_v28 = vpop.f32.mrb[46].mxu0 }
0x16be   : > { %3602 = vrot.lane.b32.xlu0 %v3334_v28, %s9825_s0  ;;  %v6731_v10 = vpop.f32.mrb[47].mxu0 }
0x16c1   : > { %v3339_v58 = vpop.f32.mrb[48].mxu0 }
0x16c2   : > { %3604 = vrot.lane.b32.xlu1 %v3339_v58, %s9825_s0  ;;  %v6734_v29 = vpop.f32.mrb[49].mxu0  ;;  %v5997_v58 = vld [vmem:[%s9777_s14 + $0x88] sm:$0xff] }
0x16c3   : > { %v5999_v29 = vld [vmem:[%s9777_s14 + $0x98] sm:$0xff] }
0x16c5   : > { %v3344_v21 = vpop.f32.mrb[50].mxu0 }
0x16c6   : > { %3594 = vrot.lane.b32.xlu1 %v3105_v18, %s9827_s24  ;;  %v6737_v30 = vpop.f32.mrb[51].mxu0 }
0x16c7   : > { %v5996_v30 = vld [vmem:[%s9777_s14 + $0x80] sm:$0xff] }
0x16c9   : > { %v3573_v17 = vpop.f32.mrb[52].mxu0 }
0x16ca   : > { %3614 = vrot.lane.b32.xlu0 %v3573_v17, %s9823_s30  ;;  %v6761_v12 = vpop.f32.mrb[53].mxu0  ;;  %v5998_v17 = vld [vmem:[%s9777_s14 + $0x90] sm:$0xff] }
0x16cb   : > { %v7155_v12 = vpack.c.bf16 %v5998_v17, %v5996_v30  ;;  %v6042_v30 = vld [vmem:[%s9779_s16 + $0x1a0] sm:$0xff]  ;;  %v6043_v17 = vld [vmem:[%s9779_s16 + $0x1a8] sm:$0xff] }
0x16cd   : > { %v3578_v31 = vpop.f32.mrb[54].mxu0 }
0x16ce   : > { %3616 = vrot.lane.b32.xlu0 %v3578_v31, %s9823_s30  ;;  %v6764_v60 = vpop.f32.mrb[55].mxu0  ;;  %v6001_v31 = vld [vmem:[%s9777_s14 + $0xa8] sm:$0xff] }
0x16cf   : > { %v6003_v60 = vld [vmem:[%s9777_s14 + $0xb8] sm:$0xff] }
0x16d1   : > { %v3583_v32 = vpop.f32.mrb[56].mxu0 }
0x16d2   : > { %3606 = vrot.lane.b32.xlu0 %v3344_v21, %s9825_s0  ;;  %3618 = vrot.lane.b32.xlu1 %v3583_v32, %s9823_s30  ;;  %v6767_v35 = vpop.f32.mrb[57].mxu0  ;;  %v7153_v21 = vpack.c.bf16 %v5999_v29, %v5997_v58  ;;  %v7157_v32 = vpack.c.bf16 %v6003_v60, %v6001_v31  ;;  %v6024_v58 = vld [vmem:[%s9779_s16 + $0x110] sm:$0xff]  ;;  %v6025_v29 = vld [vmem:[%s9779_s16 + $0x118] sm:$0xff] }
0x16d3   : > { %v6000_v35 = vld [vmem:[%s9777_s14 + $0xa0] sm:$0xff]  ;;  %v6027_v60 = vld [vmem:[%s9779_s16 + $0x128] sm:$0xff] }
0x16d4   : > { %7154 = vmatprep.subr.bf16.mxu0 %v7153_v21  ;;  %v7175_v21 = vpack.c.bf16 %v6025_v29, %v6024_v58  ;;  %v6026_v31 = vld [vmem:[%s9779_s16 + $0x120] sm:$0xff] }
0x16d5   : > { %7156 = vmatpush1.bf16.msra.mxu0 %v7155_v12  ;;  %v7177_v12 = vpack.c.bf16 %v6043_v17, %v6042_v30 }
0x16d6   : > { %7158 = vmatprep.subr.bf16.mxu0 %v7157_v32  ;;  %v7179_v32 = vpack.c.bf16 %v6027_v60, %v6026_v31 }
0x16fb   : > { %v3591_v19 = vpop.permute.xlu0 %3590 }
0x16fc   : > { %v3623_v16 = vsel %vm1025_vm4, %v2854_v34, %v3591_v19  ;;  %v6002_v19 = vld [vmem:[%s9777_s14 + $0xb0] sm:$0xff] }
0x16ff   : > { %v3593_v36 = vpop.permute.xlu0 %3592 }
0x1700   : > { %v3624_v41 = vsel %vm1025_vm4, %v2859_v61, %v3593_v36  ;;  %v7159_v36 = vpack.c.bf16 %v6002_v19, %v6000_v35  ;;  %v6044_v35 = vld [vmem:[%s9779_s16 + $0x1b0] sm:$0xff]  ;;  %v6045_v19 = vld [vmem:[%s9779_s16 + $0x1b8] sm:$0xff] }
0x1702   : > { %7160 = vmatpush1.bf16.msra.mxu0 %v7159_v36  ;;  %v7181_v36 = vpack.c.bf16 %v6045_v19, %v6044_v35 }
0x1730   : > { %v3603_v37 = vpop.permute.xlu0 %3602 }
0x1731   : > { %v3626_v40 = vsel %vm2006_vm8, %v3623_v16, %v3603_v37  ;;  %v6005_v37 = vld [vmem:[%s9777_s14 + $0xc8] sm:$0xff] }
0x1734   : > { %v3605_v38 = vpop.permute.xlu1 %3604 }
0x1735   : > { %v3627_v14 = vsel %vm2006_vm8, %v3624_v41, %v3605_v38  ;;  %v6007_v38 = vld [vmem:[%s9777_s14 + $0xd8] sm:$0xff]  ;;  %v6009_v41 = vld [vmem:[%s9777_s14 + $0xe8] sm:$0xff] }
0x1736   : > { %v7161_v16 = vpack.c.bf16 %v6007_v38, %v6005_v37  ;;  %v6028_v37 = vld [vmem:[%s9779_s16 + $0x130] sm:$0xff]  ;;  %v6029_v38 = vld [vmem:[%s9779_s16 + $0x138] sm:$0xff] }
0x1738   : > { %v3595_v43 = vpop.permute.xlu1 %3594  ;;  %7162 = vmatprep.subr.bf16.mxu0 %v7161_v16  ;;  %v7183_v16 = vpack.c.bf16 %v6029_v38, %v6028_v37 }
0x1739   : > { %v3625_v1 = vsel %vm1025_vm4, %v2864_v6, %v3595_v43 }
0x173c   : > { %v3615_v22 = vpop.permute.xlu0 %3614 }
0x173d   : > { %v3629_v4 = vsel %vm2010_vm9, %v3626_v40, %v3615_v22  ;;  %v6004_v40 = vld [vmem:[%s9777_s14 + $0xc0] sm:$0xff]  ;;  %v6006_v22 = vld [vmem:[%s9777_s14 + $0xd0] sm:$0xff] }
0x173e   : > { %6785 = vmatmul.mubr.msk.f32.vlgmr.msra.gmra.mrb[72].mxu1 %vm681_vm0, %v3629_v4  ;;  %v7163_v4 = vpack.c.bf16 %v6006_v22, %v6004_v40  ;;  %v6046_v40 = vld [vmem:[%s9779_s16 + $0x1c0] sm:$0xff]  ;;  %v6047_v22 = vld [vmem:[%s9779_s16 + $0x1c8] sm:$0xff] }
0x173f   : > { %6787 = vmatprep.mubr.msk.f32.mxu1 %vm7711_vm3, %v7709_v8 }
0x1740   : > { %v3617_v46 = vpop.permute.xlu0 %3616  ;;  %7164 = vmatpush1.bf16.msra.mxu0 %v7163_v4  ;;  %v7185_v4 = vpack.c.bf16 %v6047_v22, %v6046_v40 }
0x1741   : > { %v3630_v62 = vsel %vm2010_vm9, %v3627_v14, %v3617_v46  ;;  %v6011_v14 = vld [vmem:[%s9777_s14 + $0xf8] sm:$0xff]  ;;  %v6008_v46 = vld [vmem:[%s9777_s14 + $0xe0] sm:$0xff] }
0x1742   : > { %6788 = vmatmul.mubr.msk.f32.gmra.mrb[74].mxu1 %vm681_vm0, %v3630_v62  ;;  %v7165_v43 = vpack.c.bf16 %v6011_v14, %v6009_v41  ;;  %v6010_v62 = vld [vmem:[%s9777_s14 + $0xf0] sm:$0xff]  ;;  %v6030_v41 = vld [vmem:[%s9779_s16 + $0x140] sm:$0xff]  ;;  %v6031_v14 = vld [vmem:[%s9779_s16 + $0x148] sm:$0xff] }
0x1743   : > { %6790 = vmatprep.mubr.msk.f32.mxu1 %vm7711_vm3, %v7709_v8 }
0x1744   : > { %v3607_v55 = vpop.permute.xlu0 %3606  ;;  %v3619_v48 = vpop.permute.xlu1 %3618  ;;  %7166 = vmatprep.subr.bf16.mxu0 %v7165_v43  ;;  %v7187_v43 = vpack.c.bf16 %v6031_v14, %v6030_v41 }
0x1745   : > { %v3628_v47 = vsel %vm2006_vm8, %v3625_v1, %v3607_v55  ;;  %v7167_v1 = vpack.c.bf16 %v6010_v62, %v6008_v46  ;;  %v6048_v46 = vld [vmem:[%s9779_s16 + $0x1d0] sm:$0xff]  ;;  %v6049_v62 = vld [vmem:[%s9779_s16 + $0x1d8] sm:$0xff] }
0x1746   : > { %v3631_v50 = vsel %vm2010_vm9, %v3628_v47, %v3619_v48 }
0x1747   : > { %6791 = vmatmul.mubr.msk.f32.gmra.mrb[76].mxu1 %vm681_vm0, %v3631_v50  ;;  %7168 = vmatpush1.bf16.msra.mxu0 %v7167_v1  ;;  %v7189_v1 = vpack.c.bf16 %v6049_v62, %v6048_v46 }
0x1811   : > { %v3721_v52 = vpop.f32.mrb[72].mxu1 }
0x1812   : > { %v3722_v34 = vadd.f32 %v5990_v53, %v3721_v52  ;;  %v6786_v56 = vpop.f32.mrb[73].mxu1 }
0x1814   : > { %v8909_v61 = vadd.f32 %v3722_v34, %v8526_v59 }
0x1815   : > { %v3726_v63 = vpop.f32.mrb[74].mxu1 }
0x1816   : > { %v3727_v49 = vadd.f32 %v5990_v53, %v3726_v63  ;;  %v6789_v2 = vpop.f32.mrb[75].mxu1  ;;  %v3740_v5 = vsel %vm681_vm0, %v8909_v61, 0.0 }
0x1817   : > { %3741 = vadd.xlane.f32.xlu0 %v3740_v5  ;;  %v5994_v2 = vld [vmem:[%s9775_s12 + $0x1] ss:$0 sm:$0xff] }
0x1818   : > { %v8914_v6 = vadd.f32 %v3727_v49, %v8531_v54 }
0x181a   : > { %v3731_v57 = vpop.f32.mrb[76].mxu1  ;;  %v3743_v7 = vsel %vm681_vm0, %v8914_v6, 0.0 }
0x181b   : > { %v3732_v9 = vadd.f32 %v5990_v53, %v3731_v57  ;;  %3744 = vadd.xlane.f32.xlu1 %v3743_v7  ;;  %v6792_v11 = vpop.f32.mrb[77].mxu1  ;;  %v5995_v57 = vld [vmem:[%s9776_s13 + $0x1] ss:$0 sm:$0xff] }
0x181d   : > { %v8919_v59 = vadd.f32 %v3732_v9, %v8536_v51 }
0x181f   : > { %v3746_v26 = vsel %vm788_vm2, %v8919_v59, 0.0 }
0x1820   : > { %3747 = vadd.xlane.f32.xlu0 %v3746_v26 }
0x18a4   : > { %v3742_v15 = vpop.xlane.xlu0 %3741 }
0x18a5   : > { %v3749_v39 = vmul.f32 0.015625, %v3742_v15 }
0x18a7   : > { %v3752_v27 = vsub.f32 %v8909_v61, %v3749_v39 }
0x18a8   : > { %v3745_v54 = vpop.xlane.xlu1 %3744 }
0x18a9   : > { %v3750_v33 = vmul.f32 0.015625, %v3745_v54  ;;  %v3755_v45 = vmul.f32 %v3752_v27, %v3752_v27 }
0x18ab   : > { %v8925_v13 = vsub.f32 %v8914_v6, %v3750_v33  ;;  %v3758_v18 = vsel %vm681_vm0, %v3755_v45, 0.0 }
0x18ac   : > { %3759 = vadd.xlane.f32.xlu0 %v3758_v18  ;;  %v6039_v18 = vld [vmem:[%s9779_s16 + $0x188] sm:$0xff] }
0x18ad   : > { %v3748_v20 = vpop.xlane.xlu0 %3747  ;;  %v3756_v51 = vmul.f32 %v8925_v13, %v8925_v13 }
0x18ae   : > { %v3751_v23 = vmul.f32 0.015625, %v3748_v20 }
0x18af   : > { %v3761_v24 = vsel %vm681_vm0, %v3756_v51, 0.0  ;;  %v6022_v51 = vld [vmem:[%s9779_s16 + $0x100] sm:$0xff] }
0x18b0   : > { %v3754_v25 = vsub.f32 %v8919_v59, %v3751_v23  ;;  %3762 = vadd.xlane.f32.xlu1 %v3761_v24  ;;  %v6023_v23 = vld [vmem:[%s9779_s16 + $0x108] sm:$0xff] }
0x18b1   : > { %v7171_v24 = vpack.c.bf16 %v6023_v23, %v6022_v51 }
0x18b2   : > { %v3757_v28 = vmul.f32 %v3754_v25, %v3754_v25 }
0x18b4   : > { %v3764_v10 = vsel %vm788_vm2, %v3757_v28, 0.0  ;;  %v6041_v28 = vld [vmem:[%s9779_s16 + $0x198] sm:$0xff] }
0x18b5   : > { %3765 = vadd.xlane.f32.xlu0 %v3764_v10 }
0x1939   : > { %v3760_v55 = vpop.xlane.xlu0 %3759 }
0x193a   : > { %v3767_v48 = vmul.f32 0.015625, %v3760_v55  ;;  %v6032_v55 = vld [vmem:[%s9779_s16 + $0x150] sm:$0xff] }
0x193c   : > { %v3770_v47 = vadd.f32 1e-05, %v3767_v48  ;;  %v6033_v48 = vld [vmem:[%s9779_s16 + $0x158] sm:$0xff] }
0x193d   : > { %v3763_v50 = vpop.xlane.xlu1 %3762 }
0x193e   : > { %7584 = vrsqrt.f32 %v3770_v47  ;;  %v3768_v53 = vmul.f32 0.015625, %v3763_v50  ;;  %v7191_v47 = vpack.c.bf16 %v6033_v48, %v6032_v55  ;;  %v6050_v50 = vld [vmem:[%s9779_s16 + $0x1e0] sm:$0xff] }
0x1940   : > { %v3771_v52 = vadd.f32 1e-05, %v3768_v53  ;;  %v6051_v53 = vld [vmem:[%s9779_s16 + $0x1e8] sm:$0xff] }
0x1942   : > { %7586 = vrsqrt.f32 %v3771_v52  ;;  %v3766_v34 = vpop.xlane.xlu0 %3765  ;;  %v7193_v52 = vpack.c.bf16 %v6051_v53, %v6050_v50 }
0x1943   : > { %v3769_v56 = vmul.f32 0.015625, %v3766_v34  ;;  %v6034_v34 = vld [vmem:[%s9779_s16 + $0x160] sm:$0xff] }
0x1945   : > { %v3772_v63 = vadd.f32 1e-05, %v3769_v56  ;;  %v6035_v56 = vld [vmem:[%s9779_s16 + $0x168] sm:$0xff] }
0x1947   : > { %7588 = vrsqrt.f32 %v3772_v63  ;;  %v7195_v63 = vpack.c.bf16 %v6035_v56, %v6034_v34 }
0x1948   : > { %v7585_v49 = vpop.eup %7584 }
0x1949   : > { %v3776_v5 = vmul.f32 %v7585_v49, %v3752_v27  ;;  %v6052_v49 = vld [vmem:[%s9779_s16 + $0x1f0] sm:$0xff] }
0x194b   : > { %v3783_v7 = vmul.f32 %v5994_v2, %v3776_v5 }
0x194c   : > { %v7587_v9 = vpop.eup %7586 }
0x194d   : > { %v3790_v11 = vadd.f32 %v5995_v57, %v3783_v7  ;;  %v3777_v26 = vmul.f32 %v7587_v9, %v8925_v13  ;;  %v6038_v13 = vld [vmem:[%s9779_s16 + $0x180] sm:$0xff]  ;;  %v6037_v7 = vld [vmem:[%s9779_s16 + $0x178] sm:$0xff] }
0x194e   : > { %v7169_v20 = vpack.c.bf16 %v6039_v18, %v6038_v13 }
0x194f   : > { %6013 = vmatmul.mubr.msk.f32.vlgmr.msra.gmra.mrb[58].mxu0 %vm681_vm0, %v3790_v11  ;;  %v3784_v15 = vmul.f32 %v5994_v2, %v3777_v26  ;;  %v6012_v11 = vld [vmem:[%s9778_s15 + $0x1] ss:$4 sm:$0x3] }
0x1950   : > { %3902 = vmatprep.mubr.f32.mxu0 %v7709_v8  ;;  %7170 = vmatprep.subr.bf16.mxu1 %v7169_v20  ;;  %v3816_v26 = vrot.slane %v6012_v11, %v8055_v42 }
0x1951   : > { %v7589_v39 = vpop.eup %7588  ;;  %v3791_v54 = vadd.f32 %v5995_v57, %v3784_v15  ;;  %7172 = vmatpush3.bf16.msra.mxu1 %v7171_v24  ;;  %v3820_v15 = vrot.slane %v6012_v11, %v8060_v44 }
0x1952   : > { %v3778_v33 = vmul.f32 %v7589_v39, %v3754_v25  ;;  %v6040_v25 = vld [vmem:[%s9779_s16 + $0x190] sm:$0xff] }
0x1953   : > { %6014 = vmatmul.mubr.msk.f32.gmra.mrb[60].mxu0 %vm681_vm0, %v3791_v54  ;;  %v7173_v10 = vpack.c.bf16 %v6041_v28, %v6040_v25 }
0x1954   : > { %3908 = vmatprep.mubr.f32.mxu0 %v7709_v8  ;;  %v3785_v27 = vmul.f32 %v5994_v2, %v3778_v33  ;;  %v6053_v2 = vld [vmem:[%s9779_s16 + $0x1f8] sm:$0xff] }
0x1955   : > { %7174 = vmatprep.subr.bf16.mxu1 %v7173_v10  ;;  %v7197_v5 = vpack.c.bf16 %v6053_v2, %v6052_v49 }
0x1956   : > { %v3792_v45 = vadd.f32 %v5995_v57, %v3785_v27  ;;  %7176 = vmatpush3.bf16.msra.mxu1 %v7175_v21  ;;  %v6036_v57 = vld [vmem:[%s9779_s16 + $0x170] sm:$0xff] }
0x1957   : > { %7178 = vmatprep.subr.bf16.mxu1 %v7177_v12  ;;  %v7199_v9 = vpack.c.bf16 %v6037_v7, %v6036_v57 }
0x1958   : > { %6015 = vmatmul.mubr.msk.f32.gmra.mrb[62].mxu0 %vm681_vm0, %v3792_v45 }
0x1959   : > { %4242 = vmatprep.mubr.f32.mxu0 %v7709_v8 }
0x195a   : > { %7180 = vmatpush3.bf16.msra.mxu1 %v7179_v32 }
0x195b   : > { %7182 = vmatprep.subr.bf16.mxu1 %v7181_v36 }
0x195e   : > { %7184 = vmatpush3.bf16.msra.mxu1 %v7183_v16 }
0x195f   : > { %7186 = vmatprep.subr.bf16.mxu1 %v7185_v4 }
0x1962   : > { %7188 = vmatpush3.bf16.msra.mxu1 %v7187_v43 }
0x1963   : > { %7190 = vmatprep.subr.bf16.mxu1 %v7189_v1 }
0x1966   : > { %7192 = vmatpush3.bf16.msra.mxu1 %v7191_v47 }
0x1967   : > { %7194 = vmatprep.subr.bf16.mxu1 %v7193_v52 }
0x196a   : > { %7196 = vmatpush3.bf16.msra.mxu1 %v7195_v63 }
0x196b   : > { %7198 = vmatprep.subr.bf16.mxu1 %v7197_v5  ;;  %v6054_v5 = vld [vmem:[%s9780_s17 + $0x1] ss:$0 sm:$0xff] }
0x196e   : > { %7200 = vmatpush3.bf16.msra.mxu1 %v7199_v9 }
0x196f   : > { %7221 = vmatprep.subr.bf16.mxu1 %v7708_v3 }
0x1a22   : > { %v3898_v39 = vpop.f32.mrb[58].mxu0 }
0x1a23   : > { %v3899_v54 = vadd.f32 %v3898_v39, %v3816_v26  ;;  %v3900_v33 = vpop.f32.mrb[59].mxu0 }
0x1a24   : > { %v3901_v27 = vadd.f32 %v3900_v33, %v3820_v15 }
0x1a25   : > { %v6016_v45 = vmul.f32 -1.702, %v3899_v54 }
0x1a26   : > { %v6017_v13 = vmul.f32 -1.702, %v3901_v27  ;;  %v3904_v18 = vpop.f32.mrb[60].mxu0 }
0x1a27   : > { %v3927_v20 = vmul.f32 1.442695, %v6016_v45  ;;  %v3905_v51 = vadd.f32 %v3904_v18, %v3816_v26  ;;  %v3906_v23 = vpop.f32.mrb[61].mxu0 }
0x1a28   : > { %v3929_v24 = vmul.f32 1.442695, %v6017_v13  ;;  %v3907_v25 = vadd.f32 %v3906_v23, %v3820_v15 }
0x1a29   : > { %7590 = vpow2.f32 %v3927_v20  ;;  %v6018_v28 = vmul.f32 -1.702, %v3905_v51 }
0x1a2a   : > { %7592 = vpow2.f32 %v3929_v24  ;;  %v6019_v10 = vmul.f32 -1.702, %v3907_v25 }
0x1a2b   : > { %v3931_v58 = vmul.f32 1.442695, %v6018_v28  ;;  %v3910_v29 = vpop.f32.mrb[62].mxu0 }
0x1a2c   : > { %v3933_v21 = vmul.f32 1.442695, %v6019_v10  ;;  %v3911_v30 = vadd.f32 %v3910_v29, %v3816_v26  ;;  %v3912_v17 = vpop.f32.mrb[63].mxu0 }
0x1a2d   : > { %7594 = vpow2.f32 %v3931_v58  ;;  %v3913_v12 = vadd.f32 %v3912_v17, %v3820_v15 }
0x1a2e   : > { %7596 = vpow2.f32 %v3933_v21  ;;  %v6020_v31 = vmul.f32 -1.702, %v3911_v30 }
0x1a2f   : > { %v6021_v60 = vmul.f32 -1.702, %v3913_v12 }
0x1a30   : > { %v3935_v32 = vmul.f32 1.442695, %v6020_v31 }
0x1a31   : > { %v3937_v35 = vmul.f32 1.442695, %v6021_v60 }
0x1a32   : > { %7598 = vpow2.f32 %v3935_v32 }
0x1a33   : > { %v7591_v19 = vpop.eup %7590  ;;  %7600 = vpow2.f32 %v3937_v35  ;;  %v6058_v35 = vld [vmem:[%s9771_s8 + $0x108] sm:$0xff] }
0x1a34   : > { %v7593_v36 = vpop.eup %7592  ;;  %v3939_v37 = vadd.f32 1.0, %v7591_v19  ;;  %v6060_v19 = vld [vmem:[%s9771_s8 + $0x118] sm:$0xff] }
0x1a35   : > { %v3940_v38 = vadd.f32 1.0, %v7593_v36  ;;  %v7201_v36 = vpack.c.bf16 %v6060_v19, %v6058_v35 }
0x1a36   : > { %7602 = vrcp.f32 %v3939_v37  ;;  %v6057_v37 = vld [vmem:[%s9771_s8 + $0x100] sm:$0xff] }
0x1a37   : > { %v7595_v16 = vpop.eup %7594  ;;  %7604 = vrcp.f32 %v3940_v38  ;;  %v6059_v38 = vld [vmem:[%s9771_s8 + $0x110] sm:$0xff]  ;;  %7202 = vmatprep.subr.bf16.mxu0 %v7201_v36 }
0x1a38   : > { %v7597_v40 = vpop.eup %7596  ;;  %v3941_v22 = vadd.f32 1.0, %v7595_v16  ;;  %v7203_v16 = vpack.c.bf16 %v6059_v38, %v6057_v37 }
0x1a39   : > { %v3942_v4 = vadd.f32 1.0, %v7597_v40  ;;  %v6062_v40 = vld [vmem:[%s9771_s8 + $0x128] sm:$0xff] }
0x1a3a   : > { %7606 = vrcp.f32 %v3941_v22  ;;  %7204 = vmatpush1.bf16.msra.mxu0 %v7203_v16  ;;  %v6064_v22 = vld [vmem:[%s9771_s8 + $0x138] sm:$0xff] }
0x1a3b   : > { %7608 = vrcp.f32 %v3942_v4  ;;  %v7205_v4 = vpack.c.bf16 %v6064_v22, %v6062_v40 }
0x1a3c   : > { %v7599_v41 = vpop.eup %7598 }
0x1a3d   : > { %v7601_v14 = vpop.eup %7600  ;;  %v3943_v43 = vadd.f32 1.0, %v7599_v41  ;;  %v6061_v41 = vld [vmem:[%s9771_s8 + $0x120] sm:$0xff]  ;;  %7206 = vmatprep.subr.bf16.mxu0 %v7205_v4 }
0x1a3e   : > { %v3944_v46 = vadd.f32 1.0, %v7601_v14  ;;  %v6063_v14 = vld [vmem:[%s9771_s8 + $0x130] sm:$0xff] }
0x1a3f   : > { %7610 = vrcp.f32 %v3943_v43  ;;  %v7207_v43 = vpack.c.bf16 %v6063_v14, %v6061_v41 }
0x1a40   : > { %v7603_v62 = vpop.eup %7602  ;;  %7612 = vrcp.f32 %v3944_v46  ;;  %v6066_v46 = vld [vmem:[%s9771_s8 + $0x148] sm:$0xff] }
0x1a41   : > { %v7605_v1 = vpop.eup %7604  ;;  %v3957_v48 = vmul.f32 %v7603_v62, %v3899_v54  ;;  %7208 = vmatpush1.bf16.msra.mxu0 %v7207_v43  ;;  %v6068_v62 = vld [vmem:[%s9771_s8 + $0x158] sm:$0xff] }
0x1a42   : > { %v3958_v55 = vmul.f32 %v7605_v1, %v3901_v27  ;;  %v7209_v1 = vpack.c.bf16 %v6068_v62, %v6066_v46 }
0x1a44   : > { %v7607_v47 = vpop.eup %7606  ;;  %4065 = vmatprep.mubr.f32.mxu1 %v3958_v55  ;;  %v6065_v55 = vld [vmem:[%s9771_s8 + $0x140] sm:$0xff]  ;;  %7210 = vmatprep.subr.bf16.mxu0 %v7209_v1 }
0x1a45   : > { %v7609_v50 = vpop.eup %7608  ;;  %4066 = vmatmul.mubr.f32.vlgmr.msra.gmra.mrb[78].mxu1 %v3957_v48  ;;  %v3959_v52 = vmul.f32 %v7607_v47, %v3905_v51  ;;  %v6067_v48 = vld [vmem:[%s9771_s8 + $0x150] sm:$0xff] }
0x1a46   : > { %v3960_v53 = vmul.f32 %v7609_v50, %v3907_v25  ;;  %v7211_v47 = vpack.c.bf16 %v6067_v48, %v6065_v55  ;;  %v6070_v50 = vld [vmem:[%s9771_s8 + $0x168] sm:$0xff] }
0x1a48   : > { %4070 = vmatprep.mubr.f32.mxu1 %v3960_v53  ;;  %7212 = vmatpush1.bf16.msra.mxu0 %v7211_v47  ;;  %v6072_v53 = vld [vmem:[%s9771_s8 + $0x178] sm:$0xff] }
0x1a49   : > { %v7611_v34 = vpop.eup %7610  ;;  %4071 = vmatmul.mubr.f32.gmra.mrb[80].mxu1 %v3959_v52  ;;  %v7213_v52 = vpack.c.bf16 %v6072_v53, %v6070_v50 }
0x1a4a   : > { %v7613_v56 = vpop.eup %7612  ;;  %v3961_v49 = vmul.f32 %v7611_v34, %v3911_v30  ;;  %v6069_v34 = vld [vmem:[%s9771_s8 + $0x160] sm:$0xff] }
0x1a4b   : > { %v3962_v63 = vmul.f32 %v7613_v56, %v3913_v12  ;;  %v6071_v56 = vld [vmem:[%s9771_s8 + $0x170] sm:$0xff]  ;;  %7214 = vmatprep.subr.bf16.mxu0 %v7213_v52 }
0x1a4d   : > { %4075 = vmatprep.mubr.f32.mxu1 %v3962_v63  ;;  %v7215_v63 = vpack.c.bf16 %v6071_v56, %v6069_v34 }
0x1a4e   : > { %4076 = vmatmul.mubr.f32.gmra.mrb[82].mxu1 %v3961_v49 }
0x1a4f   : > { %6814 = vmatprep.mubr.msk.f32.mxu1 %vm7711_vm3, %v7709_v8  ;;  %7216 = vmatpush1.bf16.msra.mxu0 %v7215_v63 }
0x1a50   : > { %7217 = vmatprep.subr.bf16.mxu0 %v7708_v3 }
0x1b18   : > { %v6385_v2 = vpop.f32.mrb[78].mxu1 }
0x1b19   : > { %v6386_v57 = vpop.f32.mrb[79].mxu1 }
0x1b1a   : > { %v6387_v7 = vadd.f32 %v6386_v57, %v6385_v2 }
0x1b1c   : > { %v4068_v9 = vadd.f32 %v6387_v7, %v6054_v5  ;;  %v6388_v11 = vpop.f32.mrb[80].mxu1 }
0x1b1d   : > { %v6389_v26 = vpop.f32.mrb[81].mxu1 }
0x1b1e   : > { %v9102_v15 = vadd.f32 %v4068_v9, %v8909_v61  ;;  %v6390_v39 = vadd.f32 %v6389_v26, %v6388_v11 }
0x1b20   : > { %v4073_v54 = vadd.f32 %v6390_v39, %v6054_v5  ;;  %v4086_v33 = vsel %vm681_vm0, %v9102_v15, 0.0 }
0x1b21   : > { %v6391_v27 = vpop.f32.mrb[82].mxu1  ;;  %4087 = vadd.xlane.f32.xlu1 %v4086_v33  ;;  %v6055_v33 = vld [vmem:[%s9769_s6 + $0x2] ss:$0 sm:$0xff] }
0x1b22   : > { %v9107_v45 = vadd.f32 %v4073_v54, %v8914_v6  ;;  %v6392_v13 = vpop.f32.mrb[83].mxu1 }
0x1b23   : > { %v6393_v18 = vadd.f32 %v6392_v13, %v6391_v27  ;;  %v6056_v13 = vld [vmem:[%s9770_s7 + $0x2] ss:$0 sm:$0xff] }
0x1b24   : > { %v4089_v20 = vsel %vm681_vm0, %v9107_v45, 0.0 }
0x1b25   : > { %v4078_v51 = vadd.f32 %v6393_v18, %v6054_v5  ;;  %4090 = vadd.xlane.f32.xlu0 %v4089_v20 }
0x1b27   : > { %v9112_v61 = vadd.f32 %v4078_v51, %v8919_v59 }
0x1b29   : > { %v4092_v23 = vsel %vm788_vm2, %v9112_v61, 0.0 }
0x1b2a   : > { %4093 = vadd.xlane.f32.xlu1 %v4092_v23 }
0x1bae   : > { %v4088_v24 = vpop.xlane.xlu1 %4087 }
0x1baf   : > { %v4095_v25 = vmul.f32 0.015625, %v4088_v24 }
0x1bb1   : > { %v9117_v28 = vsub.f32 %v9102_v15, %v4095_v25 }
0x1bb2   : > { %v4091_v6 = vpop.xlane.xlu0 %4090 }
0x1bb3   : > { %v4096_v10 = vmul.f32 0.015625, %v4091_v6  ;;  %v4101_v58 = vmul.f32 %v9117_v28, %v9117_v28 }
0x1bb5   : > { %v9122_v29 = vsub.f32 %v9107_v45, %v4096_v10  ;;  %v4104_v59 = vsel %vm681_vm0, %v4101_v58, 0.0 }
0x1bb6   : > { %4105 = vadd.xlane.f32.xlu0 %v4104_v59 }
0x1bb7   : > { %v4094_v21 = vpop.xlane.xlu1 %4093  ;;  %v4102_v30 = vmul.f32 %v9122_v29, %v9122_v29 }
0x1bb8   : > { %v4097_v17 = vmul.f32 0.015625, %v4094_v21 }
0x1bb9   : > { %v4107_v12 = vsel %vm681_vm0, %v4102_v30, 0.0 }
0x1bba   : > { %v9129_v31 = vsub.f32 %v9112_v61, %v4097_v17  ;;  %4108 = vadd.xlane.f32.xlu1 %v4107_v12 }
0x1bbc   : > { %v4103_v60 = vmul.f32 %v9129_v31, %v9129_v31 }
0x1bbe   : > { %v4110_v32 = vsel %vm788_vm2, %v4103_v60, 0.0 }
0x1bbf   : > { %4111 = vadd.xlane.f32.xlu0 %v4110_v32 }
0x1c43   : > { %v4106_v49 = vpop.xlane.xlu0 %4105 }
0x1c44   : > { %v4113_v2 = vmul.f32 0.015625, %v4106_v49 }
0x1c46   : > { %v4116_v5 = vadd.f32 1e-05, %v4113_v2 }
0x1c47   : > { %v4109_v57 = vpop.xlane.xlu1 %4108 }
0x1c48   : > { %7614 = vrsqrt.f32 %v4116_v5  ;;  %v4114_v7 = vmul.f32 0.015625, %v4109_v57 }
0x1c4a   : > { %v4117_v9 = vadd.f32 1e-05, %v4114_v7 }
0x1c4c   : > { %7616 = vrsqrt.f32 %v4117_v9  ;;  %v4112_v11 = vpop.xlane.xlu0 %4111 }
0x1c4d   : > { %v4115_v26 = vmul.f32 0.015625, %v4112_v11 }
0x1c4f   : > { %v4118_v39 = vadd.f32 1e-05, %v4115_v26 }
0x1c51   : > { %7618 = vrsqrt.f32 %v4118_v39 }
0x1c52   : > { %v7615_v54 = vpop.eup %7614 }
0x1c53   : > { %v4122_v27 = vmul.f32 %v7615_v54, %v9117_v28 }
0x1c55   : > { %v4129_v18 = vmul.f32 %v6055_v33, %v4122_v27 }
0x1c56   : > { %v7617_v20 = vpop.eup %7616 }
0x1c57   : > { %v4136_v51 = vadd.f32 %v6056_v13, %v4129_v18  ;;  %v4123_v23 = vmul.f32 %v7617_v20, %v9122_v29  ;;  %v6073_v29 = vld [vmem:[%s9772_s9 + $0x2] ss:$4 sm:$0x3] }
0x1c58   : > { %v4162_v21 = vrot.slane %v6073_v29, %v8055_v42  ;;  %v4166_v17 = vrot.slane %v6073_v29, %v8060_v44 }
0x1c59   : > { %6074 = vmatmul.mubr.msk.f32.vlgmr.msra.gmra.mrb[64].mxu0 %vm681_vm0, %v4136_v51  ;;  %v4130_v24 = vmul.f32 %v6055_v33, %v4123_v23 }
0x1c5a   : > { %4248 = vmatprep.mubr.f32.mxu0 %v7709_v8 }
0x1c5b   : > { %v7619_v25 = vpop.eup %7618  ;;  %v4137_v6 = vadd.f32 %v6056_v13, %v4130_v24 }
0x1c5c   : > { %v4124_v10 = vmul.f32 %v7619_v25, %v9129_v31 }
0x1c5d   : > { %6075 = vmatmul.mubr.msk.f32.gmra.mrb[66].mxu0 %vm681_vm0, %v4137_v6 }
0x1c5e   : > { %4254 = vmatprep.mubr.f32.mxu0 %v7709_v8  ;;  %v4131_v28 = vmul.f32 %v6055_v33, %v4124_v10 }
0x1c60   : > { %v4138_v58 = vadd.f32 %v6056_v13, %v4131_v28 }
0x1c62   : > { %6076 = vmatmul.mubr.msk.f32.gmra.mrb[68].mxu0 %vm681_vm0, %v4138_v58 }
0x1c63   : > { %6799 = vmatprep.mubr.msk.f32.mxu0 %vm7711_vm3, %v7709_v8 }
0x1d2c   : > { %v4244_v59 = vpop.f32.mrb[64].mxu0 }
0x1d2d   : > { %v4246_v30 = vpop.f32.mrb[65].mxu0  ;;  %v4245_v31 = vadd.f32 %v4244_v59, %v4162_v21 }
0x1d2e   : > { %v4247_v35 = vadd.f32 %v4246_v30, %v4166_v17 }
0x1d30   : > { %v4250_v12 = vpop.f32.mrb[66].mxu0 }
0x1d31   : > { %v9204_v60 = vadd.f32 %v4250_v12, %v4162_v21  ;;  %v4252_v32 = vpop.f32.mrb[67].mxu0 }
0x1d32   : > { %v4253_v19 = vadd.f32 %v4252_v32, %v4166_v17 }
0x1d33   : > { %v7405_v36 = vpack.i.bf16 %v9204_v60, %v4245_v31 }
0x1d34   : > { %v7222_v37 = vpack.c.bf16 %v4253_v19, %v4247_v35  ;;  %v9207_v38 = vpack.i.bf16 %v4253_v19, %v4247_v35 }
0x1d35   : > { %v4256_v16 = vpop.f32.mrb[68].mxu0  ;;  %7406 = vrot.lane.b32.xlu1 %v7405_v36, %s9824_s29 }
0x1d36   : > { %v9210_v40 = vadd.f32 %v4256_v16, %v4162_v21  ;;  %v4258_v22 = vpop.f32.mrb[69].mxu0  ;;  %7223 = vmatpush3.bf16.msra.mxu1 %v7222_v37 }
0x1d37   : > { %v9212_v4 = vadd.f32 %v4258_v22, %v4166_v17  ;;  %6812 = vmatprep.subr.mxu1 %v7709_v8 }
0x1d38   : > { %4268 = vrot.lane.b32.xlu0 %v9210_v40, %s9824_s29 }
0x1d39   : > { %7411 = vrot.lane.b32.xlu1 %v7405_v36, %s9823_s30 }
0x1d3a   : > { %6813 = vmatpush3.msk.msra.mxu1 %vm766_vm1, %v9212_v4 }
0x1d3b   : > { %7228 = vmatprep.subr.bf16.mxu1 %v7708_v3 }
0x1d3c   : > { %7416 = vrot.lane.b32.xlu0 %v7405_v36, %s9825_s0 }
0x1d3d   : > { %4500 = vrot.lane.b32.xlu1 %v9210_v40, %s9823_s30 }
0x1d40   : > { %4492 = vrot.lane.b32.xlu0 %v9204_v60, %s9826_s4 }
0x1d41   : > { %4490 = vrot.lane.b32.xlu1 %v4245_v31, %s9826_s4 }
0x1d44   : > { %4741 = vrot.lane.b32.xlu0 %v9210_v40, %s9825_s0 }
0x1d45   : > { %4494 = vrot.lane.b32.xlu1 %v9210_v40, %s9826_s4 }
0x1d48   : > { %4731 = vrot.lane.b32.xlu0 %v4245_v31, %s9828_s22 }
0x1d49   : > { %7421 = vrot.lane.b32.xlu1 %v7405_v36, %s9827_s24 }
0x1d4c   : > { %4735 = vrot.lane.b32.xlu0 %v9210_v40, %s9828_s22 }
0x1d4d   : > { %4733 = vrot.lane.b32.xlu1 %v9204_v60, %s9828_s22 }
0x1d50   : > { %4970 = vrot.lane.b32.xlu0 %v4245_v31, %s9829_s5 }
0x1d51   : > { %4980 = vrot.lane.b32.xlu1 %v9210_v40, %s9827_s24 }
0x1da7   : > { %v7407_v41 = vpop.permute.xlu1 %7406 }
0x1da8   : > { %v7409_v14 = vunpack.i.h.bf16 %v7407_v41  ;;  %v7408_v43 = vunpack.i.l.bf16 %v7407_v41 }
0x1daa   : > { %v7218_v46 = vpack.c.bf16 %v7409_v14, %v7408_v43  ;;  %v4269_v48 = vpop.permute.xlu0 %4268 }
0x1dab   : > { %v7412_v62 = vpop.permute.xlu1 %7411 }
0x1dac   : > { %7220 = vmatpush3.bf16.xpose.msk.msra.mxu0 %vm8086_vm5, %v7218_v46  ;;  %v7414_v1 = vunpack.i.h.bf16 %v7412_v62  ;;  %v7413_v55 = vunpack.i.l.bf16 %v7412_v62 }
0x1dad   : > { %6797 = vmatprep.subr.mxu0 %v7709_v8 }
0x1dae   : > { %v7225_v50 = vpack.c.bf16 %v7414_v1, %v7413_v55  ;;  %v7417_v53 = vpop.permute.xlu0 %7416 }
0x1daf   : > { %v4501_v47 = vpop.permute.xlu1 %4500  ;;  %v7419_v34 = vunpack.i.h.bf16 %v7417_v53  ;;  %v7418_v56 = vunpack.i.l.bf16 %v7417_v53 }
0x1db1   : > { %v7232_v49 = vpack.c.bf16 %v7419_v34, %v7418_v56 }
0x1db2   : > { %v4493_v2 = vpop.permute.xlu0 %4492 }
0x1db3   : > { %v4491_v52 = vpop.permute.xlu1 %4490 }
0x1db4   : > { %6798 = vmatpush3.xpose.msk.msra.mxu0 %vm1025_vm4, %v4269_v48 }
0x1db5   : > { %7224 = vmatprep.subr.bf16.mxu0 %v7708_v3 }
0x1db6   : > { %v4742_v57 = vpop.permute.xlu0 %4741 }
0x1db7   : > { %6800 = vmatmul.mubr.msk.f32.vlgmr.msra.gmra.mrb[70].mxu0 %vm1025_vm4, %v4245_v31  ;;  %v4495_v63 = vpop.permute.xlu1 %4494 }
0x1db8   : > { %7227 = vmatpush3.bf16.xpose.msk.msra.mxu0 %vm8086_vm5, %v7225_v50  ;;  %6802 = vmatprep.mubr.msk.f32.mxu0 %vm7711_vm3, %v7709_v8 }
0x1db9   : > { %6827 = vmatprep.subr.mxu0 %v7709_v8 }
0x1dba   : > { %v4732_v11 = vpop.permute.xlu0 %4731 }
0x1dbb   : > { %6803 = vmatmul.mubr.msk.f32.gmra.mrb[72].mxu0 %vm1025_vm4, %v9204_v60  ;;  %v7422_v5 = vpop.permute.xlu1 %7421 }
0x1dbc   : > { %6805 = vmatprep.mubr.msk.f32.mxu0 %vm7711_vm3, %v7709_v8  ;;  %v7424_v7 = vunpack.i.h.bf16 %v7422_v5  ;;  %v7423_v9 = vunpack.i.l.bf16 %v7422_v5 }
0x1dbe   : > { %v7239_v26 = vpack.c.bf16 %v7424_v7, %v7423_v9  ;;  %v4736_v54 = vpop.permute.xlu0 %4735 }
0x1dbf   : > { %6806 = vmatmul.mubr.msk.f32.gmra.mrb[74].mxu0 %vm1025_vm4, %v9210_v40  ;;  %v4734_v39 = vpop.permute.xlu1 %4733 }
0x1dc0   : > { %6828 = vmatpush3.xpose.msk.msra.mxu0 %vm1025_vm4, %v4501_v47  ;;  %6829 = vmatprep.mubr.msk.f32.mxu0 %vm7711_vm3, %v7709_v8 }
0x1dc1   : > { %7231 = vmatprep.subr.bf16.mxu0 %v7708_v3 }
0x1dc2   : > { %v4971_v0 = vpop.permute.xlu0 %4970 }
0x1dc3   : > { %6830 = vmatmul.mubr.msk.f32.vlgmr.msra.gmra.mrb[76].mxu0 %vm1025_vm4, %v4491_v52  ;;  %v4981_v33 = vpop.permute.xlu1 %4980 }
0x1dc4   : > { %7234 = vmatpush3.bf16.xpose.msk.msra.mxu0 %vm8086_vm5, %v7232_v49  ;;  %6832 = vmatprep.mubr.msk.f32.mxu0 %vm7711_vm3, %v7709_v8 }
0x1dc5   : > { %6857 = vmatprep.subr.mxu0 %v7709_v8 }
0x1dc7   : > { %6833 = vmatmul.mubr.msk.f32.gmra.mrb[78].mxu0 %vm1025_vm4, %v4493_v2 }
0x1dc8   : > { %6835 = vmatprep.mubr.msk.f32.mxu0 %vm7711_vm3, %v7709_v8 }
0x1dcb   : > { %6836 = vmatmul.mubr.msk.f32.gmra.mrb[80].mxu0 %vm1025_vm4, %v4495_v63 }
0x1dcc   : > { %6858 = vmatpush3.xpose.msk.msra.mxu0 %vm1025_vm4, %v4742_v57  ;;  %6859 = vmatprep.mubr.msk.f32.mxu0 %vm7711_vm3, %v7709_v8 }
0x1dcd   : > { %7238 = vmatprep.subr.bf16.mxu0 %v7708_v3 }
0x1dcf   : > { %6860 = vmatmul.mubr.msk.f32.vlgmr.msra.gmra.mrb[82].mxu0 %vm1025_vm4, %v4732_v11 }
0x1dd0   : > { %7241 = vmatpush3.bf16.xpose.msk.msra.mxu0 %vm8086_vm5, %v7239_v26  ;;  %6862 = vmatprep.mubr.msk.f32.mxu0 %vm7711_vm3, %v7709_v8 }
0x1dd1   : > { %6887 = vmatprep.subr.mxu0 %v7709_v8 }
0x1dd3   : > { %6863 = vmatmul.mubr.msk.f32.gmra.mrb[84].mxu0 %vm1025_vm4, %v4734_v39 }
0x1dd4   : > { %6865 = vmatprep.mubr.msk.f32.mxu0 %vm7711_vm3, %v7709_v8 }
0x1dd7   : > { %6866 = vmatmul.mubr.msk.f32.gmra.mrb[86].mxu0 %vm1025_vm4, %v4736_v54 }
0x1dd8   : > { %6888 = vmatpush3.xpose.msk.msra.mxu0 %vm1025_vm4, %v4981_v33  ;;  %6889 = vmatprep.mubr.msk.f32.mxu0 %vm7711_vm3, %v7709_v8 }
0x1dd9   : > { %7245 = vmatprep.subr.bf16.mxu0 %v7708_v3 }
0x1ddb   : > { %6890 = vmatmul.mubr.msk.f32.vlgmr.msra.gmra.mrb[88].mxu0 %vm1025_vm4, %v4971_v0 }
0x1ddc   : > { %6892 = vmatprep.mubr.msk.f32.mxu0 %vm7711_vm3, %v7709_v8 }
0x1e8a   : > { %v4348_v27 = vpop.f32.mrb[70].mxu0 }
0x1e8b   : > { %v4362_v13 = vmul.f32 0.25, %v4348_v27  ;;  %v6801_v18 = vpop.f32.mrb[71].mxu0 }
0x1e8d   : > { %v4365_v20 = vsel %vm1121_vm6, %v4362_v13, -inf }
0x1e8e   : > { %4366 = vmax.xlane.f32.xlu1 %v4365_v20  ;;  %v4353_v51 = vpop.f32.mrb[72].mxu0 }
0x1e8f   : > { %v4363_v23 = vmul.f32 0.25, %v4353_v51  ;;  %v6804_v24 = vpop.f32.mrb[73].mxu0 }
0x1e91   : > { %v4368_v25 = vsel %vm1121_vm6, %v4363_v23, -inf }
0x1e92   : > { %4369 = vmax.xlane.f32.xlu0 %v4368_v25  ;;  %v4358_v6 = vpop.f32.mrb[74].mxu0 }
0x1e93   : > { %v4364_v10 = vmul.f32 0.25, %v4358_v6  ;;  %v6807_v28 = vpop.f32.mrb[75].mxu0 }
0x1e95   : > { %v4371_v58 = vsel %vm1128_vm7, %v4364_v10, -inf }
0x1e96   : > { %4372 = vmax.xlane.f32.xlu0 %v4371_v58  ;;  %v4580_v29 = vpop.f32.mrb[76].mxu0 }
0x1e97   : > { %v4594_v59 = vmul.f32 0.25, %v4580_v29  ;;  %v6831_v21 = vpop.f32.mrb[77].mxu0 }
0x1e99   : > { %v4597_v30 = vsel %vm1121_vm6, %v4594_v59, -inf }
0x1e9a   : > { %4598 = vmax.xlane.f32.xlu1 %v4597_v30  ;;  %v4585_v17 = vpop.f32.mrb[78].mxu0 }
0x1e9b   : > { %v9296_v12 = vmul.f32 0.25, %v4585_v17  ;;  %v6834_v31 = vpop.f32.mrb[79].mxu0 }
0x1e9d   : > { %v4600_v32 = vsel %vm1121_vm6, %v9296_v12, -inf }
0x1e9e   : > { %4601 = vmax.xlane.f32.xlu0 %v4600_v32  ;;  %v4590_v35 = vpop.f32.mrb[80].mxu0 }
0x1e9f   : > { %v4596_v19 = vmul.f32 0.25, %v4590_v35  ;;  %v6837_v36 = vpop.f32.mrb[81].mxu0 }
0x1ea1   : > { %v4603_v37 = vsel %vm1128_vm7, %v4596_v19, -inf }
0x1ea2   : > { %4604 = vmax.xlane.f32.xlu1 %v4603_v37  ;;  %v4821_v16 = vpop.f32.mrb[82].mxu0 }
0x1ea3   : > { %v9301_v22 = vmul.f32 0.25, %v4821_v16  ;;  %v6861_v41 = vpop.f32.mrb[83].mxu0 }
0x1ea5   : > { %v4838_v14 = vsel %vm1121_vm6, %v9301_v22, -inf }
0x1ea6   : > { %4839 = vmax.xlane.f32.xlu0 %v4838_v14  ;;  %v4826_v43 = vpop.f32.mrb[84].mxu0 }
0x1ea7   : > { %v9305_v46 = vmul.f32 0.25, %v4826_v43  ;;  %v6864_v62 = vpop.f32.mrb[85].mxu0 }
0x1ea9   : > { %v4841_v1 = vsel %vm1121_vm6, %v9305_v46, -inf }
0x1eaa   : > { %4842 = vmax.xlane.f32.xlu1 %v4841_v1  ;;  %v4831_v55 = vpop.f32.mrb[86].mxu0 }
0x1eab   : > { %v9309_v48 = vmul.f32 0.25, %v4831_v55  ;;  %v6867_v47 = vpop.f32.mrb[87].mxu0 }
0x1ead   : > { %v4844_v50 = vsel %vm1128_vm7, %v9309_v48, -inf }
0x1eae   : > { %4845 = vmax.xlane.f32.xlu0 %v4844_v50  ;;  %v5060_v53 = vpop.f32.mrb[88].mxu0 }
0x1eaf   : > { %v9313_v52 = vmul.f32 0.25, %v5060_v53  ;;  %v6891_v34 = vpop.f32.mrb[89].mxu0 }
0x1eb1   : > { %v5077_v56 = vsel %vm1121_vm6, %v9313_v52, -inf }
0x1eb2   : > { %5078 = vmax.xlane.f32.xlu1 %v5077_v56 }
0x1ec3   : > { %4636 = vrot.lane.b32.xlu1 %v9212_v4, %s9826_s4 }
0x1ec4   : > { %7426 = vrot.lane.b32.xlu0 %v9207_v38, %s9826_s4 }
0x1f1b   : > { %v4367_v63 = vpop.xlane.xlu1 %4366 }
0x1f1c   : > { %v4374_v49 = vsub.f32 %v4362_v13, %v4367_v63 }
0x1f1e   : > { %v4377_v2 = vmul.f32 1.442695, %v4374_v49 }
0x1f1f   : > { %v4370_v5 = vpop.xlane.xlu0 %4369 }
0x1f20   : > { %7620 = vpow2.f32 %v4377_v2  ;;  %v4375_v57 = vsub.f32 %v4363_v23, %v4370_v5 }
0x1f22   : > { %v4379_v7 = vmul.f32 1.442695, %v4375_v57 }
0x1f23   : > { %v4373_v9 = vpop.xlane.xlu0 %4372 }
0x1f24   : > { %7622 = vpow2.f32 %v4379_v7  ;;  %v4376_v11 = vsub.f32 %v4364_v10, %v4373_v9 }
0x1f26   : > { %v4381_v26 = vmul.f32 1.442695, %v4376_v11 }
0x1f27   : > { %v4599_v39 = vpop.xlane.xlu1 %4598 }
0x1f28   : > { %7624 = vpow2.f32 %v4381_v26  ;;  %v4606_v54 = vsub.f32 %v4594_v59, %v4599_v39 }
0x1f2a   : > { %v9321_v33 = vpop.eup %7620  ;;  %v4609_v0 = vmul.f32 1.442695, %v4606_v54 }
0x1f2b   : > { %v4383_v27 = vsel %vm1121_vm6, %v9321_v33, 0.0  ;;  %v4602_v29 = vpop.xlane.xlu0 %4601 }
0x1f2c   : > { %7626 = vpow2.f32 %v4609_v0  ;;  %4384 = vadd.xlane.f32.xlu0 %v4383_v27  ;;  %v4607_v59 = vsub.f32 %v9296_v12, %v4602_v29 }
0x1f2e   : > { %v9325_v13 = vpop.eup %7622  ;;  %v4611_v30 = vmul.f32 1.442695, %v4607_v59 }
0x1f2f   : > { %v4605_v18 = vpop.xlane.xlu1 %4604  ;;  %v4386_v20 = vsel %vm1121_vm6, %v9325_v13, 0.0 }
0x1f30   : > { %v4608_v51 = vsub.f32 %v4596_v19, %v4605_v18  ;;  %4387 = vadd.xlane.f32.xlu1 %v4386_v20 }
0x1f32   : > { %v9329_v23 = vpop.eup %7624  ;;  %v4613_v24 = vmul.f32 1.442695, %v4608_v51 }
0x1f33   : > { %v4389_v25 = vsel %vm1128_vm7, %v9329_v23, 0.0  ;;  %v4840_v21 = vpop.xlane.xlu0 %4839 }
0x1f34   : > { %7628 = vpow2.f32 %v4613_v24  ;;  %4390 = vadd.xlane.f32.xlu0 %v4389_v25  ;;  %v4847_v17 = vsub.f32 %v9301_v22, %v4840_v21 }
0x1f35   : > { %7630 = vpow2.f32 %v4611_v30 }
0x1f36   : > { %v9333_v6 = vpop.eup %7626  ;;  %v4850_v31 = vmul.f32 1.442695, %v4847_v17 }
0x1f37   : > { %v4615_v10 = vsel %vm1121_vm6, %v9333_v6, 0.0  ;;  %v4843_v32 = vpop.xlane.xlu1 %4842 }
0x1f38   : > { %4616 = vadd.xlane.f32.xlu1 %v4615_v10  ;;  %7632 = vpow2.f32 %v4850_v31  ;;  %v4848_v35 = vsub.f32 %v9305_v46, %v4843_v32 }
0x1f3a   : > { %v4852_v36 = vmul.f32 1.442695, %v4848_v35 }
0x1f3b   : > { %v4846_v19 = vpop.xlane.xlu0 %4845 }
0x1f3c   : > { %v4849_v37 = vsub.f32 %v9309_v48, %v4846_v19  ;;  %7634 = vpow2.f32 %v4852_v36 }
0x1f3e   : > { %v9337_v28 = vpop.eup %7628 }
0x1f3f   : > { %v4621_v58 = vsel %vm1128_vm7, %v9337_v28, 0.0  ;;  %v5079_v16 = vpop.xlane.xlu1 %5078  ;;  %v9349_v41 = vpop.eup %7630 }
0x1f40   : > { %4622 = vadd.xlane.f32.xlu1 %v4621_v58  ;;  %v5086_v12 = vsub.f32 %v9313_v52, %v5079_v16  ;;  %v4618_v22 = vsel %vm1121_vm6, %v9349_v41, 0.0  ;;  %v7427_v53 = vpop.permute.xlu0 %7426 }
0x1f41   : > { %v7429_v49 = vunpack.i.h.bf16 %v7427_v53  ;;  %v7428_v2 = vunpack.i.l.bf16 %v7427_v53 }
0x1f42   : > { %v9354_v14 = vpop.eup %7632  ;;  %v5089_v43 = vmul.f32 1.442695, %v5086_v12 }
0x1f43   : > { %v4856_v46 = vsel %vm1121_vm6, %v9354_v14, 0.0  ;;  %v4637_v52 = vpop.permute.xlu1 %4636  ;;  %v7229_v7 = vpack.c.bf16 %v7429_v49, %v7428_v2  ;;  %v6122_v49 = vld [vmem:[%s9773_s10 + $0xa8] sm:$0xff] }
0x1f46   : > { %v9358_v62 = vpop.eup %7634 }
0x1f47   : > { %v4859_v1 = vsel %vm1121_vm6, %v9358_v62, 0.0 }
0x1f4a   : > { %7431 = vrot.lane.b32.xlu0 %v9207_v38, %s9828_s22 }
0x1f51   : > { %7436 = vrot.lane.b32.xlu1 %v9207_v38, %s9829_s5  ;;  %v4854_v38 = vmul.f32 1.442695, %v4849_v37 }
0x1f53   : > { %7636 = vpow2.f32 %v4854_v38 }
0x1f54   : > { %7638 = vpow2.f32 %v5089_v43  ;;  %v6118_v43 = vld [vmem:[%s9773_s10 + $0x88] sm:$0xff] }
0x1f5d   : > { %v9362_v55 = vpop.eup %7636 }
0x1f5e   : > { %v4862_v48 = vsel %vm1128_vm7, %v9362_v55, 0.0  ;;  %v9366_v47 = vpop.eup %7638 }
0x1f5f   : > { %v5095_v50 = vsel %vm1121_vm6, %v9366_v47, 0.0 }
0x1f69   : > { %4619 = vadd.xlane.f32.xlu0 %v4618_v22 }
0x1f6d   : > { %4857 = vadd.xlane.f32.xlu0 %v4856_v46 }
0x1f75   : > { %4860 = vadd.xlane.f32.xlu1 %v4859_v1 }
0x1f79   : > { %4863 = vadd.xlane.f32.xlu1 %v4862_v48 }
0x1f7d   : > { %5096 = vadd.xlane.f32.xlu1 %v5095_v50 }
0x1f83   : > { %4875 = vrot.lane.b32.xlu0 %v9212_v4, %s9828_s22  ;;  %s9832_s22 = sld [smem:[#allocation11_spill]] }
0x1f87   : > { %5114 = vrot.lane.b32.xlu0 %v9212_v4, %s9829_s5 }
0x1f8b   : > { %4974 = vrot.lane.b32.xlu0 %v9210_v40, %s9829_s5 }
0x1f8e   : > { %4972 = vrot.lane.b32.xlu1 %v9204_v60, %s9829_s5  ;;  %s652_s5 = scalar_lea.vmem %s9832_s22, %s9831_s27 }
0x1fb9   : > { %v4385_v34 = vpop.xlane.xlu0 %4384 }
0x1fba   : > { %7640 = vrcp.f32 %v4385_v34  ;;  %v6120_v34 = vld [vmem:[%s9773_s10 + $0x98] sm:$0xff] }
0x1fbd   : > { %v4388_v56 = vpop.xlane.xlu1 %4387 }
0x1fbe   : > { %7642 = vrcp.f32 %v4388_v56  ;;  %v6121_v56 = vld [vmem:[%s9773_s10 + $0xa0] sm:$0xff] }
0x1fbf   : > { %v7252_v2 = vpack.c.bf16 %v6122_v49, %v6121_v56 }
0x1fc1   : > { %v4391_v63 = vpop.xlane.xlu0 %4390 }
0x1fc2   : > { %7644 = vrcp.f32 %v4391_v63 }
0x1fc4   : > { %v7641_v5 = vpop.eup %7640 }
0x1fc5   : > { %v4395_v57 = vmul.f32 %v7641_v5, %v9321_v33  ;;  %v4617_v4 = vpop.xlane.xlu1 %4616  ;;  %v7432_v9 = vpop.permute.xlu0 %7431 }
0x1fc6   : > { %7646 = vrcp.f32 %v4617_v4  ;;  %v7434_v39 = vunpack.i.h.bf16 %v7432_v9  ;;  %v7433_v54 = vunpack.i.l.bf16 %v7432_v9  ;;  %v6124_v4 = vld [vmem:[%s9773_s10 + $0xb8] sm:$0xff] }
0x1fc7   : > { %6815 = vmatmul.mubr.msk.f32.vlgmr.msra.gmra.mrb[84].mxu1 %vm1121_vm6, %v4395_v57  ;;  %v6123_v57 = vld [vmem:[%s9773_s10 + $0xb0] sm:$0xff] }
0x1fc8   : > { %v7643_v40 = vpop.eup %7642  ;;  %7230 = vmatpush3.bf16.msra.mxu1 %v7229_v7  ;;  %6817 = vmatprep.mubr.msk.f32.mxu1 %vm7711_vm3, %v7709_v8  ;;  %v7236_v27 = vpack.c.bf16 %v7434_v39, %v7433_v54 }
0x1fc9   : > { %6842 = vmatprep.subr.mxu1 %v7709_v8  ;;  %v4396_v60 = vmul.f32 %v7643_v40, %v9325_v13  ;;  %v7255_v40 = vpack.c.bf16 %v6124_v4, %v6123_v57  ;;  %v6132_v57 = vld [vmem:[%s9777_s14 + $0x108] sm:$0xff]  ;;  %v6134_v4 = vld [vmem:[%s9777_s14 + $0x118] sm:$0xff] }
0x1fcb   : > { %6818 = vmatmul.mubr.msk.f32.gmra.mrb[86].mxu1 %vm1121_vm6, %v4396_v60 }
0x1fcc   : > { %v7645_v11 = vpop.eup %7644  ;;  %6843 = vmatpush3.msk.msra.mxu1 %vm766_vm1, %v4637_v52  ;;  %6820 = vmatprep.mubr.msk.f32.mxu1 %vm7711_vm3, %v7709_v8  ;;  %v6119_v52 = vld [vmem:[%s9773_s10 + $0x90] sm:$0xff] }
0x1fcd   : > { %v4397_v26 = vmul.f32 %v7645_v11, %v9329_v23  ;;  %7235 = vmatprep.subr.bf16.mxu1 %v7708_v3  ;;  %v4623_v13 = vpop.xlane.xlu1 %4622  ;;  %v7249_v63 = vpack.c.bf16 %v6120_v34, %v6119_v52 }
0x1fcf   : > { %6821 = vmatmul.mubr.msk.f32.gmra.mrb[88].mxu1 %vm1121_vm6, %v4397_v26 }
0x1fd0   : > { %v7647_v33 = vpop.eup %7646  ;;  %6844 = vmatprep.mubr.msk.f32.mxu1 %vm7711_vm3, %v7709_v8 }
0x1fd1   : > { %v4627_v0 = vmul.f32 %v7647_v33, %v9333_v6  ;;  %v7437_v51 = vpop.permute.xlu1 %7436 }
0x1fd2   : > { %v7439_v21 = vunpack.i.h.bf16 %v7437_v51  ;;  %v7438_v30 = vunpack.i.l.bf16 %v7437_v51 }
0x1fd3   : > { %6845 = vmatmul.mubr.msk.f32.vlgmr.msra.gmra.mrb[90].mxu1 %vm1121_vm6, %v4627_v0 }
0x1fd4   : > { %7237 = vmatpush3.bf16.msra.mxu1 %v7236_v27  ;;  %6847 = vmatprep.mubr.msk.f32.mxu1 %vm7711_vm3, %v7709_v8  ;;  %v7243_v32 = vpack.c.bf16 %v7439_v21, %v7438_v30 }
0x1fd5   : > { %6872 = vmatprep.subr.mxu1 %v7709_v8 }
0x1ff6   : > { %v4620_v18 = vpop.xlane.xlu0 %4619 }
0x1ff7   : > { %7648 = vrcp.f32 %v4620_v18 }
0x1ff8   : > { %7650 = vrcp.f32 %v4623_v13 }
0x1ffa   : > { %v4858_v20 = vpop.xlane.xlu0 %4857 }
0x1ffb   : > { %7652 = vrcp.f32 %v4858_v20 }
0x1ffe   : > { %v4876_v23 = vpop.permute.xlu0 %4875 }
0x1fff   : > { %6873 = vmatpush3.msk.msra.mxu1 %vm766_vm1, %v4876_v23 }
0x2000   : > { %7242 = vmatprep.subr.bf16.mxu1 %v7708_v3 }
0x2001   : > { %v7649_v24 = vpop.eup %7648 }
0x2002   : > { %v4861_v25 = vpop.xlane.xlu1 %4860  ;;  %v4628_v6 = vmul.f32 %v7649_v24, %v9349_v41  ;;  %v7651_v10 = vpop.eup %7650 }
0x2003   : > { %7654 = vrcp.f32 %v4861_v25  ;;  %v4629_v29 = vmul.f32 %v7651_v10, %v9337_v28  ;;  %v5115_v35 = vpop.permute.xlu0 %5114 }
0x2004   : > { %6848 = vmatmul.mubr.msk.f32.gmra.mrb[92].mxu1 %vm1121_vm6, %v4628_v6 }
0x2005   : > { %6850 = vmatprep.mubr.msk.f32.mxu1 %vm7711_vm3, %v7709_v8  ;;  %v7653_v59 = vpop.eup %7652 }
0x2006   : > { %v4864_v58 = vpop.xlane.xlu1 %4863  ;;  %v4868_v17 = vmul.f32 %v7653_v59, %v9354_v14  ;;  %v6117_v14 = vld [vmem:[%s9773_s10 + $0x80] sm:$0xff] }
0x2007   : > { %7656 = vrcp.f32 %v4864_v58  ;;  %v4975_v16 = vpop.permute.xlu0 %4974 }
0x2008   : > { %6851 = vmatmul.mubr.msk.f32.gmra.mrb[94].mxu1 %vm1121_vm6, %v4629_v29 }
0x2009   : > { %6874 = vmatprep.mubr.msk.f32.mxu1 %vm7711_vm3, %v7709_v8 }
0x200a   : > { %v5097_v31 = vpop.xlane.xlu1 %5096 }
0x200b   : > { %7658 = vrcp.f32 %v5097_v31 }
0x200c   : > { %6875 = vmatmul.mubr.msk.f32.vlgmr.msra.gmra.mrb[96].mxu1 %vm1121_vm6, %v4868_v17 }
0x200d   : > { %v7655_v19 = vpop.eup %7654  ;;  %7244 = vmatpush3.bf16.msra.mxu1 %v7243_v32  ;;  %6877 = vmatprep.mubr.msk.f32.mxu1 %vm7711_vm3, %v7709_v8 }
0x200e   : > { %v4973_v28 = vpop.permute.xlu1 %4972  ;;  %6902 = vmatprep.subr.mxu1 %v7709_v8  ;;  %v4869_v36 = vmul.f32 %v7655_v19, %v9358_v62  ;;  %v7246_v62 = vpack.c.bf16 %v6118_v43, %v6117_v14 }
0x200f   : > { %6893 = vmatmul.mubr.msk.f32.gmra.mrb[90].mxu0 %vm1025_vm4, %v4973_v28 }
0x2010   : > { %6878 = vmatmul.mubr.msk.f32.gmra.mrb[98].mxu1 %vm1121_vm6, %v4869_v36  ;;  %6895 = vmatprep.mubr.msk.f32.mxu0 %vm7711_vm3, %v7709_v8 }
0x2011   : > { %v7657_v37 = vpop.eup %7656  ;;  %6903 = vmatpush3.msk.msra.mxu1 %vm766_vm1, %v5115_v35  ;;  %6880 = vmatprep.mubr.msk.f32.mxu1 %vm7711_vm3, %v7709_v8 }
0x2012   : > { %v4870_v41 = vmul.f32 %v7657_v37, %v9362_v55  ;;  %7247 = vmatpush3.bf16.msra.mxu0 %v7246_v62 }
0x2013   : > { %6896 = vmatmul.mubr.msk.f32.gmra.mrb[92].mxu0 %vm1025_vm4, %v4975_v16  ;;  %7248 = vmatprep.subr.bf16.mxu0 %v7708_v3 }
0x2014   : > { %6881 = vmatmul.mubr.msk.f32.gmra.mrb[100].mxu1 %vm1121_vm6, %v4870_v41  ;;  %6929 = vmatprep.mubr.msk.f32.mxu0 %vm7711_vm3, %v7709_v8 }
0x2015   : > { %v7659_v38 = vpop.eup %7658  ;;  %6904 = vmatprep.mubr.msk.f32.mxu1 %vm7711_vm3, %v7709_v8 }
0x2016   : > { %v5107_v12 = vmul.f32 %v7659_v38, %v9366_v47  ;;  %7250 = vmatpush3.bf16.msra.mxu0 %v7249_v63 }
0x2017   : > { %7251 = vmatprep.subr.bf16.mxu0 %v7708_v3 }
0x2018   : > { %6905 = vmatmul.mubr.msk.f32.vlgmr.msra.gmra.mrb[102].mxu1 %vm1121_vm6, %v5107_v12 }
0x2019   : > { %6907 = vmatprep.mubr.msk.f32.mxu1 %vm7711_vm3, %v7709_v8 }
0x201a   : > { %7253 = vmatpush3.bf16.msra.mxu0 %v7252_v2 }
0x201b   : > { %7254 = vmatprep.subr.bf16.mxu0 %v7708_v3 }
0x201e   : > { %7256 = vmatpush3.bf16.msra.mxu0 %v7255_v40  ;;  %v6133_v40 = vld [vmem:[%s9777_s14 + $0x110] sm:$0xff] }
0x209a   : > { %v4476_v22 = vpop.f32.mrb[84].mxu1 }
0x209b   : > { %v6816_v46 = vpop.f32.mrb[85].mxu1 }
0x209e   : > { %v9438_v1 = vpop.f32.mrb[86].mxu1 }
0x209f   : > { %v6819_v55 = vpop.f32.mrb[87].mxu1 }
0x20a2   : > { %v9441_v48 = vpop.f32.mrb[88].mxu1 }
0x20a3   : > { %v6822_v47 = vpop.f32.mrb[89].mxu1 }
0x20a6   : > { %v4717_v50 = vpop.f32.mrb[90].mxu1 }
0x20a7   : > { %5212 = vrot.lane.b32.xlu1 %v4717_v50, %s9827_s24  ;;  %v6846_v53 = vpop.f32.mrb[91].mxu1 }
0x20d7   : > { %v9456_v5 = vpop.f32.mrb[92].mxu1 }
0x20d8   : > { %v6849_v7 = vpop.f32.mrb[93].mxu1 }
0x20d9   : > { %v7257_v7 = vpack.c.bf16 %v6134_v4, %v6132_v57  ;;  %v6176_v57 = vld [vmem:[%s9779_s16 + $0x298] sm:$0xff] }
0x20db   : > { %v9465_v60 = vpop.f32.mrb[94].mxu1  ;;  %7258 = vmatprep.subr.bf16.mxu1 %v7257_v7  ;;  %v6159_v7 = vld [vmem:[%s9779_s16 + $0x210] sm:$0xff] }
0x20dc   : > { %v6852_v9 = vpop.f32.mrb[95].mxu1 }
0x20df   : > { %v4956_v11 = vpop.f32.mrb[96].mxu1 }
0x20e0   : > { %5224 = vrot.lane.b32.xlu0 %v4956_v11, %s9825_s0  ;;  %v6876_v26 = vpop.f32.mrb[97].mxu1  ;;  %v6136_v11 = vld [vmem:[%s9777_s14 + $0x128] sm:$0xff] }
0x20e1   : > { %v6138_v26 = vld [vmem:[%s9777_s14 + $0x138] sm:$0xff] }
0x20e2   : > { %v5065_v39 = vpop.f32.mrb[90].mxu0 }
0x20e3   : > { %v9469_v54 = vpop.f32.mrb[98].mxu1  ;;  %v6894_v33 = vpop.f32.mrb[91].mxu0  ;;  %v5075_v24 = vmul.f32 0.25, %v5065_v39  ;;  %v7261_v39 = vpack.c.bf16 %v6138_v26, %v6136_v11  ;;  %v6178_v11 = vld [vmem:[%s9779_s16 + $0x2a8] sm:$0xff] }
0x20e4   : > { %v6879_v0 = vpop.f32.mrb[99].mxu1  ;;  %v6135_v33 = vld [vmem:[%s9777_s14 + $0x120] sm:$0xff] }
0x20e5   : > { %v5080_v25 = vsel %vm1121_vm6, %v5075_v24, -inf  ;;  %v6137_v0 = vld [vmem:[%s9777_s14 + $0x130] sm:$0xff] }
0x20e6   : > { %v5070_v27 = vpop.f32.mrb[92].mxu0 }
0x20e7   : > { %v9471_v13 = vpop.f32.mrb[100].mxu1  ;;  %v6897_v18 = vpop.f32.mrb[93].mxu0  ;;  %v5076_v6 = vmul.f32 0.25, %v5070_v27  ;;  %v7263_v27 = vpack.c.bf16 %v6137_v0, %v6135_v33  ;;  %v6162_v33 = vld [vmem:[%s9779_s16 + $0x228] sm:$0xff] }
0x20e8   : > { %v6882_v20 = vpop.f32.mrb[101].mxu1  ;;  %v6140_v18 = vld [vmem:[%s9777_s14 + $0x148] sm:$0xff] }
0x20e9   : > { %v5083_v10 = vsel %vm1128_vm7, %v5076_v6, -inf }
0x20eb   : > { %v5195_v51 = vpop.f32.mrb[102].mxu1 }
0x20ec   : > { %5236 = vrot.lane.b32.xlu1 %v5195_v51, %s9823_s30  ;;  %v6906_v23 = vpop.f32.mrb[103].mxu1  ;;  %v6139_v51 = vld [vmem:[%s9777_s14 + $0x140] sm:$0xff] }
0x20ed   : > { %v6141_v23 = vld [vmem:[%s9777_s14 + $0x150] sm:$0xff] }
0x20ff   : > { %5081 = vmax.xlane.f32.xlu0 %v5080_v25  ;;  %v6144_v25 = vld [vmem:[%s9777_s14 + $0x168] sm:$0xff] }
0x2110   : > { %5084 = vmax.xlane.f32.xlu1 %v5083_v10  ;;  %v6143_v10 = vld [vmem:[%s9777_s14 + $0x160] sm:$0xff] }
0x2119   : > { %v5213_v58 = vpop.permute.xlu1 %5212 }
0x211a   : > { %v5245_v59 = vsel %vm1025_vm4, %v4476_v22, %v5213_v58  ;;  %v9487_v22 = vld [vmem:[%s9774_s11 + $0x2] ss:$0 sm:$0xff]  ;;  %v6145_v58 = vld [vmem:[%s9777_s14 + $0x170] sm:$0xff] }
0x2152   : > { %v5225_v29 = vpop.permute.xlu0 %5224 }
0x2153   : > { %v5248_v21 = vsel %vm2006_vm8, %v5245_v59, %v5225_v29  ;;  %v7271_v29 = vpack.c.bf16 %v6145_v58, %v6143_v10  ;;  %v6166_v10 = vld [vmem:[%s9779_s16 + $0x248] sm:$0xff] }
0x215e   : > { %v5237_v30 = vpop.permute.xlu1 %5236 }
0x215f   : > { %v5251_v17 = vsel %vm2010_vm9, %v5248_v21, %v5237_v30 }
0x2160   : > { %6930 = vmatmul.mubr.msk.f32.vlgmr.msra.gmra.mrb[94].mxu0 %vm681_vm0, %v5251_v17 }
0x2161   : > { %6932 = vmatprep.mubr.msk.f32.mxu0 %vm7711_vm3, %v7709_v8 }
0x218c   : > { %v5082_v31 = vpop.xlane.xlu0 %5081 }
0x218d   : > { %v5087_v32 = vsub.f32 %v5075_v24, %v5082_v31  ;;  %v7267_v24 = vpack.c.bf16 %v6141_v23, %v6139_v51  ;;  %v6164_v51 = vld [vmem:[%s9779_s16 + $0x238] sm:$0xff] }
0x218f   : > { %v5091_v35 = vmul.f32 1.442695, %v5087_v32 }
0x2191   : > { %7660 = vpow2.f32 %v5091_v35 }
0x219b   : > { %v7661_v19 = vpop.eup %7660 }
0x219c   : > { %v5098_v28 = vsel %vm1121_vm6, %v7661_v19, 0.0 }
0x219d   : > { %5099 = vadd.xlane.f32.xlu0 %v5098_v28  ;;  %v5085_v36 = vpop.xlane.xlu1 %5084  ;;  %v9564_v28 = vld [vmem:[%s9775_s12 + $0x2] ss:$0 sm:$0xff] }
0x219e   : > { %v5088_v37 = vsub.f32 %v5076_v6, %v5085_v36 }
0x21a0   : > { %v5093_v16 = vmul.f32 1.442695, %v5088_v37  ;;  %v9569_v37 = vld [vmem:[%s9776_s13 + $0x2] ss:$0 sm:$0xff] }
0x21a2   : > { %7662 = vpow2.f32 %v5093_v16 }
0x21ac   : > { %v7663_v41 = vpop.eup %7662 }
0x21ad   : > { %v5101_v38 = vsel %vm1128_vm7, %v7663_v41, 0.0 }
0x21ae   : > { %5102 = vadd.xlane.f32.xlu0 %v5101_v38 }
0x222a   : > { %v5100_v12 = vpop.xlane.xlu0 %5099 }
0x222b   : > { %7664 = vrcp.f32 %v5100_v12 }
0x2233   : > { %v5343_v14 = vpop.f32.mrb[94].mxu0 }
0x2234   : > { %v5344_v43 = vadd.f32 %v9487_v22, %v5343_v14  ;;  %v6931_v46 = vpop.f32.mrb[95].mxu0 }
0x2235   : > { %v7665_v62 = vpop.eup %7664 }
0x2236   : > { %v9491_v55 = vadd.f32 %v5344_v43, %v9102_v15  ;;  %v5108_v47 = vmul.f32 %v7665_v62, %v7661_v19 }
0x2238   : > { %6908 = vmatmul.mubr.msk.f32.gmra.mrb[104].mxu1 %vm1121_vm6, %v5108_v47  ;;  %v5362_v50 = vsel %vm681_vm0, %v9491_v55, 0.0 }
0x2239   : > { %5363 = vadd.xlane.f32.xlu1 %v5362_v50  ;;  %6910 = vmatprep.mubr.msk.f32.mxu1 %vm7711_vm3, %v7709_v8 }
0x223b   : > { %v5103_v53 = vpop.xlane.xlu0 %5102 }
0x223c   : > { %7666 = vrcp.f32 %v5103_v53 }
0x2246   : > { %v7667_v52 = vpop.eup %7666 }
0x2247   : > { %v5109_v34 = vmul.f32 %v7667_v52, %v7663_v41 }
0x2249   : > { %6911 = vmatmul.mubr.msk.f32.gmra.mrb[106].mxu1 %vm1121_vm6, %v5109_v34  ;;  %v6173_v34 = vld [vmem:[%s9779_s16 + $0x280] sm:$0xff] }
0x224a   : > { %5214 = vrot.lane.b32.xlu1 %v9456_v5, %s9827_s24  ;;  %5518 = vmatprep.mubr.f32.mxu1 %v7709_v8  ;;  %v6131_v5 = vld [vmem:[%s9777_s14 + $0x100] sm:$0xff] }
0x224b   : > { %v7259_v9 = vpack.c.bf16 %v6133_v40, %v6131_v5  ;;  %v6160_v5 = vld [vmem:[%s9779_s16 + $0x218] sm:$0xff] }
0x224c   : > { %v7279_v40 = vpack.c.bf16 %v6160_v5, %v6159_v7 }
0x224d   : > { %7260 = vmatpush1.bf16.msra.mxu1 %v7259_v9  ;;  %v6177_v9 = vld [vmem:[%s9779_s16 + $0x2a0] sm:$0xff] }
0x224e   : > { %7262 = vmatprep.subr.bf16.mxu1 %v7261_v39  ;;  %v7281_v26 = vpack.c.bf16 %v6178_v11, %v6177_v9  ;;  %v6161_v39 = vld [vmem:[%s9779_s16 + $0x220] sm:$0xff] }
0x224f   : > { %v7283_v0 = vpack.c.bf16 %v6162_v33, %v6161_v39 }
0x2251   : > { %7264 = vmatpush1.bf16.msra.mxu1 %v7263_v27  ;;  %v6179_v27 = vld [vmem:[%s9779_s16 + $0x2b0] sm:$0xff] }
0x22c6   : > { %v5364_v15 = vpop.xlane.xlu1 %5363 }
0x22c7   : > { %v5371_v56 = vmul.f32 0.015625, %v5364_v15  ;;  %v6174_v15 = vld [vmem:[%s9779_s16 + $0x288] sm:$0xff] }
0x22c9   : > { %v5374_v63 = vsub.f32 %v9491_v55, %v5371_v56  ;;  %v7273_v56 = vpack.c.bf16 %v6174_v15, %v6173_v34 }
0x22ca   : > { %v5215_v41 = vpop.permute.xlu1 %5214 }
0x22cb   : > { %v5377_v49 = vmul.f32 %v5374_v63, %v5374_v63  ;;  %v5246_v12 = vsel %vm1025_vm4, %v9438_v1, %v5215_v41  ;;  %7274 = vmatprep.subr.bf16.mxu0 %v7273_v56  ;;  %v6187_v41 = vld [vmem:[%s9779_s16 + $0x2f0] sm:$0xff] }
0x22cd   : > { %v5380_v2 = vsel %vm681_vm0, %v5377_v49, 0.0 }
0x22ce   : > { %5381 = vadd.xlane.f32.xlu0 %v5380_v2  ;;  %v6175_v2 = vld [vmem:[%s9779_s16 + $0x290] sm:$0xff] }
0x22cf   : > { %v7277_v4 = vpack.c.bf16 %v6176_v57, %v6175_v2 }
0x22e4   : > { %5226 = vrot.lane.b32.xlu0 %v9469_v54, %s9825_s0  ;;  %v6142_v54 = vld [vmem:[%s9777_s14 + $0x158] sm:$0xff] }
0x22e5   : > { %v7265_v20 = vpack.c.bf16 %v6142_v54, %v6140_v18  ;;  %v6180_v18 = vld [vmem:[%s9779_s16 + $0x2b8] sm:$0xff] }
0x22e6   : > { %v7285_v54 = vpack.c.bf16 %v6180_v18, %v6179_v27 }
0x22e7   : > { %7266 = vmatprep.subr.bf16.mxu1 %v7265_v20  ;;  %v6163_v20 = vld [vmem:[%s9779_s16 + $0x230] sm:$0xff] }
0x22e8   : > { %5228 = vrot.lane.b32.xlu0 %v9471_v13, %s9825_s0  ;;  %7268 = vmatpush1.bf16.msra.mxu1 %v7267_v24  ;;  %v6146_v13 = vld [vmem:[%s9777_s14 + $0x178] sm:$0xff]  ;;  %v7287_v23 = vpack.c.bf16 %v6164_v51, %v6163_v20  ;;  %v6181_v24 = vld [vmem:[%s9779_s16 + $0x2c0] sm:$0xff] }
0x22e9   : > { %v7269_v6 = vpack.c.bf16 %v6146_v13, %v6144_v25  ;;  %v6182_v25 = vld [vmem:[%s9779_s16 + $0x2c8] sm:$0xff] }
0x22ea   : > { %v7289_v13 = vpack.c.bf16 %v6182_v25, %v6181_v24 }
0x22eb   : > { %7270 = vmatprep.subr.bf16.mxu1 %v7269_v6  ;;  %v6165_v6 = vld [vmem:[%s9779_s16 + $0x240] sm:$0xff] }
0x22ec   : > { %7272 = vmatpush1.bf16.msra.mxu1 %v7271_v29  ;;  %v7291_v58 = vpack.c.bf16 %v6166_v10, %v6165_v6  ;;  %v6183_v29 = vld [vmem:[%s9779_s16 + $0x2d0] sm:$0xff] }
0x22ed   : > { %7305 = vmatprep.subr.bf16.mxu1 %v7708_v3 }
0x230b   : > { %v5200_v59 = vpop.f32.mrb[104].mxu1 }
0x230c   : > { %v6909_v21 = vpop.f32.mrb[105].mxu1  ;;  %5238 = vrot.lane.b32.xlu1 %v5200_v59, %s9823_s30  ;;  %v6184_v59 = vld [vmem:[%s9779_s16 + $0x2d8] sm:$0xff] }
0x230d   : > { %v7293_v21 = vpack.c.bf16 %v6184_v59, %v6183_v29 }
0x2310   : > { %5216 = vrot.lane.b32.xlu1 %v9465_v60, %s9827_s24 }
0x231c   : > { %v5205_v30 = vpop.f32.mrb[106].mxu1 }
0x231d   : > { %v6912_v17 = vpop.f32.mrb[107].mxu1  ;;  %5240 = vrot.lane.b32.xlu1 %v5205_v30, %s9823_s30  ;;  %v6167_v30 = vld [vmem:[%s9779_s16 + $0x250] sm:$0xff] }
0x231e   : > { %v6168_v17 = vld [vmem:[%s9779_s16 + $0x258] sm:$0xff] }
0x235b   : > { %v5382_v31 = vpop.xlane.xlu0 %5381 }
0x235c   : > { %v5389_v32 = vmul.f32 0.015625, %v5382_v31  ;;  %v7295_v31 = vpack.c.bf16 %v6168_v17, %v6167_v30 }
0x235e   : > { %v5392_v35 = vadd.f32 1e-05, %v5389_v32  ;;  %v6185_v32 = vld [vmem:[%s9779_s16 + $0x2e0] sm:$0xff] }
0x235f   : > { %v5227_v38 = vpop.permute.xlu0 %5226 }
0x2360   : > { %7668 = vrsqrt.f32 %v5392_v35  ;;  %v5249_v14 = vsel %vm2006_vm8, %v5246_v12, %v5227_v38  ;;  %v6186_v35 = vld [vmem:[%s9779_s16 + $0x2e8] sm:$0xff]  ;;  %v6188_v38 = vld [vmem:[%s9779_s16 + $0x2f8] sm:$0xff] }
0x2361   : > { %v7301_v12 = vpack.c.bf16 %v6188_v38, %v6187_v41 }
0x2363   : > { %v5229_v50 = vpop.permute.xlu0 %5228 }
0x236a   : > { %v7669_v19 = vpop.eup %7668 }
0x236b   : > { %v5398_v36 = vmul.f32 %v7669_v19, %v5374_v63  ;;  %v6158_v63 = vld [vmem:[%s9779_s16 + $0x208] sm:$0xff]  ;;  %v7297_v19 = vpack.c.bf16 %v6186_v35, %v6185_v32 }
0x236d   : > { %v5405_v60 = vmul.f32 %v9564_v28, %v5398_v36  ;;  %v6169_v36 = vld [vmem:[%s9779_s16 + $0x260] sm:$0xff] }
0x236f   : > { %v5412_v16 = vadd.f32 %v9569_v37, %v5405_v60  ;;  %v6170_v60 = vld [vmem:[%s9779_s16 + $0x268] sm:$0xff] }
0x2371   : > { %6148 = vmatmul.mubr.msk.f32.vlgmr.msra.gmra.mrb[108].mxu1 %vm681_vm0, %v5412_v16  ;;  %v7299_v16 = vpack.c.bf16 %v6170_v60, %v6169_v36 }
0x2372   : > { %5524 = vmatprep.mubr.f32.mxu1 %v7709_v8 }
0x237e   : > { %v5239_v43 = vpop.permute.xlu1 %5238 }
0x237f   : > { %v5252_v46 = vsel %vm2010_vm9, %v5249_v14, %v5239_v43  ;;  %v6171_v14 = vld [vmem:[%s9779_s16 + $0x270] sm:$0xff]  ;;  %v6172_v43 = vld [vmem:[%s9779_s16 + $0x278] sm:$0xff] }
0x2380   : > { %6933 = vmatmul.mubr.msk.f32.gmra.mrb[96].mxu0 %vm681_vm0, %v5252_v46  ;;  %v7303_v46 = vpack.c.bf16 %v6172_v43, %v6171_v14 }
0x2381   : > { %6935 = vmatprep.mubr.msk.f32.mxu0 %vm7711_vm3, %v7709_v8 }
0x2382   : > { %v5217_v62 = vpop.permute.xlu1 %5216 }
0x2383   : > { %v5247_v47 = vsel %vm1025_vm4, %v9441_v48, %v5217_v62  ;;  %v6157_v48 = vld [vmem:[%s9779_s16 + $0x200] sm:$0xff] }
0x2384   : > { %v5250_v53 = vsel %vm2006_vm8, %v5247_v47, %v5229_v50  ;;  %v7275_v49 = vpack.c.bf16 %v6158_v63, %v6157_v48  ;;  %v6147_v62 = vld [vmem:[%s9778_s15 + $0x2] ss:$4 sm:$0x3] }
0x2385   : > { %v9687_v47 = vrot.slane %v6147_v62, %v8055_v42  ;;  %v9690_v50 = vrot.slane %v6147_v62, %v8060_v44 }
0x2386   : > { %7276 = vmatpush3.bf16.msra.mxu0 %v7275_v49 }
0x2387   : > { %7278 = vmatprep.subr.bf16.mxu0 %v7277_v4 }
0x238a   : > { %7280 = vmatpush3.bf16.msra.mxu0 %v7279_v40 }
0x238b   : > { %7282 = vmatprep.subr.bf16.mxu0 %v7281_v26 }
0x238e   : > { %7284 = vmatpush3.bf16.msra.mxu0 %v7283_v0 }
0x238f   : > { %v5241_v52 = vpop.permute.xlu1 %5240  ;;  %7286 = vmatprep.subr.bf16.mxu0 %v7285_v54 }
0x2390   : > { %v5253_v1 = vsel %vm2010_vm9, %v5250_v53, %v5241_v52 }
0x2391   : > { %6936 = vmatmul.mubr.msk.f32.gmra.mrb[98].mxu0 %vm681_vm0, %v5253_v1 }
0x2392   : > { %7288 = vmatpush3.bf16.msra.mxu0 %v7287_v23 }
0x2393   : > { %7290 = vmatprep.subr.bf16.mxu0 %v7289_v13 }
0x2396   : > { %7292 = vmatpush3.bf16.msra.mxu0 %v7291_v58 }
0x2397   : > { %7294 = vmatprep.subr.bf16.mxu0 %v7293_v21 }
0x239a   : > { %7296 = vmatpush3.bf16.msra.mxu0 %v7295_v31 }
0x239b   : > { %7298 = vmatprep.subr.bf16.mxu0 %v7297_v19 }
0x239e   : > { %7300 = vmatpush3.bf16.msra.mxu0 %v7299_v16 }
0x239f   : > { %7302 = vmatprep.subr.bf16.mxu0 %v7301_v12 }
0x23a2   : > { %7304 = vmatpush3.bf16.msra.mxu0 %v7303_v46 }
0x2444   : > { %v5520_v53 = vpop.f32.mrb[108].mxu1 }
0x2445   : > { %v5521_v52 = vadd.f32 %v5520_v53, %v9687_v47  ;;  %v5522_v1 = vpop.f32.mrb[109].mxu1 }
0x2446   : > { %v5523_v34 = vadd.f32 %v5522_v1, %v9690_v50 }
0x2447   : > { %v6151_v15 = vmul.f32 -1.702, %v5521_v52 }
0x2448   : > { %v6152_v56 = vmul.f32 -1.702, %v5523_v34 }
0x2449   : > { %v5549_v48 = vmul.f32 1.442695, %v6151_v15  ;;  %v5719_v15 = vld [vmem:[%s9783_s20] sm:$0xff] }
0x244a   : > { %v5551_v63 = vmul.f32 1.442695, %v6152_v56  ;;  %v5722_v56 = vld [vmem:[%s9783_s20 + $0x18] sm:$0xff] }
0x244b   : > { %7670 = vpow2.f32 %v5549_v48 }
0x244c   : > { %7672 = vpow2.f32 %v5551_v63  ;;  %v5723_v63 = vld [vmem:[%s9783_s20 + $0x20] sm:$0xff] }
0x2453   : > { %v5348_v49 = vpop.f32.mrb[96].mxu0 }
0x2454   : > { %v5349_v2 = vadd.f32 %v9487_v22, %v5348_v49  ;;  %v6934_v42 = vpop.f32.mrb[97].mxu0  ;;  %v5724_v49 = vld [vmem:[%s9783_s20 + $0x28] sm:$0xff] }
0x2455   : > { %v7671_v57 = vpop.eup %7670  ;;  %v5725_v42 = vld [vmem:[%s9783_s20 + $0x30] sm:$0xff] }
0x2456   : > { %v7673_v4 = vpop.eup %7672  ;;  %v5561_v44 = vadd.f32 1.0, %v7671_v57  ;;  %v5358_v7 = vadd.f32 %v5349_v2, %v9107_v45  ;;  %v7312_v2 = vpack.c.bf16 %v5724_v49, %v5723_v63  ;;  %v5726_v57 = vld [vmem:[%s9783_s20 + $0x38] sm:$0xff] }
0x2457   : > { %v5562_v5 = vadd.f32 1.0, %v7673_v4  ;;  %v7315_v4 = vpack.c.bf16 %v5726_v57, %v5725_v42 }
0x2458   : > { %7674 = vrcp.f32 %v5561_v44  ;;  %v5365_v40 = vsel %vm681_vm0, %v5358_v7, 0.0 }
0x2459   : > { %7676 = vrcp.f32 %v5562_v5  ;;  %5366 = vadd.xlane.f32.xlu0 %v5365_v40 }
0x2462   : > { %v7675_v9 = vpop.eup %7674 }
0x2463   : > { %v7677_v11 = vpop.eup %7676  ;;  %v5579_v33 = vmul.f32 %v7675_v9, %v5521_v52 }
0x2464   : > { %v5580_v26 = vmul.f32 %v7677_v11, %v5523_v34  ;;  %v5353_v39 = vpop.f32.mrb[98].mxu0 }
0x2465   : > { %v5354_v0 = vadd.f32 %v9487_v22, %v5353_v39  ;;  %v6937_v27 = vpop.f32.mrb[99].mxu0 }
0x2466   : > { %5687 = vmatprep.mubr.f32.mxu0 %v5580_v26 }
0x2467   : > { %v5359_v18 = vadd.f32 %v5354_v0, %v9112_v61  ;;  %5688 = vmatmul.mubr.f32.vlgmr.msra.gmra.mrb[100].mxu0 %v5579_v33  ;;  %v6189_v61 = vld [vmem:[%s9780_s17 + $0x2] ss:$0 sm:$0xff] }
0x2469   : > { %v5368_v45 = vsel %vm788_vm2, %v5359_v18, 0.0 }
0x246a   : > { %5369 = vadd.xlane.f32.xlu1 %v5368_v45 }
0x24e6   : > { %v5367_v54 = vpop.xlane.xlu0 %5366 }
0x24e7   : > { %v5372_v20 = vmul.f32 0.015625, %v5367_v54 }
0x24e9   : > { %v5375_v51 = vsub.f32 %v5358_v7, %v5372_v20 }
0x24eb   : > { %v5378_v23 = vmul.f32 %v5375_v51, %v5375_v51 }
0x24ed   : > { %v5383_v24 = vsel %vm681_vm0, %v5378_v23, 0.0 }
0x24ee   : > { %5384 = vadd.xlane.f32.xlu0 %v5383_v24  ;;  %v5703_v24 = vld [vmem:[%s9830_s3] sm:$0x1] }
0x24f7   : > { %v5370_v25 = vpop.xlane.xlu1 %5369 }
0x24f8   : > { %v5373_v13 = vmul.f32 0.015625, %v5370_v25 }
0x24fa   : > { %v5376_v6 = vsub.f32 %v5359_v18, %v5373_v13  ;;  %v5702_v18 = vld [vmem:[%s9781_s18] sm:$0x1] }
0x24fc   : > { %v5379_v10 = vmul.f32 %v5376_v6, %v5376_v6 }
0x24fe   : > { %v5386_v22 = vsel %vm788_vm2, %v5379_v10, 0.0 }
0x24ff   : > { %5387 = vadd.xlane.f32.xlu0 %v5386_v22 }
0x253a   : > { %v6485_v58 = vpop.f32.mrb[100].mxu0 }
0x253b   : > { %v6486_v29 = vpop.f32.mrb[101].mxu0 }
0x253c   : > { %v6487_v59 = vadd.f32 %v6486_v29, %v6485_v58 }
0x253e   : > { %v5690_v21 = vadd.f32 %v6487_v59, %v6189_v61 }
0x2540   : > { %v5701_v30 = vadd.f32 %v5690_v21, %v9491_v55 }
0x2542   : > { %v5704_v17 = vsel %vm788_vm2, %v5701_v30, 0.0 }
0x2543   : > { %5705 = vadd.xlane.f32.xlu1 %v5704_v17 }
0x257b   : > { %v5385_v31 = vpop.xlane.xlu0 %5384 }
0x257c   : > { %v5390_v32 = vmul.f32 0.015625, %v5385_v31 }
0x257e   : > { %v5393_v35 = vadd.f32 1e-05, %v5390_v32 }
0x2580   : > { %7678 = vrsqrt.f32 %v5393_v35 }
0x258a   : > { %v7679_v19 = vpop.eup %7678 }
0x258b   : > { %v5399_v36 = vmul.f32 %v7679_v19, %v5375_v51 }
0x258c   : > { %v5388_v60 = vpop.xlane.xlu0 %5387 }
0x258d   : > { %v5391_v16 = vmul.f32 0.015625, %v5388_v60  ;;  %v5406_v41 = vmul.f32 %v9564_v28, %v5399_v36 }
0x258f   : > { %v5394_v38 = vadd.f32 1e-05, %v5391_v16  ;;  %v5413_v12 = vadd.f32 %v9569_v37, %v5406_v41 }
0x2591   : > { %7680 = vrsqrt.f32 %v5394_v38  ;;  %6149 = vmatmul.mubr.msk.f32.gmra.mrb[110].mxu1 %vm681_vm0, %v5413_v12 }
0x2592   : > { %5530 = vmatprep.mubr.f32.mxu1 %v7709_v8 }
0x259b   : > { %v7681_v55 = vpop.eup %7680 }
0x259c   : > { %v5400_v14 = vmul.f32 %v7681_v55, %v5376_v6 }
0x259e   : > { %v5407_v43 = vmul.f32 %v9564_v28, %v5400_v14  ;;  %v5720_v28 = vld [vmem:[%s9783_s20 + $0x8] sm:$0xff] }
0x25a0   : > { %v5414_v46 = vadd.f32 %v9569_v37, %v5407_v43  ;;  %v7306_v37 = vpack.c.bf16 %v5720_v28, %v5719_v15 }
0x25a2   : > { %6150 = vmatmul.mubr.msk.f32.gmra.mrb[112].mxu1 %vm681_vm0, %v5414_v46 }
0x25a3   : > { %6954 = vmatprep.mubr.msk.f32.mxu1 %vm7711_vm3, %v7709_v8  ;;  %7307 = vmatpush3.bf16.msra.mxu1 %v7306_v37  ;;  %v5721_v8 = vld [vmem:[%s9783_s20 + $0x10] sm:$0xff] }
0x25a4   : > { %7308 = vmatprep.subr.bf16.mxu1 %v7708_v3  ;;  %v7309_v48 = vpack.c.bf16 %v5722_v56, %v5721_v8 }
0x25a7   : > { %7310 = vmatpush3.bf16.msra.mxu1 %v7309_v48 }
0x25a8   : > { %7311 = vmatprep.subr.bf16.mxu1 %v7708_v3 }
0x25ab   : > { %7313 = vmatpush3.bf16.msra.mxu1 %v7312_v2 }
0x25ac   : > { %7314 = vmatprep.subr.bf16.mxu1 %v7708_v3 }
0x25af   : > { %7316 = vmatpush3.bf16.msra.mxu1 %v7315_v4 }
0x25d0   : > { %v5706_v62 = vpop.xlane.xlu1 %5705 }
0x25d1   : > { %v5707_v53 = vmul.f32 0.015625, %v5706_v62 }
0x25d3   : > { %v5708_v52 = vsub.f32 %v5701_v30, %v5707_v53 }
0x25d5   : > { %v5709_v1 = vmul.f32 %v5708_v52, %v5708_v52 }
0x25d7   : > { %v5710_v34 = vsel %vm788_vm2, %v5709_v1, 0.0 }
0x25d8   : > { %5711 = vadd.xlane.f32.xlu0 %v5710_v34 }
0x2664   : > { %v5526_v44 = vpop.f32.mrb[110].mxu1 }
0x2665   : > { %v5527_v7 = vadd.f32 %v5526_v44, %v9687_v47  ;;  %v5528_v5 = vpop.f32.mrb[111].mxu1  ;;  %v5712_v40 = vpop.xlane.xlu0 %5711 }
0x2666   : > { %v5529_v9 = vadd.f32 %v5528_v5, %v9690_v50  ;;  %v5713_v11 = vmul.f32 0.015625, %v5712_v40 }
0x2667   : > { %v6153_v26 = vmul.f32 -1.702, %v5527_v7 }
0x2668   : > { %v6154_v3 = vmul.f32 -1.702, %v5529_v9  ;;  %v5714_v39 = vadd.f32 1e-05, %v5713_v11 }
0x2669   : > { %v5553_v33 = vmul.f32 1.442695, %v6153_v26 }
0x266a   : > { %v5555_v0 = vmul.f32 1.442695, %v6154_v3  ;;  %7682 = vrsqrt.f32 %v5714_v39 }
0x266b   : > { %7684 = vpow2.f32 %v5553_v33 }
0x266c   : > { %7686 = vpow2.f32 %v5555_v0 }
0x2674   : > { %v7683_v27 = vpop.eup %7682 }
0x2675   : > { %v7685_v45 = vpop.eup %7684  ;;  %v5716_v54 = vmul.f32 %v7683_v27, %v5708_v52  ;;  %v5532_v20 = vpop.f32.mrb[112].mxu1 }
0x2676   : > { %v7687_v51 = vpop.eup %7686  ;;  %v5563_v23 = vadd.f32 1.0, %v7685_v45  ;;  %v5533_v25 = vadd.f32 %v5532_v20, %v9687_v47  ;;  %v5534_v13 = vpop.f32.mrb[113].mxu1 }
0x2677   : > { %v5564_v6 = vadd.f32 1.0, %v7687_v51  ;;  %v5717_v10 = vmul.f32 %v5716_v54, %v5702_v18  ;;  %v5535_v22 = vadd.f32 %v5534_v13, %v9690_v50 }
0x2678   : > { %7688 = vrcp.f32 %v5563_v23  ;;  %v6155_v58 = vmul.f32 -1.702, %v5533_v25 }
0x2679   : > { %7690 = vrcp.f32 %v5564_v6  ;;  %v5718_v61 = vadd.f32 %v5717_v10, %v5703_v24  ;;  %v6156_v29 = vmul.f32 -1.702, %v5535_v22 }
0x267a   : > { %v5557_v59 = vmul.f32 1.442695, %v6155_v58 }
0x267b   : > { %v5559_v21 = vmul.f32 1.442695, %v6156_v29  ;;  %6955 = vmatmul.mubr.msk.f32.vlgmr.msra.gmra.mrb[114].mxu1 %vm681_vm0, %v5718_v61 }
0x267c   : > { %7692 = vpow2.f32 %v5557_v59 }
0x267d   : > { %7694 = vpow2.f32 %v5559_v21 }
0x2682   : > { %v7689_v30 = vpop.eup %7688 }
0x2683   : > { %v7691_v17 = vpop.eup %7690  ;;  %v5581_v47 = vmul.f32 %v7689_v30, %v5527_v7 }
0x2684   : > { %v5582_v31 = vmul.f32 %v7691_v17, %v5529_v9 }
0x2686   : > { %v7693_v32 = vpop.eup %7692  ;;  %5692 = vmatprep.mubr.f32.mxu0 %v5582_v31 }
0x2687   : > { %v7695_v35 = vpop.eup %7694  ;;  %v5565_v50 = vadd.f32 1.0, %v7693_v32  ;;  %5693 = vmatmul.mubr.f32.gmra.mrb[102].mxu0 %v5581_v47 }
0x2688   : > { %v5566_v19 = vadd.f32 1.0, %v7695_v35 }
0x2689   : > { %7696 = vrcp.f32 %v5565_v50 }
0x268a   : > { %7698 = vrcp.f32 %v5566_v19 }
0x2693   : > { %v7697_v36 = vpop.eup %7696 }
0x2694   : > { %v7699_v60 = vpop.eup %7698  ;;  %v5583_v41 = vmul.f32 %v7697_v36, %v5533_v25 }
0x2695   : > { %v5584_v16 = vmul.f32 %v7699_v60, %v5535_v22 }
0x2697   : > { %5696 = vmatprep.mubr.f32.mxu0 %v5584_v16 }
0x2698   : > { %5697 = vmatmul.mubr.f32.gmra.mrb[104].mxu0 %v5583_v41 }
0x274e   : > { %v5796_v38 = vpop.f32.mrb[114].mxu1 }
0x274f   : > { %5800 = vst.msk [vmem:[%s652_s5] sm:$0x1] %vm788_vm2, %v5796_v38  ;;  %v6956_v12 = vpop.f32.mrb[115].mxu1 }
0x275a   : > { %v6488_v55 = vpop.f32.mrb[102].mxu0 }
0x275b   : > { %v6489_v14 = vpop.f32.mrb[103].mxu0 }
0x276b   : > { %v6491_v43 = vpop.f32.mrb[104].mxu0 }
0x276c   : > { %v6492_v46 = vpop.f32.mrb[105].mxu0 }
0x276d PF: > { %s9833_s0 = sld [smem:[#allocation2_spill]] }
0x2773   : > { %s31_s2 = sadd.s32 1, %s9833_s0  }
0x2774   : > { %p28_p4 = scmp.ge.s32.totalorder %s31_s2, 4  }
0x2776   :  { %30 = sbr.rel (!%p28_p4) target bundleno = 9 (0x9), region = 146 }

</bundles_post_ra>
